<compile_context>
chip_gen: v7x
topology: tpu7x:2x2x1
jax: 0.10.0
libtpu: 0.0.40
codegen_flags: <defaults>
</compile_context>

<pallas_src>
import functools

import jax
import jax.numpy as jnp
from jax.experimental import pallas as pl
from jax.experimental.pallas import tpu as pltpu


_LANE = 128                 # lane width: pad feature dims up to this
_ROW_ALIGN = 256            # pad node count so row tiles are always aligned
_SINGLE_PASS_MAX_N = 4096   # below this, collapse the reduction axis (tk = N)


def _round_up(x, m):
    return ((x + m - 1) // m) * m


def _vmem_limit_bytes():
    """Generation-aware VMEM limit: ~80% of physical capacity."""
    default = 48 * 1024 * 1024
    try:
        cap = getattr(pltpu.get_tpu_info(), "vmem_capacity_bytes", None)
        if cap:
            return int(cap * 0.8)
    except Exception:
        pass
    return default


def _pick_row_tile(n):
    """Destination-row tile; prefer >=2 tiles so the parallel axis can split cores."""
    for t in (512, 256, 128):
        if n % t == 0 and n // t >= 2:
            return t
    for t in (512, 256, 128, 64, 32, 16, 8):
        if n % t == 0:
            return t
    return n


def _pick_col_tile(n):
    """Source-node (reduction) tile; collapse to the full dim for small/medium N."""
    if n <= _SINGLE_PASS_MAX_N:
        return n
    for t in (2048, 1024, 512, 256):
        if n % t == 0:
            return t
    return n


# ---------------------------------------------------------------------------
# Fused SAGE layer kernels:  H = (1/deg) * (A @ (X @ W_l')) + X @ W_r' + b'
# ---------------------------------------------------------------------------
def _sage_kernel_single(a_ref, x_src_ref, x_dst_ref, wl_ref, wr_ref,
                        b_ref, invdeg_ref, o_ref, *, apply_relu: bool):
    """Single-pass variant: the whole source dimension fits in one k-tile."""
    # On-the-fly projection of (resident) source features: Z_l = X @ W_l'.
    zl = jnp.dot(x_src_ref[...], wl_ref[...],
                 preferred_element_type=jnp.float32).astype(jnp.bfloat16)
    # int8 0/1 counts -> bf16 on the VPU (free filler under a DMA-bound stream).
    # TODO(synk): on v7x this could be stored as fp8 (0/1 exact) and fed to the
    #             MXU directly to skip the upconvert.
    a = a_ref[...].astype(jnp.bfloat16)
    acc = jnp.dot(a, zl, preferred_element_type=jnp.float32)
    # Root term for the destination rows: Z_r = X_i @ W_r'.
    zr = jnp.dot(x_dst_ref[...], wr_ref[...], preferred_element_type=jnp.float32)
    h = acc * invdeg_ref[...] + zr + b_ref[...]   # mean aggr + root + folded bias
    if apply_relu:
        h = jnp.maximum(h, 0.0)
    o_ref[...] = h.astype(o_ref.dtype)            # single cast at the store


def _sage_kernel_multi(a_ref, x_src_ref, x_dst_ref, wl_ref, wr_ref,
                       b_ref, invdeg_ref, o_ref, acc_ref, *, apply_relu: bool):
    """Tiled-reduction variant for large graphs (grid = (N/TM, N/TK))."""
    k = pl.program_id(1)

    @pl.when(k == 0)
    def _():
        acc_ref[...] = jnp.zeros_like(acc_ref)

    # Project the current source tile on the fly (W_l' is VMEM-resident).
    zl = jnp.dot(x_src_ref[...], wl_ref[...],
                 preferred_element_type=jnp.float32).astype(jnp.bfloat16)
    a = a_ref[...].astype(jnp.bfloat16)           # int8 -> bf16 on the VPU
    acc_ref[...] += jnp.dot(a, zl, preferred_element_type=jnp.float32)

    @pl.when(k == pl.num_programs(1) - 1)
    def _():
        zr = jnp.dot(x_dst_ref[...], wr_ref[...],
                     preferred_element_type=jnp.float32)
        h = acc_ref[...] * invdeg_ref[...] + zr + b_ref[...]
        if apply_relu:
            h = jnp.maximum(h, 0.0)
        o_ref[...] = h.astype(o_ref.dtype)


def sage_layer(a, inv_deg, x, w_l, w_r, bias, *, apply_relu, out_dtype):
    """One fused SAGEConv(+folded BN)(+ReLU) layer.

    a:       (N, N)      int8 edge counts (0/1, multi-edges counted)
    inv_deg: (N, 1)      f32 per-destination 1/deg (0-deg rows use 1)
    x:       (N, F_in_p) bf16 node features (lane-padded)
    w_l/w_r: (F_in_p, Fp) bf16 (BN folded, lane-padded)
    bias:    (1, Fp)     f32 (BN folded, lane-padded)
    """
    n = a.shape[0]
    f_in_p = x.shape[1]
    fp = w_l.shape[1]
    tm = _pick_row_tile(n)
    tk = _pick_col_tile(n)
    vmem_limit = _vmem_limit_bytes()

    if tk == n:
        # Single pass over sources: no accumulator scratch, grid = (N/TM,).
        kernel = functools.partial(_sage_kernel_single, apply_relu=apply_relu)
        return pl.pallas_call(
            kernel,
            out_shape=jax.ShapeDtypeStruct((n, fp), out_dtype),
            grid=(n // tm,),
            in_specs=[
                pl.BlockSpec((tm, n), lambda i: (i, 0)),        # A row stripe (int8)
                pl.BlockSpec((n, f_in_p), lambda i: (0, 0)),    # X (resident sources)
                pl.BlockSpec((tm, f_in_p), lambda i: (i, 0)),   # X dst tile (root)
                pl.BlockSpec((f_in_p, fp), lambda i: (0, 0)),   # W_l' (resident)
                pl.BlockSpec((f_in_p, fp), lambda i: (0, 0)),   # W_r' (resident)
                pl.BlockSpec((1, fp), lambda i: (0, 0)),        # folded bias
                pl.BlockSpec((tm, 1), lambda i: (i, 0)),        # 1/deg
            ],
            out_specs=pl.BlockSpec((tm, fp), lambda i: (i, 0)),
            compiler_params=pltpu.CompilerParams(
                dimension_semantics=("parallel",),
                vmem_limit_bytes=vmem_limit),
        )(a, x, x, w_l, w_r, bias, inv_deg)

    # Large-graph path: tiled reduction over source nodes, reduction axis last.
    kernel = functools.partial(_sage_kernel_multi, apply_relu=apply_relu)
    return pl.pallas_call(
        kernel,
        out_shape=jax.ShapeDtypeStruct((n, fp), out_dtype),
        grid=(n // tm, n // tk),
        in_specs=[
            pl.BlockSpec((tm, tk), lambda i, k: (i, k)),        # A tile (int8 stream)
            pl.BlockSpec((tk, f_in_p), lambda i, k: (k, 0)),    # X source tile
            pl.BlockSpec((tm, f_in_p), lambda i, k: (i, 0)),    # X dst tile (root)
            pl.BlockSpec((f_in_p, fp), lambda i, k: (0, 0)),    # W_l' (resident)
            pl.BlockSpec((f_in_p, fp), lambda i, k: (0, 0)),    # W_r' (resident)
            pl.BlockSpec((1, fp), lambda i, k: (0, 0)),         # folded bias
            pl.BlockSpec((tm, 1), lambda i, k: (i, 0)),         # 1/deg
        ],
        out_specs=pl.BlockSpec((tm, fp), lambda i, k: (i, 0)),
        scratch_shapes=[pltpu.VMEM((tm, fp), jnp.float32)],
        compiler_params=pltpu.CompilerParams(
            dimension_semantics=("parallel", "arbitrary"),
            vmem_limit_bytes=vmem_limit),
    )(a, x, x, w_l, w_r, bias, inv_deg)


# ---------------------------------------------------------------------------
# Glue: BN folding, padding, adjacency construction, multi-layer forward
# ---------------------------------------------------------------------------
def _prepare_layer(p, f_in_padded, apply_bn_relu, bn_eps):
    """Fold eval-mode BatchNorm into the linear weights/bias and pad to lane width."""
    wl, wr, b = p["wl"], p["wr"], p["b"]
    f_in, f_out = wl.shape
    if apply_bn_relu:
        scale = p["gamma"] / jnp.sqrt(p["rvar"] + bn_eps)       # (1, F_out)
        shift = p["beta"] - p["rmean"] * scale
        wl = wl * scale
        wr = wr * scale
        b = b * scale + shift
    fp = _round_up(f_out, _LANE)
    # Pad out-channels to lane width and in-channels to the (padded) activation
    # width; padded rows/cols are zero so they contribute nothing.
    wl = jnp.pad(wl, ((0, f_in_padded - f_in), (0, fp - f_out)))
    wr = jnp.pad(wr, ((0, f_in_padded - f_in), (0, fp - f_out)))
    b = jnp.pad(b, ((0, 0), (0, fp - f_out)))
    return (wl.astype(jnp.bfloat16), wr.astype(jnp.bfloat16),
            b.astype(jnp.float32), fp)


def build_adjacency_and_invdeg(edge_index, num_nodes_padded):
    """Dense int8 edge-count adjacency + f32 per-destination 1/deg vector."""
    src, dst = edge_index[0], edge_index[1]
    # TODO(synk): build directly in int8 / CSR (scalar-prefetch gather kernel)
    #             for large sparse graphs; the int32 scatter is kept here for
    #             robustness at small dense sizes.
    counts = jnp.zeros((num_nodes_padded, num_nodes_padded), jnp.int32)
    counts = counts.at[dst, src].add(1)          # multi-edges counted (scatter-mean)
    a = counts.astype(jnp.int8)                  # compact 0/1 (small counts) storage
    deg = jnp.zeros((num_nodes_padded,), jnp.float32).at[dst].add(1.0)
    inv_deg = (1.0 / jnp.maximum(deg, 1.0)).reshape(-1, 1)   # isolated nodes -> 0 aggr
    return a, inv_deg


def init_graphsage_params(key, in_channels, hidden_channels, out_channels,
                          num_layers=2):
    """Deterministic synthetic parameters mirroring GraphSAGE.__init__ shapes."""
    dims = [in_channels] + [hidden_channels] * (num_layers - 1) + [out_channels]
    params = []
    for layer in range(num_layers):
        f_in, f_out = dims[layer], dims[layer + 1]
        key, k1, k2, k3 = jax.random.split(key, 4)
        scale = 1.0 / jnp.sqrt(jnp.float32(f_in))
        params.append(dict(
            # Linear weights stored transposed: (F_in, F_out)
            wl=jax.random.uniform(k1, (f_in, f_out), jnp.float32, -scale, scale),
            wr=jax.random.uniform(k2, (f_in, f_out), jnp.float32, -scale, scale),
            b=jax.random.uniform(k3, (1, f_out), jnp.float32, -scale, scale),
            # BatchNorm1d default init / running stats (eval mode)
            gamma=jnp.ones((1, f_out), jnp.float32),
            beta=jnp.zeros((1, f_out), jnp.float32),
            rmean=jnp.zeros((1, f_out), jnp.float32),
            rvar=jnp.ones((1, f_out), jnp.float32),
        ))
    return params


def graphsage_forward(params, x, edge_index, *, bn_eps=1e-5):
    n, f_in = x.shape
    out_channels = params[-1]["wl"].shape[1]
    num_layers = len(params)

    # Pad node count so row/col tiles are always aligned and >= 2 row tiles exist.
    n_pad = _round_up(n, _ROW_ALIGN)
    a, inv_deg = build_adjacency_and_invdeg(edge_index, n_pad)

    # Lane-pad features once; bf16 operands for the MXU.
    f_in_p = _round_up(f_in, _LANE)
    h = jnp.pad(x, ((0, n_pad - n), (0, f_in_p - f_in))).astype(jnp.bfloat16)

    for i, p in enumerate(params):
        apply_bn_relu = i < num_layers - 1
        w_l, w_r, b_pad, fp = _prepare_layer(p, h.shape[1], apply_bn_relu, bn_eps)
        h = sage_layer(a, inv_deg, h, w_l, w_r, b_pad,
                       apply_relu=apply_bn_relu,
                       out_dtype=jnp.bfloat16 if apply_bn_relu else jnp.float32)
    return h[:n, :out_channels]                  # drop row/lane padding


# ---------------------------------------------------------------------------
if __name__ == "__main__":
    key = jax.random.PRNGKey(0)

    num_nodes = 1024
    in_channels, hidden_channels, out_channels = 16, 32, 8
    num_layers = 2
    num_edges = 4096

    key, kx, ke_src, ke_dst, kp = jax.random.split(key, 5)
    x = jax.random.normal(kx, (num_nodes, in_channels), jnp.float32)
    edge_index = jnp.stack([
        jax.random.randint(ke_src, (num_edges,), 0, num_nodes),
        jax.random.randint(ke_dst, (num_edges,), 0, num_nodes),
    ], axis=0)  # [2, E]

    params = init_graphsage_params(kp, in_channels, hidden_channels,
                                   out_channels, num_layers)

    fwd = jax.jit(graphsage_forward)
    out = fwd(params, x, edge_index)
    jax.block_until_ready(out)
    assert out.shape == (num_nodes, out_channels)
    print("KERNEL_OK")
</pallas_src>

<mosaic_0001>
module attributes {stable_mosaic.version = 11 : i64} {
  func.func private @main(%arg0: i32) attributes {dimension_semantics = [#tpu.dimension_semantics<core_parallel>], iteration_bounds = array<i64: 2>, tpu.core_type = #tpu.core_type<sc_scalar_subcore>, window_params = []} {
    return
  }
}

module attributes {stable_mosaic.version = 11 : i64} {
  func.func private @main(%arg0: i32) attributes {dimension_semantics = [#tpu.dimension_semantics<core_parallel>], iteration_bounds = array<i64: 2>, tpu.core_type = #tpu.core_type<sc_scalar_subcore>, window_params = []} {
    return
  }
}

module attributes {stable_mosaic.version = 11 : i64} {
  func.func @_sage_kernel_single(%arg0: i32, %arg1: memref<512x1024xi8, #tpu.memory_space<vmem>>, %arg2: memref<1024x128xbf16, #tpu.memory_space<vmem>>, %arg3: memref<512x128xbf16, #tpu.memory_space<vmem>>, %arg4: memref<128x128xbf16, #tpu.memory_space<vmem>>, %arg5: memref<128x128xbf16, #tpu.memory_space<vmem>>, %arg6: memref<1x128xf32, #tpu.memory_space<vmem>>, %arg7: memref<512x1xf32, #tpu.memory_space<vmem>>, %arg8: memref<512x128xbf16, #tpu.memory_space<vmem>>) attributes {dimension_semantics = [#tpu.dimension_semantics<parallel>], iteration_bounds = array<i64: 2>, scalar_prefetch = 0 : i64, scratch_operands = 0 : i64, tpu.core_type = #tpu.core_type<tc>, window_params = [{transform_indices = @transform_0, window_bounds = array<i64: 512, 1024>}, {pipeline_mode = #tpu.pipeline_mode<synchronous>, transform_indices = @transform_1, window_bounds = array<i64: 1024, 128>}, {transform_indices = @transform_2, window_bounds = array<i64: 512, 128>}, {pipeline_mode = #tpu.pipeline_mode<synchronous>, transform_indices = @transform_3, window_bounds = array<i64: 128, 128>}, {pipeline_mode = #tpu.pipeline_mode<synchronous>, transform_indices = @transform_4, window_bounds = array<i64: 128, 128>}, {pipeline_mode = #tpu.pipeline_mode<synchronous>, transform_indices = @transform_5, window_bounds = array<i64: 1, 128>}, {transform_indices = @transform_6, window_bounds = array<i64: 512, 1>}, {transform_indices = @transform_7, window_bounds = array<i64: 512, 128>}]} {
    %c0 = arith.constant 0 : index
    %c0_0 = arith.constant 0 : index
    %0 = vector.load %arg2[%c0, %c0_0] : memref<1024x128xbf16, #tpu.memory_space<vmem>>, vector<1024x128xbf16>
    %c0_1 = arith.constant 0 : index
    %c0_2 = arith.constant 0 : index
    %1 = vector.load %arg4[%c0_1, %c0_2] : memref<128x128xbf16, #tpu.memory_space<vmem>>, vector<128x128xbf16>
    %cst = arith.constant dense<0.000000e+00> : vector<1024x128xf32>
    %2 = tpu.matmul %0, %1, %cst {dimension_numbers = #tpu.dot_dimension_numbers<[1], [0], [0], [1], [0, 0, 1, 1], [], []>} : vector<1024x128xbf16>, vector<128x128xbf16>, vector<1024x128xf32> -> vector<1024x128xf32>
    %3 = arith.truncf %2 : vector<1024x128xf32> to vector<1024x128xbf16>
    %c0_3 = arith.constant 0 : index
    %c0_4 = arith.constant 0 : index
    %4 = vector.load %arg1[%c0_3, %c0_4] : memref<512x1024xi8, #tpu.memory_space<vmem>>, vector<512x1024xi8>
    %5 = arith.sitofp %4 : vector<512x1024xi8> to vector<512x1024xbf16>
    %cst_5 = arith.constant dense<0.000000e+00> : vector<512x128xf32>
    %6 = tpu.matmul %5, %3, %cst_5 {dimension_numbers = #tpu.dot_dimension_numbers<[1], [0], [0], [1], [0, 0, 1, 1], [], []>} : vector<512x1024xbf16>, vector<1024x128xbf16>, vector<512x128xf32> -> vector<512x128xf32>
    %c0_6 = arith.constant 0 : index
    %c0_7 = arith.constant 0 : index
    %7 = vector.load %arg3[%c0_6, %c0_7] : memref<512x128xbf16, #tpu.memory_space<vmem>>, vector<512x128xbf16>
    %c0_8 = arith.constant 0 : index
    %c0_9 = arith.constant 0 : index
    %8 = vector.load %arg5[%c0_8, %c0_9] : memref<128x128xbf16, #tpu.memory_space<vmem>>, vector<128x128xbf16>
    %cst_10 = arith.constant dense<0.000000e+00> : vector<512x128xf32>
    %9 = tpu.matmul %7, %8, %cst_10 {dimension_numbers = #tpu.dot_dimension_numbers<[1], [0], [0], [1], [0, 0, 1, 1], [], []>} : vector<512x128xbf16>, vector<128x128xbf16>, vector<512x128xf32> -> vector<512x128xf32>
    %c0_11 = arith.constant 0 : index
    %c0_12 = arith.constant 0 : index
    %10 = vector.load %arg7[%c0_11, %c0_12] : memref<512x1xf32, #tpu.memory_space<vmem>>, vector<512x1xf32>
    %11 = vector.broadcast %10 : vector<512x1xf32> to vector<512x128xf32>
    %12 = arith.mulf %6, %11 : vector<512x128xf32>
    %13 = arith.addf %12, %9 : vector<512x128xf32>
    %c0_13 = arith.constant 0 : index
    %c0_14 = arith.constant 0 : index
    %14 = vector.load %arg6[%c0_13, %c0_14] : memref<1x128xf32, #tpu.memory_space<vmem>>, vector<1x128xf32>
    %15 = vector.broadcast %14 : vector<1x128xf32> to vector<512x128xf32>
    %16 = arith.addf %13, %15 : vector<512x128xf32>
    %cst_15 = arith.constant 0.000000e+00 : f32
    %17 = vector.broadcast %cst_15 : f32 to vector<512x128xf32>
    %18 = arith.maximumf %16, %17 : vector<512x128xf32>
    %19 = arith.truncf %18 : vector<512x128xf32> to vector<512x128xbf16>
    %c0_16 = arith.constant 0 : index
    %c0_17 = arith.constant 0 : index
    %20 = vector.load %arg8[%c0_16, %c0_17] : memref<512x128xbf16, #tpu.memory_space<vmem>>, vector<512x128xbf16>
    tpu.vector_store %arg8[%c0_16, %c0_17], %19 {strides = array<i32>} : memref<512x128xbf16, #tpu.memory_space<vmem>>, vector<512x128xbf16>,
    return
  }
  func.func @transform_0(%arg0: i32) -> (i32, i32) {
    %c0_i32 = arith.constant 0 : i32
    %c0_i32_0 = arith.constant 0 : i32
    return %arg0, %c0_i32 : i32, i32
  }
  func.func @transform_1(%arg0: i32) -> (i32, i32) {
    %c0_i32 = arith.constant 0 : i32
    %c0_i32_0 = arith.constant 0 : i32
    %c0_i32_1 = arith.constant 0 : i32
    return %c0_i32, %c0_i32_0 : i32, i32
  }
  func.func @transform_2(%arg0: i32) -> (i32, i32) {
    %c0_i32 = arith.constant 0 : i32
    %c0_i32_0 = arith.constant 0 : i32
    return %arg0, %c0_i32 : i32, i32
  }
  func.func @transform_3(%arg0: i32) -> (i32, i32) {
    %c0_i32 = arith.constant 0 : i32
    %c0_i32_0 = arith.constant 0 : i32
    %c0_i32_1 = arith.constant 0 : i32
    return %c0_i32, %c0_i32_0 : i32, i32
  }
  func.func @transform_4(%arg0: i32) -> (i32, i32) {
    %c0_i32 = arith.constant 0 : i32
    %c0_i32_0 = arith.constant 0 : i32
    %c0_i32_1 = arith.constant 0 : i32
    return %c0_i32, %c0_i32_0 : i32, i32
  }
  func.func @transform_5(%arg0: i32) -> (i32, i32) {
    %c0_i32 = arith.constant 0 : i32
    %c0_i32_0 = arith.constant 0 : i32
    %c0_i32_1 = arith.constant 0 : i32
    return %c0_i32, %c0_i32_0 : i32, i32
  }
  func.func @transform_6(%arg0: i32) -> (i32, i32) {
    %c0_i32 = arith.constant 0 : i32
    %c0_i32_0 = arith.constant 0 : i32
    return %arg0, %c0_i32 : i32, i32
  }
  func.func @transform_7(%arg0: i32) -> (i32, i32) {
    %c0_i32 = arith.constant 0 : i32
    %c0_i32_0 = arith.constant 0 : i32
    return %arg0, %c0_i32 : i32, i32
  }
}

module attributes {stable_mosaic.version = 11 : i64} {
  func.func @_sage_kernel_single(%arg0: i32, %arg1: memref<512x1024xi8, #tpu.memory_space<vmem>>, %arg2: memref<1024x128xbf16, #tpu.memory_space<vmem>>, %arg3: memref<512x128xbf16, #tpu.memory_space<vmem>>, %arg4: memref<128x128xbf16, #tpu.memory_space<vmem>>, %arg5: memref<128x128xbf16, #tpu.memory_space<vmem>>, %arg6: memref<1x128xf32, #tpu.memory_space<vmem>>, %arg7: memref<512x1xf32, #tpu.memory_space<vmem>>, %arg8: memref<512x128xf32, #tpu.memory_space<vmem>>) attributes {dimension_semantics = [#tpu.dimension_semantics<parallel>], iteration_bounds = array<i64: 2>, scalar_prefetch = 0 : i64, scratch_operands = 0 : i64, tpu.core_type = #tpu.core_type<tc>, window_params = [{transform_indices = @transform_0, window_bounds = array<i64: 512, 1024>}, {pipeline_mode = #tpu.pipeline_mode<synchronous>, transform_indices = @transform_1, window_bounds = array<i64: 1024, 128>}, {transform_indices = @transform_2, window_bounds = array<i64: 512, 128>}, {pipeline_mode = #tpu.pipeline_mode<synchronous>, transform_indices = @transform_3, window_bounds = array<i64: 128, 128>}, {pipeline_mode = #tpu.pipeline_mode<synchronous>, transform_indices = @transform_4, window_bounds = array<i64: 128, 128>}, {pipeline_mode = #tpu.pipeline_mode<synchronous>, transform_indices = @transform_5, window_bounds = array<i64: 1, 128>}, {transform_indices = @transform_6, window_bounds = array<i64: 512, 1>}, {transform_indices = @transform_7, window_bounds = array<i64: 512, 128>}]} {
    %c0 = arith.constant 0 : index
    %c0_0 = arith.constant 0 : index
    %0 = vector.load %arg2[%c0, %c0_0] : memref<1024x128xbf16, #tpu.memory_space<vmem>>, vector<1024x128xbf16>
    %c0_1 = arith.constant 0 : index
    %c0_2 = arith.constant 0 : index
    %1 = vector.load %arg4[%c0_1, %c0_2] : memref<128x128xbf16, #tpu.memory_space<vmem>>, vector<128x128xbf16>
    %cst = arith.constant dense<0.000000e+00> : vector<1024x128xf32>
    %2 = tpu.matmul %0, %1, %cst {dimension_numbers = #tpu.dot_dimension_numbers<[1], [0], [0], [1], [0, 0, 1, 1], [], []>} : vector<1024x128xbf16>, vector<128x128xbf16>, vector<1024x128xf32> -> vector<1024x128xf32>
    %3 = arith.truncf %2 : vector<1024x128xf32> to vector<1024x128xbf16>
    %c0_3 = arith.constant 0 : index
    %c0_4 = arith.constant 0 : index
    %4 = vector.load %arg1[%c0_3, %c0_4] : memref<512x1024xi8, #tpu.memory_space<vmem>>, vector<512x1024xi8>
    %5 = arith.sitofp %4 : vector<512x1024xi8> to vector<512x1024xbf16>
    %cst_5 = arith.constant dense<0.000000e+00> : vector<512x128xf32>
    %6 = tpu.matmul %5, %3, %cst_5 {dimension_numbers = #tpu.dot_dimension_numbers<[1], [0], [0], [1], [0, 0, 1, 1], [], []>} : vector<512x1024xbf16>, vector<1024x128xbf16>, vector<512x128xf32> -> vector<512x128xf32>
    %c0_6 = arith.constant 0 : index
    %c0_7 = arith.constant 0 : index
    %7 = vector.load %arg3[%c0_6, %c0_7] : memref<512x128xbf16, #tpu.memory_space<vmem>>, vector<512x128xbf16>
    %c0_8 = arith.constant 0 : index
    %c0_9 = arith.constant 0 : index
    %8 = vector.load %arg5[%c0_8, %c0_9] : memref<128x128xbf16, #tpu.memory_space<vmem>>, vector<128x128xbf16>
    %cst_10 = arith.constant dense<0.000000e+00> : vector<512x128xf32>
    %9 = tpu.matmul %7, %8, %cst_10 {dimension_numbers = #tpu.dot_dimension_numbers<[1], [0], [0], [1], [0, 0, 1, 1], [], []>} : vector<512x128xbf16>, vector<128x128xbf16>, vector<512x128xf32> -> vector<512x128xf32>
    %c0_11 = arith.constant 0 : index
    %c0_12 = arith.constant 0 : index
    %10 = vector.load %arg7[%c0_11, %c0_12] : memref<512x1xf32, #tpu.memory_space<vmem>>, vector<512x1xf32>
    %11 = vector.broadcast %10 : vector<512x1xf32> to vector<512x128xf32>
    %12 = arith.mulf %6, %11 : vector<512x128xf32>
    %13 = arith.addf %12, %9 : vector<512x128xf32>
    %c0_13 = arith.constant 0 : index
    %c0_14 = arith.constant 0 : index
    %14 = vector.load %arg6[%c0_13, %c0_14] : memref<1x128xf32, #tpu.memory_space<vmem>>, vector<1x128xf32>
    %15 = vector.broadcast %14 : vector<1x128xf32> to vector<512x128xf32>
    %16 = arith.addf %13, %15 : vector<512x128xf32>
    %c0_15 = arith.constant 0 : index
    %c0_16 = arith.constant 0 : index
    %17 = vector.load %arg8[%c0_15, %c0_16] : memref<512x128xf32, #tpu.memory_space<vmem>>, vector<512x128xf32>
    tpu.vector_store %arg8[%c0_15, %c0_16], %16 {strides = array<i32>} : memref<512x128xf32, #tpu.memory_space<vmem>>, vector<512x128xf32>,
    return
  }
  func.func @transform_0(%arg0: i32) -> (i32, i32) {
    %c0_i32 = arith.constant 0 : i32
    %c0_i32_0 = arith.constant 0 : i32
    return %arg0, %c0_i32 : i32, i32
  }
  func.func @transform_1(%arg0: i32) -> (i32, i32) {
    %c0_i32 = arith.constant 0 : i32
    %c0_i32_0 = arith.constant 0 : i32
    %c0_i32_1 = arith.constant 0 : i32
    return %c0_i32, %c0_i32_0 : i32, i32
  }
  func.func @transform_2(%arg0: i32) -> (i32, i32) {
    %c0_i32 = arith.constant 0 : i32
    %c0_i32_0 = arith.constant 0 : i32
    return %arg0, %c0_i32 : i32, i32
  }
  func.func @transform_3(%arg0: i32) -> (i32, i32) {
    %c0_i32 = arith.constant 0 : i32
    %c0_i32_0 = arith.constant 0 : i32
    %c0_i32_1 = arith.constant 0 : i32
    return %c0_i32, %c0_i32_0 : i32, i32
  }
  func.func @transform_4(%arg0: i32) -> (i32, i32) {
    %c0_i32 = arith.constant 0 : i32
    %c0_i32_0 = arith.constant 0 : i32
    %c0_i32_1 = arith.constant 0 : i32
    return %c0_i32, %c0_i32_0 : i32, i32
  }
  func.func @transform_5(%arg0: i32) -> (i32, i32) {
    %c0_i32 = arith.constant 0 : i32
    %c0_i32_0 = arith.constant 0 : i32
    %c0_i32_1 = arith.constant 0 : i32
    return %c0_i32, %c0_i32_0 : i32, i32
  }
  func.func @transform_6(%arg0: i32) -> (i32, i32) {
    %c0_i32 = arith.constant 0 : i32
    %c0_i32_0 = arith.constant 0 : i32
    return %arg0, %c0_i32 : i32, i32
  }
  func.func @transform_7(%arg0: i32) -> (i32, i32) {
    %c0_i32 = arith.constant 0 : i32
    %c0_i32_0 = arith.constant 0 : i32
    return %arg0, %c0_i32 : i32, i32
  }
}

</mosaic_0001>

<bundles_post_ra>
// kernel: graphsage_forward.2
= control target key start
LH: loop header
LB: loop body
LE: loop exit
PB: predicated region body
PF: predicated region fallthrough
CT: control target
= control target key end

     0   :  { %s6021_s24 = smov 0   ;;  %s7200_s0 = inlined_call_operand.vmem [shape: s8[1024,1024], index: 0, kind: input, shape index: {}]   ;;  %s7201_s1 = inlined_call_operand.vmem [shape: bf16[1024,128], index: 1, kind: input, shape index: {}, may-alias: {1,2}]   ;;  %s7202_s2 = inlined_call_operand.vmem [shape: bf16[1024,128], index: 2, kind: input, shape index: {}, may-alias: {1,2}]   ;;  %s7203_s3 = inlined_call_operand.vmem [shape: bf16[128,128], index: 3, kind: input, shape index: {}]   ;;  %s7204_s4 = inlined_call_operand.vmem [shape: bf16[128,128], index: 4, kind: input, shape index: {}]   ;;  %s7205_s5 = inlined_call_operand.vmem [shape: f32[1,128], index: 5, kind: input, shape index: {}]   ;;  %s7206_s6 = inlined_call_operand.vmem [shape: f32[1024,1], index: 6, kind: input, shape index: {}]   ;;  %s7207_s7 = inlined_call_operand.vmem [shape: bf16[1024,128], index: 7, kind: output, shape index: {}]  }
   0x1 LB: > { %s4711_s25 = sadd.s32 4294967295, %s5978_s24   ;;  %p4715_p0 = scmp.ge.s32.totalorder %s5978_s24, 1  ;;  %s5978_s24 = sphi %s6021_s24, %s17_s24  }
   0x2   : > { %p261_p1 = scmp.lt.s32.totalorder %s5978_s24, 3 }
   0x4   : > { %p262_p2 = pnand %p4715_p0, %p261_p1 }
   0x6   : > { %265 = sbr.rel (%p262_p2) target bundleno = 1297 (0x511), region = 48 }
   0xd   : > { %v5859_v0 = vld [vmem:[%s7203_s3] sm:$0xff]   ;;  %v5860_v1 = vld [vmem:[%s7203_s3 + $0x8] sm:$0xff]   ;;  %v5861_v2 = vld [vmem:[%s7203_s3 + $0x10] sm:$0xff]   ;;  %v5980_v33 = vmov 0   ;;  %s4716_s20 = sshll.u32 %s4711_s25, 4  ;;  %s4719_s22 = sshll.u32 %s4711_s25, 6 }
   0xe   : > { %5272 = vmatprep.subr.bf16.mxu0 %v5859_v0  ;;  %v5862_v3 = vld [vmem:[%s7203_s3 + $0x18] sm:$0xff]   ;;  %v5867_v4 = vld [vmem:[%s7201_s1] sm:$0xff]   ;;  %v5864_v6 = vld [vmem:[%s7203_s3 + $0x28] sm:$0xff]   ;;  %5496 = vmatprep.subr.bf16.mxu1 %v5980_v33  ;;  %p305_p3 = scmp.lt.s32.totalorder %s4716_s20, 31  ;;  %p312_p4 = scmp.lt.s32.totalorder %s4719_s22, 127 }
   0xf   : > { %5273 = vmatpush3.bf16.msra.mxu0 %v5859_v0  ;;  %5288 = vmatprep.mubr.bf16.mxu0 %v5867_v4  ;;  %v5863_v5 = vld [vmem:[%s7203_s3 + $0x20] sm:$0xff]   ;;  %v5865_v7 = vld [vmem:[%s7203_s3 + $0x30] sm:$0xff]   ;;  %v5866_v8 = vld [vmem:[%s7203_s3 + $0x38] sm:$0xff]  }
  0x10   : > { %5274 = vmatprep.subr.bf16.mxu0 %v5860_v1  ;;  %v5868_v9 = vld [vmem:[%s7201_s1 + $0x8] sm:$0xff]   ;;  %v5869_v10 = vld [vmem:[%s7201_s1 + $0x10] sm:$0xff]   ;;  %v5870_v11 = vld [vmem:[%s7201_s1 + $0x18] sm:$0xff]   ;;  %5857 = vset.pattern.permute.xlu0 %v5980_v33  ;;  %s7315_s20 = smov (!%p305_p3, %s4716_s20), 31  ;;  %s7317_s22 = smov (!%p312_p4, %s4719_s22), 127 }
  0x11   : > { %v5871_v12 = vld [vmem:[%s7201_s1 + $0x20] sm:$0xff]   ;;  %v5872_v13 = vld [vmem:[%s7201_s1 + $0x28] sm:$0xff]   ;;  %v5873_v14 = vld [vmem:[%s7201_s1 + $0x30] sm:$0xff]   ;;  %5858 = vset.pattern.permute.xlu1 %v5980_v33  ;;  %s4904_s27 = sshll.u32 %s7315_s20, 6  ;;  %s4720_s23 = sshll.u32 %s7317_s22, 2 }
  0x12   : > { %v5874_v15 = vld [vmem:[%s7201_s1 + $0x38] sm:$0xff]   ;;  %v5875_v16 = vld [vmem:[%s7201_s1 + $0x40] sm:$0xff]   ;;  %v5876_v17 = vld [vmem:[%s7201_s1 + $0x48] sm:$0xff]   ;;  %s6227_s30 = scalar_lea.vmem %s7200_s0, %s4904_s27  ;;  %s6590_s27 = scalar_lea.vmem %s7202_s2, %s4720_s23 }
  0x13   : > { %5275 = vmatpush3.bf16.msra.mxu0 %v5860_v1  ;;  %v5877_v18 = vld [vmem:[%s7201_s1 + $0x50] sm:$0xff]   ;;  %v5878_v19 = vld [vmem:[%s7201_s1 + $0x58] sm:$0xff]   ;;  %v5879_v20 = vld [vmem:[%s7201_s1 + $0x60] sm:$0xff]   ;;  %s4722_s28 = sshll.u32 %s7317_s22, 3  ;;  %s6916_s14 = scalar_lea.vmem %s7207_s7, %s4720_s23 }
  0x14   : > { %5276 = vmatprep.subr.bf16.mxu0 %v5861_v2  ;;  %v5880_v21 = vld [vmem:[%s7201_s1 + $0x68] sm:$0xff]   ;;  %v5881_v22 = vld [vmem:[%s7201_s1 + $0x70] sm:$0xff]   ;;  %v5882_v23 = vld [vmem:[%s7201_s1 + $0x78] sm:$0xff]   ;;  %s6658_s9 = scalar_lea.vmem %s7206_s6, %s4722_s28 }
  0x15   : > { %v5883_v24 = vld [vmem:[%s7201_s1 + $0x80] sm:$0xff]   ;;  %v5884_v25 = vld [vmem:[%s7201_s1 + $0x88] sm:$0xff]   ;;  %v5885_v26 = vld [vmem:[%s7201_s1 + $0x90] sm:$0xff]  }
  0x16   : > { %v5886_v27 = vld [vmem:[%s7201_s1 + $0x98] sm:$0xff]   ;;  %v5887_v28 = vld [vmem:[%s7201_s1 + $0xa0] sm:$0xff]   ;;  %v5888_v29 = vld [vmem:[%s7201_s1 + $0xa8] sm:$0xff]  }
  0x17   : > { %5277 = vmatpush3.bf16.msra.mxu0 %v5861_v2  ;;  %v5889_v30 = vld [vmem:[%s7201_s1 + $0xb0] sm:$0xff]   ;;  %v5890_v31 = vld [vmem:[%s7201_s1 + $0xb8] sm:$0xff]   ;;  %v5891_v32 = vld [vmem:[%s7201_s1 + $0xc0] sm:$0xff]  }
  0x18   : > { %5278 = vmatprep.subr.bf16.mxu0 %v5862_v3  ;;  %v5892_v34 = vld [vmem:[%s7201_s1 + $0xc8] sm:$0xff]   ;;  %v5893_v35 = vld [vmem:[%s7201_s1 + $0xd0] sm:$0xff]   ;;  %v5894_v36 = vld [vmem:[%s7201_s1 + $0xd8] sm:$0xff]  }
  0x19   : > { %v5895_v37 = vld [vmem:[%s7201_s1 + $0xe0] sm:$0xff]   ;;  %v5896_v38 = vld [vmem:[%s7201_s1 + $0xe8] sm:$0xff]   ;;  %v5897_v39 = vld [vmem:[%s7201_s1 + $0xf0] sm:$0xff]  }
  0x1a   : > { %v5898_v40 = vld [vmem:[%s7201_s1 + $0xf8] sm:$0xff]   ;;  %v5899_v41 = vld [vmem:[%s7201_s1 + $0x100] sm:$0xff]   ;;  %v5900_v42 = vld [vmem:[%s7201_s1 + $0x108] sm:$0xff]  }
  0x1b   : > { %5279 = vmatpush3.bf16.msra.mxu0 %v5862_v3  ;;  %v5901_v43 = vld [vmem:[%s7201_s1 + $0x110] sm:$0xff]   ;;  %v5902_v44 = vld [vmem:[%s7201_s1 + $0x118] sm:$0xff]   ;;  %v5903_v45 = vld [vmem:[%s7201_s1 + $0x120] sm:$0xff]  }
  0x1c   : > { %5280 = vmatprep.subr.bf16.mxu0 %v5863_v5  ;;  %v5904_v46 = vld [vmem:[%s7201_s1 + $0x128] sm:$0xff]   ;;  %v5905_v47 = vld [vmem:[%s7201_s1 + $0x130] sm:$0xff]   ;;  %v5906_v48 = vld [vmem:[%s7201_s1 + $0x138] sm:$0xff]  }
  0x1d   : > { %v5907_v49 = vld [vmem:[%s7201_s1 + $0x140] sm:$0xff]   ;;  %v5908_v50 = vld [vmem:[%s7201_s1 + $0x148] sm:$0xff]   ;;  %v5909_v51 = vld [vmem:[%s7201_s1 + $0x150] sm:$0xff]  }
  0x1e   : > { %v5910_v52 = vld [vmem:[%s7201_s1 + $0x158] sm:$0xff]   ;;  %v5911_v53 = vld [vmem:[%s7201_s1 + $0x160] sm:$0xff]   ;;  %v5912_v54 = vld [vmem:[%s7201_s1 + $0x168] sm:$0xff]  }
  0x1f   : > { %5281 = vmatpush3.bf16.msra.mxu0 %v5863_v5  ;;  %v5913_v55 = vld [vmem:[%s7201_s1 + $0x170] sm:$0xff]   ;;  %v5914_v56 = vld [vmem:[%s7201_s1 + $0x178] sm:$0xff]   ;;  %v5915_v57 = vld [vmem:[%s7201_s1 + $0x180] sm:$0xff]  }
  0x20   : > { %5282 = vmatprep.subr.bf16.mxu0 %v5864_v6  ;;  %v5916_v58 = vld [vmem:[%s7201_s1 + $0x188] sm:$0xff]   ;;  %v5917_v59 = vld [vmem:[%s7201_s1 + $0x190] sm:$0xff]   ;;  %v5918_v60 = vld [vmem:[%s7201_s1 + $0x198] sm:$0xff]  }
  0x21   : > { %v5919_v61 = vld [vmem:[%s7201_s1 + $0x1a0] sm:$0xff]   ;;  %v5920_v62 = vld [vmem:[%s7201_s1 + $0x1a8] sm:$0xff]   ;;  %v5921_v63 = vld [vmem:[%s7201_s1 + $0x1b0] sm:$0xff]  }
  0x22   : > { %v5922_v2 = vld [vmem:[%s7201_s1 + $0x1b8] sm:$0xff]   ;;  %v5923_v5 = vld [vmem:[%s7201_s1 + $0x1c0] sm:$0xff]  }
  0x23   : > { %5283 = vmatpush3.bf16.msra.mxu0 %v5864_v6  ;;  %v6233_v3 = vld [vmem:[%s6227_s30 + $0x158] sm:$0xff] }
  0x24   : > { %5284 = vmatprep.subr.bf16.mxu0 %v5865_v7  ;;  %v1726_v6 = vunpack.c.l.s8.bf16 %v6233_v3 }
  0x26   : > { %2300 = vmatprep.mubr.bf16.mxu1 %v1726_v6 }
  0x27   : > { %5285 = vmatpush3.bf16.msra.mxu0 %v5865_v7 }
  0x28   : > { %5286 = vmatprep.subr.bf16.mxu0 %v5866_v8 }
  0x2b   : > { %5287 = vmatpush3.bf16.msra.mxu0 %v5866_v8 }
  0x2c   : > { %1899 = vmatprep.subr.bf16.mxu0 %v5980_v33 }
  0x2e   : > { %5289 = vmatmul.mubr.bf16.vlgmr.msra.gmra.mrb[0].mxu0 %v5868_v9 }
  0x2f   : > { %5292 = vmatprep.mubr.bf16.mxu0 %v5869_v10 }
  0x36   : > { %5293 = vmatmul.mubr.bf16.gmra.mrb[4].mxu0 %v5870_v11 }
  0x37   : > { %5296 = vmatprep.mubr.bf16.mxu0 %v5871_v12  ;;  %v5924_v12 = vld [vmem:[%s7201_s1 + $0x1c8] sm:$0xff]  }
  0x3e   : > { %5297 = vmatmul.mubr.bf16.gmra.mrb[8].mxu0 %v5872_v13 }
  0x3f   : > { %5300 = vmatprep.mubr.bf16.mxu0 %v5873_v14  ;;  %v5925_v14 = vld [vmem:[%s7201_s1 + $0x1d0] sm:$0xff]  }
  0x46   : > { %5301 = vmatmul.mubr.bf16.gmra.mrb[12].mxu0 %v5874_v15 }
  0x47   : > { %5304 = vmatprep.mubr.bf16.mxu0 %v5875_v16 }
  0x4e   : > { %5305 = vmatmul.mubr.bf16.gmra.mrb[16].mxu0 %v5876_v17 }
  0x4f   : > { %5308 = vmatprep.mubr.bf16.mxu0 %v5877_v18 }
  0x56   : > { %5309 = vmatmul.mubr.bf16.gmra.mrb[20].mxu0 %v5878_v19 }
  0x57   : > { %5312 = vmatprep.mubr.bf16.mxu0 %v5879_v20  ;;  %v5926_v20 = vld [vmem:[%s7201_s1 + $0x1d8] sm:$0xff]  }
  0x5e   : > { %5313 = vmatmul.mubr.bf16.gmra.mrb[24].mxu0 %v5880_v21 }
  0x5f   : > { %5316 = vmatprep.mubr.bf16.mxu0 %v5881_v22  ;;  %v5927_v22 = vld [vmem:[%s7201_s1 + $0x1e0] sm:$0xff]  }
  0x66   : > { %5317 = vmatmul.mubr.bf16.gmra.mrb[28].mxu0 %v5882_v23 }
  0x67   : > { %5320 = vmatprep.mubr.bf16.mxu0 %v5883_v24 }
  0x6e   : > { %5321 = vmatmul.mubr.bf16.gmra.mrb[32].mxu0 %v5884_v25 }
  0x6f   : > { %5324 = vmatprep.mubr.bf16.mxu0 %v5885_v26 }
  0x76   : > { %5325 = vmatmul.mubr.bf16.gmra.mrb[36].mxu0 %v5886_v27 }
  0x77   : > { %5328 = vmatprep.mubr.bf16.mxu0 %v5887_v28  ;;  %v5928_v28 = vld [vmem:[%s7201_s1 + $0x1e8] sm:$0xff]  }
  0x7e   : > { %5329 = vmatmul.mubr.bf16.gmra.mrb[40].mxu0 %v5888_v29 }
  0x7f   : > { %5332 = vmatprep.mubr.bf16.mxu0 %v5889_v30  ;;  %v5929_v30 = vld [vmem:[%s7201_s1 + $0x1f0] sm:$0xff]  }
  0x86   : > { %5333 = vmatmul.mubr.bf16.gmra.mrb[44].mxu0 %v5890_v31 }
  0x87   : > { %5336 = vmatprep.mubr.bf16.mxu0 %v5891_v32 }
  0x8e   : > { %5337 = vmatmul.mubr.bf16.gmra.mrb[48].mxu0 %v5892_v34 }
  0x8f   : > { %5340 = vmatprep.mubr.bf16.mxu0 %v5893_v35  ;;  %v1516_v35 = vld [vmem:[%s6227_s30 + $0x8] sm:$0xff] }
  0x96   : > { %5341 = vmatmul.mubr.bf16.gmra.mrb[52].mxu0 %v5894_v36 }
  0x97   : > { %5344 = vmatprep.mubr.bf16.mxu0 %v5895_v37 }
  0x9e   : > { %5345 = vmatmul.mubr.bf16.gmra.mrb[56].mxu0 %v5896_v38  ;;  %v5930_v38 = vld [vmem:[%s7201_s1 + $0x1f8] sm:$0xff]  }
  0x9f   : > { %5348 = vmatprep.mubr.bf16.mxu0 %v5897_v39 }
  0xa6   : > { %5349 = vmatmul.mubr.bf16.gmra.mrb[60].mxu0 %v5898_v40  ;;  %v1644_v40 = vunpack.c.l.s8.bf16 %v1516_v35 }
  0xa7   : > { %5352 = vmatprep.mubr.bf16.mxu0 %v5899_v41 }
  0xae   : > { %5353 = vmatmul.mubr.bf16.gmra.mrb[64].mxu0 %v5900_v42 }
  0xaf   : > { %5356 = vmatprep.mubr.bf16.mxu0 %v5901_v43 }
  0xb6   : > { %5357 = vmatmul.mubr.bf16.gmra.mrb[68].mxu0 %v5902_v44 }
  0xb7   : > { %5360 = vmatprep.mubr.bf16.mxu0 %v5903_v45 }
  0xbe   : > { %5361 = vmatmul.mubr.bf16.gmra.mrb[72].mxu0 %v5904_v46 }
  0xbf   : > { %5364 = vmatprep.mubr.bf16.mxu0 %v5905_v47 }
  0xc6   : > { %5365 = vmatmul.mubr.bf16.gmra.mrb[76].mxu0 %v5906_v48 }
  0xc7   : > { %5368 = vmatprep.mubr.bf16.mxu0 %v5907_v49 }
  0xce   : > { %5369 = vmatmul.mubr.bf16.gmra.mrb[80].mxu0 %v5908_v50 }
  0xcf   : > { %5372 = vmatprep.mubr.bf16.mxu0 %v5909_v51 }
  0xd6   : > { %5373 = vmatmul.mubr.bf16.gmra.mrb[84].mxu0 %v5910_v52 }
  0xd7   : > { %5376 = vmatprep.mubr.bf16.mxu0 %v5911_v53 }
  0xde   : > { %5377 = vmatmul.mubr.bf16.gmra.mrb[88].mxu0 %v5912_v54 }
  0xdf   : > { %5380 = vmatprep.mubr.bf16.mxu0 %v5913_v55 }
  0xe6   : > { %5381 = vmatmul.mubr.bf16.gmra.mrb[92].mxu0 %v5914_v56 }
  0xe7   : > { %5384 = vmatprep.mubr.bf16.mxu0 %v5915_v57 }
  0xee   : > { %5385 = vmatmul.mubr.bf16.gmra.mrb[96].mxu0 %v5916_v58 }
  0xef   : > { %5388 = vmatprep.mubr.bf16.mxu0 %v5917_v59 }
  0xf6   : > { %5389 = vmatmul.mubr.bf16.gmra.mrb[100].mxu0 %v5918_v60 }
  0xf7   : > { %5392 = vmatprep.mubr.bf16.mxu0 %v5919_v61 }
  0xfe   : > { %5393 = vmatmul.mubr.bf16.gmra.mrb[104].mxu0 %v5920_v62  ;;  %v1515_v62 = vld [vmem:[%s6227_s30] sm:$0xff] }
  0xff   : > { %5396 = vmatprep.mubr.bf16.mxu0 %v5921_v63 }
 0x101   : > { %v5290_v0 = vpop.f32.mrb[0].mxu0 }
 0x102   : > { %v940_v1 = vpop.f32.mrb[1].mxu0 }
 0x103   : > { %v5291_v4 = vpop.f32.mrb[2].mxu0 }
 0x104   : > { %v1452_v7 = vpack.c.bf16 %v5291_v4, %v5290_v0  ;;  %v943_v8 = vpop.f32.mrb[3].mxu0 }
 0x105   : > { %v1451_v9 = vpack.c.bf16 %v943_v8, %v940_v1  ;;  %v1643_v1 = vunpack.c.l.s8.bf16 %v1515_v62 }
 0x106   : > { %5397 = vmatmul.mubr.bf16.gmra.mrb[108].mxu0 %v5922_v2 }
 0x107   : > { %1900 = vmatpush1.bf16.msra.mxu0 %v1451_v9  ;;  %5400 = vmatprep.mubr.bf16.mxu0 %v5923_v5 }
 0x108   : > { %1901 = vmatprep.subr.bf16.mxu0 %v5980_v33 }
 0x109   : > { %v5294_v10 = vpop.f32.mrb[4].mxu0 }
 0x10a   : > { %v956_v11 = vpop.f32.mrb[5].mxu0 }
 0x10b   : > { %v5295_v13 = vpop.f32.mrb[6].mxu0  ;;  %1902 = vmatpush1.bf16.msra.mxu0 %v1452_v7  ;;  %v1652_v7 = vunpack.c.h.s8.bf16 %v1516_v35 }
 0x10c   : > { %v1454_v15 = vpack.c.bf16 %v5295_v13, %v5294_v10  ;;  %v959_v16 = vpop.f32.mrb[7].mxu0  ;;  %1903 = vmatprep.subr.bf16.mxu0 %v5980_v33  ;;  %v1651_v10 = vunpack.c.h.s8.bf16 %v1515_v62 }
 0x10d   : > { %v1453_v17 = vpack.c.bf16 %v959_v16, %v956_v11  ;;  %v1524_v11 = vld [vmem:[%s6227_s30 + $0x48] sm:$0xff] }
 0x10e   : > { %5401 = vmatmul.mubr.bf16.gmra.mrb[112].mxu0 %v5924_v12  ;;  %v1660_v16 = vunpack.c.l.s8.bf16 %v1524_v11 }
 0x10f   : > { %1904 = vmatpush1.bf16.msra.mxu0 %v1453_v17  ;;  %5404 = vmatprep.mubr.bf16.mxu0 %v5925_v14  ;;  %v1523_v17 = vld [vmem:[%s6227_s30 + $0x40] sm:$0xff] }
 0x110   : > { %1905 = vmatprep.subr.bf16.mxu0 %v5980_v33 }
 0x111   : > { %v5298_v18 = vpop.f32.mrb[8].mxu0 }
 0x112   : > { %v972_v19 = vpop.f32.mrb[9].mxu0 }
 0x113   : > { %v5299_v21 = vpop.f32.mrb[10].mxu0  ;;  %1906 = vmatpush1.bf16.msra.mxu0 %v1454_v15 }
 0x114   : > { %v1456_v23 = vpack.c.bf16 %v5299_v21, %v5298_v18  ;;  %v975_v24 = vpop.f32.mrb[11].mxu0  ;;  %1907 = vmatprep.subr.bf16.mxu0 %v5980_v33 }
 0x115   : > { %v1455_v25 = vpack.c.bf16 %v975_v24, %v972_v19 }
 0x116   : > { %5405 = vmatmul.mubr.bf16.gmra.mrb[116].mxu0 %v5926_v20  ;;  %v1659_v20 = vunpack.c.l.s8.bf16 %v1523_v17 }
 0x117   : > { %1908 = vmatpush1.bf16.msra.mxu0 %v1455_v25  ;;  %5408 = vmatprep.mubr.bf16.mxu0 %v5927_v22  ;;  %v1668_v25 = vunpack.c.h.s8.bf16 %v1524_v11 }
 0x118   : > { %1909 = vmatprep.subr.bf16.mxu0 %v5980_v33 }
 0x119   : > { %v5302_v26 = vpop.f32.mrb[12].mxu0 }
 0x11a   : > { %v988_v27 = vpop.f32.mrb[13].mxu0 }
 0x11b   : > { %v5303_v29 = vpop.f32.mrb[14].mxu0  ;;  %1910 = vmatpush1.bf16.msra.mxu0 %v1456_v23 }
 0x11c   : > { %v1458_v31 = vpack.c.bf16 %v5303_v29, %v5302_v26  ;;  %v991_v32 = vpop.f32.mrb[15].mxu0  ;;  %1911 = vmatprep.subr.bf16.mxu0 %v5980_v33  ;;  %v1532_v29 = vld [vmem:[%s6227_s30 + $0x88] sm:$0xff] }
 0x11d   : > { %v1457_v34 = vpack.c.bf16 %v991_v32, %v988_v27  ;;  %v1676_v35 = vunpack.c.l.s8.bf16 %v1532_v29 }
 0x11e   : > { %5409 = vmatmul.mubr.bf16.gmra.mrb[120].mxu0 %v5928_v28  ;;  %v1667_v28 = vunpack.c.h.s8.bf16 %v1523_v17 }
 0x11f   : > { %1912 = vmatpush1.bf16.msra.mxu0 %v1457_v34  ;;  %5412 = vmatprep.mubr.bf16.mxu0 %v5929_v30 }
 0x120   : > { %1913 = vmatprep.subr.bf16.mxu0 %v5980_v33 }
 0x121   : > { %v5306_v36 = vpop.f32.mrb[16].mxu0 }
 0x122   : > { %v1004_v37 = vpop.f32.mrb[17].mxu0 }
 0x123   : > { %v5307_v39 = vpop.f32.mrb[18].mxu0  ;;  %1914 = vmatpush1.bf16.msra.mxu0 %v1458_v31 }
 0x124   : > { %v1460_v41 = vpack.c.bf16 %v5307_v39, %v5306_v36  ;;  %v1007_v42 = vpop.f32.mrb[19].mxu0  ;;  %1915 = vmatprep.subr.bf16.mxu0 %v5980_v33  ;;  %v1531_v36 = vld [vmem:[%s6227_s30 + $0x80] sm:$0xff] }
 0x125   : > { %v1459_v43 = vpack.c.bf16 %v1007_v42, %v1004_v37  ;;  %v1675_v39 = vunpack.c.l.s8.bf16 %v1531_v36 }
 0x126   : > { %5413 = vmatmul.mubr.bf16.gmra.mrb[124].mxu0 %v5930_v38 }
 0x127   : > { %1916 = vmatpush1.bf16.msra.mxu0 %v1459_v43  ;;  %1931 = vmatprep.mubr.bf16.mxu0 %v1644_v40 }
 0x128   : > { %1917 = vmatprep.subr.bf16.mxu0 %v5980_v33 }
 0x129   : > { %v5310_v44 = vpop.f32.mrb[20].mxu0 }
 0x12a   : > { %v1020_v45 = vpop.f32.mrb[21].mxu0 }
 0x12b   : > { %v5311_v46 = vpop.f32.mrb[22].mxu0  ;;  %1918 = vmatpush1.bf16.msra.mxu0 %v1460_v41 }
 0x12c   : > { %v1462_v47 = vpack.c.bf16 %v5311_v46, %v5310_v44  ;;  %v1023_v48 = vpop.f32.mrb[23].mxu0  ;;  %1919 = vmatprep.subr.bf16.mxu0 %v5980_v33  ;;  %v1684_v44 = vunpack.c.h.s8.bf16 %v1532_v29 }
 0x12d   : > { %v1461_v49 = vpack.c.bf16 %v1023_v48, %v1020_v45  ;;  %v1540_v48 = vld [vmem:[%s6227_s30 + $0xc8] sm:$0xff] }
 0x12e   : > { %v1700_v62 = vunpack.c.h.s8.bf16 %v1540_v48 }
 0x12f   : > { %1920 = vmatpush1.bf16.msra.mxu0 %v1461_v49 }
 0x130   : > { %1921 = vmatprep.subr.bf16.mxu0 %v5980_v33 }
 0x131   : > { %v5314_v50 = vpop.f32.mrb[24].mxu0 }
 0x132   : > { %v1036_v51 = vpop.f32.mrb[25].mxu0 }
 0x133   : > { %v5315_v52 = vpop.f32.mrb[26].mxu0  ;;  %1922 = vmatpush1.bf16.msra.mxu0 %v1462_v47  ;;  %v1683_v47 = vunpack.c.h.s8.bf16 %v1531_v36 }
 0x134   : > { %v1464_v53 = vpack.c.bf16 %v5315_v52, %v5314_v50  ;;  %v1039_v54 = vpop.f32.mrb[27].mxu0  ;;  %1923 = vmatprep.subr.bf16.mxu0 %v5980_v33 }
 0x135   : > { %v1463_v55 = vpack.c.bf16 %v1039_v54, %v1036_v51  ;;  %v1539_v54 = vld [vmem:[%s6227_s30 + $0xc0] sm:$0xff] }
 0x137   : > { %1924 = vmatpush1.bf16.msra.mxu0 %v1463_v55 }
 0x138   : > { %1925 = vmatprep.subr.bf16.mxu0 %v5980_v33 }
 0x139   : > { %v5318_v56 = vpop.f32.mrb[28].mxu0 }
 0x13a   : > { %v1052_v57 = vpop.f32.mrb[29].mxu0 }
 0x13b   : > { %v5319_v58 = vpop.f32.mrb[30].mxu0  ;;  %1926 = vmatpush1.bf16.msra.mxu0 %v1464_v53  ;;  %v1692_v53 = vunpack.c.l.s8.bf16 %v1540_v48 }
 0x13c   : > { %v1466_v59 = vpack.c.bf16 %v5319_v58, %v5318_v56  ;;  %v1055_v60 = vpop.f32.mrb[31].mxu0  ;;  %1927 = vmatprep.subr.bf16.mxu0 %v5980_v33 }
 0x13d   : > { %v1465_v61 = vpack.c.bf16 %v1055_v60, %v1052_v57  ;;  %v1691_v57 = vunpack.c.l.s8.bf16 %v1539_v54 }
 0x13f   : > { %1928 = vmatpush1.bf16.msra.mxu0 %v1465_v61 }
 0x140   : > { %1929 = vmatprep.subr.bf16.mxu0 %v5980_v33 }
 0x141   : > { %v5322_v63 = vpop.f32.mrb[32].mxu0 }
 0x142   : > { %v1068_v0 = vpop.f32.mrb[33].mxu0 }
 0x143   : > { %v5323_v2 = vpop.f32.mrb[34].mxu0  ;;  %1930 = vmatpush1.bf16.msra.mxu0 %v1466_v59 }
 0x144   : > { %v1468_v4 = vpack.c.bf16 %v5323_v2, %v5322_v63  ;;  %v1071_v5 = vpop.f32.mrb[35].mxu0  ;;  %2188 = vmatprep.subr.bf16.mxu0 %v5980_v33  ;;  %v1548_v2 = vld [vmem:[%s6227_s30 + $0x108] sm:$0xff] }
 0x145   : > { %v1467_v6 = vpack.c.bf16 %v1071_v5, %v1068_v0 }
 0x146   : > { %1932 = vmatmul.mubr.bf16.vlgmr.msra.gmra.mrb[128].mxu0 %v1643_v1  ;;  %v1699_v1 = vunpack.c.h.s8.bf16 %v1539_v54 }
 0x147   : > { %2189 = vmatpush1.bf16.msra.mxu0 %v1467_v6  ;;  %5512 = vmatpush1.bf16.msra.mxu1 %v1467_v6 }
 0x148   : > { %2190 = vmatprep.subr.bf16.mxu0 %v5980_v33  ;;  %5497 = vmatprep.subr.bf16.mxu1 %v5980_v33 }
 0x149   : > { %v5326_v8 = vpop.f32.mrb[36].mxu0  ;;  %1939 = vmatprep.mubr.bf16.mxu0 %v1652_v7 }
 0x14a   : > { %v1084_v9 = vpop.f32.mrb[37].mxu0 }
 0x14b   : > { %v5327_v12 = vpop.f32.mrb[38].mxu0  ;;  %2191 = vmatpush1.bf16.msra.mxu0 %v1468_v4  ;;  %5513 = vmatpush1.bf16.msra.mxu1 %v1468_v4 }
 0x14c   : > { %v1470_v13 = vpack.c.bf16 %v5327_v12, %v5326_v8  ;;  %v1087_v14 = vpop.f32.mrb[39].mxu0  ;;  %2192 = vmatprep.subr.bf16.mxu0 %v5980_v33  ;;  %5498 = vmatprep.subr.bf16.mxu1 %v5980_v33  ;;  %v1708_v8 = vunpack.c.l.s8.bf16 %v1548_v2 }
 0x14d   : > { %v1469_v15 = vpack.c.bf16 %v1087_v14, %v1084_v9  ;;  %v1557_v9 = vld [vmem:[%s6227_s30 + $0x150] sm:$0xff] }
 0x14e   : > { %1940 = vmatmul.mubr.bf16.gmra.mrb[132].mxu0 %v1651_v10  ;;  %v1547_v10 = vld [vmem:[%s6227_s30 + $0x100] sm:$0xff] }
 0x14f   : > { %2193 = vmatpush1.bf16.msra.mxu0 %v1469_v15  ;;  %5514 = vmatpush1.bf16.msra.mxu1 %v1469_v15  ;;  %v1707_v14 = vunpack.c.l.s8.bf16 %v1547_v10 }
 0x150   : > { %2194 = vmatprep.subr.bf16.mxu0 %v5980_v33  ;;  %5499 = vmatprep.subr.bf16.mxu1 %v5980_v33 }
 0x151   : > { %v5330_v18 = vpop.f32.mrb[40].mxu0  ;;  %1947 = vmatprep.mubr.bf16.mxu0 %v1660_v16  ;;  %v1734_v16 = vunpack.c.h.s8.bf16 %v6233_v3 }
 0x152   : > { %v1100_v19 = vpop.f32.mrb[41].mxu0 }
 0x153   : > { %v5331_v21 = vpop.f32.mrb[42].mxu0  ;;  %2195 = vmatpush1.bf16.msra.mxu0 %v1470_v13  ;;  %5515 = vmatpush1.bf16.msra.mxu1 %v1470_v13  ;;  %v1725_v13 = vunpack.c.l.s8.bf16 %v1557_v9 }
 0x154   : > { %v1472_v22 = vpack.c.bf16 %v5331_v21, %v5330_v18  ;;  %v1103_v23 = vpop.f32.mrb[43].mxu0  ;;  %2196 = vmatprep.subr.bf16.mxu0 %v5980_v33  ;;  %5500 = vmatprep.subr.bf16.mxu1 %v5980_v33  ;;  %v1566_v21 = vld [vmem:[%s6227_s30 + $0x198] sm:$0xff] }
 0x155   : > { %v1471_v24 = vpack.c.bf16 %v1103_v23, %v1100_v19  ;;  %v1716_v19 = vunpack.c.h.s8.bf16 %v1548_v2  ;;  %v1556_v23 = vld [vmem:[%s6227_s30 + $0x148] sm:$0xff] }
 0x156   : > { %1948 = vmatmul.mubr.bf16.gmra.mrb[136].mxu0 %v1659_v20 }
 0x157   : > { %2197 = vmatpush1.bf16.msra.mxu0 %v1471_v24  ;;  %5516 = vmatpush1.bf16.msra.mxu1 %v1471_v24  ;;  %v1733_v24 = vunpack.c.h.s8.bf16 %v1557_v9 }
 0x158   : > { %2198 = vmatprep.subr.bf16.mxu0 %v5980_v33  ;;  %5501 = vmatprep.subr.bf16.mxu1 %v5980_v33 }
 0x159   : > { %v5334_v26 = vpop.f32.mrb[44].mxu0  ;;  %1955 = vmatprep.mubr.bf16.mxu0 %v1668_v25  ;;  %v1715_v25 = vunpack.c.h.s8.bf16 %v1547_v10 }
 0x15a   : > { %v1116_v27 = vpop.f32.mrb[45].mxu0 }
 0x15b   : > { %v5335_v30 = vpop.f32.mrb[46].mxu0  ;;  %2199 = vmatpush1.bf16.msra.mxu0 %v1472_v22  ;;  %5517 = vmatpush1.bf16.msra.mxu1 %v1472_v22 }
 0x15c   : > { %v1474_v31 = vpack.c.bf16 %v5335_v30, %v5334_v26  ;;  %v1119_v32 = vpop.f32.mrb[47].mxu0  ;;  %2200 = vmatprep.subr.bf16.mxu0 %v5980_v33  ;;  %5502 = vmatprep.subr.bf16.mxu1 %v5980_v33  ;;  %v1724_v30 = vunpack.c.l.s8.bf16 %v1556_v23 }
 0x15d   : > { %v1473_v34 = vpack.c.bf16 %v1119_v32, %v1116_v27  ;;  %v1742_v27 = vunpack.c.l.s8.bf16 %v1566_v21  ;;  %v1565_v32 = vld [vmem:[%s6227_s30 + $0x190] sm:$0xff] }
 0x15e   : > { %1956 = vmatmul.mubr.bf16.gmra.mrb[140].mxu0 %v1667_v28  ;;  %v1741_v36 = vunpack.c.l.s8.bf16 %v1565_v32  ;;  %v1749_v48 = vunpack.c.h.s8.bf16 %v1565_v32 }
 0x15f   : > { %2201 = vmatpush1.bf16.msra.mxu0 %v1473_v34  ;;  %5518 = vmatpush1.bf16.msra.mxu1 %v1473_v34  ;;  %v1555_v34 = vld [vmem:[%s6227_s30 + $0x140] sm:$0xff] }
 0x160   : > { %2202 = vmatprep.subr.bf16.mxu0 %v5980_v33  ;;  %5503 = vmatprep.subr.bf16.mxu1 %v5980_v33 }
 0x161   : > { %v5338_v37 = vpop.f32.mrb[48].mxu0  ;;  %1963 = vmatprep.mubr.bf16.mxu0 %v1676_v35 }
 0x162   : > { %v1132_v38 = vpop.f32.mrb[49].mxu0 }
 0x163   : > { %v5339_v40 = vpop.f32.mrb[50].mxu0  ;;  %2203 = vmatpush1.bf16.msra.mxu0 %v1474_v31  ;;  %5519 = vmatpush1.bf16.msra.mxu1 %v1474_v31 }
 0x164   : > { %v1476_v41 = vpack.c.bf16 %v5339_v40, %v5338_v37  ;;  %v1135_v42 = vpop.f32.mrb[51].mxu0  ;;  %2204 = vmatprep.subr.bf16.mxu0 %v5980_v33  ;;  %5504 = vmatprep.subr.bf16.mxu1 %v5980_v33 }
 0x165   : > { %v1475_v43 = vpack.c.bf16 %v1135_v42, %v1132_v38  ;;  %v1723_v38 = vunpack.c.l.s8.bf16 %v1555_v34 }
 0x166   : > { %1964 = vmatmul.mubr.bf16.gmra.mrb[144].mxu0 %v1675_v39  ;;  %v1750_v39 = vunpack.c.h.s8.bf16 %v1566_v21 }
 0x167   : > { %2205 = vmatpush1.bf16.msra.mxu0 %v1475_v43  ;;  %5520 = vmatpush1.bf16.msra.mxu1 %v1475_v43  ;;  %v1732_v43 = vunpack.c.h.s8.bf16 %v1556_v23 }
 0x168   : > { %2206 = vmatprep.subr.bf16.mxu0 %v5980_v33  ;;  %5505 = vmatprep.subr.bf16.mxu1 %v5980_v33 }
 0x169   : > { %v5342_v45 = vpop.f32.mrb[52].mxu0  ;;  %1971 = vmatprep.mubr.bf16.mxu0 %v1684_v44 }
 0x16a   : > { %v1148_v46 = vpop.f32.mrb[53].mxu0 }
 0x16b   : > { %v5343_v49 = vpop.f32.mrb[54].mxu0  ;;  %2207 = vmatpush1.bf16.msra.mxu0 %v1476_v41  ;;  %5521 = vmatpush1.bf16.msra.mxu1 %v1476_v41 }
 0x16c   : > { %v1478_v50 = vpack.c.bf16 %v5343_v49, %v5342_v45  ;;  %v1151_v51 = vpop.f32.mrb[55].mxu0  ;;  %2208 = vmatprep.subr.bf16.mxu0 %v5980_v33  ;;  %5506 = vmatprep.subr.bf16.mxu1 %v5980_v33  ;;  %v1574_v45 = vld [vmem:[%s6227_s30 + $0x1d8] sm:$0xff] }
 0x16d   : > { %v1477_v52 = vpack.c.bf16 %v1151_v51, %v1148_v46  ;;  %v1758_v51 = vunpack.c.l.s8.bf16 %v1574_v45 }
 0x16e   : > { %1972 = vmatmul.mubr.bf16.gmra.mrb[148].mxu0 %v1683_v47  ;;  %v1564_v47 = vld [vmem:[%s6227_s30 + $0x188] sm:$0xff] }
 0x16f   : > { %2209 = vmatpush1.bf16.msra.mxu0 %v1477_v52  ;;  %5522 = vmatpush1.bf16.msra.mxu1 %v1477_v52 }
 0x170   : > { %2210 = vmatprep.subr.bf16.mxu0 %v5980_v33  ;;  %5507 = vmatprep.subr.bf16.mxu1 %v5980_v33 }
 0x171   : > { %v5346_v55 = vpop.f32.mrb[56].mxu0  ;;  %1979 = vmatprep.mubr.bf16.mxu0 %v1692_v53 }
 0x172   : > { %v1164_v56 = vpop.f32.mrb[57].mxu0 }
 0x173   : > { %v5347_v58 = vpop.f32.mrb[58].mxu0  ;;  %2211 = vmatpush1.bf16.msra.mxu0 %v1478_v50  ;;  %5523 = vmatpush1.bf16.msra.mxu1 %v1478_v50  ;;  %v1731_v50 = vunpack.c.h.s8.bf16 %v1555_v34 }
 0x174   : > { %v1480_v59 = vpack.c.bf16 %v5347_v58, %v5346_v55  ;;  %v1167_v60 = vpop.f32.mrb[59].mxu0  ;;  %2212 = vmatprep.subr.bf16.mxu0 %v5980_v33  ;;  %5508 = vmatprep.subr.bf16.mxu1 %v5980_v33  ;;  %v1740_v55 = vunpack.c.l.s8.bf16 %v1564_v47  ;;  %v1563_v58 = vld [vmem:[%s6227_s30 + $0x180] sm:$0xff] }
 0x175   : > { %v1479_v61 = vpack.c.bf16 %v1167_v60, %v1164_v56  ;;  %v1747_v10 = vunpack.c.h.s8.bf16 %v1563_v58 }
 0x176   : > { %1980 = vmatmul.mubr.bf16.gmra.mrb[152].mxu0 %v1691_v57  ;;  %v1573_v57 = vld [vmem:[%s6227_s30 + $0x1d0] sm:$0xff] }
 0x177   : > { %2213 = vmatpush1.bf16.msra.mxu0 %v1479_v61  ;;  %5524 = vmatpush1.bf16.msra.mxu1 %v1479_v61  ;;  %v1757_v60 = vunpack.c.l.s8.bf16 %v1573_v57  ;;  %v1739_v61 = vunpack.c.l.s8.bf16 %v1563_v58  ;;  %v1765_v9 = vunpack.c.h.s8.bf16 %v1573_v57 }
 0x178   : > { %2214 = vmatprep.subr.bf16.mxu0 %v5980_v33  ;;  %5509 = vmatprep.subr.bf16.mxu1 %v5980_v33 }
 0x179   : > { %v5350_v63 = vpop.f32.mrb[60].mxu0  ;;  %1987 = vmatprep.mubr.bf16.mxu0 %v1700_v62 }
 0x17a   : > { %v1180_v0 = vpop.f32.mrb[61].mxu0 }
 0x17b   : > { %v5351_v4 = vpop.f32.mrb[62].mxu0  ;;  %2215 = vmatpush1.bf16.msra.mxu0 %v1480_v59  ;;  %5525 = vmatpush1.bf16.msra.mxu1 %v1480_v59 }
 0x17c   : > { %v1482_v5 = vpack.c.bf16 %v5351_v4, %v5350_v63  ;;  %v1183_v6 = vpop.f32.mrb[63].mxu0  ;;  %2216 = vmatprep.subr.bf16.mxu0 %v5980_v33  ;;  %5510 = vmatprep.subr.bf16.mxu1 %v5980_v33  ;;  %v1766_v63 = vunpack.c.h.s8.bf16 %v1574_v45 }
 0x17d   : > { %v1481_v7 = vpack.c.bf16 %v1183_v6, %v1180_v0  ;;  %v1748_v0 = vunpack.c.h.s8.bf16 %v1564_v47  ;;  %v1582_v6 = vld [vmem:[%s6227_s30 + $0x218] sm:$0xff] }
 0x17e   : > { %1988 = vmatmul.mubr.bf16.gmra.mrb[156].mxu0 %v1699_v1 }
 0x17f   : > { %2217 = vmatpush1.bf16.msra.mxu0 %v1481_v7  ;;  %5526 = vmatpush1.bf16.msra.mxu1 %v1481_v7  ;;  %v1572_v7 = vld [vmem:[%s6227_s30 + $0x1c8] sm:$0xff] }
 0x180   : > { %2218 = vmatprep.subr.bf16.mxu0 %v5980_v33  ;;  %5511 = vmatprep.subr.bf16.mxu1 %v5980_v33 }
 0x181   : > { %v5354_v11 = vpop.f32.mrb[64].mxu0  ;;  %1995 = vmatprep.mubr.bf16.mxu0 %v1708_v8 }
 0x182   : > { %v1196_v12 = vpop.f32.mrb[65].mxu0 }
 0x183   : > { %v5355_v15 = vpop.f32.mrb[66].mxu0  ;;  %2219 = vmatpush1.bf16.msra.mxu0 %v1482_v5  ;;  %5527 = vmatpush1.bf16.msra.mxu1 %v1482_v5 }
 0x184   : > { %v1484_v17 = vpack.c.bf16 %v5355_v15, %v5354_v11  ;;  %v1199_v18 = vpop.f32.mrb[67].mxu0  ;;  %2477 = vmatprep.subr.bf16.mxu1 %v5980_v33 }
 0x185   : > { %v1483_v20 = vpack.c.bf16 %v1199_v18, %v1196_v12  ;;  %v1774_v12 = vunpack.c.l.s8.bf16 %v1582_v6  ;;  %v1581_v18 = vld [vmem:[%s6227_s30 + $0x210] sm:$0xff] }
 0x186   : > { %2301 = vmatmul.mubr.bf16.vlgmr.msra.gmra.mrb[0].mxu1 %v1725_v13  ;;  %1996 = vmatmul.mubr.bf16.gmra.mrb[160].mxu0 %v1707_v14  ;;  %v1756_v13 = vunpack.c.l.s8.bf16 %v1572_v7  ;;  %v1773_v21 = vunpack.c.l.s8.bf16 %v1581_v18  ;;  %v1781_v32 = vunpack.c.h.s8.bf16 %v1581_v18 }
 0x187   : > { %2478 = vmatpush1.bf16.msra.mxu1 %v1483_v20  ;;  %2308 = vmatprep.mubr.bf16.mxu1 %v1734_v16 }
 0x188   : > { %2479 = vmatprep.subr.bf16.mxu1 %v5980_v33  ;;  %2003 = vmatprep.mubr.bf16.mxu0 %v1716_v19  ;;  %v1571_v19 = vld [vmem:[%s6227_s30 + $0x1c0] sm:$0xff] }
 0x189   : > { %v5358_v22 = vpop.f32.mrb[68].mxu0  ;;  %v1763_v34 = vunpack.c.h.s8.bf16 %v1571_v19 }
 0x18a   : > { %v1212_v3 = vpop.f32.mrb[69].mxu0 }
 0x18b   : > { %2480 = vmatpush1.bf16.msra.mxu1 %v1484_v17  ;;  %v5359_v26 = vpop.f32.mrb[70].mxu0 }
 0x18c   : > { %v1486_v28 = vpack.c.bf16 %v5359_v26, %v5358_v22  ;;  %v1215_v29 = vpop.f32.mrb[71].mxu0  ;;  %2481 = vmatprep.subr.bf16.mxu1 %v5980_v33  ;;  %v1755_v22 = vunpack.c.l.s8.bf16 %v1571_v19 }
 0x18d   : > { %v1485_v31 = vpack.c.bf16 %v1215_v29, %v1212_v3  ;;  %v1764_v3 = vunpack.c.h.s8.bf16 %v1572_v7  ;;  %v1590_v29 = vld [vmem:[%s6227_s30 + $0x258] sm:$0xff] }
 0x18e   : > { %2309 = vmatmul.mubr.bf16.gmra.mrb[4].mxu1 %v1733_v24  ;;  %2004 = vmatmul.mubr.bf16.gmra.mrb[164].mxu0 %v1715_v25  ;;  %v1782_v24 = vunpack.c.h.s8.bf16 %v1582_v6 }
 0x18f   : > { %2316 = vmatprep.mubr.bf16.mxu1 %v1742_v27  ;;  %2482 = vmatpush1.bf16.msra.mxu1 %v1485_v31 }
 0x190   : > { %2483 = vmatprep.subr.bf16.mxu1 %v5980_v33  ;;  %2011 = vmatprep.mubr.bf16.mxu0 %v1724_v30  ;;  %v1580_v30 = vld [vmem:[%s6227_s30 + $0x208] sm:$0xff] }
 0x191   : > { %v5362_v35 = vpop.f32.mrb[72].mxu0 }
 0x192   : > { %v1228_v37 = vpop.f32.mrb[73].mxu0 }
 0x193   : > { %2484 = vmatpush1.bf16.msra.mxu1 %v1486_v28  ;;  %v5363_v40 = vpop.f32.mrb[74].mxu0 }
 0x194   : > { %v1488_v41 = vpack.c.bf16 %v5363_v40, %v5362_v35  ;;  %v1231_v42 = vpop.f32.mrb[75].mxu0  ;;  %2485 = vmatprep.subr.bf16.mxu1 %v5980_v33 }
 0x195   : > { %v1487_v44 = vpack.c.bf16 %v1231_v42, %v1228_v37  ;;  %v1772_v37 = vunpack.c.l.s8.bf16 %v1580_v30  ;;  %v1589_v42 = vld [vmem:[%s6227_s30 + $0x250] sm:$0xff] }
 0x196   : > { %2317 = vmatmul.mubr.bf16.gmra.mrb[8].mxu1 %v1741_v36  ;;  %2012 = vmatmul.mubr.bf16.gmra.mrb[168].mxu0 %v1723_v38  ;;  %v1790_v36 = vunpack.c.l.s8.bf16 %v1590_v29  ;;  %v1789_v45 = vunpack.c.l.s8.bf16 %v1589_v42  ;;  %v1797_v57 = vunpack.c.h.s8.bf16 %v1589_v42 }
 0x197   : > { %2324 = vmatprep.mubr.bf16.mxu1 %v1750_v39  ;;  %2486 = vmatpush1.bf16.msra.mxu1 %v1487_v44 }
 0x198   : > { %2487 = vmatprep.subr.bf16.mxu1 %v5980_v33  ;;  %2019 = vmatprep.mubr.bf16.mxu0 %v1732_v43  ;;  %v1579_v43 = vld [vmem:[%s6227_s30 + $0x200] sm:$0xff] }
 0x199   : > { %v5366_v46 = vpop.f32.mrb[76].mxu0  ;;  %v1779_v58 = vunpack.c.h.s8.bf16 %v1579_v43 }
 0x19a   : > { %v1244_v49 = vpop.f32.mrb[77].mxu0 }
 0x19b   : > { %2488 = vmatpush1.bf16.msra.mxu1 %v1488_v41  ;;  %v5367_v52 = vpop.f32.mrb[78].mxu0 }
 0x19c   : > { %v1490_v53 = vpack.c.bf16 %v5367_v52, %v5366_v46  ;;  %v1247_v54 = vpop.f32.mrb[79].mxu0  ;;  %2489 = vmatprep.subr.bf16.mxu1 %v5980_v33  ;;  %v1771_v46 = vunpack.c.l.s8.bf16 %v1579_v43 }
 0x19d   : > { %v1489_v56 = vpack.c.bf16 %v1247_v54, %v1244_v49  ;;  %v1780_v49 = vunpack.c.h.s8.bf16 %v1580_v30  ;;  %v1598_v54 = vld [vmem:[%s6227_s30 + $0x298] sm:$0xff] }
 0x19e   : > { %2325 = vmatmul.mubr.bf16.gmra.mrb[12].mxu1 %v1749_v48  ;;  %2020 = vmatmul.mubr.bf16.gmra.mrb[172].mxu0 %v1731_v50  ;;  %v1798_v48 = vunpack.c.h.s8.bf16 %v1590_v29  ;;  %v1814_v7 = vunpack.c.h.s8.bf16 %v1598_v54 }
 0x19f   : > { %2332 = vmatprep.mubr.bf16.mxu1 %v1758_v51  ;;  %2490 = vmatpush1.bf16.msra.mxu1 %v1489_v56 }
 0x1a0   : > { %2491 = vmatprep.subr.bf16.mxu1 %v5980_v33  ;;  %2027 = vmatprep.mubr.bf16.mxu0 %v1740_v55  ;;  %v1588_v55 = vld [vmem:[%s6227_s30 + $0x248] sm:$0xff] }
 0x1a1   : > { %v5370_v59 = vpop.f32.mrb[80].mxu0 }
 0x1a2   : > { %v1260_v62 = vpop.f32.mrb[81].mxu0 }
 0x1a3   : > { %2492 = vmatpush1.bf16.msra.mxu1 %v1490_v53  ;;  %v5371_v1 = vpop.f32.mrb[82].mxu0 }
 0x1a4   : > { %v1492_v2 = vpack.c.bf16 %v5371_v1, %v5370_v59  ;;  %v1263_v4 = vpop.f32.mrb[83].mxu0  ;;  %2493 = vmatprep.subr.bf16.mxu1 %v5980_v33 }
 0x1a5   : > { %v1491_v5 = vpack.c.bf16 %v1263_v4, %v1260_v62  ;;  %v1587_v4 = vld [vmem:[%s6227_s30 + $0x240] sm:$0xff] }
 0x1a6   : > { %2333 = vmatmul.mubr.bf16.gmra.mrb[16].mxu1 %v1757_v60  ;;  %2028 = vmatmul.mubr.bf16.gmra.mrb[176].mxu0 %v1739_v61  ;;  %v1806_v60 = vunpack.c.l.s8.bf16 %v1598_v54  ;;  %v1788_v61 = vunpack.c.l.s8.bf16 %v1588_v55  ;;  %v1787_v6 = vunpack.c.l.s8.bf16 %v1587_v4 }
 0x1a7   : > { %2340 = vmatprep.mubr.bf16.mxu1 %v1766_v63  ;;  %2035 = vmatprep.mubr.bf16.mxu0 %v1748_v0 }
 0x1a8   : > { %2494 = vmatpush1.bf16.msra.mxu1 %v1491_v5 }
 0x1a9   : > { %2495 = vmatprep.subr.bf16.mxu1 %v5980_v33  ;;  %v5374_v8 = vpop.f32.mrb[84].mxu0 }
 0x1aa   : > { %v1276_v11 = vpop.f32.mrb[85].mxu0 }
 0x1ab   : > { %v5375_v14 = vpop.f32.mrb[86].mxu0 }
 0x1ac   : > { %2496 = vmatpush1.bf16.msra.mxu1 %v1492_v2  ;;  %v1494_v15 = vpack.c.bf16 %v5375_v14, %v5374_v8  ;;  %v1279_v16 = vpop.f32.mrb[87].mxu0  ;;  %v1597_v2 = vld [vmem:[%s6227_s30 + $0x290] sm:$0xff]  ;;  %v1796_v8 = vunpack.c.h.s8.bf16 %v1588_v55 }
 0x1ad   : > { %v1493_v17 = vpack.c.bf16 %v1279_v16, %v1276_v11  ;;  %2497 = vmatprep.subr.bf16.mxu1 %v5980_v33  ;;  %v1805_v5 = vunpack.c.l.s8.bf16 %v1597_v2  ;;  %v1813_v11 = vunpack.c.h.s8.bf16 %v1597_v2  ;;  %v1595_v16 = vld [vmem:[%s6227_s30 + $0x280] sm:$0xff]  ;;  %v1620_v2 = vld [vmem:[%s6227_s30 + $0x348] sm:$0xff] }
 0x1ae   : > { %2341 = vmatmul.mubr.bf16.gmra.mrb[20].mxu1 %v1765_v9  ;;  %2036 = vmatmul.mubr.bf16.gmra.mrb[180].mxu0 %v1747_v10  ;;  %v1606_v9 = vld [vmem:[%s6227_s30 + $0x2d8] sm:$0xff]  ;;  %v1596_v10 = vld [vmem:[%s6227_s30 + $0x288] sm:$0xff]  ;;  %v1803_v18 = vunpack.c.l.s8.bf16 %v1595_v16 }
 0x1af   : > { %2348 = vmatprep.mubr.bf16.mxu1 %v1774_v12  ;;  %2043 = vmatprep.mubr.bf16.mxu0 %v1756_v13  ;;  %v1795_v12 = vunpack.c.h.s8.bf16 %v1587_v4  ;;  %v1822_v13 = vunpack.c.l.s8.bf16 %v1606_v9  ;;  %v1804_v14 = vunpack.c.l.s8.bf16 %v1596_v10  ;;  %v1830_v19 = vunpack.c.h.s8.bf16 %v1606_v9 }
 0x1b0   : > { %2498 = vmatpush1.bf16.msra.mxu1 %v1493_v17 }
 0x1b1   : > { %2499 = vmatprep.subr.bf16.mxu1 %v5980_v33  ;;  %v5378_v20 = vpop.f32.mrb[88].mxu0 }
 0x1b2   : > { %v1292_v23 = vpop.f32.mrb[89].mxu0 }
 0x1b3   : > { %v5379_v25 = vpop.f32.mrb[90].mxu0 }
 0x1b4   : > { %2500 = vmatpush1.bf16.msra.mxu1 %v1494_v15  ;;  %v1496_v26 = vpack.c.bf16 %v5379_v25, %v5378_v20  ;;  %v1295_v27 = vpop.f32.mrb[91].mxu0  ;;  %v1605_v15 = vld [vmem:[%s6227_s30 + $0x2d0] sm:$0xff]  ;;  %v1812_v20 = vunpack.c.h.s8.bf16 %v1596_v10 }
 0x1b5   : > { %v1495_v28 = vpack.c.bf16 %v1295_v27, %v1292_v23  ;;  %2501 = vmatprep.subr.bf16.mxu1 %v5980_v33  ;;  %v1821_v17 = vunpack.c.l.s8.bf16 %v1605_v15  ;;  %v1614_v23 = vld [vmem:[%s6227_s30 + $0x318] sm:$0xff]  ;;  %v1829_v27 = vunpack.c.h.s8.bf16 %v1605_v15 }
 0x1b6   : > { %2349 = vmatmul.mubr.bf16.gmra.mrb[24].mxu1 %v1773_v21  ;;  %2044 = vmatmul.mubr.bf16.gmra.mrb[184].mxu0 %v1755_v22  ;;  %v1838_v30 = vunpack.c.l.s8.bf16 %v1614_v23 }
 0x1b7   : > { %2356 = vmatprep.mubr.bf16.mxu1 %v1782_v24  ;;  %2051 = vmatprep.mubr.bf16.mxu0 %v1764_v3  ;;  %v1604_v24 = vld [vmem:[%s6227_s30 + $0x2c8] sm:$0xff] }
 0x1b8   : > { %2502 = vmatpush1.bf16.msra.mxu1 %v1495_v28  ;;  %v1811_v28 = vunpack.c.h.s8.bf16 %v1595_v16 }
 0x1b9   : > { %2503 = vmatprep.subr.bf16.mxu1 %v5980_v33  ;;  %v5382_v31 = vpop.f32.mrb[92].mxu0 }
 0x1ba   : > { %v1308_v35 = vpop.f32.mrb[93].mxu0 }
 0x1bb   : > { %v5383_v38 = vpop.f32.mrb[94].mxu0 }
 0x1bc   : > { %2504 = vmatpush1.bf16.msra.mxu1 %v1496_v26  ;;  %v1498_v39 = vpack.c.bf16 %v5383_v38, %v5382_v31  ;;  %v1311_v40 = vpop.f32.mrb[95].mxu0  ;;  %v1820_v31 = vunpack.c.l.s8.bf16 %v1604_v24  ;;  %v1828_v38 = vunpack.c.h.s8.bf16 %v1604_v24 }
 0x1bd   : > { %v1497_v41 = vpack.c.bf16 %v1311_v40, %v1308_v35  ;;  %2505 = vmatprep.subr.bf16.mxu1 %v5980_v33  ;;  %v1612_v40 = vld [vmem:[%s6227_s30 + $0x308] sm:$0xff] }
 0x1be   : > { %2357 = vmatmul.mubr.bf16.gmra.mrb[28].mxu1 %v1781_v32  ;;  %2052 = vmatmul.mubr.bf16.gmra.mrb[188].mxu0 %v1763_v34  ;;  %v1613_v32 = vld [vmem:[%s6227_s30 + $0x310] sm:$0xff]  ;;  %v1603_v34 = vld [vmem:[%s6227_s30 + $0x2c0] sm:$0xff] }
 0x1bf   : > { %2364 = vmatprep.mubr.bf16.mxu1 %v1790_v36  ;;  %2059 = vmatprep.mubr.bf16.mxu0 %v1772_v37  ;;  %v1837_v35 = vunpack.c.l.s8.bf16 %v1613_v32  ;;  %v1819_v36 = vunpack.c.l.s8.bf16 %v1603_v34  ;;  %v1846_v37 = vunpack.c.h.s8.bf16 %v1614_v23  ;;  %v1827_v42 = vunpack.c.h.s8.bf16 %v1603_v34 }
 0x1c0   : > { %2506 = vmatpush1.bf16.msra.mxu1 %v1497_v41  ;;  %v1845_v41 = vunpack.c.h.s8.bf16 %v1613_v32 }
 0x1c1   : > { %2507 = vmatprep.subr.bf16.mxu1 %v5980_v33  ;;  %v6350_v44 = vpop.f32.mrb[96].mxu0 }
 0x1c2   : > { %v6352_v47 = vpop.f32.mrb[97].mxu0 }
 0x1c3   : > { %v6354_v50 = vpop.f32.mrb[98].mxu0 }
 0x1c4   : > { %2508 = vmatpush1.bf16.msra.mxu1 %v1498_v39  ;;  %v1500_v51 = vpack.c.bf16 %v6354_v50, %v6350_v44  ;;  %v6358_v52 = vpop.f32.mrb[99].mxu0  ;;  %v1622_v39 = vld [vmem:[%s6227_s30 + $0x358] sm:$0xff] }
 0x1c5   : > { %v1499_v53 = vpack.c.bf16 %v6358_v52, %v6352_v47  ;;  %2766 = vmatprep.subr.bf16.mxu1 %v5980_v33  ;;  %v1854_v43 = vunpack.c.l.s8.bf16 %v1622_v39  ;;  %v1862_v55 = vunpack.c.h.s8.bf16 %v1622_v39  ;;  %v1636_v39 = vld [vmem:[%s6227_s30 + $0x3c8] sm:$0xff]  ;;  %v1527_v47 = vld [vmem:[%s6227_s30 + $0x60] sm:$0xff]  ;;  %v1517_v52 = vld [vmem:[%s6227_s30 + $0x10] sm:$0xff] }
 0x1c6   : > { %2365 = vmatmul.mubr.bf16.gmra.mrb[32].mxu1 %v1789_v45  ;;  %2060 = vmatmul.mubr.bf16.gmra.mrb[192].mxu0 %v1771_v46  ;;  %v1836_v45 = vunpack.c.l.s8.bf16 %v1612_v40  ;;  %v1621_v46 = vld [vmem:[%s6227_s30 + $0x350] sm:$0xff]  ;;  %v1663_v44 = vunpack.c.l.s8.bf16 %v1527_v47  ;;  %v1645_v50 = vunpack.c.l.s8.bf16 %v1517_v52 }
 0x1c7   : > { %2372 = vmatprep.mubr.bf16.mxu1 %v1798_v48  ;;  %2067 = vmatprep.mubr.bf16.mxu0 %v1780_v49  ;;  %v1611_v48 = vld [vmem:[%s6227_s30 + $0x300] sm:$0xff]  ;;  %v1853_v49 = vunpack.c.l.s8.bf16 %v1621_v46 }
 0x1c8   : > { %v1835_v54 = vunpack.c.l.s8.bf16 %v1611_v48 }
 0x1c9   : > { %v6365_v56 = vpop.f32.mrb[100].mxu0 }
 0x1ca   : > { %v6367_v59 = vpop.f32.mrb[101].mxu0 }
 0x1cb   : > { %v6369_v62 = vpop.f32.mrb[102].mxu0 }
 0x1cc   : > { %v1502_v63 = vpack.c.bf16 %v6369_v62, %v6365_v56  ;;  %v6373_v0 = vpop.f32.mrb[103].mxu0 }
 0x1cd   : > { %v1501_v1 = vpack.c.bf16 %v6373_v0, %v6367_v59 }
 0x1ce   : > { %2373 = vmatmul.mubr.bf16.gmra.mrb[36].mxu1 %v1797_v57  ;;  %2068 = vmatmul.mubr.bf16.gmra.mrb[196].mxu0 %v1779_v58  ;;  %v1844_v57 = vunpack.c.h.s8.bf16 %v1612_v40 }
 0x1cf   : > { %2380 = vmatprep.mubr.bf16.mxu1 %v1806_v60  ;;  %2075 = vmatprep.mubr.bf16.mxu0 %v1788_v61  ;;  %v1630_v61 = vld [vmem:[%s6227_s30 + $0x398] sm:$0xff] }
 0x1d0   : > { %v1870_v10 = vunpack.c.l.s8.bf16 %v1630_v61  ;;  %v1878_v16 = vunpack.c.h.s8.bf16 %v1630_v61 }
 0x1d1   : > { %v6383_v21 = vpop.f32.mrb[104].mxu0 }
 0x1d2   : > { %v6385_v22 = vpop.f32.mrb[105].mxu0 }
 0x1d3   : > { %v6389_v3 = vpop.f32.mrb[106].mxu0 }
 0x1d4   : > { %v1504_v25 = vpack.c.bf16 %v6389_v3, %v6383_v21  ;;  %v6393_v26 = vpop.f32.mrb[107].mxu0 }
 0x1d5   : > { %v1503_v29 = vpack.c.bf16 %v6393_v26, %v6385_v22  ;;  %v1535_v22 = vld [vmem:[%s6227_s30 + $0xa0] sm:$0xff]  ;;  %v1525_v26 = vld [vmem:[%s6227_s30 + $0x50] sm:$0xff] }
 0x1d6   : > { %2381 = vmatmul.mubr.bf16.gmra.mrb[40].mxu1 %v1805_v5  ;;  %2076 = vmatmul.mubr.bf16.gmra.mrb[200].mxu0 %v1787_v6 }
 0x1d7   : > { %2388 = vmatprep.mubr.bf16.mxu1 %v1814_v7  ;;  %2083 = vmatprep.mubr.bf16.mxu0 %v1796_v8  ;;  %v1861_v7 = vunpack.c.h.s8.bf16 %v1621_v46  ;;  %v1843_v8 = vunpack.c.h.s8.bf16 %v1611_v48 }
 0x1d9   : > { %v6403_v58 = vpop.f32.mrb[108].mxu0 }
 0x1da   : > { %v6405_v60 = vpop.f32.mrb[109].mxu0 }
 0x1db   : > { %v6409_v4 = vpop.f32.mrb[110].mxu0 }
 0x1dc   : > { %v1506_v5 = vpack.c.bf16 %v6409_v4, %v6403_v58  ;;  %v6413_v6 = vpop.f32.mrb[111].mxu0 }
 0x1dd   : > { %v1505_v9 = vpack.c.bf16 %v6413_v6, %v6405_v60  ;;  %v1544_v6 = vld [vmem:[%s6227_s30 + $0xe8] sm:$0xff] }
 0x1de   : > { %2389 = vmatmul.mubr.bf16.gmra.mrb[44].mxu1 %v1813_v11  ;;  %2084 = vmatmul.mubr.bf16.gmra.mrb[204].mxu0 %v1795_v12  ;;  %v1852_v11 = vunpack.c.l.s8.bf16 %v1620_v2  ;;  %v1629_v12 = vld [vmem:[%s6227_s30 + $0x390] sm:$0xff] }
 0x1df   : > { %2396 = vmatprep.mubr.bf16.mxu1 %v1822_v13  ;;  %2091 = vmatprep.mubr.bf16.mxu0 %v1804_v14  ;;  %v1619_v13 = vld [vmem:[%s6227_s30 + $0x340] sm:$0xff]  ;;  %v1869_v14 = vunpack.c.l.s8.bf16 %v1629_v12 }
 0x1e0   : > { %v1851_v15 = vunpack.c.l.s8.bf16 %v1619_v13  ;;  %v1859_v23 = vunpack.c.h.s8.bf16 %v1619_v13 }
 0x1e6   : > { %2397 = vmatmul.mubr.bf16.gmra.mrb[48].mxu1 %v1821_v17  ;;  %2092 = vmatmul.mubr.bf16.gmra.mrb[208].mxu0 %v1803_v18  ;;  %v1860_v17 = vunpack.c.h.s8.bf16 %v1620_v2  ;;  %v1638_v18 = vld [vmem:[%s6227_s30 + $0x3d8] sm:$0xff] }
 0x1e7   : > { %2404 = vmatprep.mubr.bf16.mxu1 %v1830_v19  ;;  %2099 = vmatprep.mubr.bf16.mxu0 %v1812_v20  ;;  %v1628_v19 = vld [vmem:[%s6227_s30 + $0x388] sm:$0xff]  ;;  %v1877_v20 = vunpack.c.h.s8.bf16 %v1629_v12  ;;  %v1886_v24 = vunpack.c.l.s8.bf16 %v1638_v18  ;;  %v1894_v34 = vunpack.c.h.s8.bf16 %v1638_v18 }
 0x1ee   : > { %2405 = vmatmul.mubr.bf16.gmra.mrb[52].mxu1 %v1829_v27  ;;  %2100 = vmatmul.mubr.bf16.gmra.mrb[212].mxu0 %v1811_v28  ;;  %v1868_v27 = vunpack.c.l.s8.bf16 %v1628_v19  ;;  %v1637_v28 = vld [vmem:[%s6227_s30 + $0x3d0] sm:$0xff] }
 0x1ef   : > { %2412 = vmatprep.mubr.bf16.mxu1 %v1838_v30  ;;  %2107 = vmatprep.mubr.bf16.mxu0 %v1820_v31  ;;  %v1627_v30 = vld [vmem:[%s6227_s30 + $0x380] sm:$0xff]  ;;  %v1885_v31 = vunpack.c.l.s8.bf16 %v1637_v28 }
 0x1f0   : > { %v1867_v32 = vunpack.c.l.s8.bf16 %v1627_v30 }
 0x1f6   : > { %2413 = vmatmul.mubr.bf16.gmra.mrb[56].mxu1 %v1837_v35  ;;  %2108 = vmatmul.mubr.bf16.gmra.mrb[216].mxu0 %v1819_v36  ;;  %v1876_v35 = vunpack.c.h.s8.bf16 %v1628_v19  ;;  %v6423_v36 = vpop.f32.mrb[112].mxu0 }
 0x1f7   : > { %2420 = vmatprep.mubr.bf16.mxu1 %v1846_v37  ;;  %2115 = vmatprep.mubr.bf16.mxu0 %v1828_v38  ;;  %v6425_v37 = vpop.f32.mrb[113].mxu0  ;;  %v1520_v38 = vld [vmem:[%s6227_s30 + $0x28] sm:$0xff] }
 0x1f8   : > { %v6429_v40 = vpop.f32.mrb[114].mxu0  ;;  %v1648_v48 = vunpack.c.l.s8.bf16 %v1520_v38  ;;  %v1656_v2 = vunpack.c.h.s8.bf16 %v1520_v38 }
 0x1fe   : > { %2421 = vmatmul.mubr.bf16.gmra.mrb[60].mxu1 %v1845_v41  ;;  %2116 = vmatmul.mubr.bf16.gmra.mrb[220].mxu0 %v1827_v42  ;;  %v1508_v41 = vpack.c.bf16 %v6429_v40, %v6423_v36  ;;  %v6433_v42 = vpop.f32.mrb[115].mxu0 }
 0x1ff   : > { %2428 = vmatprep.mubr.bf16.mxu1 %v1854_v43  ;;  %2123 = vmatprep.mubr.bf16.mxu0 %v1836_v45  ;;  %v1893_v43 = vunpack.c.h.s8.bf16 %v1637_v28  ;;  %v1875_v45 = vunpack.c.h.s8.bf16 %v1627_v30  ;;  %v1507_v46 = vpack.c.bf16 %v6433_v42, %v6425_v37  ;;  %v6459_v59 = vpop.f32.mrb[116].mxu0  ;;  %v1533_v37 = vld [vmem:[%s6227_s30 + $0x90] sm:$0xff] }
 0x200   : > { %v1404_v0 = vpop.f32.mrb[117].mxu0  ;;  %v1677_v40 = vunpack.c.l.s8.bf16 %v1533_v37 }
 0x206   : > { %2429 = vmatmul.mubr.bf16.gmra.mrb[64].mxu1 %v1853_v49  ;;  %2124 = vmatmul.mubr.bf16.gmra.mrb[224].mxu0 %v1835_v54  ;;  %v1884_v49 = vunpack.c.l.s8.bf16 %v1636_v39  ;;  %v1519_v54 = vld [vmem:[%s6227_s30 + $0x20] sm:$0xff] }
 0x207   : > { %2436 = vmatprep.mubr.bf16.mxu1 %v1862_v55  ;;  %2131 = vmatprep.mubr.bf16.mxu0 %v1844_v57  ;;  %v1635_v55 = vld [vmem:[%s6227_s30 + $0x3c0] sm:$0xff]  ;;  %v1647_v57 = vunpack.c.l.s8.bf16 %v1519_v54 }
 0x208   : > { %v1883_v61 = vunpack.c.l.s8.bf16 %v1635_v55  ;;  %v1891_v12 = vunpack.c.h.s8.bf16 %v1635_v55  ;;  %v1685_v55 = vunpack.c.h.s8.bf16 %v1533_v37  ;;  %v5931_v37 = vld [vmem:[%s7204_s4] sm:$0xff]  }
 0x209   : > { %5416 = vmatprep.subr.bf16.mxu0 %v5931_v37 }
 0x20e   : > { %2437 = vmatmul.mubr.bf16.gmra.mrb[68].mxu1 %v1861_v7  ;;  %2132 = vmatmul.mubr.bf16.gmra.mrb[228].mxu0 %v1843_v8  ;;  %v1892_v7 = vunpack.c.h.s8.bf16 %v1636_v39  ;;  %v1528_v8 = vld [vmem:[%s6227_s30 + $0x68] sm:$0xff] }
 0x20f   : > { %2444 = vmatprep.mubr.bf16.mxu1 %v1870_v10  ;;  %2139 = vmatprep.mubr.bf16.mxu0 %v1852_v11  ;;  %v1518_v10 = vld [vmem:[%s6227_s30 + $0x18] sm:$0xff]  ;;  %v1655_v11 = vunpack.c.h.s8.bf16 %v1519_v54  ;;  %v1664_v13 = vunpack.c.l.s8.bf16 %v1528_v8 }
 0x216   : > { %2445 = vmatmul.mubr.bf16.gmra.mrb[72].mxu1 %v1869_v14  ;;  %2140 = vmatmul.mubr.bf16.gmra.mrb[232].mxu0 %v1851_v15  ;;  %v1646_v14 = vunpack.c.l.s8.bf16 %v1518_v10  ;;  %v1526_v15 = vld [vmem:[%s6227_s30 + $0x58] sm:$0xff] }
 0x217   : > { %2452 = vmatprep.mubr.bf16.mxu1 %v1878_v16  ;;  %2147 = vmatprep.mubr.bf16.mxu0 %v1860_v17  ;;  %v6466_v16 = vpop.f32.mrb[118].mxu0  ;;  %v1653_v17 = vunpack.c.h.s8.bf16 %v1517_v52  ;;  %v1670_v3 = vunpack.c.h.s8.bf16 %v1526_v15 }
 0x218   : > { %v1510_v56 = vpack.c.bf16 %v6466_v16, %v6459_v59  ;;  %v1407_v62 = vpop.f32.mrb[119].mxu0  ;;  %v1550_v59 = vld [vmem:[%s6227_s30 + $0x118] sm:$0xff] }
 0x219   : > { %v1509_v18 = vpack.c.bf16 %v1407_v62, %v1404_v0 }
 0x21e   : > { %2453 = vmatmul.mubr.bf16.gmra.mrb[76].mxu1 %v1877_v20  ;;  %2148 = vmatmul.mubr.bf16.gmra.mrb[236].mxu0 %v1859_v23  ;;  %v1662_v20 = vunpack.c.l.s8.bf16 %v1526_v15  ;;  %v1661_v23 = vunpack.c.l.s8.bf16 %v1525_v26 }
 0x21f   : > { %2460 = vmatprep.mubr.bf16.mxu1 %v1886_v24  ;;  %2155 = vmatprep.mubr.bf16.mxu0 %v1868_v27  ;;  %v1669_v27 = vunpack.c.h.s8.bf16 %v1525_v26 }
 0x226   : > { %2461 = vmatmul.mubr.bf16.gmra.mrb[80].mxu1 %v1885_v31  ;;  %2156 = vmatmul.mubr.bf16.gmra.mrb[240].mxu0 %v1867_v32  ;;  %v1696_v31 = vunpack.c.l.s8.bf16 %v1544_v6 }
 0x227   : > { %2468 = vmatprep.mubr.bf16.mxu1 %v1894_v34  ;;  %2163 = vmatprep.mubr.bf16.mxu0 %v1876_v35  ;;  %v1543_v35 = vld [vmem:[%s6227_s30 + $0xe0] sm:$0xff] }
 0x228   : > { %v1695_v36 = vunpack.c.l.s8.bf16 %v1543_v35  ;;  %v1703_v54 = vunpack.c.h.s8.bf16 %v1543_v35 }
 0x22e   : > { %2469 = vmatmul.mubr.bf16.gmra.mrb[84].mxu1 %v1893_v43  ;;  %2164 = vmatmul.mubr.bf16.gmra.mrb[244].mxu0 %v1875_v45 }
 0x22f   : > { %2509 = vmatprep.mubr.bf16.mxu1 %v1648_v48  ;;  %2171 = vmatprep.mubr.bf16.mxu0 %v1884_v49  ;;  %v1542_v48 = vld [vmem:[%s6227_s30 + $0xd8] sm:$0xff] }
 0x236   : > { %2510 = vmatmul.mubr.bf16.vlgmr.msra.gmra.mrb[88].mxu1 %v1647_v57  ;;  %2172 = vmatmul.mubr.bf16.gmra.mrb[248].mxu0 %v1883_v61 }
 0x237   : > { %2767 = vmatpush1.bf16.msra.mxu1 %v1499_v53  ;;  %2517 = vmatprep.mubr.bf16.mxu1 %v1656_v2  ;;  %v1654_v53 = vunpack.c.h.s8.bf16 %v1518_v10  ;;  %v1694_v2 = vunpack.c.l.s8.bf16 %v1542_v48  ;;  %v1551_v10 = vld [vmem:[%s6227_s30 + $0x120] sm:$0xff] }
 0x238   : > { %2768 = vmatprep.subr.bf16.mxu1 %v5980_v33  ;;  %2179 = vmatprep.mubr.bf16.mxu0 %v1892_v7 }
 0x23b   : > { %2769 = vmatpush1.bf16.msra.mxu1 %v1500_v51  ;;  %v1672_v51 = vunpack.c.h.s8.bf16 %v1528_v8 }
 0x23c   : > { %2770 = vmatprep.subr.bf16.mxu1 %v5980_v33 }
 0x23e   : > { %2518 = vmatmul.mubr.bf16.gmra.mrb[92].mxu1 %v1655_v11  ;;  %2180 = vmatmul.mubr.bf16.gmra.mrb[252].mxu0 %v1891_v12  ;;  %v1541_v11 = vld [vmem:[%s6227_s30 + $0xd0] sm:$0xff] }
 0x23f   : > { %2525 = vmatprep.mubr.bf16.mxu1 %v1664_v13  ;;  %2771 = vmatpush1.bf16.msra.mxu1 %v1501_v1  ;;  %v1536_v1 = vld [vmem:[%s6227_s30 + $0xa8] sm:$0xff]  ;;  %v1711_v13 = vunpack.c.l.s8.bf16 %v1551_v10 }
 0x240   : > { %2772 = vmatprep.subr.bf16.mxu1 %v5980_v33  ;;  %2220 = vmatprep.mubr.bf16.mxu0 %v1646_v14  ;;  %v1680_v19 = vunpack.c.l.s8.bf16 %v1536_v1  ;;  %v1688_v21 = vunpack.c.h.s8.bf16 %v1536_v1  ;;  %v1693_v14 = vunpack.c.l.s8.bf16 %v1541_v11  ;;  %v1701_v1 = vunpack.c.h.s8.bf16 %v1541_v11  ;;  %v5935_v11 = vld [vmem:[%s7204_s4 + $0x20] sm:$0xff]  }
 0x243   : > { %2773 = vmatpush1.bf16.msra.mxu1 %v1502_v63  ;;  %v1671_v63 = vunpack.c.h.s8.bf16 %v1527_v47 }
 0x244   : > { %2774 = vmatprep.subr.bf16.mxu1 %v5980_v33 }
 0x246   : > { %2526 = vmatmul.mubr.bf16.gmra.mrb[96].mxu1 %v1663_v44  ;;  %2221 = vmatmul.mubr.bf16.vlgmr.msra.gmra.mrb[128].mxu0 %v1645_v50  ;;  %v1702_v44 = vunpack.c.h.s8.bf16 %v1542_v48  ;;  %v1575_v48 = vld [vmem:[%s6227_s30 + $0x1e0] sm:$0xff] }
 0x247   : > { %2533 = vmatprep.mubr.bf16.mxu1 %v1672_v51  ;;  %2228 = vmatprep.mubr.bf16.mxu0 %v1654_v53  ;;  %v1560_v53 = vld [vmem:[%s6227_s30 + $0x168] sm:$0xff] }
 0x248   : > { %2775 = vmatpush1.bf16.msra.mxu1 %v1503_v29  ;;  %v1679_v29 = vunpack.c.l.s8.bf16 %v1535_v22  ;;  %v1728_v16 = vunpack.c.l.s8.bf16 %v1560_v53  ;;  %5417 = vmatpush3.bf16.msra.mxu0 %v5931_v37  ;;  %v1600_v37 = vld [vmem:[%s6227_s30 + $0x2a8] sm:$0xff] }
 0x249   : > { %2776 = vmatprep.subr.bf16.mxu1 %v5980_v33 }
 0x24c   : > { %2777 = vmatpush1.bf16.msra.mxu1 %v1504_v25  ;;  %v5410_v25 = vpop.f32.mrb[120].mxu0 }
 0x24d   : > { %2778 = vmatprep.subr.bf16.mxu1 %v5980_v33  ;;  %v1420_v60 = vpop.f32.mrb[121].mxu0 }
 0x24e   : > { %2534 = vmatmul.mubr.bf16.gmra.mrb[100].mxu1 %v1671_v63  ;;  %2229 = vmatmul.mubr.bf16.gmra.mrb[132].mxu0 %v1653_v17  ;;  %v5411_v24 = vpop.f32.mrb[122].mxu0  ;;  %v1559_v17 = vld [vmem:[%s6227_s30 + $0x160] sm:$0xff] }
 0x24f   : > { %2541 = vmatprep.mubr.bf16.mxu1 %v1680_v19  ;;  %2236 = vmatprep.mubr.bf16.mxu0 %v1662_v20  ;;  %v1512_v58 = vpack.c.bf16 %v5411_v24, %v5410_v25  ;;  %v1423_v4 = vpop.f32.mrb[123].mxu0  ;;  %v1727_v20 = vunpack.c.l.s8.bf16 %v1559_v17  ;;  %v1568_v25 = vld [vmem:[%s6227_s30 + $0x1a8] sm:$0xff] }
 0x250   : > { %2779 = vmatpush1.bf16.msra.mxu1 %v1505_v9  ;;  %v1534_v9 = vld [vmem:[%s6227_s30 + $0x98] sm:$0xff]  ;;  %v1511_v28 = vpack.c.bf16 %v1423_v4, %v1420_v60  ;;  %v5414_v30 = vpop.f32.mrb[124].mxu0 }
 0x251   : > { %2780 = vmatprep.subr.bf16.mxu1 %v5980_v33  ;;  %v1678_v32 = vunpack.c.l.s8.bf16 %v1534_v9  ;;  %v1436_v34 = vpop.f32.mrb[125].mxu0  ;;  %v1686_v45 = vunpack.c.h.s8.bf16 %v1534_v9 }
 0x252   : > { %v5415_v38 = vpop.f32.mrb[126].mxu0 }
 0x253   : > { %v1514_v39 = vpack.c.bf16 %v5415_v38, %v5414_v30  ;;  %v1439_v42 = vpop.f32.mrb[127].mxu0  ;;  %v5932_v38 = vld [vmem:[%s7204_s4 + $0x8] sm:$0xff]  }
 0x254   : > { %2781 = vmatpush1.bf16.msra.mxu1 %v1506_v5  ;;  %v1687_v5 = vunpack.c.h.s8.bf16 %v1535_v22  ;;  %v1513_v43 = vpack.c.bf16 %v1439_v42, %v1436_v34  ;;  %5418 = vmatprep.subr.bf16.mxu0 %v5932_v38 }
 0x255   : > { %2782 = vmatprep.subr.bf16.mxu1 %v5980_v33  ;;  %5419 = vmatpush3.bf16.msra.mxu0 %v5932_v38  ;;  %v5941_v38 = vld [vmem:[%s6590_s27 + $0x10] sm:$0xff]  }
 0x256   : > { %2542 = vmatmul.mubr.bf16.gmra.mrb[104].mxu1 %v1679_v29  ;;  %2237 = vmatmul.mubr.bf16.gmra.mrb[136].mxu0 %v1661_v23  ;;  %v1736_v29 = vunpack.c.h.s8.bf16 %v1560_v53  ;;  %v1718_v23 = vunpack.c.h.s8.bf16 %v1550_v59 }
 0x257   : > { %2549 = vmatprep.mubr.bf16.mxu1 %v1688_v21  ;;  %2244 = vmatprep.mubr.bf16.mxu0 %v1670_v3 }
 0x258   : > { %2783 = vmatpush1.bf16.msra.mxu1 %v1507_v46  ;;  %v1552_v46 = vld [vmem:[%s6227_s30 + $0x128] sm:$0xff] }
 0x259   : > { %2784 = vmatprep.subr.bf16.mxu1 %v5980_v33  ;;  %v1712_v61 = vunpack.c.l.s8.bf16 %v1552_v46  ;;  %v1720_v52 = vunpack.c.h.s8.bf16 %v1552_v46  ;;  %v5933_v46 = vld [vmem:[%s7204_s4 + $0x10] sm:$0xff]  }
 0x25a   : > { %5420 = vmatprep.subr.bf16.mxu0 %v5933_v46 }
 0x25b   : > { %5421 = vmatpush3.bf16.msra.mxu0 %v5933_v46 }
 0x25c   : > { %2785 = vmatpush1.bf16.msra.mxu1 %v1508_v41  ;;  %v1704_v41 = vunpack.c.h.s8.bf16 %v1544_v6  ;;  %v1735_v6 = vunpack.c.h.s8.bf16 %v1559_v17 }
 0x25d   : > { %2786 = vmatprep.subr.bf16.mxu1 %v5980_v33 }
 0x25e   : > { %2550 = vmatmul.mubr.bf16.gmra.mrb[108].mxu1 %v1687_v5  ;;  %2245 = vmatmul.mubr.bf16.gmra.mrb[140].mxu0 %v1669_v27  ;;  %v1567_v27 = vld [vmem:[%s6227_s30 + $0x1a0] sm:$0xff] }
 0x25f   : > { %2557 = vmatprep.mubr.bf16.mxu1 %v1696_v31  ;;  %2252 = vmatprep.mubr.bf16.mxu0 %v1678_v32  ;;  %v1743_v30 = vunpack.c.l.s8.bf16 %v1567_v27  ;;  %v1752_v32 = vunpack.c.h.s8.bf16 %v1568_v25 }
 0x260   : > { %2787 = vmatpush1.bf16.msra.mxu1 %v1509_v18  ;;  %v1549_v18 = vld [vmem:[%s6227_s30 + $0x110] sm:$0xff] }
 0x261   : > { %2788 = vmatprep.subr.bf16.mxu1 %v5980_v33  ;;  %v1709_v22 = vunpack.c.l.s8.bf16 %v1549_v18  ;;  %v1717_v9 = vunpack.c.h.s8.bf16 %v1549_v18 }
 0x264   : > { %2789 = vmatpush1.bf16.msra.mxu1 %v1510_v56  ;;  %v1710_v56 = vunpack.c.l.s8.bf16 %v1550_v59 }
 0x265   : > { %2790 = vmatprep.subr.bf16.mxu1 %v5980_v33 }
 0x266   : > { %2558 = vmatmul.mubr.bf16.gmra.mrb[112].mxu1 %v1695_v36  ;;  %2253 = vmatmul.mubr.bf16.gmra.mrb[144].mxu0 %v1677_v40 }
 0x267   : > { %2565 = vmatprep.mubr.bf16.mxu1 %v1704_v41  ;;  %2260 = vmatprep.mubr.bf16.mxu0 %v1686_v45 }
 0x268   : > { %2791 = vmatpush1.bf16.msra.mxu1 %v1511_v28 }
 0x269   : > { %v6501_v49 = vpop.f32.mrb[168].mxu0  ;;  %2792 = vmatprep.subr.bf16.mxu1 %v5980_v33 }
 0x26a   : > { %v2015_v57 = vpop.f32.mrb[169].mxu0 }
 0x26b   : > { %v6504_v7 = vpop.f32.mrb[170].mxu0  ;;  %v1759_v57 = vunpack.c.l.s8.bf16 %v1575_v48 }
 0x26c   : > { %v2018_v8 = vpop.f32.mrb[171].mxu0  ;;  %2793 = vmatpush1.bf16.msra.mxu1 %v1512_v58  ;;  %v1744_v58 = vunpack.c.l.s8.bf16 %v1568_v25 }
 0x26d   : > { %2794 = vmatprep.subr.bf16.mxu1 %v5980_v33 }
 0x26e   : > { %2566 = vmatmul.mubr.bf16.gmra.mrb[116].mxu1 %v1703_v54  ;;  %2261 = vmatmul.mubr.bf16.gmra.mrb[148].mxu0 %v1685_v55  ;;  %v5934_v54 = vld [vmem:[%s7204_s4 + $0x18] sm:$0xff]  }
 0x26f   : > { %2573 = vmatprep.mubr.bf16.mxu1 %v1712_v61  ;;  %2268 = vmatprep.mubr.bf16.mxu0 %v1694_v2 }
 0x270   : > { %2795 = vmatpush1.bf16.msra.mxu1 %v1513_v43  ;;  %v1751_v43 = vunpack.c.h.s8.bf16 %v1567_v27  ;;  %5422 = vmatprep.subr.bf16.mxu0 %v5934_v54 }
 0x271   : > { %v6509_v12 = vpop.f32.mrb[172].mxu0  ;;  %2796 = vmatprep.subr.bf16.mxu1 %v5980_v33  ;;  %v1719_v33 = vunpack.c.h.s8.bf16 %v1551_v10  ;;  %5423 = vmatpush3.bf16.msra.mxu0 %v5934_v54  ;;  %v1599_v54 = vld [vmem:[%s6227_s30 + $0x2a0] sm:$0xff] }
 0x272   : > { %v2023_v47 = vpop.f32.mrb[173].mxu0  ;;  %5424 = vmatprep.subr.bf16.mxu0 %v5935_v11 }
 0x273   : > { %v6512_v50 = vpop.f32.mrb[174].mxu0 }
 0x274   : > { %v2026_v51 = vpop.f32.mrb[175].mxu0  ;;  %2797 = vmatpush1.bf16.msra.mxu1 %v1514_v39  ;;  %v1576_v39 = vld [vmem:[%s6227_s30 + $0x1e8] sm:$0xff] }
 0x275   : > { %v1760_v40 = vunpack.c.l.s8.bf16 %v1576_v39  ;;  %v1768_v2 = vunpack.c.h.s8.bf16 %v1576_v39  ;;  %5425 = vmatpush3.bf16.msra.mxu0 %v5935_v11  ;;  %v5942_v39 = vld [vmem:[%s6590_s27 + $0x18] sm:$0xff]  }
 0x276   : > { %2574 = vmatmul.mubr.bf16.gmra.mrb[120].mxu1 %v1711_v13  ;;  %2269 = vmatmul.mubr.bf16.gmra.mrb[152].mxu0 %v1693_v14  ;;  %v5936_v13 = vld [vmem:[%s7204_s4 + $0x28] sm:$0xff]  }
 0x277   : > { %2581 = vmatprep.mubr.bf16.mxu1 %v1720_v52  ;;  %2276 = vmatprep.mubr.bf16.mxu0 %v1702_v44  ;;  %v1584_v14 = vld [vmem:[%s6227_s30 + $0x228] sm:$0xff]  ;;  %v1767_v52 = vunpack.c.h.s8.bf16 %v1575_v48 }
 0x278   : > { %5426 = vmatprep.subr.bf16.mxu0 %v5936_v13  ;;  %v1776_v51 = vunpack.c.l.s8.bf16 %v1584_v14  ;;  %v1784_v17 = vunpack.c.h.s8.bf16 %v1584_v14  ;;  %v5943_v14 = vld [vmem:[%s6590_s27 + $0x20] sm:$0xff]  }
 0x279   : > { %v6516_v0 = vpop.f32.mrb[176].mxu0  ;;  %5427 = vmatpush3.bf16.msra.mxu0 %v5936_v13 }
 0x27a   : > { %7208 = vst [vmem:[#allocation2_spill] sm:$0xff] %v6516_v0  ;;  %v2031_v15 = vpop.f32.mrb[177].mxu0 }
 0x27b   : > { %v6518_v62 = vpop.f32.mrb[178].mxu0  ;;  %v5938_v15 = vld [vmem:[%s7204_s4 + $0x38] sm:$0xff]  }
 0x27c   : > { %7209 = vst [vmem:[#allocation3_spill] sm:$0xff] %v6518_v62  ;;  %v2034_v63 = vpop.f32.mrb[179].mxu0 }
 0x27e   : > { %2582 = vmatmul.mubr.bf16.gmra.mrb[124].mxu1 %v1719_v33  ;;  %2277 = vmatmul.mubr.bf16.gmra.mrb[156].mxu0 %v1701_v1  ;;  %v5937_v33 = vld [vmem:[%s7204_s4 + $0x30] sm:$0xff]   ;;  %v1583_v1 = vld [vmem:[%s6227_s30 + $0x220] sm:$0xff] }
 0x27f   : > { %2589 = vmatprep.mubr.bf16.mxu1 %v1728_v16  ;;  %2284 = vmatprep.mubr.bf16.mxu0 %v1710_v56  ;;  %v1775_v56 = vunpack.c.l.s8.bf16 %v1583_v1 }
 0x280   : > { %5428 = vmatprep.subr.bf16.mxu0 %v5937_v33 }
 0x281   : > { %v6522_v19 = vpop.f32.mrb[180].mxu0  ;;  %5429 = vmatpush3.bf16.msra.mxu0 %v5937_v33 }
 0x282   : > { %7210 = vst [vmem:[#allocation4_spill] sm:$0xff] %v6522_v19  ;;  %v2039_v26 = vpop.f32.mrb[181].mxu0  ;;  %5430 = vmatprep.subr.bf16.mxu0 %v5938_v15 }
 0x283   : > { %v6524_v21 = vpop.f32.mrb[182].mxu0  ;;  %v5939_v26 = vld [vmem:[%s6590_s27] sm:$0xff]  }
 0x284   : > { %7211 = vst [vmem:[#allocation5_spill] sm:$0xff] %v6524_v21  ;;  %v2042_v3 = vpop.f32.mrb[183].mxu0 }
 0x285   : > { %5431 = vmatpush3.bf16.msra.mxu0 %v5938_v15  ;;  %v1783_v3 = vunpack.c.h.s8.bf16 %v1583_v1 }
 0x286   : > { %2590 = vmatmul.mubr.bf16.gmra.mrb[0].mxu1 %v1727_v20  ;;  %2285 = vmatmul.mubr.bf16.gmra.mrb[160].mxu0 %v1709_v22  ;;  %v1592_v22 = vld [vmem:[%s6227_s30 + $0x268] sm:$0xff] }
 0x287   : > { %2597 = vmatprep.mubr.bf16.mxu1 %v1736_v29  ;;  %2292 = vmatprep.mubr.bf16.mxu0 %v1718_v23  ;;  %v5940_v29 = vld [vmem:[%s6590_s27 + $0x8] sm:$0xff]  }
 0x289   : > { %v6527_v60 = vpop.f32.mrb[184].mxu0 }
 0x28a   : > { %7212 = vst [vmem:[#allocation6_spill] sm:$0xff] %v6527_v60  ;;  %v2047_v24 = vpop.f32.mrb[185].mxu0 }
 0x28b   : > { %v6529_v4 = vpop.f32.mrb[186].mxu0 }
 0x28c   : > { %7213 = vst [vmem:[#allocation7_spill] sm:$0xff] %v6529_v4  ;;  %v2050_v5 = vpop.f32.mrb[187].mxu0 }
 0x28e   : > { %2598 = vmatmul.mubr.bf16.gmra.mrb[4].mxu1 %v1735_v6  ;;  %2293 = vmatmul.mubr.bf16.gmra.mrb[164].mxu0 %v1717_v9  ;;  %v1792_v6 = vunpack.c.l.s8.bf16 %v1592_v22 }
 0x28f   : > { %2605 = vmatprep.mubr.bf16.mxu1 %v1744_v58  ;;  %5432 = vmatprep.mubr.bf16.mxu0 %v5939_v26  ;;  %v1591_v58 = vld [vmem:[%s6227_s30 + $0x260] sm:$0xff] }
 0x290   : > { %v1791_v27 = vunpack.c.l.s8.bf16 %v1591_v58 }
 0x291   : > { %v6532_v28 = vpop.f32.mrb[188].mxu0 }
 0x292   : > { %7214 = vst [vmem:[#allocation8_spill] sm:$0xff] %v6532_v28  ;;  %v2055_v31 = vpop.f32.mrb[189].mxu0 }
 0x293   : > { %v6534_v34 = vpop.f32.mrb[190].mxu0  ;;  %v1800_v31 = vunpack.c.h.s8.bf16 %v1592_v22 }
 0x294   : > { %7215 = vst [vmem:[#allocation9_spill] sm:$0xff] %v6534_v34  ;;  %v2058_v35 = vpop.f32.mrb[191].mxu0 }
 0x296   : > { %2606 = vmatmul.mubr.bf16.gmra.mrb[8].mxu1 %v1743_v30  ;;  %5433 = vmatmul.mubr.bf16.vlgmr.msra.gmra.mrb[0].mxu0 %v5940_v29 }
 0x297   : > { %2613 = vmatprep.mubr.bf16.mxu1 %v1752_v32  ;;  %5436 = vmatprep.mubr.bf16.mxu0 %v5941_v38  ;;  %v1615_v38 = vld [vmem:[%s6227_s30 + $0x320] sm:$0xff] }
 0x299   : > { %v6543_v42 = vpop.f32.mrb[192].mxu0 }
 0x29a   : > { %7216 = vst [vmem:[#allocation10_spill] sm:$0xff] %v6543_v42  ;;  %v2063_v36 = vpop.f32.mrb[193].mxu0 }
 0x29b   : > { %v6545_v41 = vpop.f32.mrb[194].mxu0  ;;  %v1799_v36 = vunpack.c.h.s8.bf16 %v1591_v58 }
 0x29c   : > { %7217 = vst [vmem:[#allocation11_spill] sm:$0xff] %v6545_v41  ;;  %v2066_v45 = vpop.f32.mrb[195].mxu0 }
 0x29d   : > { %v1808_v45 = vunpack.c.l.s8.bf16 %v1600_v37 }
 0x29e   : > { %2614 = vmatmul.mubr.bf16.gmra.mrb[12].mxu1 %v1751_v43  ;;  %5437 = vmatmul.mubr.bf16.gmra.mrb[4].mxu0 %v5942_v39 }
 0x29f   : > { %2621 = vmatprep.mubr.bf16.mxu1 %v1760_v40  ;;  %5440 = vmatprep.mubr.bf16.mxu0 %v5943_v14  ;;  %v1847_v14 = vunpack.c.h.s8.bf16 %v1615_v38 }
 0x2a1   : > { %v6554_v55 = vpop.f32.mrb[196].mxu0 }
 0x2a2   : > { %7218 = vst [vmem:[#allocation12_spill] sm:$0xff] %v6554_v55  ;;  %v2071_v61 = vpop.f32.mrb[197].mxu0 }
 0x2a3   : > { %v6556_v8 = vpop.f32.mrb[198].mxu0  ;;  %v1807_v61 = vunpack.c.l.s8.bf16 %v1599_v54 }
 0x2a4   : > { %7219 = vst [vmem:[#allocation13_spill] sm:$0xff] %v6556_v8  ;;  %v2074_v10 = vpop.f32.mrb[199].mxu0 }
 0x2a5   : > { %v1816_v10 = vunpack.c.h.s8.bf16 %v1600_v37 }
 0x2a6   : > { %2622 = vmatmul.mubr.bf16.gmra.mrb[16].mxu1 %v1759_v57 }
 0x2a7   : > { %2629 = vmatprep.mubr.bf16.mxu1 %v1768_v2 }
 0x2a9   : > { %v6565_v47 = vpop.f32.mrb[200].mxu0 }
 0x2aa   : > { %7220 = vst [vmem:[#allocation14_spill] sm:$0xff] %v6565_v47  ;;  %v2079_v44 = vpop.f32.mrb[201].mxu0 }
 0x2ab   : > { %v6567_v53 = vpop.f32.mrb[202].mxu0  ;;  %v1608_v44 = vld [vmem:[%s6227_s30 + $0x2e8] sm:$0xff] }
 0x2ac   : > { %7221 = vst [vmem:[#allocation15_spill] sm:$0xff] %v6567_v53  ;;  %v2082_v59 = vpop.f32.mrb[203].mxu0  ;;  %v1824_v1 = vunpack.c.l.s8.bf16 %v1608_v44  ;;  %v1832_v26 = vunpack.c.h.s8.bf16 %v1608_v44 }
 0x2ad   : > { %v1815_v59 = vunpack.c.h.s8.bf16 %v1599_v54 }
 0x2ae   : > { %2630 = vmatmul.mubr.bf16.gmra.mrb[20].mxu1 %v1767_v52  ;;  %v5944_v52 = vld [vmem:[%s6590_s27 + $0x28] sm:$0xff]  }
 0x2af   : > { %2637 = vmatprep.mubr.bf16.mxu1 %v1776_v51  ;;  %5441 = vmatmul.mubr.bf16.gmra.mrb[8].mxu0 %v5944_v52 }
 0x2b1   : > { %v6578_v16 = vpop.f32.mrb[204].mxu0 }
 0x2b2   : > { %7222 = vst [vmem:[#allocation16_spill] sm:$0xff] %v6578_v16  ;;  %v2087_v63 = vpop.f32.mrb[205].mxu0 }
 0x2b3   : > { %v6582_v18 = vpop.f32.mrb[206].mxu0  ;;  %v1607_v63 = vld [vmem:[%s6227_s30 + $0x2e0] sm:$0xff] }
 0x2b4   : > { %7223 = vst [vmem:[#allocation17_spill] sm:$0xff] %v6582_v18  ;;  %v2090_v20 = vpop.f32.mrb[207].mxu0 }
 0x2b5   : > { %v1823_v20 = vunpack.c.l.s8.bf16 %v1607_v63 }
 0x2b6   : > { %2638 = vmatmul.mubr.bf16.gmra.mrb[24].mxu1 %v1775_v56 }
 0x2b7   : > { %2645 = vmatprep.mubr.bf16.mxu1 %v1784_v17 }
 0x2b9   : > { %v6595_v23 = vpop.f32.mrb[208].mxu0 }
 0x2ba   : > { %7224 = vst [vmem:[#allocation18_spill] sm:$0xff] %v6595_v23  ;;  %v2095_v25 = vpop.f32.mrb[209].mxu0 }
 0x2bb   : > { %v6597_v9 = vpop.f32.mrb[210].mxu0  ;;  %v5945_v25 = vld [vmem:[%s6590_s27 + $0x30] sm:$0xff]  }
 0x2bc   : > { %7225 = vst [vmem:[#allocation19_spill] sm:$0xff] %v6597_v9  ;;  %v2098_v24 = vpop.f32.mrb[211].mxu0  ;;  %5444 = vmatprep.mubr.bf16.mxu0 %v5945_v25  ;;  %v5949_v25 = vld [vmem:[%s6590_s27 + $0x50] sm:$0xff]  }
 0x2bd   : > { %v1616_v24 = vld [vmem:[%s6227_s30 + $0x328] sm:$0xff] }
 0x2be   : > { %2646 = vmatmul.mubr.bf16.gmra.mrb[28].mxu1 %v1783_v3 }
 0x2bf   : > { %2653 = vmatprep.mubr.bf16.mxu1 %v1792_v6  ;;  %v5946_v6 = vld [vmem:[%s6590_s27 + $0x38] sm:$0xff]  }
 0x2c0   : > { %5445 = vmatmul.mubr.bf16.gmra.mrb[12].mxu0 %v5946_v6  ;;  %v5950_v6 = vld [vmem:[%s6590_s27 + $0x58] sm:$0xff]  }
 0x2c1   : > { %v6600_v5 = vpop.f32.mrb[212].mxu0 }
 0x2c2   : > { %7226 = vst [vmem:[#allocation20_spill] sm:$0xff] %v6600_v5  ;;  %v2103_v30 = vpop.f32.mrb[213].mxu0 }
 0x2c3   : > { %v6602_v32 = vpop.f32.mrb[214].mxu0 }
 0x2c4   : > { %7227 = vst [vmem:[#allocation21_spill] sm:$0xff] %v6602_v32  ;;  %v2106_v35 = vpop.f32.mrb[215].mxu0 }
 0x2c6   : > { %2654 = vmatmul.mubr.bf16.gmra.mrb[32].mxu1 %v1791_v27  ;;  %v1831_v27 = vunpack.c.h.s8.bf16 %v1607_v63 }
 0x2c7   : > { %2661 = vmatprep.mubr.bf16.mxu1 %v1800_v31  ;;  %v1840_v31 = vunpack.c.l.s8.bf16 %v1616_v24 }
 0x2c9   : > { %v6607_v43 = vpop.f32.mrb[216].mxu0 }
 0x2ca   : > { %7228 = vst [vmem:[#allocation22_spill] sm:$0xff] %v6607_v43  ;;  %v2111_v40 = vpop.f32.mrb[217].mxu0 }
 0x2cb   : > { %v6609_v46 = vpop.f32.mrb[218].mxu0 }
 0x2cc   : > { %7229 = vst [vmem:[#allocation23_spill] sm:$0xff] %v6609_v46  ;;  %v2114_v48 = vpop.f32.mrb[219].mxu0 }
 0x2ce   : > { %2662 = vmatmul.mubr.bf16.gmra.mrb[36].mxu1 %v1799_v36  ;;  %v1839_v36 = vunpack.c.l.s8.bf16 %v1615_v38  ;;  %v3665_v38 = vld [vmem:[%s6658_s9 + $0x8] sm:$0xff] }
 0x2cf   : > { %2669 = vmatprep.mubr.bf16.mxu1 %v1808_v45  ;;  %v1848_v45 = vunpack.c.h.s8.bf16 %v1616_v24  ;;  %v1632_v24 = vld [vmem:[%s6227_s30 + $0x3a8] sm:$0xff] }
 0x2d1   : > { %v6612_v57 = vpop.f32.mrb[220].mxu0 }
 0x2d2   : > { %7230 = vst [vmem:[#allocation24_spill] sm:$0xff] %v6612_v57  ;;  %v2119_v2 = vpop.f32.mrb[221].mxu0 }
 0x2d3   : > { %v6614_v11 = vpop.f32.mrb[222].mxu0  ;;  %v5948_v2 = vld [vmem:[%s6590_s27 + $0x48] sm:$0xff]  }
 0x2d4   : > { %7231 = vst [vmem:[#allocation25_spill] sm:$0xff] %v6614_v11  ;;  %v2122_v13 = vpop.f32.mrb[223].mxu0 }
 0x2d6   : > { %2670 = vmatmul.mubr.bf16.gmra.mrb[40].mxu1 %v1807_v61  ;;  %v5947_v61 = vld [vmem:[%s6590_s27 + $0x40] sm:$0xff]  }
 0x2d7   : > { %2677 = vmatprep.mubr.bf16.mxu1 %v1816_v10  ;;  %v1624_v10 = vld [vmem:[%s6227_s30 + $0x368] sm:$0xff]  ;;  %5448 = vmatprep.mubr.bf16.mxu0 %v5947_v61  ;;  %v1631_v61 = vld [vmem:[%s6227_s30 + $0x3a0] sm:$0xff] }
 0x2d8   : > { %5449 = vmatmul.mubr.bf16.gmra.mrb[16].mxu0 %v5948_v2  ;;  %v1856_v44 = vunpack.c.l.s8.bf16 %v1624_v10  ;;  %v3667_v2 = vld [vmem:[%s6658_s9 + $0x18] sm:$0xff] }
 0x2d9   : > { %v6619_v51 = vpop.f32.mrb[224].mxu0  ;;  %5452 = vmatprep.mubr.bf16.mxu0 %v5949_v25  ;;  %v3671_v25 = vld [vmem:[%s6658_s9 + $0x38] sm:$0xff] }
 0x2da   : > { %7232 = vst [vmem:[#allocation26_spill] sm:$0xff] %v6619_v51  ;;  %v2127_v33 = vpop.f32.mrb[225].mxu0 }
 0x2db   : > { %v6621_v15 = vpop.f32.mrb[226].mxu0 }
 0x2dc   : > { %7233 = vst [vmem:[#allocation27_spill] sm:$0xff] %v6621_v15  ;;  %v2130_v56 = vpop.f32.mrb[227].mxu0 }
 0x2de   : > { %2678 = vmatmul.mubr.bf16.gmra.mrb[44].mxu1 %v1815_v59 }
 0x2df   : > { %2685 = vmatprep.mubr.bf16.mxu1 %v1824_v1  ;;  %v1623_v1 = vld [vmem:[%s6227_s30 + $0x360] sm:$0xff] }
 0x2e0   : > { %v1855_v63 = vunpack.c.l.s8.bf16 %v1623_v1  ;;  %5453 = vmatmul.mubr.bf16.gmra.mrb[20].mxu0 %v5950_v6  ;;  %v1640_v6 = vld [vmem:[%s6227_s30 + $0x3e8] sm:$0xff] }
 0x2e1   : > { %v6624_v17 = vpop.f32.mrb[228].mxu0 }
 0x2e2   : > { %7234 = vst [vmem:[#allocation28_spill] sm:$0xff] %v6624_v17  ;;  %v2135_v22 = vpop.f32.mrb[229].mxu0 }
 0x2e3   : > { %v6626_v29 = vpop.f32.mrb[230].mxu0  ;;  %v1864_v22 = vunpack.c.h.s8.bf16 %v1624_v10 }
 0x2e4   : > { %7235 = vst [vmem:[#allocation29_spill] sm:$0xff] %v6626_v29  ;;  %v2138_v3 = vpop.f32.mrb[231].mxu0  ;;  %v3711_v29 = vld [vmem:[%s6658_s9 + $0x178] sm:$0xff] }
 0x2e6   : > { %2686 = vmatmul.mubr.bf16.gmra.mrb[48].mxu1 %v1823_v20 }
 0x2e7   : > { %2693 = vmatprep.mubr.bf16.mxu1 %v1832_v26 }
 0x2e9   : > { %v6631_v58 = vpop.f32.mrb[232].mxu0 }
 0x2ea   : > { %7236 = vst [vmem:[#allocation30_spill] sm:$0xff] %v6631_v58  ;;  %v2143_v30 = vpop.f32.mrb[233].mxu0  ;;  %v5962_v58 = vld [vmem:[%s6590_s27 + $0xb8] sm:$0xff]  }
 0x2eb   : > { %v6633_v35 = vpop.f32.mrb[234].mxu0 }
 0x2ec   : > { %7237 = vst [vmem:[#allocation31_spill] sm:$0xff] %v6633_v35  ;;  %v2146_v37 = vpop.f32.mrb[235].mxu0 }
 0x2ee   : > { %2694 = vmatmul.mubr.bf16.gmra.mrb[52].mxu1 %v1831_v27  ;;  %v3664_v27 = vld [vmem:[%s6658_s9] sm:$0xff] }
 0x2ef   : > { %2701 = vmatprep.mubr.bf16.mxu1 %v1840_v31  ;;  %3730 = vperm.xlu0 %5857, %v3664_v27   ;;  %v1863_v31 = vunpack.c.h.s8.bf16 %v1623_v1  ;;  %v3670_v27 = vld [vmem:[%s6658_s9 + $0x30] sm:$0xff] }
 0x2f1   : > { %v6636_v39 = vpop.f32.mrb[236].mxu0 }
 0x2f2   : > { %7238 = vst [vmem:[#allocation32_spill] sm:$0xff] %v6636_v39  ;;  %v2151_v40 = vpop.f32.mrb[237].mxu0  ;;  %v1546_v39 = vld [vmem:[%s6227_s30 + $0xf8] sm:$0xff] }
 0x2f3   : > { %v6638_v48 = vpop.f32.mrb[238].mxu0  ;;  %3735 = vperm.xlu0 %5857, %v3665_v38   ;;  %v1888_v38 = vunpack.c.l.s8.bf16 %v1640_v6 }
 0x2f4   : > { %7239 = vst [vmem:[#allocation33_spill] sm:$0xff] %v6638_v48  ;;  %v2154_v54 = vpop.f32.mrb[239].mxu0  ;;  %v3703_v48 = vld [vmem:[%s6658_s9 + $0x138] sm:$0xff] }
 0x2f5   : > { %v3666_v54 = vld [vmem:[%s6658_s9 + $0x10] sm:$0xff] }
 0x2f6   : > { %2702 = vmatmul.mubr.bf16.gmra.mrb[56].mxu1 %v1839_v36  ;;  %v1872_v36 = vunpack.c.l.s8.bf16 %v1632_v24  ;;  %3740 = vperm.xlu1 %5858, %v3666_v54   ;;  %v3673_v54 = vld [vmem:[%s6658_s9 + $0x48] sm:$0xff] }
 0x2f7   : > { %2709 = vmatprep.mubr.bf16.mxu1 %v1848_v45 }
 0x2f9   : > { %v6643_v13 = vpop.f32.mrb[240].mxu0 }
 0x2fa   : > { %7240 = vst [vmem:[#allocation34_spill] sm:$0xff] %v6643_v13  ;;  %v2159_v52 = vpop.f32.mrb[241].mxu0  ;;  %3745 = vperm.xlu1 %5858, %v3667_v2   ;;  %v3672_v2 = vld [vmem:[%s6658_s9 + $0x40] sm:$0xff]  ;;  %v5960_v13 = vld [vmem:[%s6590_s27 + $0xa8] sm:$0xff]  }
 0x2fb   : > { %v6645_v59 = vpop.f32.mrb[242].mxu0 }
 0x2fc   : > { %7241 = vst [vmem:[#allocation35_spill] sm:$0xff] %v6645_v59  ;;  %v2162_v33 = vpop.f32.mrb[243].mxu0 }
 0x2fe   : > { %2710 = vmatmul.mubr.bf16.gmra.mrb[60].mxu1 %v1847_v14  ;;  %v1871_v14 = vunpack.c.l.s8.bf16 %v1631_v61 }
 0x2ff   : > { %2717 = vmatprep.mubr.bf16.mxu1 %v1856_v44  ;;  %v1880_v44 = vunpack.c.h.s8.bf16 %v1632_v24  ;;  %v1879_v24 = vunpack.c.h.s8.bf16 %v1631_v61  ;;  %v3674_v61 = vld [vmem:[%s6658_s9 + $0x50] sm:$0xff] }
 0x301   : > { %v6648_v56 = vpop.f32.mrb[244].mxu0 }
 0x302   : > { %7242 = vst [vmem:[#allocation36_spill] sm:$0xff] %v6648_v56  ;;  %v2167_v20 = vpop.f32.mrb[245].mxu0  ;;  %v1538_v56 = vld [vmem:[%s6227_s30 + $0xb8] sm:$0xff] }
 0x303   : > { %v6650_v26 = vpop.f32.mrb[246].mxu0  ;;  %v3668_v20 = vld [vmem:[%s6658_s9 + $0x20] sm:$0xff] }
 0x304   : > { %7243 = vst [vmem:[#allocation37_spill] sm:$0xff] %v6650_v26  ;;  %v2170_v3 = vpop.f32.mrb[247].mxu0  ;;  %3750 = vperm.xlu0 %5857, %v3668_v20   ;;  %v1896_v20 = vunpack.c.h.s8.bf16 %v1640_v6  ;;  %v3695_v26 = vld [vmem:[%s6658_s9 + $0xf8] sm:$0xff] }
 0x305   : > { %v5952_v3 = vld [vmem:[%s6590_s27 + $0x68] sm:$0xff]  }
 0x306   : > { %2718 = vmatmul.mubr.bf16.gmra.mrb[64].mxu1 %v1855_v63  ;;  %v3669_v63 = vld [vmem:[%s6658_s9 + $0x28] sm:$0xff] }
 0x307   : > { %2725 = vmatprep.mubr.bf16.mxu1 %v1864_v22  ;;  %3755 = vperm.xlu1 %5858, %v3669_v63   ;;  %v5951_v22 = vld [vmem:[%s6590_s27 + $0x60] sm:$0xff]  }
 0x308   : > { %5456 = vmatprep.mubr.bf16.mxu0 %v5951_v22  ;;  %3760 = vperm.xlu0 %5857, %v3670_v27   ;;  %v3676_v27 = vld [vmem:[%s6658_s9 + $0x60] sm:$0xff] }
 0x309   : > { %v6662_v30 = vpop.f32.mrb[248].mxu0  ;;  %5457 = vmatmul.mubr.bf16.gmra.mrb[24].mxu0 %v5952_v3 }
 0x30a   : > { %7244 = vst [vmem:[#allocation38_spill] sm:$0xff] %v6662_v30  ;;  %v2175_v37 = vpop.f32.mrb[249].mxu0  ;;  %v5958_v30 = vld [vmem:[%s6590_s27 + $0x98] sm:$0xff]  }
 0x30b   : > { %v6665_v40 = vpop.f32.mrb[250].mxu0  ;;  %3765 = vperm.xlu1 %5858, %v3671_v25   ;;  %v3677_v25 = vld [vmem:[%s6658_s9 + $0x68] sm:$0xff] }
 0x30c   : > { %7245 = vst [vmem:[#allocation39_spill] sm:$0xff] %v6665_v40  ;;  %v2178_v45 = vpop.f32.mrb[251].mxu0  ;;  %3770 = vperm.xlu0 %5857, %v3672_v2  }
 0x30e   : > { %2726 = vmatmul.mubr.bf16.gmra.mrb[68].mxu1 %v1863_v31 }
 0x30f   : > { %2733 = vmatprep.mubr.bf16.mxu1 %v1872_v36  ;;  %3775 = vperm.xlu1 %5858, %v3673_v54   ;;  %v3678_v54 = vld [vmem:[%s6658_s9 + $0x70] sm:$0xff] }
 0x310   : > { %3780 = vperm.xlu0 %5857, %v3674_v61  }
 0x311   : > { %v6670_v10 = vpop.f32.mrb[252].mxu0 }
 0x312   : > { %7246 = vst [vmem:[#allocation40_spill] sm:$0xff] %v6670_v10  ;;  %v2183_v52 = vpop.f32.mrb[253].mxu0  ;;  %v1530_v10 = vld [vmem:[%s6227_s30 + $0x78] sm:$0xff] }
 0x313   : > { %v6672_v33 = vpop.f32.mrb[254].mxu0  ;;  %v3675_v52 = vld [vmem:[%s6658_s9 + $0x58] sm:$0xff] }
 0x314   : > { %7247 = vst [vmem:[#allocation41_spill] sm:$0xff] %v6672_v33  ;;  %v2186_v1 = vpop.f32.mrb[255].mxu0  ;;  %3785 = vperm.xlu1 %5858, %v3675_v52   ;;  %3790 = vperm.xlu0 %5857, %v3676_v27   ;;  %v3683_v27 = vld [vmem:[%s6658_s9 + $0x98] sm:$0xff] }
 0x315   : > { %v3687_v33 = vld [vmem:[%s6658_s9 + $0xb8] sm:$0xff] }
 0x316   : > { %2734 = vmatmul.mubr.bf16.gmra.mrb[72].mxu1 %v1871_v14  ;;  %v1639_v14 = vld [vmem:[%s6227_s30 + $0x3e0] sm:$0xff] }
 0x317   : > { %2741 = vmatprep.mubr.bf16.mxu1 %v1880_v44  ;;  %v1887_v1 = vunpack.c.l.s8.bf16 %v1639_v14  ;;  %v1895_v2 = vunpack.c.h.s8.bf16 %v1639_v14  ;;  %v3682_v14 = vld [vmem:[%s6658_s9 + $0x90] sm:$0xff] }
 0x318   : > { %3795 = vperm.xlu1 %5858, %v3677_v25   ;;  %3800 = vperm.xlu0 %5857, %v3678_v54   ;;  %v1521_v25 = vld [vmem:[%s6227_s30 + $0x30] sm:$0xff] }
 0x319   : > { %v6681_v31 = vpop.f32.mrb[128].mxu0 }
 0x31a   : > { %v2224_v37 = vpop.f32.mrb[129].mxu0 }
 0x31b   : > { %v6683_v36 = vpop.f32.mrb[130].mxu0  ;;  %v5954_v37 = vld [vmem:[%s6590_s27 + $0x78] sm:$0xff]  }
 0x31c   : > { %v2227_v45 = vpop.f32.mrb[131].mxu0 }
 0x31d   : > { %v1522_v45 = vld [vmem:[%s6227_s30 + $0x38] sm:$0xff] }
 0x31e   : > { %2742 = vmatmul.mubr.bf16.gmra.mrb[76].mxu1 %v1879_v24  ;;  %v5953_v24 = vld [vmem:[%s6590_s27 + $0x70] sm:$0xff]   ;;  %v1650_v61 = vunpack.c.l.s8.bf16 %v1522_v45  ;;  %v1658_v54 = vunpack.c.h.s8.bf16 %v1522_v45 }
 0x31f   : > { %2749 = vmatprep.mubr.bf16.mxu1 %v1888_v38  ;;  %v3679_v38 = vld [vmem:[%s6658_s9 + $0x78] sm:$0xff]  ;;  %5460 = vmatprep.mubr.bf16.mxu0 %v5953_v24 }
 0x320   : > { %5461 = vmatmul.mubr.bf16.gmra.mrb[28].mxu0 %v5954_v37  ;;  %3805 = vperm.xlu1 %5858, %v3679_v38   ;;  %v1649_v37 = vunpack.c.l.s8.bf16 %v1521_v25 }
 0x321   : > { %v6690_v44 = vpop.f32.mrb[132].mxu0 }
 0x322   : > { %v2232_v63 = vpop.f32.mrb[133].mxu0 }
 0x323   : > { %v6692_v22 = vpop.f32.mrb[134].mxu0 }
 0x324   : > { %v2235_v3 = vpop.f32.mrb[135].mxu0 }
 0x325   : > { %v3680_v3 = vld [vmem:[%s6658_s9 + $0x80] sm:$0xff] }
 0x326   : > { %2750 = vmatmul.mubr.bf16.gmra.mrb[80].mxu1 %v1887_v1  ;;  %3810 = vperm.xlu0 %5857, %v3680_v3   ;;  %v5956_v3 = vld [vmem:[%s6590_s27 + $0x88] sm:$0xff]  }
 0x327   : > { %2757 = vmatprep.mubr.bf16.mxu1 %v1896_v20  ;;  %v3681_v20 = vld [vmem:[%s6658_s9 + $0x88] sm:$0xff] }
 0x328   : > { %3815 = vperm.xlu1 %5858, %v3681_v20   ;;  %v5955_v20 = vld [vmem:[%s6590_s27 + $0x80] sm:$0xff]  }
 0x329   : > { %v6701_v6 = vpop.f32.mrb[136].mxu0  ;;  %5464 = vmatprep.mubr.bf16.mxu0 %v5955_v20  ;;  %v1529_v20 = vld [vmem:[%s6227_s30 + $0x70] sm:$0xff] }
 0x32a   : > { %v2240_v52 = vpop.f32.mrb[137].mxu0  ;;  %3820 = vperm.xlu0 %5857, %v3682_v14   ;;  %5465 = vmatmul.mubr.bf16.gmra.mrb[32].mxu0 %v5956_v3  ;;  %v1657_v14 = vunpack.c.h.s8.bf16 %v1521_v25  ;;  %v3691_v3 = vld [vmem:[%s6658_s9 + $0xd8] sm:$0xff]  ;;  %v3690_v25 = vld [vmem:[%s6658_s9 + $0xd0] sm:$0xff] }
 0x32b   : > { %v6703_v1 = vpop.f32.mrb[138].mxu0 }
 0x32c   : > { %v2243_v63 = vpop.f32.mrb[139].mxu0  ;;  %3825 = vperm.xlu1 %5858, %v3683_v27   ;;  %v3686_v27 = vld [vmem:[%s6658_s9 + $0xb0] sm:$0xff] }
 0x32d   : > { %v3684_v63 = vld [vmem:[%s6658_s9 + $0xa0] sm:$0xff] }
 0x32e   : > { %2758 = vmatmul.mubr.bf16.gmra.mrb[84].mxu1 %v1895_v2  ;;  %3830 = vperm.xlu0 %5857, %v3684_v63   ;;  %v3688_v63 = vld [vmem:[%s6658_s9 + $0xc0] sm:$0xff] }
 0x32f   : > { %2798 = vmatprep.mubr.bf16.mxu1 %v1650_v61  ;;  %v3685_v61 = vld [vmem:[%s6658_s9 + $0xa8] sm:$0xff] }
 0x330   : > { %3835 = vperm.xlu1 %5858, %v3685_v61   ;;  %v3689_v61 = vld [vmem:[%s6658_s9 + $0xc8] sm:$0xff] }
 0x331   : > { %v6710_v24 = vpop.f32.mrb[140].mxu0 }
 0x332   : > { %v2248_v38 = vpop.f32.mrb[141].mxu0  ;;  %3840 = vperm.xlu0 %5857, %v3686_v27  }
 0x333   : > { %v6712_v52 = vpop.f32.mrb[142].mxu0 }
 0x334   : > { %v2251_v2 = vpop.f32.mrb[143].mxu0  ;;  %3845 = vperm.xlu1 %5858, %v3687_v33   ;;  %v1665_v33 = vunpack.c.l.s8.bf16 %v1529_v20 }
 0x336   : > { %2799 = vmatmul.mubr.bf16.vlgmr.msra.gmra.mrb[88].mxu1 %v1649_v37  ;;  %v1666_v37 = vunpack.c.l.s8.bf16 %v1530_v10  ;;  %3850 = vperm.xlu0 %5857, %v3688_v63   ;;  %v5957_v63 = vld [vmem:[%s6590_s27 + $0x90] sm:$0xff]  }
 0x337   : > { %2806 = vmatprep.mubr.bf16.mxu1 %v1658_v54  ;;  %5468 = vmatprep.mubr.bf16.mxu0 %v5957_v63  ;;  %v1537_v63 = vld [vmem:[%s6227_s30 + $0xb0] sm:$0xff] }
 0x338   : > { %3855 = vperm.xlu1 %5858, %v3689_v61   ;;  %v3692_v61 = vld [vmem:[%s6658_s9 + $0xe0] sm:$0xff]  ;;  %5469 = vmatmul.mubr.bf16.gmra.mrb[36].mxu0 %v5958_v30  ;;  %v3699_v30 = vld [vmem:[%s6658_s9 + $0x118] sm:$0xff] }
 0x339   : > { %v6721_v45 = vpop.f32.mrb[144].mxu0 }
 0x33a   : > { %v2256_v38 = vpop.f32.mrb[145].mxu0  ;;  %3860 = vperm.xlu0 %5857, %v3690_v25   ;;  %v1673_v25 = vunpack.c.h.s8.bf16 %v1529_v20  ;;  %v3698_v20 = vld [vmem:[%s6658_s9 + $0x110] sm:$0xff] }
 0x33b   : > { %v6723_v2 = vpop.f32.mrb[146].mxu0 }
 0x33c   : > { %v2259_v54 = vpop.f32.mrb[147].mxu0  ;;  %3865 = vperm.xlu1 %5858, %v3691_v3   ;;  %v3694_v3 = vld [vmem:[%s6658_s9 + $0xf0] sm:$0xff] }
 0x33d   : > { %v1674_v54 = vunpack.c.h.s8.bf16 %v1530_v10 }
 0x33e   : > { %2807 = vmatmul.mubr.bf16.gmra.mrb[92].mxu1 %v1657_v14  ;;  %3870 = vperm.xlu0 %5857, %v3692_v61   ;;  %v3696_v61 = vld [vmem:[%s6658_s9 + $0x100] sm:$0xff] }
 0x33f   : > { %2814 = vmatprep.mubr.bf16.mxu1 %v1666_v37  ;;  %v3693_v37 = vld [vmem:[%s6658_s9 + $0xe8] sm:$0xff] }
 0x340   : > { %3875 = vperm.xlu1 %5858, %v3693_v37   ;;  %v3697_v37 = vld [vmem:[%s6658_s9 + $0x108] sm:$0xff] }
 0x341   : > { %v6730_v38 = vpop.f32.mrb[148].mxu0 }
 0x342   : > { %v2264_v27 = vpop.f32.mrb[149].mxu0  ;;  %3880 = vperm.xlu0 %5857, %v3694_v3  }
 0x343   : > { %v6732_v40 = vpop.f32.mrb[150].mxu0 }
 0x344   : > { %v2267_v14 = vpop.f32.mrb[151].mxu0  ;;  %3885 = vperm.xlu1 %5858, %v3695_v26   ;;  %v1681_v26 = vunpack.c.l.s8.bf16 %v1537_v63 }
 0x346   : > { %2815 = vmatmul.mubr.bf16.gmra.mrb[96].mxu1 %v1665_v33  ;;  %v1682_v33 = vunpack.c.l.s8.bf16 %v1538_v56  ;;  %3890 = vperm.xlu0 %5857, %v3696_v61   ;;  %v5959_v61 = vld [vmem:[%s6590_s27 + $0xa0] sm:$0xff]  }
 0x347   : > { %2822 = vmatprep.mubr.bf16.mxu1 %v1674_v54  ;;  %5472 = vmatprep.mubr.bf16.mxu0 %v5959_v61  ;;  %v1545_v61 = vld [vmem:[%s6227_s30 + $0xf0] sm:$0xff] }
 0x348   : > { %3895 = vperm.xlu1 %5858, %v3697_v37   ;;  %v3700_v37 = vld [vmem:[%s6658_s9 + $0x120] sm:$0xff]  ;;  %5473 = vmatmul.mubr.bf16.gmra.mrb[40].mxu0 %v5960_v13  ;;  %v3707_v13 = vld [vmem:[%s6658_s9 + $0x158] sm:$0xff] }
 0x349   : > { %v6741_v10 = vpop.f32.mrb[152].mxu0 }
 0x34a   : > { %v2272_v27 = vpop.f32.mrb[153].mxu0  ;;  %3900 = vperm.xlu0 %5857, %v3698_v20   ;;  %v1689_v20 = vunpack.c.h.s8.bf16 %v1537_v63  ;;  %v3706_v63 = vld [vmem:[%s6658_s9 + $0x150] sm:$0xff] }
 0x34b   : > { %v6743_v14 = vpop.f32.mrb[154].mxu0 }
 0x34c   : > { %v2275_v54 = vpop.f32.mrb[155].mxu0  ;;  %3905 = vperm.xlu1 %5858, %v3699_v30   ;;  %v3702_v30 = vld [vmem:[%s6658_s9 + $0x130] sm:$0xff] }
 0x34d   : > { %v1690_v54 = vunpack.c.h.s8.bf16 %v1538_v56 }
 0x34e   : > { %2823 = vmatmul.mubr.bf16.gmra.mrb[100].mxu1 %v1673_v25  ;;  %3910 = vperm.xlu0 %5857, %v3700_v37   ;;  %v3704_v37 = vld [vmem:[%s6658_s9 + $0x140] sm:$0xff] }
 0x34f   : > { %2830 = vmatprep.mubr.bf16.mxu1 %v1682_v33  ;;  %v3701_v33 = vld [vmem:[%s6658_s9 + $0x128] sm:$0xff] }
 0x350   : > { %3915 = vperm.xlu1 %5858, %v3701_v33   ;;  %v3705_v33 = vld [vmem:[%s6658_s9 + $0x148] sm:$0xff] }
 0x351   : > { %v6750_v27 = vpop.f32.mrb[156].mxu0 }
 0x352   : > { %v2280_v3 = vpop.f32.mrb[157].mxu0  ;;  %3920 = vperm.xlu0 %5857, %v3702_v30  }
 0x353   : > { %v6752_v59 = vpop.f32.mrb[158].mxu0 }
 0x354   : > { %v2283_v25 = vpop.f32.mrb[159].mxu0  ;;  %3925 = vperm.xlu1 %5858, %v3703_v48   ;;  %v1697_v48 = vunpack.c.l.s8.bf16 %v1545_v61 }
 0x356   : > { %2831 = vmatmul.mubr.bf16.gmra.mrb[104].mxu1 %v1681_v26  ;;  %v1698_v26 = vunpack.c.l.s8.bf16 %v1546_v39  ;;  %3930 = vperm.xlu0 %5857, %v3704_v37   ;;  %v5961_v37 = vld [vmem:[%s6590_s27 + $0xb0] sm:$0xff]  }
 0x357   : > { %2838 = vmatprep.mubr.bf16.mxu1 %v1690_v54  ;;  %5476 = vmatprep.mubr.bf16.mxu0 %v5961_v37  ;;  %v3716_v37 = vld [vmem:[%s6658_s9 + $0x1a0] sm:$0xff] }
 0x358   : > { %3935 = vperm.xlu1 %5858, %v3705_v33   ;;  %v3708_v33 = vld [vmem:[%s6658_s9 + $0x160] sm:$0xff]  ;;  %5477 = vmatmul.mubr.bf16.gmra.mrb[44].mxu0 %v5962_v58 }
 0x359   : > { %v6761_v56 = vpop.f32.mrb[160].mxu0 }
 0x35a   : > { %v2288_v3 = vpop.f32.mrb[161].mxu0  ;;  %3940 = vperm.xlu0 %5857, %v3706_v63   ;;  %v1705_v63 = vunpack.c.h.s8.bf16 %v1545_v61  ;;  %v3717_v61 = vld [vmem:[%s6658_s9 + $0x1a8] sm:$0xff] }
 0x35b   : > { %v6763_v25 = vpop.f32.mrb[162].mxu0 }
 0x35c   : > { %v2291_v54 = vpop.f32.mrb[163].mxu0  ;;  %3945 = vperm.xlu1 %5858, %v3707_v13   ;;  %v1554_v13 = vld [vmem:[%s6227_s30 + $0x138] sm:$0xff] }
 0x35d   : > { %v1706_v54 = vunpack.c.h.s8.bf16 %v1546_v39  ;;  %v3710_v39 = vld [vmem:[%s6658_s9 + $0x170] sm:$0xff] }
 0x35e   : > { %2839 = vmatmul.mubr.bf16.gmra.mrb[108].mxu1 %v1689_v20  ;;  %3950 = vperm.xlu0 %5857, %v3708_v33   ;;  %v3714_v33 = vld [vmem:[%s6658_s9 + $0x190] sm:$0xff] }
 0x35f   : > { %2846 = vmatprep.mubr.bf16.mxu1 %v1698_v26  ;;  %v3709_v26 = vld [vmem:[%s6658_s9 + $0x168] sm:$0xff] }
 0x360   : > { %3955 = vperm.xlu1 %5858, %v3709_v26   ;;  %v3715_v26 = vld [vmem:[%s6658_s9 + $0x198] sm:$0xff] }
 0x361   : > { %v6770_v3 = vpop.f32.mrb[164].mxu0 }
 0x362   : > { %v2296_v30 = vpop.f32.mrb[165].mxu0  ;;  %3960 = vperm.xlu0 %5857, %v3710_v39   ;;  %v5963_v39 = vld [vmem:[%s6590_s27 + $0xc0] sm:$0xff]  }
 0x363   : > { %v6772_v35 = vpop.f32.mrb[166].mxu0  ;;  %v1714_v30 = vunpack.c.l.s8.bf16 %v1554_v13  ;;  %5480 = vmatprep.mubr.bf16.mxu0 %v5963_v39 }
 0x364   : > { %v2299_v20 = vpop.f32.mrb[167].mxu0  ;;  %3965 = vperm.xlu1 %5858, %v3711_v29   ;;  %v1722_v29 = vunpack.c.h.s8.bf16 %v1554_v13 }
 0x365   : > { %v3712_v20 = vld [vmem:[%s6658_s9 + $0x180] sm:$0xff] }
 0x366   : > { %2847 = vmatmul.mubr.bf16.gmra.mrb[112].mxu1 %v1697_v48  ;;  %v3713_v48 = vld [vmem:[%s6658_s9 + $0x188] sm:$0xff]  ;;  %3970 = vperm.xlu0 %5857, %v3712_v20   ;;  %v3718_v20 = vld [vmem:[%s6658_s9 + $0x1b0] sm:$0xff] }
 0x367   : > { %2854 = vmatprep.mubr.bf16.mxu1 %v1706_v54  ;;  %v1553_v54 = vld [vmem:[%s6227_s30 + $0x130] sm:$0xff] }
 0x368   : > { %3975 = vperm.xlu1 %5858, %v3713_v48   ;;  %v1713_v58 = vunpack.c.l.s8.bf16 %v1553_v54  ;;  %v1562_v48 = vld [vmem:[%s6227_s30 + $0x178] sm:$0xff]  ;;  %v1721_v13 = vunpack.c.h.s8.bf16 %v1553_v54 }
 0x369   : > { %v1738_v54 = vunpack.c.h.s8.bf16 %v1562_v48 }
 0x36a   : > { %3980 = vperm.xlu0 %5857, %v3714_v33   ;;  %v3721_v33 = vld [vmem:[%s6658_s9 + $0x1c8] sm:$0xff] }
 0x36c   : > { %3985 = vperm.xlu1 %5858, %v3715_v26   ;;  %v1730_v26 = vunpack.c.l.s8.bf16 %v1562_v48 }
 0x36e   : > { %2855 = vmatmul.mubr.bf16.gmra.mrb[116].mxu1 %v1705_v63  ;;  %v5964_v63 = vld [vmem:[%s6590_s27 + $0xc8] sm:$0xff]   ;;  %3990 = vperm.xlu0 %5857, %v3716_v37   ;;  %v3722_v37 = vld [vmem:[%s6658_s9 + $0x1d0] sm:$0xff] }
 0x36f   : > { %2862 = vmatprep.mubr.bf16.mxu1 %v1714_v30  ;;  %v3719_v30 = vld [vmem:[%s6658_s9 + $0x1b8] sm:$0xff]  ;;  %5481 = vmatmul.mubr.bf16.gmra.mrb[48].mxu0 %v5964_v63  ;;  %v3725_v63 = vld [vmem:[%s6658_s9 + $0x1e8] sm:$0xff] }
 0x370   : > { %3995 = vperm.xlu1 %5858, %v3717_v61   ;;  %v3723_v61 = vld [vmem:[%s6658_s9 + $0x1d8] sm:$0xff] }
 0x372   : > { %4000 = vperm.xlu0 %5857, %v3718_v20   ;;  %v5965_v20 = vld [vmem:[%s6590_s27 + $0xd0] sm:$0xff]  }
 0x373   : > { %5484 = vmatprep.mubr.bf16.mxu0 %v5965_v20 }
 0x374   : > { %4005 = vperm.xlu1 %5858, %v3719_v30   ;;  %v3724_v30 = vld [vmem:[%s6658_s9 + $0x1e0] sm:$0xff] }
 0x376   : > { %2863 = vmatmul.mubr.bf16.gmra.mrb[120].mxu1 %v1713_v58  ;;  %v3720_v58 = vld [vmem:[%s6658_s9 + $0x1c0] sm:$0xff] }
 0x377   : > { %2870 = vmatprep.mubr.bf16.mxu1 %v1722_v29  ;;  %v1561_v29 = vld [vmem:[%s6227_s30 + $0x170] sm:$0xff]  ;;  %4010 = vperm.xlu0 %5857, %v3720_v58  }
 0x378   : > { %4015 = vperm.xlu1 %5858, %v3721_v33   ;;  %v1729_v39 = vunpack.c.l.s8.bf16 %v1561_v29  ;;  %v3727_v33 = vld [vmem:[%s6658_s9 + $0x1f8] sm:$0xff]  ;;  %v3726_v58 = vld [vmem:[%s6658_s9 + $0x1f0] sm:$0xff]  ;;  %v1737_v17 = vunpack.c.h.s8.bf16 %v1561_v29  ;;  %v5967_v29 = vld [vmem:[%s6590_s27 + $0xe0] sm:$0xff]  }
 0x37b   : > { %4020 = vperm.xlu0 %5857, %v3722_v37  }
 0x37c   : > { %4025 = vperm.xlu1 %5858, %v3723_v61   ;;  %v6805_v61 = vpop.f32.mrb[0].mxu0 }
 0x37d   : > { %v6807_v37 = vpop.f32.mrb[1].mxu0 }
 0x37e   : > { %2871 = vmatmul.mubr.bf16.gmra.mrb[124].mxu1 %v1721_v13  ;;  %v5966_v13 = vld [vmem:[%s6590_s27 + $0xd8] sm:$0xff]  }
 0x37f   : > { %2878 = vmatprep.mubr.bf16.mxu1 %v1730_v26  ;;  %4030 = vperm.xlu0 %5857, %v3724_v30   ;;  %v1570_v26 = vld [vmem:[%s6227_s30 + $0x1b8] sm:$0xff] }
 0x380   : > { %4035 = vperm.xlu1 %5858, %v3725_v63   ;;  %5485 = vmatmul.mubr.bf16.gmra.mrb[52].mxu0 %v5966_v13  ;;  %v1746_v48 = vunpack.c.l.s8.bf16 %v1570_v26  ;;  %v1754_v20 = vunpack.c.h.s8.bf16 %v1570_v26  ;;  %v5968_v13 = vld [vmem:[%s6590_s27 + $0xe8] sm:$0xff]   ;;  %v1577_v26 = vld [vmem:[%s6227_s30 + $0x1f0] sm:$0xff] }
 0x381   : > { %5488 = vmatprep.mubr.bf16.mxu0 %v5967_v29  ;;  %v5969_v29 = vld [vmem:[%s6590_s27 + $0xf0] sm:$0xff]   ;;  %v1769_v57 = vunpack.c.h.s8.bf16 %v1577_v26 }
 0x383   : > { %4040 = vperm.xlu0 %5857, %v3726_v58  }
 0x384   : > { %4045 = vperm.xlu1 %5858, %v3727_v33   ;;  %v1578_v33 = vld [vmem:[%s6227_s30 + $0x1f8] sm:$0xff] }
 0x385   : > { %v1762_v58 = vunpack.c.l.s8.bf16 %v1578_v33  ;;  %v1770_v11 = vunpack.c.h.s8.bf16 %v1578_v33  ;;  %v1585_v33 = vld [vmem:[%s6227_s30 + $0x230] sm:$0xff] }
 0x386   : > { %2879 = vmatmul.mubr.bf16.gmra.mrb[0].mxu1 %v1729_v39  ;;  %v6809_v39 = vpop.f32.mrb[2].mxu0 }
 0x387   : > { %2886 = vmatprep.mubr.bf16.mxu1 %v1738_v54  ;;  %v1569_v54 = vld [vmem:[%s6227_s30 + $0x1b0] sm:$0xff]  ;;  %v6812_v63 = vpop.f32.mrb[3].mxu0 }
 0x388   : > { %v1745_v30 = vunpack.c.l.s8.bf16 %v1569_v54  ;;  %5489 = vmatmul.mubr.bf16.gmra.mrb[56].mxu0 %v5968_v13  ;;  %v6817_v15 = vpop.f32.mrb[4].mxu0  ;;  %v5970_v13 = vld [vmem:[%s6590_s27 + $0xf8] sm:$0xff]  }
 0x389   : > { %5492 = vmatprep.mubr.bf16.mxu0 %v5969_v29  ;;  %v1594_v29 = vld [vmem:[%s6227_s30 + $0x278] sm:$0xff] }
 0x38e   : > { %2887 = vmatmul.mubr.bf16.gmra.mrb[4].mxu1 %v1737_v17  ;;  %v1753_v17 = vunpack.c.h.s8.bf16 %v1569_v54  ;;  %v1586_v54 = vld [vmem:[%s6227_s30 + $0x238] sm:$0xff] }
 0x38f   : > { %2894 = vmatprep.mubr.bf16.mxu1 %v1746_v48  ;;  %v6819_v48 = vpop.f32.mrb[5].mxu0  ;;  %v1778_v46 = vunpack.c.l.s8.bf16 %v1586_v54  ;;  %v1786_v32 = vunpack.c.h.s8.bf16 %v1586_v54  ;;  %v1802_v54 = vunpack.c.h.s8.bf16 %v1594_v29 }
 0x390   : > { %v6821_v51 = vpop.f32.mrb[6].mxu0  ;;  %5493 = vmatmul.mubr.bf16.gmra.mrb[60].mxu0 %v5970_v13  ;;  %v1794_v13 = vunpack.c.l.s8.bf16 %v1594_v29 }
 0x396   : > { %2895 = vmatmul.mubr.bf16.gmra.mrb[8].mxu1 %v1745_v30  ;;  %v6824_v30 = vpop.f32.mrb[7].mxu0 }
 0x397   : > { %2902 = vmatprep.mubr.bf16.mxu1 %v1754_v20  ;;  %v1761_v20 = vunpack.c.l.s8.bf16 %v1577_v26  ;;  %v1785_v26 = vunpack.c.h.s8.bf16 %v1585_v33 }
 0x39e   : > { %2903 = vmatmul.mubr.bf16.gmra.mrb[12].mxu1 %v1753_v17  ;;  %v6829_v17 = vpop.f32.mrb[8].mxu0 }
 0x39f   : > { %2910 = vmatprep.mubr.bf16.mxu1 %v1762_v58  ;;  %v6831_v43 = vpop.f32.mrb[9].mxu0 }
 0x3a0   : > { %v6833_v58 = vpop.f32.mrb[10].mxu0 }
 0x3a6   : > { %2911 = vmatmul.mubr.bf16.gmra.mrb[16].mxu1 %v1761_v20  ;;  %v6836_v20 = vpop.f32.mrb[11].mxu0 }
 0x3a7   : > { %2918 = vmatprep.mubr.bf16.mxu1 %v1770_v11  ;;  %v1777_v11 = vunpack.c.l.s8.bf16 %v1585_v33  ;;  %v6839_v5 = vpop.f32.mrb[12].mxu0 }
 0x3a8   : > { %v6841_v9 = vpop.f32.mrb[13].mxu0 }
 0x3ae   : > { %2919 = vmatmul.mubr.bf16.gmra.mrb[20].mxu1 %v1769_v57  ;;  %v6843_v57 = vpop.f32.mrb[14].mxu0 }
 0x3af   : > { %2926 = vmatprep.mubr.bf16.mxu1 %v1778_v46  ;;  %v1593_v46 = vld [vmem:[%s6227_s30 + $0x270] sm:$0xff]  ;;  %v6846_v23 = vpop.f32.mrb[15].mxu0 }
 0x3b0   : > { %v1793_v18 = vunpack.c.l.s8.bf16 %v1593_v46  ;;  %v1801_v33 = vunpack.c.h.s8.bf16 %v1593_v46  ;;  %v6849_v16 = vpop.f32.mrb[16].mxu0 }
 0x3b1   : > { %v6851_v53 = vpop.f32.mrb[17].mxu0 }
 0x3b6   : > { %2927 = vmatmul.mubr.bf16.gmra.mrb[24].mxu1 %v1777_v11 }
 0x3b7   : > { %2934 = vmatprep.mubr.bf16.mxu1 %v1786_v32  ;;  %v1602_v32 = vld [vmem:[%s6227_s30 + $0x2b8] sm:$0xff] }
 0x3b8   : > { %v1810_v11 = vunpack.c.l.s8.bf16 %v1602_v32  ;;  %v1818_v29 = vunpack.c.h.s8.bf16 %v1602_v32 }
 0x3be   : > { %2935 = vmatmul.mubr.bf16.gmra.mrb[28].mxu1 %v1785_v26  ;;  %v6853_v26 = vpop.f32.mrb[18].mxu0 }
 0x3bf   : > { %2942 = vmatprep.mubr.bf16.mxu1 %v1794_v13  ;;  %v1601_v13 = vld [vmem:[%s6227_s30 + $0x2b0] sm:$0xff]  ;;  %v6856_v47 = vpop.f32.mrb[19].mxu0 }
 0x3c0   : > { %v1809_v8 = vunpack.c.l.s8.bf16 %v1601_v13  ;;  %v1817_v46 = vunpack.c.h.s8.bf16 %v1601_v13  ;;  %v6859_v55 = vpop.f32.mrb[20].mxu0 }
 0x3c1   : > { %v6861_v41 = vpop.f32.mrb[21].mxu0 }
 0x3c6   : > { %2943 = vmatmul.mubr.bf16.gmra.mrb[32].mxu1 %v1793_v18  ;;  %v1610_v18 = vld [vmem:[%s6227_s30 + $0x2f8] sm:$0xff] }
 0x3c7   : > { %2950 = vmatprep.mubr.bf16.mxu1 %v1802_v54  ;;  %v1826_v54 = vunpack.c.l.s8.bf16 %v1610_v18  ;;  %v1834_v32 = vunpack.c.h.s8.bf16 %v1610_v18 }
 0x3ce   : > { %2951 = vmatmul.mubr.bf16.gmra.mrb[36].mxu1 %v1801_v33  ;;  %v6863_v33 = vpop.f32.mrb[22].mxu0 }
 0x3cf   : > { %2958 = vmatprep.mubr.bf16.mxu1 %v1810_v11  ;;  %7248 = vst [vmem:[#allocation42_spill] sm:$0xff] %v6863_v33  ;;  %v1609_v11 = vld [vmem:[%s6227_s30 + $0x2f0] sm:$0xff]  ;;  %v6866_v42 = vpop.f32.mrb[23].mxu0 }
 0x3d0   : > { %v1825_v34 = vunpack.c.l.s8.bf16 %v1609_v11  ;;  %v1833_v13 = vunpack.c.h.s8.bf16 %v1609_v11 }
 0x3d6   : > { %2959 = vmatmul.mubr.bf16.gmra.mrb[40].mxu1 %v1809_v8  ;;  %v1618_v8 = vld [vmem:[%s6227_s30 + $0x338] sm:$0xff] }
 0x3d7   : > { %2966 = vmatprep.mubr.bf16.mxu1 %v1818_v29  ;;  %v1842_v29 = vunpack.c.l.s8.bf16 %v1618_v8  ;;  %v1850_v18 = vunpack.c.h.s8.bf16 %v1618_v8  ;;  %v3731_v8 = vpop.permute.xlu0 %3730 }
 0x3dc   : > { %v6869_v28 = vpop.f32.mrb[24].mxu0 }
 0x3dd   : > { %7249 = vst [vmem:[#allocation43_spill] sm:$0xff] %v6869_v28  ;;  %v6871_v4 = vpop.f32.mrb[25].mxu0 }
 0x3de   : > { %2967 = vmatmul.mubr.bf16.gmra.mrb[44].mxu1 %v1817_v46  ;;  %7250 = vst [vmem:[#allocation44_spill] sm:$0xff] %v6871_v4  ;;  %v6873_v46 = vpop.f32.mrb[26].mxu0 }
 0x3df   : > { %2974 = vmatprep.mubr.bf16.mxu1 %v1826_v54  ;;  %7251 = vst [vmem:[#allocation45_spill] sm:$0xff] %v6873_v46  ;;  %v1617_v54 = vld [vmem:[%s6227_s30 + $0x330] sm:$0xff]  ;;  %v6876_v60 = vpop.f32.mrb[27].mxu0 }
 0x3e0   : > { %7252 = vst [vmem:[#allocation46_spill] sm:$0xff] %v6876_v60  ;;  %v1841_v21 = vunpack.c.l.s8.bf16 %v1617_v54  ;;  %v1849_v11 = vunpack.c.h.s8.bf16 %v1617_v54 }
 0x3e6   : > { %2975 = vmatmul.mubr.bf16.gmra.mrb[48].mxu1 %v1825_v34  ;;  %v1626_v34 = vld [vmem:[%s6227_s30 + $0x378] sm:$0xff] }
 0x3e7   : > { %2982 = vmatprep.mubr.bf16.mxu1 %v1834_v32  ;;  %v1858_v32 = vunpack.c.l.s8.bf16 %v1626_v34  ;;  %v1866_v4 = vunpack.c.h.s8.bf16 %v1626_v34 }
 0x3ee   : > { %2983 = vmatmul.mubr.bf16.gmra.mrb[52].mxu1 %v1833_v13 }
 0x3ef   : > { %2990 = vmatprep.mubr.bf16.mxu1 %v1842_v29  ;;  %v1625_v29 = vld [vmem:[%s6227_s30 + $0x370] sm:$0xff] }
 0x3f0   : > { %v1857_v60 = vunpack.c.l.s8.bf16 %v1625_v29 }
 0x3f3   : > { %v6879_v19 = vpop.f32.mrb[28].mxu0 }
 0x3f4   : > { %7253 = vst [vmem:[#allocation47_spill] sm:$0xff] %v6879_v19  ;;  %v6881_v28 = vpop.f32.mrb[29].mxu0  ;;  %v1865_v19 = vunpack.c.h.s8.bf16 %v1625_v29  ;;  %v3741_v29 = vpop.permute.xlu1 %3740 }
 0x3f5   : > { %7254 = vst [vmem:[#allocation48_spill] sm:$0xff] %v6881_v28  ;;  %v6883_v13 = vpop.f32.mrb[30].mxu0 }
 0x3f6   : > { %2991 = vmatmul.mubr.bf16.gmra.mrb[56].mxu1 %v1841_v21  ;;  %7255 = vst [vmem:[#allocation49_spill] sm:$0xff] %v6883_v13  ;;  %v6886_v46 = vpop.f32.mrb[31].mxu0  ;;  %v1634_v21 = vld [vmem:[%s6227_s30 + $0x3b8] sm:$0xff] }
 0x3f7   : > { %2998 = vmatprep.mubr.bf16.mxu1 %v1850_v18  ;;  %7256 = vst [vmem:[#allocation50_spill] sm:$0xff] %v6886_v46  ;;  %v1874_v0 = vunpack.c.l.s8.bf16 %v1634_v21 }
 0x3fd   : > { %v6891_v46 = vpop.f32.mrb[32].mxu0 }
 0x3fe   : > { %2999 = vmatmul.mubr.bf16.gmra.mrb[60].mxu1 %v1849_v11  ;;  %v3736_v11 = vpop.permute.xlu0 %3735  ;;  %7257 = vst [vmem:[#allocation51_spill] sm:$0xff] %v6891_v46 }
 0x3ff   : > { %3006 = vmatprep.mubr.bf16.mxu1 %v1858_v32 }
 0x406   : > { %3007 = vmatmul.mubr.bf16.gmra.mrb[64].mxu1 %v1857_v60  ;;  %v6896_v60 = vld [vmem:[%s7205_s5] ss:$0 sm:$0xff] }
 0x407   : > { %3014 = vmatprep.mubr.bf16.mxu1 %v1866_v4  ;;  %v6898_v4 = vpop.f32.mrb[33].mxu0 }
 0x408   : > { %7258 = vst [vmem:[#allocation52_spill] sm:$0xff] %v6898_v4  ;;  %v6901_v34 = vpop.f32.mrb[34].mxu0 }
 0x409   : > { %v2800_v18 = vpop.f32.mrb[88].mxu1  ;;  %7259 = vst [vmem:[#allocation53_spill] sm:$0xff] %v6901_v34 }
 0x40a   : > { %v5528_v54 = vadd.f32 %v2800_v18, %v6681_v31  ;;  %v2802_v62 = vpop.f32.mrb[89].mxu1 }
 0x40b   : > { %v2803_v28 = vpop.f32.mrb[90].mxu1 }
 0x40c   : > { %v5529_v32 = vadd.f32 %v2803_v28, %v6683_v36  ;;  %v2805_v13 = vpop.f32.mrb[91].mxu1  ;;  %v4048_v33 = vmul.f32 %v5528_v54, %v3731_v8  ;;  %v1633_v28 = vld [vmem:[%s6227_s30 + $0x3b0] sm:$0xff]  ;;  %v6904_v36 = vpop.f32.mrb[35].mxu0 }
 0x40d   : > { %7260 = vst [vmem:[#allocation54_spill] sm:$0xff] %v6904_v36 }
 0x40e   : > { %v4049_v31 = vmul.f32 %v5529_v32, %v3736_v11  ;;  %v4112_v62 = vadd.f32 %v4048_v33, %v6807_v37  ;;  %3015 = vmatmul.mubr.bf16.gmra.mrb[68].mxu1 %v1865_v19  ;;  %v1873_v37 = vunpack.c.l.s8.bf16 %v1633_v28  ;;  %v1882_v33 = vunpack.c.h.s8.bf16 %v1634_v21 }
 0x40f   : > { %3022 = vmatprep.mubr.bf16.mxu1 %v1874_v0 }
 0x410   : > { %v4183_v13 = vadd.f32 %v6896_v60, %v4112_v62  ;;  %v4113_v8 = vadd.f32 %v4049_v31, %v6812_v63  ;;  %v3746_v63 = vpop.permute.xlu1 %3745 }
 0x411   : > { %v2808_v18 = vpop.f32.mrb[92].mxu1 }
 0x412   : > { %v4184_v54 = vadd.f32 %v6896_v60, %v4113_v8  ;;  %v5530_v11 = vadd.f32 %v2808_v18, %v6690_v44  ;;  %v2810_v32 = vpop.f32.mrb[93].mxu1  ;;  %v4247_v34 = vmax.f32 %v4183_v13, 0.0 }
 0x413   : > { %v2811_v19 = vpop.f32.mrb[94].mxu1 }
 0x414   : > { %v4248_v0 = vmax.f32 %v4184_v54, 0.0  ;;  %v4050_v46 = vmul.f32 %v5530_v11, %v3741_v29  ;;  %v5531_v4 = vadd.f32 %v2811_v19, %v6692_v22  ;;  %v2813_v36 = vpop.f32.mrb[95].mxu1  ;;  %v1642_v29 = vld [vmem:[%s6227_s30 + $0x3f8] sm:$0xff]  ;;  %v1881_v54 = vunpack.c.h.s8.bf16 %v1633_v28  ;;  %v3751_v11 = vpop.permute.xlu0 %3750 }
 0x416   : > { %v4972_v44 = vpack.c.bf16 %v4248_v0, %v4247_v34  ;;  %v4114_v31 = vadd.f32 %v6805_v61, %v4050_v46  ;;  %v4051_v62 = vmul.f32 %v5531_v4, %v3746_v63  ;;  %3023 = vmatmul.mubr.bf16.gmra.mrb[72].mxu1 %v1873_v37  ;;  %v1890_v61 = vunpack.c.l.s8.bf16 %v1642_v29 }
 0x417   : > { %3030 = vmatprep.mubr.bf16.mxu1 %v1882_v33  ;;  %v3756_v33 = vpop.permute.xlu1 %3755 }
 0x418   : > { %4973 = vst [vmem:[%s6916_s14] sm:$0xff] %v4972_v44   ;;  %v4185_v21 = vadd.f32 %v6896_v60, %v4114_v31  ;;  %v4115_v22 = vadd.f32 %v6809_v39, %v4051_v62  ;;  %v6926_v39 = vpop.f32.mrb[36].mxu0  ;;  %v1641_v31 = vld [vmem:[%s6227_s30 + $0x3f0] sm:$0xff] }
 0x419   : > { %v2816_v36 = vpop.f32.mrb[96].mxu1  ;;  %v6928_v0 = vpop.f32.mrb[37].mxu0 }
 0x41a   : > { %v4186_v13 = vadd.f32 %v6896_v60, %v4115_v22  ;;  %v5532_v8 = vadd.f32 %v2816_v36, %v6701_v6  ;;  %v2818_v18 = vpop.f32.mrb[97].mxu1  ;;  %v4249_v46 = vmax.f32 %v4185_v21, 0.0  ;;  %v6931_v44 = vpop.f32.mrb[38].mxu0 }
 0x41b   : > { %v2819_v34 = vpop.f32.mrb[98].mxu1  ;;  %v6934_v62 = vpop.f32.mrb[39].mxu0 }
 0x41c   : > { %v4250_v4 = vmax.f32 %v4186_v13, 0.0  ;;  %v5533_v32 = vadd.f32 %v2819_v34, %v6703_v1  ;;  %v2821_v37 = vpop.f32.mrb[99].mxu1  ;;  %v4052_v19 = vmul.f32 %v5532_v8, %v3751_v11  ;;  %v3761_v18 = vpop.permute.xlu0 %3760  ;;  %v1898_v11 = vunpack.c.h.s8.bf16 %v1642_v29 }
 0x41d   : > { %v3766_v37 = vpop.permute.xlu1 %3765 }
 0x41e   : > { %v4977_v63 = vpack.c.bf16 %v4250_v4, %v4249_v46  ;;  %v4116_v6 = vadd.f32 %v4052_v19, %v6819_v48  ;;  %3031 = vmatmul.mubr.bf16.gmra.mrb[76].mxu1 %v1881_v54  ;;  %v4053_v28 = vmul.f32 %v5533_v32, %v3756_v33  ;;  %v1889_v48 = vunpack.c.l.s8.bf16 %v1641_v31 }
 0x41f   : > { %3038 = vmatprep.mubr.bf16.mxu1 %v1890_v61 }
 0x420   : > { %5129 = vst [vmem:[%s6916_s14 + $0x8] sm:$0xff] %v4977_v63   ;;  %v4187_v1 = vadd.f32 %v6896_v60, %v4116_v6  ;;  %v4117_v21 = vadd.f32 %v4053_v28, %v6824_v30 }
 0x421   : > { %v2824_v22 = vpop.f32.mrb[100].mxu1 }
 0x422   : > { %v4188_v36 = vadd.f32 %v6896_v60, %v4117_v21  ;;  %v5534_v13 = vadd.f32 %v2824_v22, %v6710_v24  ;;  %v2826_v8 = vpop.f32.mrb[101].mxu1  ;;  %v4251_v34 = vmax.f32 %v4187_v1, 0.0  ;;  %v3771_v21 = vpop.permute.xlu0 %3770 }
 0x423   : > { %v2827_v54 = vpop.f32.mrb[102].mxu1 }
 0x424   : > { %v4252_v61 = vmax.f32 %v4188_v36, 0.0  ;;  %v4054_v46 = vmul.f32 %v5534_v13, %v3761_v18  ;;  %v5535_v4 = vadd.f32 %v2827_v54, %v6712_v52  ;;  %v2829_v32 = vpop.f32.mrb[103].mxu1  ;;  %v1897_v52 = vunpack.c.h.s8.bf16 %v1641_v31  ;;  %v6949_v18 = vpop.f32.mrb[40].mxu0 }
 0x425   : > { %v3776_v54 = vpop.permute.xlu1 %3775 }
 0x426   : > { %v4982_v19 = vpack.c.bf16 %v4252_v61, %v4251_v34  ;;  %v4118_v30 = vadd.f32 %v6817_v15, %v4054_v46  ;;  %v4055_v33 = vmul.f32 %v5535_v4, %v3766_v37  ;;  %3039 = vmatmul.mubr.bf16.gmra.mrb[80].mxu1 %v1889_v48 }
 0x427   : > { %3046 = vmatprep.mubr.bf16.mxu1 %v1898_v11 }
 0x428   : > { %5130 = vst [vmem:[%s6916_s14 + $0x10] sm:$0xff] %v4982_v19   ;;  %v4189_v24 = vadd.f32 %v6896_v60, %v4118_v30  ;;  %v4119_v63 = vadd.f32 %v6821_v51, %v4055_v33  ;;  %v6951_v51 = vpop.f32.mrb[41].mxu0  ;;  %v3781_v30 = vpop.permute.xlu0 %3780 }
 0x429   : > { %v2832_v6 = vpop.f32.mrb[104].mxu1  ;;  %v6954_v31 = vpop.f32.mrb[42].mxu0 }
 0x42a   : > { %v4190_v29 = vadd.f32 %v6896_v60, %v4119_v63  ;;  %v5536_v28 = vadd.f32 %v2832_v6, %v6721_v45  ;;  %v2834_v1 = vpop.f32.mrb[105].mxu1  ;;  %v4253_v36 = vmax.f32 %v4189_v24, 0.0  ;;  %v6956_v61 = vpop.f32.mrb[43].mxu0 }
 0x42b   : > { %v2835_v22 = vpop.f32.mrb[106].mxu1 }
 0x42c   : > { %v4254_v15 = vmax.f32 %v4190_v29, 0.0  ;;  %v5537_v13 = vadd.f32 %v2835_v22, %v6723_v2  ;;  %v2837_v8 = vpop.f32.mrb[107].mxu1  ;;  %v4056_v48 = vmul.f32 %v5536_v28, %v3771_v21  ;;  %v3786_v28 = vpop.permute.xlu1 %3785 }
 0x42d   : > { %v3791_v8 = vpop.permute.xlu0 %3790 }
 0x42e   : > { %v4987_v11 = vpack.c.bf16 %v4254_v15, %v4253_v36  ;;  %v4120_v34 = vadd.f32 %v4056_v48, %v6831_v43  ;;  %3047 = vmatmul.mubr.bf16.gmra.mrb[84].mxu1 %v1897_v52  ;;  %v4057_v45 = vmul.f32 %v5537_v13, %v3776_v54 }
 0x430   : > { %5131 = vst [vmem:[%s6916_s14 + $0x18] sm:$0xff] %v4987_v11   ;;  %v4191_v46 = vadd.f32 %v6896_v60, %v4120_v34  ;;  %v4121_v2 = vadd.f32 %v4057_v45, %v6836_v20  ;;  %v6971_v45 = vpop.f32.mrb[44].mxu0 }
 0x431   : > { %v2840_v4 = vpop.f32.mrb[108].mxu1 }
 0x432   : > { %v4192_v32 = vadd.f32 %v6896_v60, %v4121_v2  ;;  %v5538_v37 = vadd.f32 %v2840_v4, %v6730_v38  ;;  %v2842_v19 = vpop.f32.mrb[109].mxu1  ;;  %v4255_v33 = vmax.f32 %v4191_v46, 0.0  ;;  %v3796_v46 = vpop.permute.xlu1 %3795 }
 0x433   : > { %v2843_v43 = vpop.f32.mrb[110].mxu1  ;;  %v6973_v2 = vpop.f32.mrb[45].mxu0 }
 0x434   : > { %v4256_v24 = vmax.f32 %v4192_v32, 0.0  ;;  %v4058_v63 = vmul.f32 %v5538_v37, %v3781_v30  ;;  %v5539_v6 = vadd.f32 %v2843_v43, %v6732_v40  ;;  %v2845_v29 = vpop.f32.mrb[111].mxu1 }
 0x436   : > { %v4992_v1 = vpack.c.bf16 %v4256_v24, %v4255_v33  ;;  %v4122_v52 = vadd.f32 %v6829_v17, %v4058_v63  ;;  %v4059_v20 = vmul.f32 %v5539_v6, %v3786_v28  ;;  %v3801_v63 = vpop.permute.xlu0 %3800 }
 0x438   : > { %5132 = vst [vmem:[%s6916_s14 + $0x20] sm:$0xff] %v4992_v1   ;;  %v4193_v21 = vadd.f32 %v6896_v60, %v4122_v52  ;;  %v4123_v22 = vadd.f32 %v6833_v58, %v4059_v20  ;;  %v3806_v20 = vpop.permute.xlu1 %3805 }
 0x439   : > { %v2848_v38 = vpop.f32.mrb[112].mxu1 }
 0x43a   : > { %v4194_v36 = vadd.f32 %v6896_v60, %v4123_v22  ;;  %v5540_v15 = vadd.f32 %v2848_v38, %v6741_v10  ;;  %v2850_v13 = vpop.f32.mrb[113].mxu1  ;;  %v4257_v48 = vmax.f32 %v4193_v21, 0.0  ;;  %v6976_v10 = vpop.f32.mrb[46].mxu0 }
 0x43b   : > { %v2851_v40 = vpop.f32.mrb[114].mxu1  ;;  %v6978_v37 = vpop.f32.mrb[47].mxu0 }
 0x43c   : > { %v4258_v54 = vmax.f32 %v4194_v36, 0.0  ;;  %v5541_v11 = vadd.f32 %v2851_v40, %v6743_v14  ;;  %v2853_v17 = vpop.f32.mrb[115].mxu1  ;;  %v4060_v34 = vmul.f32 %v5540_v15, %v3791_v8  ;;  %v3811_v40 = vpop.permute.xlu0 %3810 }
 0x43e   : > { %v4997_v58 = vpack.c.bf16 %v4258_v54, %v4257_v48  ;;  %v4124_v4 = vadd.f32 %v4060_v34, %v6841_v9  ;;  %v4061_v32 = vmul.f32 %v5541_v11, %v3796_v46  ;;  %v3816_v46 = vpop.permute.xlu1 %3815 }
 0x440   : > { %5133 = vst [vmem:[%s6916_s14 + $0x28] sm:$0xff] %v4997_v58   ;;  %v4195_v19 = vadd.f32 %v6896_v60, %v4124_v4  ;;  %v4125_v14 = vadd.f32 %v4061_v32, %v6846_v23 }
 0x441   : > { %v2856_v30 = vpop.f32.mrb[116].mxu1 }
 0x442   : > { %v4196_v43 = vadd.f32 %v6896_v60, %v4125_v14  ;;  %v5542_v33 = vadd.f32 %v2856_v30, %v6750_v27  ;;  %v2858_v24 = vpop.f32.mrb[117].mxu1  ;;  %v4259_v9 = vmax.f32 %v4195_v19, 0.0  ;;  %v6993_v34 = vpop.f32.mrb[48].mxu0 }
 0x443   : > { %v2859_v6 = vpop.f32.mrb[118].mxu1  ;;  %v6995_v58 = vpop.f32.mrb[49].mxu0 }
 0x444   : > { %v4260_v29 = vmax.f32 %v4196_v43, 0.0  ;;  %v4062_v28 = vmul.f32 %v5542_v33, %v3801_v63  ;;  %v5543_v1 = vadd.f32 %v2859_v6, %v6752_v59  ;;  %v2861_v52 = vpop.f32.mrb[119].mxu1  ;;  %v3821_v63 = vpop.permute.xlu0 %3820 }
 0x445   : > { %v3826_v52 = vpop.permute.xlu1 %3825 }
 0x446   : > { %v5002_v21 = vpack.c.bf16 %v4260_v29, %v4259_v9  ;;  %v4126_v22 = vadd.f32 %v6839_v5, %v4062_v28  ;;  %v4063_v23 = vmul.f32 %v5543_v1, %v3806_v20 }
 0x448   : > { %5134 = vst [vmem:[%s6916_s14 + $0x30] sm:$0xff] %v5002_v21   ;;  %v4197_v38 = vadd.f32 %v6896_v60, %v4126_v22  ;;  %v4127_v36 = vadd.f32 %v6843_v57, %v4063_v23 }
 0x449   : > { %v2864_v27 = vpop.f32.mrb[120].mxu1 }
 0x44a   : > { %v4198_v15 = vadd.f32 %v6896_v60, %v4127_v36  ;;  %v5544_v13 = vadd.f32 %v2864_v27, %v6761_v56  ;;  %v2866_v8 = vpop.f32.mrb[121].mxu1  ;;  %v4261_v48 = vmax.f32 %v4197_v38, 0.0  ;;  %v6998_v56 = vpop.f32.mrb[50].mxu0 }
 0x44b   : > { %v2867_v59 = vpop.f32.mrb[122].mxu1  ;;  %v7000_v19 = vpop.f32.mrb[51].mxu0 }
 0x44c   : > { %v4262_v54 = vmax.f32 %v4198_v15, 0.0  ;;  %v5545_v11 = vadd.f32 %v2867_v59, %v6763_v25  ;;  %v2869_v5 = vpop.f32.mrb[123].mxu1  ;;  %v4064_v17 = vmul.f32 %v5544_v13, %v3811_v40  ;;  %v3831_v15 = vpop.permute.xlu0 %3830 }
 0x44e   : > { %v5007_v57 = vpack.c.bf16 %v4262_v54, %v4261_v48  ;;  %v4128_v4 = vadd.f32 %v4064_v17, %v6851_v53  ;;  %v4065_v32 = vmul.f32 %v5545_v11, %v3816_v46  ;;  %v3836_v54 = vpop.permute.xlu1 %3835 }
 0x450   : > { %5135 = vst [vmem:[%s6916_s14 + $0x38] sm:$0xff] %v5007_v57   ;;  %v4199_v14 = vadd.f32 %v6896_v60, %v4128_v4  ;;  %v4129_v25 = vadd.f32 %v4065_v32, %v6856_v47 }
 0x451   : > { %v2872_v30 = vpop.f32.mrb[124].mxu1 }
 0x452   : > { %v4200_v43 = vadd.f32 %v6896_v60, %v4129_v25  ;;  %v5546_v33 = vadd.f32 %v2872_v30, %v6770_v3  ;;  %v2874_v24 = vpop.f32.mrb[125].mxu1  ;;  %v4263_v53 = vmax.f32 %v4199_v14, 0.0  ;;  %v3841_v30 = vpop.permute.xlu0 %3840 }
 0x453   : > { %v2875_v6 = vpop.f32.mrb[126].mxu1  ;;  %v7015_v48 = vpop.f32.mrb[52].mxu0 }
 0x454   : > { %v4264_v9 = vmax.f32 %v4200_v43, 0.0  ;;  %v4066_v29 = vmul.f32 %v5546_v33, %v3821_v63  ;;  %v5547_v28 = vadd.f32 %v2875_v6, %v6772_v35  ;;  %v2877_v1 = vpop.f32.mrb[127].mxu1  ;;  %v7017_v11 = vpop.f32.mrb[53].mxu0 }
 0x455   : > { %v7261_v1 = vld [vmem:[#allocation42_spill] sm:$0xff] }
 0x456   : > { %v5012_v20 = vpack.c.bf16 %v4264_v9, %v4263_v53  ;;  %v4130_v21 = vadd.f32 %v6849_v16, %v4066_v29  ;;  %v4067_v47 = vmul.f32 %v5547_v28, %v3826_v52  ;;  %v3846_v53 = vpop.permute.xlu1 %3845 }
 0x458   : > { %5136 = vst [vmem:[%s6916_s14 + $0x40] sm:$0xff] %v5012_v20   ;;  %v4201_v22 = vadd.f32 %v6896_v60, %v4130_v21  ;;  %v4131_v23 = vadd.f32 %v6853_v26, %v4067_v47  ;;  %v7262_v21 = vld [vmem:[#allocation2_spill] sm:$0xff] }
 0x459   : > { %v2880_v3 = vpop.f32.mrb[0].mxu1 }
 0x45a   : > { %v4202_v38 = vadd.f32 %v6896_v60, %v4131_v23  ;;  %v5548_v36 = vadd.f32 %v2880_v3, %v6501_v49  ;;  %v2882_v27 = vpop.f32.mrb[1].mxu1  ;;  %v4265_v13 = vmax.f32 %v4201_v22, 0.0  ;;  %v7020_v49 = vpop.f32.mrb[54].mxu0 }
 0x45b   : > { %v2883_v35 = vpop.f32.mrb[2].mxu1  ;;  %v7022_v46 = vpop.f32.mrb[55].mxu0 }
 0x45c   : > { %v4266_v8 = vmax.f32 %v4202_v38, 0.0  ;;  %v5549_v40 = vadd.f32 %v2883_v35, %v6504_v7  ;;  %v2885_v16 = vpop.f32.mrb[3].mxu1  ;;  %v4068_v59 = vmul.f32 %v5548_v36, %v3831_v15  ;;  %v3851_v23 = vpop.permute.xlu0 %3850  ;;  %v7263_v36 = vld [vmem:[#allocation3_spill] sm:$0xff] }
 0x45d   : > { %v7037_v35 = vpop.f32.mrb[56].mxu0  ;;  %v7264_v16 = vld [vmem:[#allocation44_spill] sm:$0xff] }
 0x45e   : > { %v5017_v26 = vpack.c.bf16 %v4266_v8, %v4265_v13  ;;  %v4132_v5 = vadd.f32 %v4068_v59, %v6861_v41  ;;  %v4069_v17 = vmul.f32 %v5549_v40, %v3836_v54  ;;  %v3856_v13 = vpop.permute.xlu1 %3855  ;;  %v7039_v8 = vpop.f32.mrb[57].mxu0 }
 0x460   : > { %5137 = vst [vmem:[%s6916_s14 + $0x48] sm:$0xff] %v5017_v26   ;;  %v4203_v57 = vadd.f32 %v6896_v60, %v4132_v5  ;;  %v4133_v7 = vadd.f32 %v4069_v17, %v6866_v42  ;;  %v7042_v26 = vpop.f32.mrb[58].mxu0 }
 0x461   : > { %v2888_v4 = vpop.f32.mrb[4].mxu1  ;;  %v7044_v5 = vpop.f32.mrb[59].mxu0 }
 0x462   : > { %v4204_v32 = vadd.f32 %v6896_v60, %v4133_v7  ;;  %v5550_v14 = vadd.f32 %v2888_v4, %v6509_v12  ;;  %v2890_v25 = vpop.f32.mrb[5].mxu1  ;;  %v4267_v41 = vmax.f32 %v4203_v57, 0.0  ;;  %v7265_v57 = vld [vmem:[#allocation46_spill] sm:$0xff] }
 0x463   : > { %v2891_v43 = vpop.f32.mrb[6].mxu1 }
 0x464   : > { %v4268_v33 = vmax.f32 %v4204_v32, 0.0  ;;  %v4070_v24 = vmul.f32 %v5550_v14, %v3841_v30  ;;  %v5551_v63 = vadd.f32 %v2891_v43, %v6512_v50  ;;  %v2893_v6 = vpop.f32.mrb[7].mxu1  ;;  %v7266_v14 = vld [vmem:[#allocation4_spill] sm:$0xff]  ;;  %v3861_v43 = vpop.permute.xlu0 %3860 }
 0x465   : > { %v7267_v6 = vld [vmem:[#allocation5_spill] sm:$0xff] }
 0x466   : > { %v5022_v9 = vpack.c.bf16 %v4268_v33, %v4267_v41  ;;  %v4134_v29 = vadd.f32 %v6859_v55, %v4070_v24  ;;  %v4071_v42 = vmul.f32 %v5551_v63, %v3846_v53 }
 0x468   : > { %5138 = vst [vmem:[%s6916_s14 + $0x50] sm:$0xff] %v5022_v9   ;;  %v4205_v28 = vadd.f32 %v6896_v60, %v4134_v29  ;;  %v4135_v52 = vadd.f32 %v7261_v1, %v4071_v42  ;;  %v3866_v29 = vpop.permute.xlu1 %3865 }
 0x469   : > { %v2896_v12 = vpop.f32.mrb[8].mxu1 }
 0x46a   : > { %v4206_v20 = vadd.f32 %v6896_v60, %v4135_v52  ;;  %v5552_v47 = vadd.f32 %v2896_v12, %v7262_v21  ;;  %v2898_v22 = vpop.f32.mrb[9].mxu1  ;;  %v4269_v3 = vmax.f32 %v4205_v28, 0.0  ;;  %v7268_v28 = vld [vmem:[#allocation43_spill] sm:$0xff] }
 0x46b   : > { %v2899_v50 = vpop.f32.mrb[10].mxu1 }
 0x46c   : > { %v4270_v38 = vmax.f32 %v4206_v20, 0.0  ;;  %v5553_v27 = vadd.f32 %v2899_v50, %v7263_v36  ;;  %v2901_v55 = vpop.f32.mrb[11].mxu1  ;;  %v4072_v15 = vmul.f32 %v5552_v47, %v3851_v23  ;;  %v7269_v20 = vld [vmem:[#allocation45_spill] sm:$0xff]  ;;  %v7270_v23 = vld [vmem:[#allocation6_spill] sm:$0xff] }
 0x46e   : > { %v5027_v40 = vpack.c.bf16 %v4270_v38, %v4269_v3  ;;  %v4136_v59 = vadd.f32 %v4072_v15, %v7264_v16  ;;  %v4073_v54 = vmul.f32 %v5553_v27, %v3856_v13  ;;  %v3871_v38 = vpop.permute.xlu0 %3870  ;;  %v7271_v15 = vld [vmem:[#allocation7_spill] sm:$0xff] }
 0x470   : > { %5139 = vst [vmem:[%s6916_s14 + $0x58] sm:$0xff] %v5027_v40   ;;  %v4207_v17 = vadd.f32 %v6896_v60, %v4136_v59  ;;  %v4137_v7 = vadd.f32 %v4073_v54, %v7265_v57  ;;  %v7059_v59 = vpop.f32.mrb[60].mxu0  ;;  %v3876_v54 = vpop.permute.xlu1 %3875 }
 0x471   : > { %v2904_v4 = vpop.f32.mrb[12].mxu1 }
 0x472   : > { %v4208_v32 = vadd.f32 %v6896_v60, %v4137_v7  ;;  %v5554_v25 = vadd.f32 %v2904_v4, %v7266_v14  ;;  %v2906_v30 = vpop.f32.mrb[13].mxu1  ;;  %v4271_v33 = vmax.f32 %v4207_v17, 0.0  ;;  %v7061_v17 = vpop.f32.mrb[61].mxu0  ;;  %v7272_v7 = vld [vmem:[#allocation48_spill] sm:$0xff] }
 0x473   : > { %v2907_v41 = vpop.f32.mrb[14].mxu1  ;;  %v7064_v14 = vpop.f32.mrb[62].mxu0 }
 0x474   : > { %v4272_v24 = vmax.f32 %v4208_v32, 0.0  ;;  %v4074_v63 = vmul.f32 %v5554_v25, %v3861_v43  ;;  %v5555_v53 = vadd.f32 %v2907_v41, %v7267_v6  ;;  %v2909_v9 = vpop.f32.mrb[15].mxu1  ;;  %v7066_v25 = vpop.f32.mrb[63].mxu0  ;;  %v7273_v43 = vld [vmem:[#allocation50_spill] sm:$0xff] }
 0x475   : > { %v3881_v9 = vpop.permute.xlu0 %3880 }
 0x476   : > { %v5032_v42 = vpack.c.bf16 %v4272_v24, %v4271_v33  ;;  %v4138_v1 = vadd.f32 %v7268_v28, %v4074_v63  ;;  %v4075_v52 = vmul.f32 %v5555_v53, %v3866_v29  ;;  %v7274_v63 = vld [vmem:[#allocation8_spill] sm:$0xff] }
 0x478   : > { %5140 = vst [vmem:[%s6916_s14 + $0x60] sm:$0xff] %v5032_v42   ;;  %v4209_v12 = vadd.f32 %v6896_v60, %v4138_v1  ;;  %v4139_v21 = vadd.f32 %v7269_v20, %v4075_v52  ;;  %v7275_v52 = vld [vmem:[#allocation9_spill] sm:$0xff] }
 0x479   : > { %v2912_v47 = vpop.f32.mrb[16].mxu1 }
 0x47a   : > { %v4210_v22 = vadd.f32 %v6896_v60, %v4139_v21  ;;  %v5556_v50 = vadd.f32 %v2912_v47, %v7270_v23  ;;  %v2914_v3 = vpop.f32.mrb[17].mxu1  ;;  %v4273_v27 = vmax.f32 %v4209_v12, 0.0  ;;  %v3886_v21 = vpop.permute.xlu1 %3885 }
 0x47b   : > { %v2915_v36 = vpop.f32.mrb[18].mxu1 }
 0x47c   : > { %v4274_v55 = vmax.f32 %v4210_v22, 0.0  ;;  %v5557_v13 = vadd.f32 %v2915_v36, %v7271_v15  ;;  %v2917_v40 = vpop.f32.mrb[19].mxu1  ;;  %v4076_v16 = vmul.f32 %v5556_v50, %v3871_v38  ;;  %v7276_v22 = vld [vmem:[#allocation47_spill] sm:$0xff]  ;;  %v7277_v38 = vld [vmem:[#allocation49_spill] sm:$0xff]  ;;  %v7278_v15 = vld [vmem:[#allocation10_spill] sm:$0xff] }
 0x47e   : > { %v5037_v57 = vpack.c.bf16 %v4274_v55, %v4273_v27  ;;  %v4140_v4 = vadd.f32 %v4076_v16, %v7272_v7  ;;  %v4077_v32 = vmul.f32 %v5557_v13, %v3876_v54  ;;  %v3891_v16 = vpop.permute.xlu0 %3890 }
 0x480   : > { %5141 = vst [vmem:[%s6916_s14 + $0x68] sm:$0xff] %v5037_v57   ;;  %v4211_v30 = vadd.f32 %v6896_v60, %v4140_v4  ;;  %v4141_v41 = vadd.f32 %v4077_v32, %v7273_v43  ;;  %v7279_v4 = vld [vmem:[#allocation11_spill] sm:$0xff] }
 0x481   : > { %v2920_v33 = vpop.f32.mrb[20].mxu1 }
 0x482   : > { %v4212_v24 = vadd.f32 %v6896_v60, %v4141_v41  ;;  %v5558_v6 = vadd.f32 %v2920_v33, %v7274_v63  ;;  %v2922_v53 = vpop.f32.mrb[21].mxu1  ;;  %v4275_v42 = vmax.f32 %v4211_v30, 0.0  ;;  %v3896_v41 = vpop.permute.xlu1 %3895 }
 0x483   : > { %v2923_v29 = vpop.f32.mrb[22].mxu1 }
 0x484   : > { %v4276_v28 = vmax.f32 %v4212_v24, 0.0  ;;  %v4078_v1 = vmul.f32 %v5558_v6, %v3881_v9  ;;  %v5559_v12 = vadd.f32 %v2923_v29, %v7275_v52  ;;  %v2925_v20 = vpop.f32.mrb[23].mxu1  ;;  %v7280_v24 = vld [vmem:[#allocation52_spill] sm:$0xff]  ;;  %v7281_v9 = vld [vmem:[#allocation54_spill] sm:$0xff] }
 0x485   : > { %v3901_v20 = vpop.permute.xlu0 %3900 }
 0x486   : > { %v5042_v47 = vpack.c.bf16 %v4276_v28, %v4275_v42  ;;  %v4142_v23 = vadd.f32 %v7276_v22, %v4078_v1  ;;  %v4079_v50 = vmul.f32 %v5559_v12, %v3886_v21  ;;  %v7282_v1 = vld [vmem:[#allocation12_spill] sm:$0xff] }
 0x488   : > { %5142 = vst [vmem:[%s6916_s14 + $0x70] sm:$0xff] %v5042_v47   ;;  %v4213_v3 = vadd.f32 %v6896_v60, %v4142_v23  ;;  %v4143_v36 = vadd.f32 %v7277_v38, %v4079_v50  ;;  %v7283_v50 = vld [vmem:[#allocation13_spill] sm:$0xff] }
 0x489   : > { %v2928_v27 = vpop.f32.mrb[24].mxu1 }
 0x48a   : > { %v4214_v55 = vadd.f32 %v6896_v60, %v4143_v36  ;;  %v5560_v13 = vadd.f32 %v2928_v27, %v7278_v15  ;;  %v2930_v40 = vpop.f32.mrb[25].mxu1  ;;  %v4277_v57 = vmax.f32 %v4213_v3, 0.0  ;;  %v3906_v36 = vpop.permute.xlu1 %3905 }
 0x48b   : > { %v2931_v54 = vpop.f32.mrb[26].mxu1 }
 0x48c   : > { %v4278_v7 = vmax.f32 %v4214_v55, 0.0  ;;  %v5561_v32 = vadd.f32 %v2931_v54, %v7279_v4  ;;  %v2933_v30 = vpop.f32.mrb[27].mxu1  ;;  %v4080_v43 = vmul.f32 %v5560_v13, %v3891_v16  ;;  %v7284_v55 = vld [vmem:[#allocation51_spill] sm:$0xff]  ;;  %v7285_v16 = vld [vmem:[#allocation53_spill] sm:$0xff]  ;;  %v7286_v4 = vld [vmem:[#allocation14_spill] sm:$0xff] }
 0x48e   : > { %v5047_v33 = vpack.c.bf16 %v4278_v7, %v4277_v57  ;;  %v4144_v63 = vadd.f32 %v4080_v43, %v7280_v24  ;;  %v4081_v6 = vmul.f32 %v5561_v32, %v3896_v41  ;;  %v3911_v43 = vpop.permute.xlu0 %3910 }
 0x490   : > { %5143 = vst [vmem:[%s6916_s14 + $0x78] sm:$0xff] %v5047_v33   ;;  %v4215_v53 = vadd.f32 %v6896_v60, %v4144_v63  ;;  %v4145_v29 = vadd.f32 %v4081_v6, %v7281_v9  ;;  %v7287_v63 = vld [vmem:[#allocation15_spill] sm:$0xff] }
 0x491   : > { %v2936_v42 = vpop.f32.mrb[28].mxu1 }
 0x492   : > { %v4216_v28 = vadd.f32 %v6896_v60, %v4145_v29  ;;  %v5562_v52 = vadd.f32 %v2936_v42, %v7282_v1  ;;  %v2938_v12 = vpop.f32.mrb[29].mxu1  ;;  %v4279_v47 = vmax.f32 %v4215_v53, 0.0  ;;  %v3916_v29 = vpop.permute.xlu1 %3915 }
 0x493   : > { %v2939_v21 = vpop.f32.mrb[30].mxu1 }
 0x494   : > { %v4280_v22 = vmax.f32 %v4216_v28, 0.0  ;;  %v4082_v23 = vmul.f32 %v5562_v52, %v3901_v20  ;;  %v5563_v3 = vadd.f32 %v2939_v21, %v7283_v50  ;;  %v2941_v38 = vpop.f32.mrb[31].mxu1  ;;  %v3921_v50 = vpop.permute.xlu0 %3920 }
 0x496   : > { %v5052_v27 = vpack.c.bf16 %v4280_v22, %v4279_v47  ;;  %v4146_v15 = vadd.f32 %v7284_v55, %v4082_v23  ;;  %v4083_v13 = vmul.f32 %v5563_v3, %v3906_v36  ;;  %v7288_v47 = vld [vmem:[#allocation16_spill] sm:$0xff]  ;;  %v7289_v55 = vld [vmem:[#allocation17_spill] sm:$0xff] }
 0x498   : > { %5144 = vst [vmem:[%s6916_s14 + $0x80] sm:$0xff] %v5052_v27   ;;  %v4217_v40 = vadd.f32 %v6896_v60, %v4146_v15  ;;  %v4147_v54 = vadd.f32 %v7285_v16, %v4083_v13  ;;  %v3926_v13 = vpop.permute.xlu1 %3925 }
 0x499   : > { %v2944_v57 = vpop.f32.mrb[32].mxu1 }
 0x49a   : > { %v4218_v7 = vadd.f32 %v6896_v60, %v4147_v54  ;;  %v5564_v32 = vadd.f32 %v2944_v57, %v7286_v4  ;;  %v2946_v30 = vpop.f32.mrb[33].mxu1  ;;  %v4281_v33 = vmax.f32 %v4217_v40, 0.0 }
 0x49b   : > { %v2947_v41 = vpop.f32.mrb[34].mxu1 }
 0x49c   : > { %v4282_v24 = vmax.f32 %v4218_v7, 0.0  ;;  %v5565_v6 = vadd.f32 %v2947_v41, %v7287_v63  ;;  %v2949_v53 = vpop.f32.mrb[35].mxu1  ;;  %v4084_v9 = vmul.f32 %v5564_v32, %v3911_v43  ;;  %v7290_v32 = vld [vmem:[#allocation18_spill] sm:$0xff]  ;;  %v3931_v41 = vpop.permute.xlu0 %3930 }
 0x49e   : > { %v5057_v42 = vpack.c.bf16 %v4282_v24, %v4281_v33  ;;  %v4148_v28 = vadd.f32 %v4084_v9, %v6928_v0  ;;  %v4085_v1 = vmul.f32 %v5565_v6, %v3916_v29  ;;  %v7291_v6 = vld [vmem:[#allocation19_spill] sm:$0xff]  ;;  %v3936_v29 = vpop.permute.xlu1 %3935 }
 0x4a0   : > { %5145 = vst [vmem:[%s6916_s14 + $0x88] sm:$0xff] %v5057_v42   ;;  %v4219_v52 = vadd.f32 %v6896_v60, %v4148_v28  ;;  %v4149_v12 = vadd.f32 %v4085_v1, %v6934_v62 }
 0x4a1   : > { %v2952_v20 = vpop.f32.mrb[36].mxu1 }
 0x4a2   : > { %v4220_v21 = vadd.f32 %v6896_v60, %v4149_v12  ;;  %v5566_v22 = vadd.f32 %v2952_v20, %v7288_v47  ;;  %v2954_v23 = vpop.f32.mrb[37].mxu1  ;;  %v4283_v38 = vmax.f32 %v4219_v52, 0.0 }
 0x4a3   : > { %v2955_v3 = vpop.f32.mrb[38].mxu1  ;;  %v3941_v23 = vpop.permute.xlu0 %3940 }
 0x4a4   : > { %v4284_v36 = vmax.f32 %v4220_v21, 0.0  ;;  %v4086_v27 = vmul.f32 %v5566_v22, %v3921_v50  ;;  %v5567_v0 = vadd.f32 %v2955_v3, %v7289_v55  ;;  %v2957_v15 = vpop.f32.mrb[39].mxu1  ;;  %v7292_v21 = vld [vmem:[#allocation20_spill] sm:$0xff] }
 0x4a6   : > { %v5062_v40 = vpack.c.bf16 %v4284_v36, %v4283_v38  ;;  %v4150_v16 = vadd.f32 %v6926_v39, %v4086_v27  ;;  %v4087_v62 = vmul.f32 %v5567_v0, %v3926_v13  ;;  %v7293_v27 = vld [vmem:[#allocation21_spill] sm:$0xff]  ;;  %v3946_v0 = vpop.permute.xlu1 %3945 }
 0x4a8   : > { %5146 = vst [vmem:[%s6916_s14 + $0x90] sm:$0xff] %v5062_v40   ;;  %v4221_v54 = vadd.f32 %v6896_v60, %v4150_v16  ;;  %v4151_v57 = vadd.f32 %v6931_v44, %v4087_v62 }
 0x4a9   : > { %v2960_v7 = vpop.f32.mrb[40].mxu1 }
 0x4aa   : > { %v4222_v4 = vadd.f32 %v6896_v60, %v4151_v57  ;;  %v5568_v30 = vadd.f32 %v2960_v7, %v7290_v32  ;;  %v2962_v43 = vpop.f32.mrb[41].mxu1  ;;  %v4285_v24 = vmax.f32 %v4221_v54, 0.0  ;;  %v7294_v57 = vld [vmem:[#allocation22_spill] sm:$0xff]  ;;  %v3951_v32 = vpop.permute.xlu0 %3950 }
 0x4ab   : > { %v2963_v33 = vpop.f32.mrb[42].mxu1 }
 0x4ac   : > { %v4286_v63 = vmax.f32 %v4222_v4, 0.0  ;;  %v5569_v53 = vadd.f32 %v2963_v33, %v7291_v6  ;;  %v2965_v39 = vpop.f32.mrb[43].mxu1  ;;  %v4088_v9 = vmul.f32 %v5568_v30, %v3931_v41  ;;  %v7295_v33 = vld [vmem:[#allocation23_spill] sm:$0xff]  ;;  %v3956_v6 = vpop.permute.xlu1 %3955 }
 0x4ae   : > { %v5067_v42 = vpack.c.bf16 %v4286_v63, %v4285_v24  ;;  %v4152_v28 = vadd.f32 %v4088_v9, %v6951_v51  ;;  %v4089_v44 = vmul.f32 %v5569_v53, %v3936_v29 }
 0x4b0   : > { %5147 = vst [vmem:[%s6916_s14 + $0x98] sm:$0xff] %v5067_v42   ;;  %v4223_v1 = vadd.f32 %v6896_v60, %v4152_v28  ;;  %v4153_v52 = vadd.f32 %v4089_v44, %v6956_v61  ;;  %v7296_v44 = vld [vmem:[#allocation24_spill] sm:$0xff] }
 0x4b1   : > { %v2968_v12 = vpop.f32.mrb[44].mxu1 }
 0x4b2   : > { %v4224_v20 = vadd.f32 %v6896_v60, %v4153_v52  ;;  %v5570_v47 = vadd.f32 %v2968_v12, %v7292_v21  ;;  %v2970_v22 = vpop.f32.mrb[45].mxu1  ;;  %v4287_v3 = vmax.f32 %v4223_v1, 0.0  ;;  %v3961_v12 = vpop.permute.xlu0 %3960 }
 0x4b3   : > { %v2971_v50 = vpop.f32.mrb[46].mxu1 }
 0x4b4   : > { %v4288_v38 = vmax.f32 %v4224_v20, 0.0  ;;  %v4090_v36 = vmul.f32 %v5570_v47, %v3941_v23  ;;  %v5571_v51 = vadd.f32 %v2971_v50, %v7293_v27  ;;  %v2973_v55 = vpop.f32.mrb[47].mxu1  ;;  %v7297_v23 = vld [vmem:[#allocation25_spill] sm:$0xff] }
 0x4b6   : > { %v5072_v15 = vpack.c.bf16 %v4288_v38, %v4287_v3  ;;  %v4154_v13 = vadd.f32 %v6949_v18, %v4090_v36  ;;  %v4091_v61 = vmul.f32 %v5571_v51, %v3946_v0  ;;  %v3966_v3 = vpop.permute.xlu1 %3965 }
 0x4b8   : > { %5148 = vst [vmem:[%s6916_s14 + $0xa0] sm:$0xff] %v5072_v15   ;;  %v4225_v40 = vadd.f32 %v6896_v60, %v4154_v13  ;;  %v4155_v16 = vadd.f32 %v6954_v31, %v4091_v61  ;;  %v7298_v15 = vld [vmem:[#allocation26_spill] sm:$0xff] }
 0x4b9   : > { %v2976_v62 = vpop.f32.mrb[48].mxu1 }
 0x4ba   : > { %v4226_v54 = vadd.f32 %v6896_v60, %v4155_v16  ;;  %v5572_v7 = vadd.f32 %v2976_v62, %v7294_v57  ;;  %v2978_v4 = vpop.f32.mrb[49].mxu1  ;;  %v4289_v43 = vmax.f32 %v4225_v40, 0.0  ;;  %v3971_v40 = vpop.permute.xlu0 %3970  ;;  %v7299_v57 = vld [vmem:[#allocation27_spill] sm:$0xff] }
 0x4bb   : > { %v2979_v30 = vpop.f32.mrb[50].mxu1 }
 0x4bc   : > { %v4290_v41 = vmax.f32 %v4226_v54, 0.0  ;;  %v5573_v24 = vadd.f32 %v2979_v30, %v7295_v33  ;;  %v2981_v18 = vpop.f32.mrb[51].mxu1  ;;  %v4092_v63 = vmul.f32 %v5572_v7, %v3951_v32  ;;  %v3976_v32 = vpop.permute.xlu1 %3975 }
 0x4be   : > { %v5077_v53 = vpack.c.bf16 %v4290_v41, %v4289_v43  ;;  %v4156_v39 = vadd.f32 %v4092_v63, %v6973_v2  ;;  %v4093_v31 = vmul.f32 %v5573_v24, %v3956_v6  ;;  %v7300_v63 = vld [vmem:[#allocation28_spill] sm:$0xff] }
 0x4c0   : > { %5149 = vst [vmem:[%s6916_s14 + $0xa8] sm:$0xff] %v5077_v53   ;;  %v4227_v9 = vadd.f32 %v6896_v60, %v4156_v39  ;;  %v4157_v29 = vadd.f32 %v4093_v31, %v6978_v37  ;;  %v3981_v39 = vpop.permute.xlu0 %3980 }
 0x4c1   : > { %v2984_v42 = vpop.f32.mrb[52].mxu1 }
 0x4c2   : > { %v4228_v28 = vadd.f32 %v6896_v60, %v4157_v29  ;;  %v5574_v1 = vadd.f32 %v2984_v42, %v7296_v44  ;;  %v2986_v52 = vpop.f32.mrb[53].mxu1  ;;  %v4291_v21 = vmax.f32 %v4227_v9, 0.0 }
 0x4c3   : > { %v2987_v20 = vpop.f32.mrb[54].mxu1 }
 0x4c4   : > { %v4292_v47 = vmax.f32 %v4228_v28, 0.0  ;;  %v4094_v22 = vmul.f32 %v5574_v1, %v3961_v12  ;;  %v5575_v2 = vadd.f32 %v2987_v20, %v7297_v23  ;;  %v2989_v50 = vpop.f32.mrb[55].mxu1  ;;  %v7301_v28 = vld [vmem:[#allocation29_spill] sm:$0xff]  ;;  %v3986_v1 = vpop.permute.xlu1 %3985  ;;  %v7302_v23 = vld [vmem:[#allocation30_spill] sm:$0xff] }
 0x4c6   : > { %v5082_v38 = vpack.c.bf16 %v4292_v47, %v4291_v21  ;;  %v4158_v36 = vadd.f32 %v6971_v45, %v4094_v22  ;;  %v4095_v37 = vmul.f32 %v5575_v2, %v3966_v3  ;;  %v3991_v3 = vpop.permute.xlu0 %3990 }
 0x4c8   : > { %5150 = vst [vmem:[%s6916_s14 + $0xb0] sm:$0xff] %v5082_v38   ;;  %v4229_v27 = vadd.f32 %v6896_v60, %v4158_v36  ;;  %v4159_v51 = vadd.f32 %v6976_v10, %v4095_v37 }
 0x4c9   : > { %v2992_v55 = vpop.f32.mrb[56].mxu1 }
 0x4ca   : > { %v4230_v0 = vadd.f32 %v6896_v60, %v4159_v51  ;;  %v5576_v13 = vadd.f32 %v2992_v55, %v7298_v15  ;;  %v2994_v61 = vpop.f32.mrb[57].mxu1  ;;  %v4293_v62 = vmax.f32 %v4229_v27, 0.0  ;;  %v7303_v27 = vld [vmem:[#allocation31_spill] sm:$0xff] }
 0x4cb   : > { %v2995_v16 = vpop.f32.mrb[58].mxu1 }
 0x4cc   : > { %v4294_v54 = vmax.f32 %v4230_v0, 0.0  ;;  %v5577_v7 = vadd.f32 %v2995_v16, %v7299_v57  ;;  %v2997_v45 = vpop.f32.mrb[59].mxu1  ;;  %v4096_v4 = vmul.f32 %v5576_v13, %v3971_v40  ;;  %v3996_v0 = vpop.permute.xlu1 %3995 }
 0x4cd   : > { %v4001_v45 = vpop.permute.xlu0 %4000 }
 0x4ce   : > { %v5087_v30 = vpack.c.bf16 %v4294_v54, %v4293_v62  ;;  %v4160_v43 = vadd.f32 %v4096_v4, %v6995_v58  ;;  %v4097_v10 = vmul.f32 %v5577_v7, %v3976_v32  ;;  %v7304_v54 = vld [vmem:[#allocation32_spill] sm:$0xff] }
 0x4d0   : > { %5151 = vst [vmem:[%s6916_s14 + $0xb8] sm:$0xff] %v5087_v30   ;;  %v4231_v41 = vadd.f32 %v6896_v60, %v4160_v43  ;;  %v4161_v33 = vadd.f32 %v4097_v10, %v7000_v19  ;;  %v7305_v43 = vld [vmem:[#allocation33_spill] sm:$0xff] }
 0x4d1   : > { %v3000_v24 = vpop.f32.mrb[60].mxu1 }
 0x4d2   : > { %v4232_v18 = vadd.f32 %v6896_v60, %v4161_v33  ;;  %v5578_v6 = vadd.f32 %v3000_v24, %v7300_v63  ;;  %v3002_v53 = vpop.f32.mrb[61].mxu1  ;;  %v4295_v9 = vmax.f32 %v4231_v41, 0.0  ;;  %v4006_v33 = vpop.permute.xlu1 %4005 }
 0x4d3   : > { %v3003_v31 = vpop.f32.mrb[62].mxu1 }
 0x4d4   : > { %v4296_v29 = vmax.f32 %v4232_v18, 0.0  ;;  %v4098_v42 = vmul.f32 %v5578_v6, %v3981_v39  ;;  %v5579_v58 = vadd.f32 %v3003_v31, %v7301_v28  ;;  %v3005_v44 = vpop.f32.mrb[63].mxu1  ;;  %v7306_v31 = vld [vmem:[#allocation34_spill] sm:$0xff] }
 0x4d6   : > { %v5092_v52 = vpack.c.bf16 %v4296_v29, %v4295_v9  ;;  %v4162_v12 = vadd.f32 %v6993_v34, %v4098_v42  ;;  %v4099_v19 = vmul.f32 %v5579_v58, %v3986_v1  ;;  %v4011_v42 = vpop.permute.xlu0 %4010  ;;  %v7307_v1 = vld [vmem:[#allocation35_spill] sm:$0xff] }
 0x4d8   : > { %5152 = vst [vmem:[%s6916_s14 + $0xc0] sm:$0xff] %v5092_v52   ;;  %v4233_v20 = vadd.f32 %v6896_v60, %v4162_v12  ;;  %v4163_v21 = vadd.f32 %v6998_v56, %v4099_v19  ;;  %v4016_v19 = vpop.permute.xlu1 %4015 }
 0x4d9   : > { %v3008_v47 = vpop.f32.mrb[64].mxu1 }
 0x4da   : > { %v4234_v22 = vadd.f32 %v6896_v60, %v4163_v21  ;;  %v5580_v2 = vadd.f32 %v3008_v47, %v7302_v23  ;;  %v3010_v50 = vpop.f32.mrb[65].mxu1  ;;  %v4297_v36 = vmax.f32 %v4233_v20, 0.0  ;;  %v7156_v60 = vld [vmem:[%s7205_s5] ss:$0 sm:$0xff] }
 0x4db   : > { %v3011_v38 = vpop.f32.mrb[66].mxu1  ;;  %v7308_v50 = vld [vmem:[#allocation36_spill] sm:$0xff] }
 0x4dc   : > { %v4298_v37 = vmax.f32 %v4234_v22, 0.0  ;;  %v5581_v51 = vadd.f32 %v3011_v38, %v7303_v27  ;;  %v3013_v34 = vpop.f32.mrb[67].mxu1  ;;  %v4100_v55 = vmul.f32 %v5580_v2, %v3991_v3 }
 0x4de   : > { %v5097_v15 = vpack.c.bf16 %v4298_v37, %v4297_v36  ;;  %v4164_v13 = vadd.f32 %v4100_v55, %v7017_v11  ;;  %v4101_v56 = vmul.f32 %v5581_v51, %v3996_v0  ;;  %v4021_v36 = vpop.permute.xlu0 %4020  ;;  %v7309_v55 = vld [vmem:[#allocation37_spill] sm:$0xff] }
 0x4e0   : > { %5153 = vst [vmem:[%s6916_s14 + $0xc8] sm:$0xff] %v5097_v15   ;;  %v4235_v61 = vadd.f32 %v7156_v60, %v4164_v13  ;;  %v4165_v40 = vadd.f32 %v4101_v56, %v7022_v46  ;;  %v4026_v15 = vpop.permute.xlu1 %4025 }
 0x4e1   : > { %v3016_v16 = vpop.f32.mrb[68].mxu1 }
 0x4e2   : > { %v4236_v62 = vadd.f32 %v7156_v60, %v4165_v40  ;;  %v5582_v57 = vadd.f32 %v3016_v16, %v7304_v54  ;;  %v3018_v7 = vpop.f32.mrb[69].mxu1  ;;  %v4299_v4 = vmax.f32 %v4235_v61, 0.0  ;;  %v7310_v54 = vld [vmem:[#allocation38_spill] sm:$0xff] }
 0x4e3   : > { %v3019_v11 = vpop.f32.mrb[70].mxu1 }
 0x4e4   : > { %v4300_v32 = vmax.f32 %v4236_v62, 0.0  ;;  %v4102_v30 = vmul.f32 %v5582_v57, %v4001_v45  ;;  %v5583_v10 = vadd.f32 %v3019_v11, %v7305_v43  ;;  %v3021_v41 = vpop.f32.mrb[71].mxu1  ;;  %v4031_v45 = vpop.permute.xlu0 %4030 }
 0x4e5   : > { %v4036_v41 = vpop.permute.xlu1 %4035 }
 0x4e6   : > { %v5102_v24 = vpack.c.bf16 %v4300_v32, %v4299_v4  ;;  %v4166_v18 = vadd.f32 %v7015_v48, %v4102_v30  ;;  %v4103_v46 = vmul.f32 %v5583_v10, %v4006_v33  ;;  %v7311_v30 = vld [vmem:[#allocation39_spill] sm:$0xff] }
 0x4e8   : > { %5154 = vst [vmem:[%s6916_s14 + $0xd0] sm:$0xff] %v5102_v24   ;;  %v4237_v63 = vadd.f32 %v7156_v60, %v4166_v18  ;;  %v4167_v6 = vadd.f32 %v7020_v49, %v4103_v46 }
 0x4e9   : > { %v3024_v53 = vpop.f32.mrb[72].mxu1 }
 0x4ea   : > { %v4238_v39 = vadd.f32 %v7156_v60, %v4167_v6  ;;  %v5584_v9 = vadd.f32 %v3024_v53, %v7306_v31  ;;  %v3026_v29 = vpop.f32.mrb[73].mxu1  ;;  %v4301_v58 = vmax.f32 %v4237_v63, 0.0  ;;  %v7312_v53 = vld [vmem:[#allocation40_spill] sm:$0xff] }
 0x4eb   : > { %v3027_v28 = vpop.f32.mrb[74].mxu1 }
 0x4ec   : > { %v4302_v44 = vmax.f32 %v4238_v39, 0.0  ;;  %v5585_v52 = vadd.f32 %v3027_v28, %v7307_v1  ;;  %v3029_v48 = vpop.f32.mrb[75].mxu1  ;;  %v4104_v12 = vmul.f32 %v5584_v9, %v4011_v42  ;;  %v4041_v9 = vpop.permute.xlu0 %4040 }
 0x4ee   : > { %v5107_v20 = vpack.c.bf16 %v4302_v44, %v4301_v58  ;;  %v4168_v21 = vadd.f32 %v4104_v12, %v7039_v8  ;;  %v4105_v49 = vmul.f32 %v5585_v52, %v4016_v19  ;;  %v4046_v52 = vpop.permute.xlu1 %4045 }
 0x4f0   : > { %5155 = vst [vmem:[%s6916_s14 + $0xd8] sm:$0xff] %v5107_v20   ;;  %v4239_v47 = vadd.f32 %v7156_v60, %v4168_v21  ;;  %v4169_v22 = vadd.f32 %v4105_v49, %v7044_v5 }
 0x4f1   : > { %v3032_v23 = vpop.f32.mrb[76].mxu1 }
 0x4f2   : > { %v4240_v2 = vadd.f32 %v7156_v60, %v4169_v22  ;;  %v5586_v3 = vadd.f32 %v3032_v23, %v7308_v50  ;;  %v3034_v38 = vpop.f32.mrb[77].mxu1  ;;  %v4303_v27 = vmax.f32 %v4239_v47, 0.0 }
 0x4f3   : > { %v3035_v37 = vpop.f32.mrb[78].mxu1 }
 0x4f4   : > { %v4304_v51 = vmax.f32 %v4240_v2, 0.0  ;;  %v4106_v34 = vmul.f32 %v5586_v3, %v4021_v36  ;;  %v5587_v8 = vadd.f32 %v3035_v37, %v7309_v55  ;;  %v3037_v0 = vpop.f32.mrb[79].mxu1 }
 0x4f6   : > { %v5112_v13 = vpack.c.bf16 %v4304_v51, %v4303_v27  ;;  %v4170_v56 = vadd.f32 %v7037_v35, %v4106_v34  ;;  %v4107_v5 = vmul.f32 %v5587_v8, %v4026_v15 }
 0x4f8   : > { %5156 = vst [vmem:[%s6916_s14 + $0xe0] sm:$0xff] %v5112_v13   ;;  %v4241_v61 = vadd.f32 %v7156_v60, %v4170_v56  ;;  %v4171_v40 = vadd.f32 %v7042_v26, %v4107_v5 }
 0x4f9   : > { %v3040_v16 = vpop.f32.mrb[80].mxu1 }
 0x4fa   : > { %v4242_v62 = vadd.f32 %v7156_v60, %v4171_v40  ;;  %v5588_v57 = vadd.f32 %v3040_v16, %v7310_v54  ;;  %v3042_v7 = vpop.f32.mrb[81].mxu1  ;;  %v4305_v4 = vmax.f32 %v4241_v61, 0.0 }
 0x4fb   : > { %v3043_v11 = vpop.f32.mrb[82].mxu1 }
 0x4fc   : > { %v4306_v32 = vmax.f32 %v4242_v62, 0.0  ;;  %v5589_v43 = vadd.f32 %v3043_v11, %v7311_v30  ;;  %v3045_v35 = vpop.f32.mrb[83].mxu1  ;;  %v4108_v10 = vmul.f32 %v5588_v57, %v4031_v45 }
 0x4fe   : > { %v5117_v33 = vpack.c.bf16 %v4306_v32, %v4305_v4  ;;  %v4172_v24 = vadd.f32 %v4108_v10, %v7061_v17  ;;  %v4109_v26 = vmul.f32 %v5589_v43, %v4036_v41  ;;  %v7313_v17 = vld [vmem:[#allocation41_spill] sm:$0xff] }
 0x500   : > { %5157 = vst [vmem:[%s6916_s14 + $0xe8] sm:$0xff] %v5117_v33   ;;  %v4243_v18 = vadd.f32 %v7156_v60, %v4172_v24  ;;  %v4173_v46 = vadd.f32 %v4109_v26, %v7066_v25 }
 0x501   : > { %v3048_v63 = vpop.f32.mrb[84].mxu1 }
 0x502   : > { %v4244_v6 = vadd.f32 %v7156_v60, %v4173_v46  ;;  %v5590_v39 = vadd.f32 %v3048_v63, %v7312_v53  ;;  %v3050_v31 = vpop.f32.mrb[85].mxu1  ;;  %v4307_v42 = vmax.f32 %v4243_v18, 0.0 }
 0x503   : > { %v3051_v29 = vpop.f32.mrb[86].mxu1 }
 0x504   : > { %v4308_v28 = vmax.f32 %v4244_v6, 0.0  ;;  %v4110_v58 = vmul.f32 %v5590_v39, %v4041_v9  ;;  %v5591_v44 = vadd.f32 %v3051_v29, %v7313_v17  ;;  %v3053_v1 = vpop.f32.mrb[87].mxu1 }
 0x506   : > { %v5122_v48 = vpack.c.bf16 %v4308_v28, %v4307_v42  ;;  %v4174_v25 = vadd.f32 %v7059_v59, %v4110_v58  ;;  %v4111_v12 = vmul.f32 %v5591_v44, %v4046_v52 }
 0x508   : > { %5158 = vst [vmem:[%s6916_s14 + $0xf0] sm:$0xff] %v5122_v48   ;;  %v4245_v19 = vadd.f32 %v7156_v60, %v4174_v25  ;;  %v4175_v20 = vadd.f32 %v7064_v14, %v4111_v12 }
 0x50a   : > { %v4246_v21 = vadd.f32 %v7156_v60, %v4175_v20  ;;  %v4309_v49 = vmax.f32 %v4245_v19, 0.0 }
 0x50c   : > { %v4310_v47 = vmax.f32 %v4246_v21, 0.0 }
 0x50e   : > { %v5127_v22 = vpack.c.bf16 %v4310_v47, %v4309_v49 }
 0x510   : > { %5159 = vst [vmem:[%s6916_s14 + $0xf8] sm:$0xff] %v5127_v22  }
 0x511 PF: > { %s17_s24 = sadd.s32 1, %s5978_s24  }
 0x512   : > { %p14_p5 = scmp.ge.s32.totalorder %s17_s24, 4  }
 0x514   :  { %16 = sbr.rel (!%p14_p5) target bundleno = 1 (0x1), region = 84 }

// kernel: graphsage_forward.3
= control target key start
LH: loop header
LB: loop body
LE: loop exit
PB: predicated region body
PF: predicated region fallthrough
CT: control target
= control target key end

     0   :  { %s5382_s24 = smov 0   ;;  %s6585_s0 = inlined_call_operand.vmem [shape: s8[1024,1024], index: 0, kind: input, shape index: {}]   ;;  %s6586_s1 = inlined_call_operand.vmem [shape: bf16[1024,128], index: 1, kind: input, shape index: {}, may-alias: {1,2}]   ;;  %s6587_s2 = inlined_call_operand.vmem [shape: bf16[1024,128], index: 2, kind: input, shape index: {}, may-alias: {1,2}]   ;;  %s6588_s3 = inlined_call_operand.vmem [shape: bf16[128,128], index: 3, kind: input, shape index: {}]   ;;  %s6589_s4 = inlined_call_operand.vmem [shape: bf16[128,128], index: 4, kind: input, shape index: {}]   ;;  %s6590_s5 = inlined_call_operand.vmem [shape: f32[1,128], index: 5, kind: input, shape index: {}]   ;;  %s6591_s6 = inlined_call_operand.vmem [shape: f32[1024,1], index: 6, kind: input, shape index: {}]   ;;  %s6592_s7 = inlined_call_operand.vmem [shape: f32[1024,128], index: 7, kind: output, shape index: {}]  }
   0x1 LB: > { %s4391_s25 = sadd.s32 4294967295, %s5339_s24   ;;  %p4395_p0 = scmp.ge.s32.totalorder %s5339_s24, 1  ;;  %s5339_s24 = sphi %s5382_s24, %s17_s24  }
   0x2   : > { %p261_p1 = scmp.lt.s32.totalorder %s5339_s24, 3 }
   0x4   : > { %p262_p2 = pnand %p4395_p0, %p261_p1 }
   0x6   : > { %265 = sbr.rel (%p262_p2) target bundleno = 1293 (0x50d), region = 48 }
   0xd   : > { %v5220_v0 = vld [vmem:[%s6588_s3] sm:$0xff]   ;;  %v5221_v1 = vld [vmem:[%s6588_s3 + $0x8] sm:$0xff]   ;;  %v5222_v2 = vld [vmem:[%s6588_s3 + $0x10] sm:$0xff]   ;;  %v5341_v33 = vmov 0   ;;  %s4396_s20 = sshll.u32 %s4391_s25, 4  ;;  %s4399_s22 = sshll.u32 %s4391_s25, 6 }
   0xe   : > { %4633 = vmatprep.subr.bf16.mxu0 %v5220_v0  ;;  %v5223_v3 = vld [vmem:[%s6588_s3 + $0x18] sm:$0xff]   ;;  %v5228_v4 = vld [vmem:[%s6586_s1] sm:$0xff]   ;;  %v5225_v6 = vld [vmem:[%s6588_s3 + $0x28] sm:$0xff]   ;;  %4857 = vmatprep.subr.bf16.mxu1 %v5341_v33  ;;  %p305_p3 = scmp.lt.s32.totalorder %s4396_s20, 31  ;;  %p312_p4 = scmp.lt.s32.totalorder %s4399_s22, 127 }
   0xf   : > { %4634 = vmatpush3.bf16.msra.mxu0 %v5220_v0  ;;  %4649 = vmatprep.mubr.bf16.mxu0 %v5228_v4  ;;  %v5224_v5 = vld [vmem:[%s6588_s3 + $0x20] sm:$0xff]   ;;  %v5226_v7 = vld [vmem:[%s6588_s3 + $0x30] sm:$0xff]   ;;  %v5227_v8 = vld [vmem:[%s6588_s3 + $0x38] sm:$0xff]  }
  0x10   : > { %4635 = vmatprep.subr.bf16.mxu0 %v5221_v1  ;;  %v5229_v9 = vld [vmem:[%s6586_s1 + $0x8] sm:$0xff]   ;;  %v5230_v10 = vld [vmem:[%s6586_s1 + $0x10] sm:$0xff]   ;;  %v5231_v11 = vld [vmem:[%s6586_s1 + $0x18] sm:$0xff]   ;;  %5218 = vset.pattern.permute.xlu0 %v5341_v33  ;;  %s6696_s20 = smov (!%p305_p3, %s4396_s20), 31  ;;  %s6698_s22 = smov (!%p312_p4, %s4399_s22), 127 }
  0x11   : > { %v5232_v12 = vld [vmem:[%s6586_s1 + $0x20] sm:$0xff]   ;;  %v5233_v13 = vld [vmem:[%s6586_s1 + $0x28] sm:$0xff]   ;;  %v5234_v14 = vld [vmem:[%s6586_s1 + $0x30] sm:$0xff]   ;;  %5219 = vset.pattern.permute.xlu1 %v5341_v33  ;;  %s4520_s27 = sshll.u32 %s6696_s20, 6  ;;  %s4400_s23 = sshll.u32 %s6698_s22, 2 }
  0x12   : > { %v5235_v15 = vld [vmem:[%s6586_s1 + $0x38] sm:$0xff]   ;;  %v5236_v16 = vld [vmem:[%s6586_s1 + $0x40] sm:$0xff]   ;;  %v5237_v17 = vld [vmem:[%s6586_s1 + $0x48] sm:$0xff]   ;;  %s5588_s30 = scalar_lea.vmem %s6585_s0, %s4520_s27  ;;  %s5949_s27 = scalar_lea.vmem %s6587_s2, %s4400_s23 }
  0x13   : > { %4636 = vmatpush3.bf16.msra.mxu0 %v5221_v1  ;;  %v5238_v18 = vld [vmem:[%s6586_s1 + $0x50] sm:$0xff]   ;;  %v5239_v19 = vld [vmem:[%s6586_s1 + $0x58] sm:$0xff]   ;;  %v5240_v20 = vld [vmem:[%s6586_s1 + $0x60] sm:$0xff]   ;;  %s4402_s28 = sshll.u32 %s6698_s22, 3 }
  0x14   : > { %4637 = vmatprep.subr.bf16.mxu0 %v5222_v2  ;;  %v5241_v21 = vld [vmem:[%s6586_s1 + $0x68] sm:$0xff]   ;;  %v5242_v22 = vld [vmem:[%s6586_s1 + $0x70] sm:$0xff]   ;;  %v5243_v23 = vld [vmem:[%s6586_s1 + $0x78] sm:$0xff]   ;;  %s6019_s9 = scalar_lea.vmem %s6591_s6, %s4402_s28  ;;  %s6269_s14 = scalar_lea.vmem %s6592_s7, %s4402_s28 }
  0x15   : > { %v5244_v24 = vld [vmem:[%s6586_s1 + $0x80] sm:$0xff]   ;;  %v5245_v25 = vld [vmem:[%s6586_s1 + $0x88] sm:$0xff]   ;;  %v5246_v26 = vld [vmem:[%s6586_s1 + $0x90] sm:$0xff]  }
  0x16   : > { %v5247_v27 = vld [vmem:[%s6586_s1 + $0x98] sm:$0xff]   ;;  %v5248_v28 = vld [vmem:[%s6586_s1 + $0xa0] sm:$0xff]   ;;  %v5249_v29 = vld [vmem:[%s6586_s1 + $0xa8] sm:$0xff]  }
  0x17   : > { %4638 = vmatpush3.bf16.msra.mxu0 %v5222_v2  ;;  %v5250_v30 = vld [vmem:[%s6586_s1 + $0xb0] sm:$0xff]   ;;  %v5251_v31 = vld [vmem:[%s6586_s1 + $0xb8] sm:$0xff]   ;;  %v5252_v32 = vld [vmem:[%s6586_s1 + $0xc0] sm:$0xff]  }
  0x18   : > { %4639 = vmatprep.subr.bf16.mxu0 %v5223_v3  ;;  %v5253_v34 = vld [vmem:[%s6586_s1 + $0xc8] sm:$0xff]   ;;  %v5254_v35 = vld [vmem:[%s6586_s1 + $0xd0] sm:$0xff]   ;;  %v5255_v36 = vld [vmem:[%s6586_s1 + $0xd8] sm:$0xff]  }
  0x19   : > { %v5256_v37 = vld [vmem:[%s6586_s1 + $0xe0] sm:$0xff]   ;;  %v5257_v38 = vld [vmem:[%s6586_s1 + $0xe8] sm:$0xff]   ;;  %v5258_v39 = vld [vmem:[%s6586_s1 + $0xf0] sm:$0xff]  }
  0x1a   : > { %v5259_v40 = vld [vmem:[%s6586_s1 + $0xf8] sm:$0xff]   ;;  %v5260_v41 = vld [vmem:[%s6586_s1 + $0x100] sm:$0xff]   ;;  %v5261_v42 = vld [vmem:[%s6586_s1 + $0x108] sm:$0xff]  }
  0x1b   : > { %4640 = vmatpush3.bf16.msra.mxu0 %v5223_v3  ;;  %v5262_v43 = vld [vmem:[%s6586_s1 + $0x110] sm:$0xff]   ;;  %v5263_v44 = vld [vmem:[%s6586_s1 + $0x118] sm:$0xff]   ;;  %v5264_v45 = vld [vmem:[%s6586_s1 + $0x120] sm:$0xff]  }
  0x1c   : > { %4641 = vmatprep.subr.bf16.mxu0 %v5224_v5  ;;  %v5265_v46 = vld [vmem:[%s6586_s1 + $0x128] sm:$0xff]   ;;  %v5266_v47 = vld [vmem:[%s6586_s1 + $0x130] sm:$0xff]   ;;  %v5267_v48 = vld [vmem:[%s6586_s1 + $0x138] sm:$0xff]  }
  0x1d   : > { %v5268_v49 = vld [vmem:[%s6586_s1 + $0x140] sm:$0xff]   ;;  %v5269_v50 = vld [vmem:[%s6586_s1 + $0x148] sm:$0xff]   ;;  %v5270_v51 = vld [vmem:[%s6586_s1 + $0x150] sm:$0xff]  }
  0x1e   : > { %v5271_v52 = vld [vmem:[%s6586_s1 + $0x158] sm:$0xff]   ;;  %v5272_v53 = vld [vmem:[%s6586_s1 + $0x160] sm:$0xff]   ;;  %v5273_v54 = vld [vmem:[%s6586_s1 + $0x168] sm:$0xff]  }
  0x1f   : > { %4642 = vmatpush3.bf16.msra.mxu0 %v5224_v5  ;;  %v5274_v55 = vld [vmem:[%s6586_s1 + $0x170] sm:$0xff]   ;;  %v5275_v56 = vld [vmem:[%s6586_s1 + $0x178] sm:$0xff]   ;;  %v5276_v57 = vld [vmem:[%s6586_s1 + $0x180] sm:$0xff]  }
  0x20   : > { %4643 = vmatprep.subr.bf16.mxu0 %v5225_v6  ;;  %v5277_v58 = vld [vmem:[%s6586_s1 + $0x188] sm:$0xff]   ;;  %v5278_v59 = vld [vmem:[%s6586_s1 + $0x190] sm:$0xff]   ;;  %v5279_v60 = vld [vmem:[%s6586_s1 + $0x198] sm:$0xff]  }
  0x21   : > { %v5280_v61 = vld [vmem:[%s6586_s1 + $0x1a0] sm:$0xff]   ;;  %v5281_v62 = vld [vmem:[%s6586_s1 + $0x1a8] sm:$0xff]   ;;  %v5282_v63 = vld [vmem:[%s6586_s1 + $0x1b0] sm:$0xff]  }
  0x22   : > { %v5283_v2 = vld [vmem:[%s6586_s1 + $0x1b8] sm:$0xff]   ;;  %v5284_v5 = vld [vmem:[%s6586_s1 + $0x1c0] sm:$0xff]  }
  0x23   : > { %4644 = vmatpush3.bf16.msra.mxu0 %v5225_v6  ;;  %v5594_v3 = vld [vmem:[%s5588_s30 + $0x158] sm:$0xff] }
  0x24   : > { %4645 = vmatprep.subr.bf16.mxu0 %v5226_v7  ;;  %v1726_v6 = vunpack.c.l.s8.bf16 %v5594_v3 }
  0x26   : > { %2300 = vmatprep.mubr.bf16.mxu1 %v1726_v6 }
  0x27   : > { %4646 = vmatpush3.bf16.msra.mxu0 %v5226_v7 }
  0x28   : > { %4647 = vmatprep.subr.bf16.mxu0 %v5227_v8 }
  0x2b   : > { %4648 = vmatpush3.bf16.msra.mxu0 %v5227_v8 }
  0x2c   : > { %1899 = vmatprep.subr.bf16.mxu0 %v5341_v33 }
  0x2e   : > { %4650 = vmatmul.mubr.bf16.vlgmr.msra.gmra.mrb[0].mxu0 %v5229_v9 }
  0x2f   : > { %4653 = vmatprep.mubr.bf16.mxu0 %v5230_v10 }
  0x36   : > { %4654 = vmatmul.mubr.bf16.gmra.mrb[4].mxu0 %v5231_v11 }
  0x37   : > { %4657 = vmatprep.mubr.bf16.mxu0 %v5232_v12  ;;  %v5285_v12 = vld [vmem:[%s6586_s1 + $0x1c8] sm:$0xff]  }
  0x3e   : > { %4658 = vmatmul.mubr.bf16.gmra.mrb[8].mxu0 %v5233_v13 }
  0x3f   : > { %4661 = vmatprep.mubr.bf16.mxu0 %v5234_v14  ;;  %v5286_v14 = vld [vmem:[%s6586_s1 + $0x1d0] sm:$0xff]  }
  0x46   : > { %4662 = vmatmul.mubr.bf16.gmra.mrb[12].mxu0 %v5235_v15 }
  0x47   : > { %4665 = vmatprep.mubr.bf16.mxu0 %v5236_v16 }
  0x4e   : > { %4666 = vmatmul.mubr.bf16.gmra.mrb[16].mxu0 %v5237_v17 }
  0x4f   : > { %4669 = vmatprep.mubr.bf16.mxu0 %v5238_v18 }
  0x56   : > { %4670 = vmatmul.mubr.bf16.gmra.mrb[20].mxu0 %v5239_v19 }
  0x57   : > { %4673 = vmatprep.mubr.bf16.mxu0 %v5240_v20  ;;  %v5287_v20 = vld [vmem:[%s6586_s1 + $0x1d8] sm:$0xff]  }
  0x5e   : > { %4674 = vmatmul.mubr.bf16.gmra.mrb[24].mxu0 %v5241_v21 }
  0x5f   : > { %4677 = vmatprep.mubr.bf16.mxu0 %v5242_v22  ;;  %v5288_v22 = vld [vmem:[%s6586_s1 + $0x1e0] sm:$0xff]  }
  0x66   : > { %4678 = vmatmul.mubr.bf16.gmra.mrb[28].mxu0 %v5243_v23 }
  0x67   : > { %4681 = vmatprep.mubr.bf16.mxu0 %v5244_v24 }
  0x6e   : > { %4682 = vmatmul.mubr.bf16.gmra.mrb[32].mxu0 %v5245_v25 }
  0x6f   : > { %4685 = vmatprep.mubr.bf16.mxu0 %v5246_v26 }
  0x76   : > { %4686 = vmatmul.mubr.bf16.gmra.mrb[36].mxu0 %v5247_v27 }
  0x77   : > { %4689 = vmatprep.mubr.bf16.mxu0 %v5248_v28  ;;  %v5289_v28 = vld [vmem:[%s6586_s1 + $0x1e8] sm:$0xff]  }
  0x7e   : > { %4690 = vmatmul.mubr.bf16.gmra.mrb[40].mxu0 %v5249_v29 }
  0x7f   : > { %4693 = vmatprep.mubr.bf16.mxu0 %v5250_v30  ;;  %v5290_v30 = vld [vmem:[%s6586_s1 + $0x1f0] sm:$0xff]  }
  0x86   : > { %4694 = vmatmul.mubr.bf16.gmra.mrb[44].mxu0 %v5251_v31 }
  0x87   : > { %4697 = vmatprep.mubr.bf16.mxu0 %v5252_v32 }
  0x8e   : > { %4698 = vmatmul.mubr.bf16.gmra.mrb[48].mxu0 %v5253_v34 }
  0x8f   : > { %4701 = vmatprep.mubr.bf16.mxu0 %v5254_v35  ;;  %v1516_v35 = vld [vmem:[%s5588_s30 + $0x8] sm:$0xff] }
  0x96   : > { %4702 = vmatmul.mubr.bf16.gmra.mrb[52].mxu0 %v5255_v36 }
  0x97   : > { %4705 = vmatprep.mubr.bf16.mxu0 %v5256_v37 }
  0x9e   : > { %4706 = vmatmul.mubr.bf16.gmra.mrb[56].mxu0 %v5257_v38  ;;  %v5291_v38 = vld [vmem:[%s6586_s1 + $0x1f8] sm:$0xff]  }
  0x9f   : > { %4709 = vmatprep.mubr.bf16.mxu0 %v5258_v39 }
  0xa6   : > { %4710 = vmatmul.mubr.bf16.gmra.mrb[60].mxu0 %v5259_v40  ;;  %v1644_v40 = vunpack.c.l.s8.bf16 %v1516_v35 }
  0xa7   : > { %4713 = vmatprep.mubr.bf16.mxu0 %v5260_v41 }
  0xae   : > { %4714 = vmatmul.mubr.bf16.gmra.mrb[64].mxu0 %v5261_v42 }
  0xaf   : > { %4717 = vmatprep.mubr.bf16.mxu0 %v5262_v43 }
  0xb6   : > { %4718 = vmatmul.mubr.bf16.gmra.mrb[68].mxu0 %v5263_v44 }
  0xb7   : > { %4721 = vmatprep.mubr.bf16.mxu0 %v5264_v45 }
  0xbe   : > { %4722 = vmatmul.mubr.bf16.gmra.mrb[72].mxu0 %v5265_v46 }
  0xbf   : > { %4725 = vmatprep.mubr.bf16.mxu0 %v5266_v47 }
  0xc6   : > { %4726 = vmatmul.mubr.bf16.gmra.mrb[76].mxu0 %v5267_v48 }
  0xc7   : > { %4729 = vmatprep.mubr.bf16.mxu0 %v5268_v49 }
  0xce   : > { %4730 = vmatmul.mubr.bf16.gmra.mrb[80].mxu0 %v5269_v50 }
  0xcf   : > { %4733 = vmatprep.mubr.bf16.mxu0 %v5270_v51 }
  0xd6   : > { %4734 = vmatmul.mubr.bf16.gmra.mrb[84].mxu0 %v5271_v52 }
  0xd7   : > { %4737 = vmatprep.mubr.bf16.mxu0 %v5272_v53 }
  0xde   : > { %4738 = vmatmul.mubr.bf16.gmra.mrb[88].mxu0 %v5273_v54 }
  0xdf   : > { %4741 = vmatprep.mubr.bf16.mxu0 %v5274_v55 }
  0xe6   : > { %4742 = vmatmul.mubr.bf16.gmra.mrb[92].mxu0 %v5275_v56 }
  0xe7   : > { %4745 = vmatprep.mubr.bf16.mxu0 %v5276_v57 }
  0xee   : > { %4746 = vmatmul.mubr.bf16.gmra.mrb[96].mxu0 %v5277_v58 }
  0xef   : > { %4749 = vmatprep.mubr.bf16.mxu0 %v5278_v59 }
  0xf6   : > { %4750 = vmatmul.mubr.bf16.gmra.mrb[100].mxu0 %v5279_v60 }
  0xf7   : > { %4753 = vmatprep.mubr.bf16.mxu0 %v5280_v61 }
  0xfe   : > { %4754 = vmatmul.mubr.bf16.gmra.mrb[104].mxu0 %v5281_v62  ;;  %v1515_v62 = vld [vmem:[%s5588_s30] sm:$0xff] }
  0xff   : > { %4757 = vmatprep.mubr.bf16.mxu0 %v5282_v63 }
 0x101   : > { %v4651_v0 = vpop.f32.mrb[0].mxu0 }
 0x102   : > { %v940_v1 = vpop.f32.mrb[1].mxu0 }
 0x103   : > { %v4652_v4 = vpop.f32.mrb[2].mxu0 }
 0x104   : > { %v1452_v7 = vpack.c.bf16 %v4652_v4, %v4651_v0  ;;  %v943_v8 = vpop.f32.mrb[3].mxu0 }
 0x105   : > { %v1451_v9 = vpack.c.bf16 %v943_v8, %v940_v1  ;;  %v1643_v1 = vunpack.c.l.s8.bf16 %v1515_v62 }
 0x106   : > { %4758 = vmatmul.mubr.bf16.gmra.mrb[108].mxu0 %v5283_v2 }
 0x107   : > { %1900 = vmatpush1.bf16.msra.mxu0 %v1451_v9  ;;  %4761 = vmatprep.mubr.bf16.mxu0 %v5284_v5 }
 0x108   : > { %1901 = vmatprep.subr.bf16.mxu0 %v5341_v33 }
 0x109   : > { %v4655_v10 = vpop.f32.mrb[4].mxu0 }
 0x10a   : > { %v956_v11 = vpop.f32.mrb[5].mxu0 }
 0x10b   : > { %v4656_v13 = vpop.f32.mrb[6].mxu0  ;;  %1902 = vmatpush1.bf16.msra.mxu0 %v1452_v7  ;;  %v1652_v7 = vunpack.c.h.s8.bf16 %v1516_v35 }
 0x10c   : > { %v1454_v15 = vpack.c.bf16 %v4656_v13, %v4655_v10  ;;  %v959_v16 = vpop.f32.mrb[7].mxu0  ;;  %1903 = vmatprep.subr.bf16.mxu0 %v5341_v33  ;;  %v1651_v10 = vunpack.c.h.s8.bf16 %v1515_v62 }
 0x10d   : > { %v1453_v17 = vpack.c.bf16 %v959_v16, %v956_v11  ;;  %v1524_v11 = vld [vmem:[%s5588_s30 + $0x48] sm:$0xff] }
 0x10e   : > { %4762 = vmatmul.mubr.bf16.gmra.mrb[112].mxu0 %v5285_v12  ;;  %v1660_v16 = vunpack.c.l.s8.bf16 %v1524_v11 }
 0x10f   : > { %1904 = vmatpush1.bf16.msra.mxu0 %v1453_v17  ;;  %4765 = vmatprep.mubr.bf16.mxu0 %v5286_v14  ;;  %v1523_v17 = vld [vmem:[%s5588_s30 + $0x40] sm:$0xff] }
 0x110   : > { %1905 = vmatprep.subr.bf16.mxu0 %v5341_v33 }
 0x111   : > { %v4659_v18 = vpop.f32.mrb[8].mxu0 }
 0x112   : > { %v972_v19 = vpop.f32.mrb[9].mxu0 }
 0x113   : > { %v4660_v21 = vpop.f32.mrb[10].mxu0  ;;  %1906 = vmatpush1.bf16.msra.mxu0 %v1454_v15 }
 0x114   : > { %v1456_v23 = vpack.c.bf16 %v4660_v21, %v4659_v18  ;;  %v975_v24 = vpop.f32.mrb[11].mxu0  ;;  %1907 = vmatprep.subr.bf16.mxu0 %v5341_v33 }
 0x115   : > { %v1455_v25 = vpack.c.bf16 %v975_v24, %v972_v19 }
 0x116   : > { %4766 = vmatmul.mubr.bf16.gmra.mrb[116].mxu0 %v5287_v20  ;;  %v1659_v20 = vunpack.c.l.s8.bf16 %v1523_v17 }
 0x117   : > { %1908 = vmatpush1.bf16.msra.mxu0 %v1455_v25  ;;  %4769 = vmatprep.mubr.bf16.mxu0 %v5288_v22  ;;  %v1668_v25 = vunpack.c.h.s8.bf16 %v1524_v11 }
 0x118   : > { %1909 = vmatprep.subr.bf16.mxu0 %v5341_v33 }
 0x119   : > { %v4663_v26 = vpop.f32.mrb[12].mxu0 }
 0x11a   : > { %v988_v27 = vpop.f32.mrb[13].mxu0 }
 0x11b   : > { %v4664_v29 = vpop.f32.mrb[14].mxu0  ;;  %1910 = vmatpush1.bf16.msra.mxu0 %v1456_v23 }
 0x11c   : > { %v1458_v31 = vpack.c.bf16 %v4664_v29, %v4663_v26  ;;  %v991_v32 = vpop.f32.mrb[15].mxu0  ;;  %1911 = vmatprep.subr.bf16.mxu0 %v5341_v33  ;;  %v1532_v29 = vld [vmem:[%s5588_s30 + $0x88] sm:$0xff] }
 0x11d   : > { %v1457_v34 = vpack.c.bf16 %v991_v32, %v988_v27  ;;  %v1676_v35 = vunpack.c.l.s8.bf16 %v1532_v29 }
 0x11e   : > { %4770 = vmatmul.mubr.bf16.gmra.mrb[120].mxu0 %v5289_v28  ;;  %v1667_v28 = vunpack.c.h.s8.bf16 %v1523_v17 }
 0x11f   : > { %1912 = vmatpush1.bf16.msra.mxu0 %v1457_v34  ;;  %4773 = vmatprep.mubr.bf16.mxu0 %v5290_v30 }
 0x120   : > { %1913 = vmatprep.subr.bf16.mxu0 %v5341_v33 }
 0x121   : > { %v4667_v36 = vpop.f32.mrb[16].mxu0 }
 0x122   : > { %v1004_v37 = vpop.f32.mrb[17].mxu0 }
 0x123   : > { %v4668_v39 = vpop.f32.mrb[18].mxu0  ;;  %1914 = vmatpush1.bf16.msra.mxu0 %v1458_v31 }
 0x124   : > { %v1460_v41 = vpack.c.bf16 %v4668_v39, %v4667_v36  ;;  %v1007_v42 = vpop.f32.mrb[19].mxu0  ;;  %1915 = vmatprep.subr.bf16.mxu0 %v5341_v33  ;;  %v1531_v36 = vld [vmem:[%s5588_s30 + $0x80] sm:$0xff] }
 0x125   : > { %v1459_v43 = vpack.c.bf16 %v1007_v42, %v1004_v37  ;;  %v1675_v39 = vunpack.c.l.s8.bf16 %v1531_v36 }
 0x126   : > { %4774 = vmatmul.mubr.bf16.gmra.mrb[124].mxu0 %v5291_v38 }
 0x127   : > { %1916 = vmatpush1.bf16.msra.mxu0 %v1459_v43  ;;  %1931 = vmatprep.mubr.bf16.mxu0 %v1644_v40 }
 0x128   : > { %1917 = vmatprep.subr.bf16.mxu0 %v5341_v33 }
 0x129   : > { %v4671_v44 = vpop.f32.mrb[20].mxu0 }
 0x12a   : > { %v1020_v45 = vpop.f32.mrb[21].mxu0 }
 0x12b   : > { %v4672_v46 = vpop.f32.mrb[22].mxu0  ;;  %1918 = vmatpush1.bf16.msra.mxu0 %v1460_v41 }
 0x12c   : > { %v1462_v47 = vpack.c.bf16 %v4672_v46, %v4671_v44  ;;  %v1023_v48 = vpop.f32.mrb[23].mxu0  ;;  %1919 = vmatprep.subr.bf16.mxu0 %v5341_v33  ;;  %v1684_v44 = vunpack.c.h.s8.bf16 %v1532_v29 }
 0x12d   : > { %v1461_v49 = vpack.c.bf16 %v1023_v48, %v1020_v45  ;;  %v1540_v48 = vld [vmem:[%s5588_s30 + $0xc8] sm:$0xff] }
 0x12e   : > { %v1700_v62 = vunpack.c.h.s8.bf16 %v1540_v48 }
 0x12f   : > { %1920 = vmatpush1.bf16.msra.mxu0 %v1461_v49 }
 0x130   : > { %1921 = vmatprep.subr.bf16.mxu0 %v5341_v33 }
 0x131   : > { %v4675_v50 = vpop.f32.mrb[24].mxu0 }
 0x132   : > { %v1036_v51 = vpop.f32.mrb[25].mxu0 }
 0x133   : > { %v4676_v52 = vpop.f32.mrb[26].mxu0  ;;  %1922 = vmatpush1.bf16.msra.mxu0 %v1462_v47  ;;  %v1683_v47 = vunpack.c.h.s8.bf16 %v1531_v36 }
 0x134   : > { %v1464_v53 = vpack.c.bf16 %v4676_v52, %v4675_v50  ;;  %v1039_v54 = vpop.f32.mrb[27].mxu0  ;;  %1923 = vmatprep.subr.bf16.mxu0 %v5341_v33 }
 0x135   : > { %v1463_v55 = vpack.c.bf16 %v1039_v54, %v1036_v51  ;;  %v1539_v54 = vld [vmem:[%s5588_s30 + $0xc0] sm:$0xff] }
 0x137   : > { %1924 = vmatpush1.bf16.msra.mxu0 %v1463_v55 }
 0x138   : > { %1925 = vmatprep.subr.bf16.mxu0 %v5341_v33 }
 0x139   : > { %v4679_v56 = vpop.f32.mrb[28].mxu0 }
 0x13a   : > { %v1052_v57 = vpop.f32.mrb[29].mxu0 }
 0x13b   : > { %v4680_v58 = vpop.f32.mrb[30].mxu0  ;;  %1926 = vmatpush1.bf16.msra.mxu0 %v1464_v53  ;;  %v1692_v53 = vunpack.c.l.s8.bf16 %v1540_v48 }
 0x13c   : > { %v1466_v59 = vpack.c.bf16 %v4680_v58, %v4679_v56  ;;  %v1055_v60 = vpop.f32.mrb[31].mxu0  ;;  %1927 = vmatprep.subr.bf16.mxu0 %v5341_v33 }
 0x13d   : > { %v1465_v61 = vpack.c.bf16 %v1055_v60, %v1052_v57  ;;  %v1691_v57 = vunpack.c.l.s8.bf16 %v1539_v54 }
 0x13f   : > { %1928 = vmatpush1.bf16.msra.mxu0 %v1465_v61 }
 0x140   : > { %1929 = vmatprep.subr.bf16.mxu0 %v5341_v33 }
 0x141   : > { %v4683_v63 = vpop.f32.mrb[32].mxu0 }
 0x142   : > { %v1068_v0 = vpop.f32.mrb[33].mxu0 }
 0x143   : > { %v4684_v2 = vpop.f32.mrb[34].mxu0  ;;  %1930 = vmatpush1.bf16.msra.mxu0 %v1466_v59 }
 0x144   : > { %v1468_v4 = vpack.c.bf16 %v4684_v2, %v4683_v63  ;;  %v1071_v5 = vpop.f32.mrb[35].mxu0  ;;  %2188 = vmatprep.subr.bf16.mxu0 %v5341_v33  ;;  %v1548_v2 = vld [vmem:[%s5588_s30 + $0x108] sm:$0xff] }
 0x145   : > { %v1467_v6 = vpack.c.bf16 %v1071_v5, %v1068_v0 }
 0x146   : > { %1932 = vmatmul.mubr.bf16.vlgmr.msra.gmra.mrb[128].mxu0 %v1643_v1  ;;  %v1699_v1 = vunpack.c.h.s8.bf16 %v1539_v54 }
 0x147   : > { %2189 = vmatpush1.bf16.msra.mxu0 %v1467_v6  ;;  %4873 = vmatpush1.bf16.msra.mxu1 %v1467_v6 }
 0x148   : > { %2190 = vmatprep.subr.bf16.mxu0 %v5341_v33  ;;  %4858 = vmatprep.subr.bf16.mxu1 %v5341_v33 }
 0x149   : > { %v4687_v8 = vpop.f32.mrb[36].mxu0  ;;  %1939 = vmatprep.mubr.bf16.mxu0 %v1652_v7 }
 0x14a   : > { %v1084_v9 = vpop.f32.mrb[37].mxu0 }
 0x14b   : > { %v4688_v12 = vpop.f32.mrb[38].mxu0  ;;  %2191 = vmatpush1.bf16.msra.mxu0 %v1468_v4  ;;  %4874 = vmatpush1.bf16.msra.mxu1 %v1468_v4 }
 0x14c   : > { %v1470_v13 = vpack.c.bf16 %v4688_v12, %v4687_v8  ;;  %v1087_v14 = vpop.f32.mrb[39].mxu0  ;;  %2192 = vmatprep.subr.bf16.mxu0 %v5341_v33  ;;  %4859 = vmatprep.subr.bf16.mxu1 %v5341_v33  ;;  %v1708_v8 = vunpack.c.l.s8.bf16 %v1548_v2 }
 0x14d   : > { %v1469_v15 = vpack.c.bf16 %v1087_v14, %v1084_v9  ;;  %v1557_v9 = vld [vmem:[%s5588_s30 + $0x150] sm:$0xff] }
 0x14e   : > { %1940 = vmatmul.mubr.bf16.gmra.mrb[132].mxu0 %v1651_v10  ;;  %v1547_v10 = vld [vmem:[%s5588_s30 + $0x100] sm:$0xff] }
 0x14f   : > { %2193 = vmatpush1.bf16.msra.mxu0 %v1469_v15  ;;  %4875 = vmatpush1.bf16.msra.mxu1 %v1469_v15  ;;  %v1707_v14 = vunpack.c.l.s8.bf16 %v1547_v10 }
 0x150   : > { %2194 = vmatprep.subr.bf16.mxu0 %v5341_v33  ;;  %4860 = vmatprep.subr.bf16.mxu1 %v5341_v33 }
 0x151   : > { %v4691_v18 = vpop.f32.mrb[40].mxu0  ;;  %1947 = vmatprep.mubr.bf16.mxu0 %v1660_v16  ;;  %v1734_v16 = vunpack.c.h.s8.bf16 %v5594_v3 }
 0x152   : > { %v1100_v19 = vpop.f32.mrb[41].mxu0 }
 0x153   : > { %v4692_v21 = vpop.f32.mrb[42].mxu0  ;;  %2195 = vmatpush1.bf16.msra.mxu0 %v1470_v13  ;;  %4876 = vmatpush1.bf16.msra.mxu1 %v1470_v13  ;;  %v1725_v13 = vunpack.c.l.s8.bf16 %v1557_v9 }
 0x154   : > { %v1472_v22 = vpack.c.bf16 %v4692_v21, %v4691_v18  ;;  %v1103_v23 = vpop.f32.mrb[43].mxu0  ;;  %2196 = vmatprep.subr.bf16.mxu0 %v5341_v33  ;;  %4861 = vmatprep.subr.bf16.mxu1 %v5341_v33  ;;  %v1566_v21 = vld [vmem:[%s5588_s30 + $0x198] sm:$0xff] }
 0x155   : > { %v1471_v24 = vpack.c.bf16 %v1103_v23, %v1100_v19  ;;  %v1716_v19 = vunpack.c.h.s8.bf16 %v1548_v2  ;;  %v1556_v23 = vld [vmem:[%s5588_s30 + $0x148] sm:$0xff] }
 0x156   : > { %1948 = vmatmul.mubr.bf16.gmra.mrb[136].mxu0 %v1659_v20 }
 0x157   : > { %2197 = vmatpush1.bf16.msra.mxu0 %v1471_v24  ;;  %4877 = vmatpush1.bf16.msra.mxu1 %v1471_v24  ;;  %v1733_v24 = vunpack.c.h.s8.bf16 %v1557_v9 }
 0x158   : > { %2198 = vmatprep.subr.bf16.mxu0 %v5341_v33  ;;  %4862 = vmatprep.subr.bf16.mxu1 %v5341_v33 }
 0x159   : > { %v4695_v26 = vpop.f32.mrb[44].mxu0  ;;  %1955 = vmatprep.mubr.bf16.mxu0 %v1668_v25  ;;  %v1715_v25 = vunpack.c.h.s8.bf16 %v1547_v10 }
 0x15a   : > { %v1116_v27 = vpop.f32.mrb[45].mxu0 }
 0x15b   : > { %v4696_v30 = vpop.f32.mrb[46].mxu0  ;;  %2199 = vmatpush1.bf16.msra.mxu0 %v1472_v22  ;;  %4878 = vmatpush1.bf16.msra.mxu1 %v1472_v22 }
 0x15c   : > { %v1474_v31 = vpack.c.bf16 %v4696_v30, %v4695_v26  ;;  %v1119_v32 = vpop.f32.mrb[47].mxu0  ;;  %2200 = vmatprep.subr.bf16.mxu0 %v5341_v33  ;;  %4863 = vmatprep.subr.bf16.mxu1 %v5341_v33  ;;  %v1724_v30 = vunpack.c.l.s8.bf16 %v1556_v23 }
 0x15d   : > { %v1473_v34 = vpack.c.bf16 %v1119_v32, %v1116_v27  ;;  %v1742_v27 = vunpack.c.l.s8.bf16 %v1566_v21  ;;  %v1565_v32 = vld [vmem:[%s5588_s30 + $0x190] sm:$0xff] }
 0x15e   : > { %1956 = vmatmul.mubr.bf16.gmra.mrb[140].mxu0 %v1667_v28  ;;  %v1741_v36 = vunpack.c.l.s8.bf16 %v1565_v32  ;;  %v1749_v48 = vunpack.c.h.s8.bf16 %v1565_v32 }
 0x15f   : > { %2201 = vmatpush1.bf16.msra.mxu0 %v1473_v34  ;;  %4879 = vmatpush1.bf16.msra.mxu1 %v1473_v34  ;;  %v1555_v34 = vld [vmem:[%s5588_s30 + $0x140] sm:$0xff] }
 0x160   : > { %2202 = vmatprep.subr.bf16.mxu0 %v5341_v33  ;;  %4864 = vmatprep.subr.bf16.mxu1 %v5341_v33 }
 0x161   : > { %v4699_v37 = vpop.f32.mrb[48].mxu0  ;;  %1963 = vmatprep.mubr.bf16.mxu0 %v1676_v35 }
 0x162   : > { %v1132_v38 = vpop.f32.mrb[49].mxu0 }
 0x163   : > { %v4700_v40 = vpop.f32.mrb[50].mxu0  ;;  %2203 = vmatpush1.bf16.msra.mxu0 %v1474_v31  ;;  %4880 = vmatpush1.bf16.msra.mxu1 %v1474_v31 }
 0x164   : > { %v1476_v41 = vpack.c.bf16 %v4700_v40, %v4699_v37  ;;  %v1135_v42 = vpop.f32.mrb[51].mxu0  ;;  %2204 = vmatprep.subr.bf16.mxu0 %v5341_v33  ;;  %4865 = vmatprep.subr.bf16.mxu1 %v5341_v33 }
 0x165   : > { %v1475_v43 = vpack.c.bf16 %v1135_v42, %v1132_v38  ;;  %v1723_v38 = vunpack.c.l.s8.bf16 %v1555_v34 }
 0x166   : > { %1964 = vmatmul.mubr.bf16.gmra.mrb[144].mxu0 %v1675_v39  ;;  %v1750_v39 = vunpack.c.h.s8.bf16 %v1566_v21 }
 0x167   : > { %2205 = vmatpush1.bf16.msra.mxu0 %v1475_v43  ;;  %4881 = vmatpush1.bf16.msra.mxu1 %v1475_v43  ;;  %v1732_v43 = vunpack.c.h.s8.bf16 %v1556_v23 }
 0x168   : > { %2206 = vmatprep.subr.bf16.mxu0 %v5341_v33  ;;  %4866 = vmatprep.subr.bf16.mxu1 %v5341_v33 }
 0x169   : > { %v4703_v45 = vpop.f32.mrb[52].mxu0  ;;  %1971 = vmatprep.mubr.bf16.mxu0 %v1684_v44 }
 0x16a   : > { %v1148_v46 = vpop.f32.mrb[53].mxu0 }
 0x16b   : > { %v4704_v49 = vpop.f32.mrb[54].mxu0  ;;  %2207 = vmatpush1.bf16.msra.mxu0 %v1476_v41  ;;  %4882 = vmatpush1.bf16.msra.mxu1 %v1476_v41 }
 0x16c   : > { %v1478_v50 = vpack.c.bf16 %v4704_v49, %v4703_v45  ;;  %v1151_v51 = vpop.f32.mrb[55].mxu0  ;;  %2208 = vmatprep.subr.bf16.mxu0 %v5341_v33  ;;  %4867 = vmatprep.subr.bf16.mxu1 %v5341_v33  ;;  %v1574_v45 = vld [vmem:[%s5588_s30 + $0x1d8] sm:$0xff] }
 0x16d   : > { %v1477_v52 = vpack.c.bf16 %v1151_v51, %v1148_v46  ;;  %v1758_v51 = vunpack.c.l.s8.bf16 %v1574_v45 }
 0x16e   : > { %1972 = vmatmul.mubr.bf16.gmra.mrb[148].mxu0 %v1683_v47  ;;  %v1564_v47 = vld [vmem:[%s5588_s30 + $0x188] sm:$0xff] }
 0x16f   : > { %2209 = vmatpush1.bf16.msra.mxu0 %v1477_v52  ;;  %4883 = vmatpush1.bf16.msra.mxu1 %v1477_v52 }
 0x170   : > { %2210 = vmatprep.subr.bf16.mxu0 %v5341_v33  ;;  %4868 = vmatprep.subr.bf16.mxu1 %v5341_v33 }
 0x171   : > { %v4707_v55 = vpop.f32.mrb[56].mxu0  ;;  %1979 = vmatprep.mubr.bf16.mxu0 %v1692_v53 }
 0x172   : > { %v1164_v56 = vpop.f32.mrb[57].mxu0 }
 0x173   : > { %v4708_v58 = vpop.f32.mrb[58].mxu0  ;;  %2211 = vmatpush1.bf16.msra.mxu0 %v1478_v50  ;;  %4884 = vmatpush1.bf16.msra.mxu1 %v1478_v50  ;;  %v1731_v50 = vunpack.c.h.s8.bf16 %v1555_v34 }
 0x174   : > { %v1480_v59 = vpack.c.bf16 %v4708_v58, %v4707_v55  ;;  %v1167_v60 = vpop.f32.mrb[59].mxu0  ;;  %2212 = vmatprep.subr.bf16.mxu0 %v5341_v33  ;;  %4869 = vmatprep.subr.bf16.mxu1 %v5341_v33  ;;  %v1740_v55 = vunpack.c.l.s8.bf16 %v1564_v47  ;;  %v1563_v58 = vld [vmem:[%s5588_s30 + $0x180] sm:$0xff] }
 0x175   : > { %v1479_v61 = vpack.c.bf16 %v1167_v60, %v1164_v56  ;;  %v1747_v10 = vunpack.c.h.s8.bf16 %v1563_v58 }
 0x176   : > { %1980 = vmatmul.mubr.bf16.gmra.mrb[152].mxu0 %v1691_v57  ;;  %v1573_v57 = vld [vmem:[%s5588_s30 + $0x1d0] sm:$0xff] }
 0x177   : > { %2213 = vmatpush1.bf16.msra.mxu0 %v1479_v61  ;;  %4885 = vmatpush1.bf16.msra.mxu1 %v1479_v61  ;;  %v1757_v60 = vunpack.c.l.s8.bf16 %v1573_v57  ;;  %v1739_v61 = vunpack.c.l.s8.bf16 %v1563_v58  ;;  %v1765_v9 = vunpack.c.h.s8.bf16 %v1573_v57 }
 0x178   : > { %2214 = vmatprep.subr.bf16.mxu0 %v5341_v33  ;;  %4870 = vmatprep.subr.bf16.mxu1 %v5341_v33 }
 0x179   : > { %v4711_v63 = vpop.f32.mrb[60].mxu0  ;;  %1987 = vmatprep.mubr.bf16.mxu0 %v1700_v62 }
 0x17a   : > { %v1180_v0 = vpop.f32.mrb[61].mxu0 }
 0x17b   : > { %v4712_v4 = vpop.f32.mrb[62].mxu0  ;;  %2215 = vmatpush1.bf16.msra.mxu0 %v1480_v59  ;;  %4886 = vmatpush1.bf16.msra.mxu1 %v1480_v59 }
 0x17c   : > { %v1482_v5 = vpack.c.bf16 %v4712_v4, %v4711_v63  ;;  %v1183_v6 = vpop.f32.mrb[63].mxu0  ;;  %2216 = vmatprep.subr.bf16.mxu0 %v5341_v33  ;;  %4871 = vmatprep.subr.bf16.mxu1 %v5341_v33  ;;  %v1766_v63 = vunpack.c.h.s8.bf16 %v1574_v45 }
 0x17d   : > { %v1481_v7 = vpack.c.bf16 %v1183_v6, %v1180_v0  ;;  %v1748_v0 = vunpack.c.h.s8.bf16 %v1564_v47  ;;  %v1582_v6 = vld [vmem:[%s5588_s30 + $0x218] sm:$0xff] }
 0x17e   : > { %1988 = vmatmul.mubr.bf16.gmra.mrb[156].mxu0 %v1699_v1 }
 0x17f   : > { %2217 = vmatpush1.bf16.msra.mxu0 %v1481_v7  ;;  %4887 = vmatpush1.bf16.msra.mxu1 %v1481_v7  ;;  %v1572_v7 = vld [vmem:[%s5588_s30 + $0x1c8] sm:$0xff] }
 0x180   : > { %2218 = vmatprep.subr.bf16.mxu0 %v5341_v33  ;;  %4872 = vmatprep.subr.bf16.mxu1 %v5341_v33 }
 0x181   : > { %v4715_v11 = vpop.f32.mrb[64].mxu0  ;;  %1995 = vmatprep.mubr.bf16.mxu0 %v1708_v8 }
 0x182   : > { %v1196_v12 = vpop.f32.mrb[65].mxu0 }
 0x183   : > { %v4716_v15 = vpop.f32.mrb[66].mxu0  ;;  %2219 = vmatpush1.bf16.msra.mxu0 %v1482_v5  ;;  %4888 = vmatpush1.bf16.msra.mxu1 %v1482_v5 }
 0x184   : > { %v1484_v17 = vpack.c.bf16 %v4716_v15, %v4715_v11  ;;  %v1199_v18 = vpop.f32.mrb[67].mxu0  ;;  %2477 = vmatprep.subr.bf16.mxu1 %v5341_v33 }
 0x185   : > { %v1483_v20 = vpack.c.bf16 %v1199_v18, %v1196_v12  ;;  %v1774_v12 = vunpack.c.l.s8.bf16 %v1582_v6  ;;  %v1581_v18 = vld [vmem:[%s5588_s30 + $0x210] sm:$0xff] }
 0x186   : > { %2301 = vmatmul.mubr.bf16.vlgmr.msra.gmra.mrb[0].mxu1 %v1725_v13  ;;  %1996 = vmatmul.mubr.bf16.gmra.mrb[160].mxu0 %v1707_v14  ;;  %v1756_v13 = vunpack.c.l.s8.bf16 %v1572_v7  ;;  %v1773_v21 = vunpack.c.l.s8.bf16 %v1581_v18  ;;  %v1781_v32 = vunpack.c.h.s8.bf16 %v1581_v18 }
 0x187   : > { %2478 = vmatpush1.bf16.msra.mxu1 %v1483_v20  ;;  %2308 = vmatprep.mubr.bf16.mxu1 %v1734_v16 }
 0x188   : > { %2479 = vmatprep.subr.bf16.mxu1 %v5341_v33  ;;  %2003 = vmatprep.mubr.bf16.mxu0 %v1716_v19  ;;  %v1571_v19 = vld [vmem:[%s5588_s30 + $0x1c0] sm:$0xff] }
 0x189   : > { %v4719_v22 = vpop.f32.mrb[68].mxu0  ;;  %v1763_v34 = vunpack.c.h.s8.bf16 %v1571_v19 }
 0x18a   : > { %v1212_v3 = vpop.f32.mrb[69].mxu0 }
 0x18b   : > { %2480 = vmatpush1.bf16.msra.mxu1 %v1484_v17  ;;  %v4720_v26 = vpop.f32.mrb[70].mxu0 }
 0x18c   : > { %v1486_v28 = vpack.c.bf16 %v4720_v26, %v4719_v22  ;;  %v1215_v29 = vpop.f32.mrb[71].mxu0  ;;  %2481 = vmatprep.subr.bf16.mxu1 %v5341_v33  ;;  %v1755_v22 = vunpack.c.l.s8.bf16 %v1571_v19 }
 0x18d   : > { %v1485_v31 = vpack.c.bf16 %v1215_v29, %v1212_v3  ;;  %v1764_v3 = vunpack.c.h.s8.bf16 %v1572_v7  ;;  %v1590_v29 = vld [vmem:[%s5588_s30 + $0x258] sm:$0xff] }
 0x18e   : > { %2309 = vmatmul.mubr.bf16.gmra.mrb[4].mxu1 %v1733_v24  ;;  %2004 = vmatmul.mubr.bf16.gmra.mrb[164].mxu0 %v1715_v25  ;;  %v1782_v24 = vunpack.c.h.s8.bf16 %v1582_v6 }
 0x18f   : > { %2316 = vmatprep.mubr.bf16.mxu1 %v1742_v27  ;;  %2482 = vmatpush1.bf16.msra.mxu1 %v1485_v31 }
 0x190   : > { %2483 = vmatprep.subr.bf16.mxu1 %v5341_v33  ;;  %2011 = vmatprep.mubr.bf16.mxu0 %v1724_v30  ;;  %v1580_v30 = vld [vmem:[%s5588_s30 + $0x208] sm:$0xff] }
 0x191   : > { %v4723_v35 = vpop.f32.mrb[72].mxu0 }
 0x192   : > { %v1228_v37 = vpop.f32.mrb[73].mxu0 }
 0x193   : > { %2484 = vmatpush1.bf16.msra.mxu1 %v1486_v28  ;;  %v4724_v40 = vpop.f32.mrb[74].mxu0 }
 0x194   : > { %v1488_v41 = vpack.c.bf16 %v4724_v40, %v4723_v35  ;;  %v1231_v42 = vpop.f32.mrb[75].mxu0  ;;  %2485 = vmatprep.subr.bf16.mxu1 %v5341_v33 }
 0x195   : > { %v1487_v44 = vpack.c.bf16 %v1231_v42, %v1228_v37  ;;  %v1772_v37 = vunpack.c.l.s8.bf16 %v1580_v30  ;;  %v1589_v42 = vld [vmem:[%s5588_s30 + $0x250] sm:$0xff] }
 0x196   : > { %2317 = vmatmul.mubr.bf16.gmra.mrb[8].mxu1 %v1741_v36  ;;  %2012 = vmatmul.mubr.bf16.gmra.mrb[168].mxu0 %v1723_v38  ;;  %v1790_v36 = vunpack.c.l.s8.bf16 %v1590_v29  ;;  %v1789_v45 = vunpack.c.l.s8.bf16 %v1589_v42  ;;  %v1797_v57 = vunpack.c.h.s8.bf16 %v1589_v42 }
 0x197   : > { %2324 = vmatprep.mubr.bf16.mxu1 %v1750_v39  ;;  %2486 = vmatpush1.bf16.msra.mxu1 %v1487_v44 }
 0x198   : > { %2487 = vmatprep.subr.bf16.mxu1 %v5341_v33  ;;  %2019 = vmatprep.mubr.bf16.mxu0 %v1732_v43  ;;  %v1579_v43 = vld [vmem:[%s5588_s30 + $0x200] sm:$0xff] }
 0x199   : > { %v4727_v46 = vpop.f32.mrb[76].mxu0  ;;  %v1779_v58 = vunpack.c.h.s8.bf16 %v1579_v43 }
 0x19a   : > { %v1244_v49 = vpop.f32.mrb[77].mxu0 }
 0x19b   : > { %2488 = vmatpush1.bf16.msra.mxu1 %v1488_v41  ;;  %v4728_v52 = vpop.f32.mrb[78].mxu0 }
 0x19c   : > { %v1490_v53 = vpack.c.bf16 %v4728_v52, %v4727_v46  ;;  %v1247_v54 = vpop.f32.mrb[79].mxu0  ;;  %2489 = vmatprep.subr.bf16.mxu1 %v5341_v33  ;;  %v1771_v46 = vunpack.c.l.s8.bf16 %v1579_v43 }
 0x19d   : > { %v1489_v56 = vpack.c.bf16 %v1247_v54, %v1244_v49  ;;  %v1780_v49 = vunpack.c.h.s8.bf16 %v1580_v30  ;;  %v1598_v54 = vld [vmem:[%s5588_s30 + $0x298] sm:$0xff] }
 0x19e   : > { %2325 = vmatmul.mubr.bf16.gmra.mrb[12].mxu1 %v1749_v48  ;;  %2020 = vmatmul.mubr.bf16.gmra.mrb[172].mxu0 %v1731_v50  ;;  %v1798_v48 = vunpack.c.h.s8.bf16 %v1590_v29  ;;  %v1814_v7 = vunpack.c.h.s8.bf16 %v1598_v54 }
 0x19f   : > { %2332 = vmatprep.mubr.bf16.mxu1 %v1758_v51  ;;  %2490 = vmatpush1.bf16.msra.mxu1 %v1489_v56 }
 0x1a0   : > { %2491 = vmatprep.subr.bf16.mxu1 %v5341_v33  ;;  %2027 = vmatprep.mubr.bf16.mxu0 %v1740_v55  ;;  %v1588_v55 = vld [vmem:[%s5588_s30 + $0x248] sm:$0xff] }
 0x1a1   : > { %v4731_v59 = vpop.f32.mrb[80].mxu0 }
 0x1a2   : > { %v1260_v62 = vpop.f32.mrb[81].mxu0 }
 0x1a3   : > { %2492 = vmatpush1.bf16.msra.mxu1 %v1490_v53  ;;  %v4732_v1 = vpop.f32.mrb[82].mxu0 }
 0x1a4   : > { %v1492_v2 = vpack.c.bf16 %v4732_v1, %v4731_v59  ;;  %v1263_v4 = vpop.f32.mrb[83].mxu0  ;;  %2493 = vmatprep.subr.bf16.mxu1 %v5341_v33 }
 0x1a5   : > { %v1491_v5 = vpack.c.bf16 %v1263_v4, %v1260_v62  ;;  %v1587_v4 = vld [vmem:[%s5588_s30 + $0x240] sm:$0xff] }
 0x1a6   : > { %2333 = vmatmul.mubr.bf16.gmra.mrb[16].mxu1 %v1757_v60  ;;  %2028 = vmatmul.mubr.bf16.gmra.mrb[176].mxu0 %v1739_v61  ;;  %v1806_v60 = vunpack.c.l.s8.bf16 %v1598_v54  ;;  %v1788_v61 = vunpack.c.l.s8.bf16 %v1588_v55  ;;  %v1787_v6 = vunpack.c.l.s8.bf16 %v1587_v4 }
 0x1a7   : > { %2340 = vmatprep.mubr.bf16.mxu1 %v1766_v63  ;;  %2035 = vmatprep.mubr.bf16.mxu0 %v1748_v0 }
 0x1a8   : > { %2494 = vmatpush1.bf16.msra.mxu1 %v1491_v5 }
 0x1a9   : > { %2495 = vmatprep.subr.bf16.mxu1 %v5341_v33  ;;  %v4735_v8 = vpop.f32.mrb[84].mxu0 }
 0x1aa   : > { %v1276_v11 = vpop.f32.mrb[85].mxu0 }
 0x1ab   : > { %v4736_v14 = vpop.f32.mrb[86].mxu0 }
 0x1ac   : > { %2496 = vmatpush1.bf16.msra.mxu1 %v1492_v2  ;;  %v1494_v15 = vpack.c.bf16 %v4736_v14, %v4735_v8  ;;  %v1279_v16 = vpop.f32.mrb[87].mxu0  ;;  %v1597_v2 = vld [vmem:[%s5588_s30 + $0x290] sm:$0xff]  ;;  %v1796_v8 = vunpack.c.h.s8.bf16 %v1588_v55 }
 0x1ad   : > { %v1493_v17 = vpack.c.bf16 %v1279_v16, %v1276_v11  ;;  %2497 = vmatprep.subr.bf16.mxu1 %v5341_v33  ;;  %v1805_v5 = vunpack.c.l.s8.bf16 %v1597_v2  ;;  %v1813_v11 = vunpack.c.h.s8.bf16 %v1597_v2  ;;  %v1595_v16 = vld [vmem:[%s5588_s30 + $0x280] sm:$0xff]  ;;  %v1620_v2 = vld [vmem:[%s5588_s30 + $0x348] sm:$0xff] }
 0x1ae   : > { %2341 = vmatmul.mubr.bf16.gmra.mrb[20].mxu1 %v1765_v9  ;;  %2036 = vmatmul.mubr.bf16.gmra.mrb[180].mxu0 %v1747_v10  ;;  %v1606_v9 = vld [vmem:[%s5588_s30 + $0x2d8] sm:$0xff]  ;;  %v1596_v10 = vld [vmem:[%s5588_s30 + $0x288] sm:$0xff]  ;;  %v1803_v18 = vunpack.c.l.s8.bf16 %v1595_v16 }
 0x1af   : > { %2348 = vmatprep.mubr.bf16.mxu1 %v1774_v12  ;;  %2043 = vmatprep.mubr.bf16.mxu0 %v1756_v13  ;;  %v1795_v12 = vunpack.c.h.s8.bf16 %v1587_v4  ;;  %v1822_v13 = vunpack.c.l.s8.bf16 %v1606_v9  ;;  %v1804_v14 = vunpack.c.l.s8.bf16 %v1596_v10  ;;  %v1830_v19 = vunpack.c.h.s8.bf16 %v1606_v9 }
 0x1b0   : > { %2498 = vmatpush1.bf16.msra.mxu1 %v1493_v17 }
 0x1b1   : > { %2499 = vmatprep.subr.bf16.mxu1 %v5341_v33  ;;  %v4739_v20 = vpop.f32.mrb[88].mxu0 }
 0x1b2   : > { %v1292_v23 = vpop.f32.mrb[89].mxu0 }
 0x1b3   : > { %v4740_v25 = vpop.f32.mrb[90].mxu0 }
 0x1b4   : > { %2500 = vmatpush1.bf16.msra.mxu1 %v1494_v15  ;;  %v1496_v26 = vpack.c.bf16 %v4740_v25, %v4739_v20  ;;  %v1295_v27 = vpop.f32.mrb[91].mxu0  ;;  %v1605_v15 = vld [vmem:[%s5588_s30 + $0x2d0] sm:$0xff]  ;;  %v1812_v20 = vunpack.c.h.s8.bf16 %v1596_v10 }
 0x1b5   : > { %v1495_v28 = vpack.c.bf16 %v1295_v27, %v1292_v23  ;;  %2501 = vmatprep.subr.bf16.mxu1 %v5341_v33  ;;  %v1821_v17 = vunpack.c.l.s8.bf16 %v1605_v15  ;;  %v1614_v23 = vld [vmem:[%s5588_s30 + $0x318] sm:$0xff]  ;;  %v1829_v27 = vunpack.c.h.s8.bf16 %v1605_v15 }
 0x1b6   : > { %2349 = vmatmul.mubr.bf16.gmra.mrb[24].mxu1 %v1773_v21  ;;  %2044 = vmatmul.mubr.bf16.gmra.mrb[184].mxu0 %v1755_v22  ;;  %v1838_v30 = vunpack.c.l.s8.bf16 %v1614_v23 }
 0x1b7   : > { %2356 = vmatprep.mubr.bf16.mxu1 %v1782_v24  ;;  %2051 = vmatprep.mubr.bf16.mxu0 %v1764_v3  ;;  %v1604_v24 = vld [vmem:[%s5588_s30 + $0x2c8] sm:$0xff] }
 0x1b8   : > { %2502 = vmatpush1.bf16.msra.mxu1 %v1495_v28  ;;  %v1811_v28 = vunpack.c.h.s8.bf16 %v1595_v16 }
 0x1b9   : > { %2503 = vmatprep.subr.bf16.mxu1 %v5341_v33  ;;  %v4743_v31 = vpop.f32.mrb[92].mxu0 }
 0x1ba   : > { %v1308_v35 = vpop.f32.mrb[93].mxu0 }
 0x1bb   : > { %v4744_v38 = vpop.f32.mrb[94].mxu0 }
 0x1bc   : > { %2504 = vmatpush1.bf16.msra.mxu1 %v1496_v26  ;;  %v1498_v39 = vpack.c.bf16 %v4744_v38, %v4743_v31  ;;  %v1311_v40 = vpop.f32.mrb[95].mxu0  ;;  %v1820_v31 = vunpack.c.l.s8.bf16 %v1604_v24  ;;  %v1828_v38 = vunpack.c.h.s8.bf16 %v1604_v24 }
 0x1bd   : > { %v1497_v41 = vpack.c.bf16 %v1311_v40, %v1308_v35  ;;  %2505 = vmatprep.subr.bf16.mxu1 %v5341_v33  ;;  %v1612_v40 = vld [vmem:[%s5588_s30 + $0x308] sm:$0xff] }
 0x1be   : > { %2357 = vmatmul.mubr.bf16.gmra.mrb[28].mxu1 %v1781_v32  ;;  %2052 = vmatmul.mubr.bf16.gmra.mrb[188].mxu0 %v1763_v34  ;;  %v1613_v32 = vld [vmem:[%s5588_s30 + $0x310] sm:$0xff]  ;;  %v1603_v34 = vld [vmem:[%s5588_s30 + $0x2c0] sm:$0xff] }
 0x1bf   : > { %2364 = vmatprep.mubr.bf16.mxu1 %v1790_v36  ;;  %2059 = vmatprep.mubr.bf16.mxu0 %v1772_v37  ;;  %v1837_v35 = vunpack.c.l.s8.bf16 %v1613_v32  ;;  %v1819_v36 = vunpack.c.l.s8.bf16 %v1603_v34  ;;  %v1846_v37 = vunpack.c.h.s8.bf16 %v1614_v23  ;;  %v1827_v42 = vunpack.c.h.s8.bf16 %v1603_v34 }
 0x1c0   : > { %2506 = vmatpush1.bf16.msra.mxu1 %v1497_v41  ;;  %v1845_v41 = vunpack.c.h.s8.bf16 %v1613_v32 }
 0x1c1   : > { %2507 = vmatprep.subr.bf16.mxu1 %v5341_v33  ;;  %v5711_v44 = vpop.f32.mrb[96].mxu0 }
 0x1c2   : > { %v5713_v47 = vpop.f32.mrb[97].mxu0 }
 0x1c3   : > { %v5715_v50 = vpop.f32.mrb[98].mxu0 }
 0x1c4   : > { %2508 = vmatpush1.bf16.msra.mxu1 %v1498_v39  ;;  %v1500_v51 = vpack.c.bf16 %v5715_v50, %v5711_v44  ;;  %v5719_v52 = vpop.f32.mrb[99].mxu0  ;;  %v1622_v39 = vld [vmem:[%s5588_s30 + $0x358] sm:$0xff] }
 0x1c5   : > { %v1499_v53 = vpack.c.bf16 %v5719_v52, %v5713_v47  ;;  %2766 = vmatprep.subr.bf16.mxu1 %v5341_v33  ;;  %v1854_v43 = vunpack.c.l.s8.bf16 %v1622_v39  ;;  %v1862_v55 = vunpack.c.h.s8.bf16 %v1622_v39  ;;  %v1636_v39 = vld [vmem:[%s5588_s30 + $0x3c8] sm:$0xff]  ;;  %v1527_v47 = vld [vmem:[%s5588_s30 + $0x60] sm:$0xff]  ;;  %v1517_v52 = vld [vmem:[%s5588_s30 + $0x10] sm:$0xff] }
 0x1c6   : > { %2365 = vmatmul.mubr.bf16.gmra.mrb[32].mxu1 %v1789_v45  ;;  %2060 = vmatmul.mubr.bf16.gmra.mrb[192].mxu0 %v1771_v46  ;;  %v1836_v45 = vunpack.c.l.s8.bf16 %v1612_v40  ;;  %v1621_v46 = vld [vmem:[%s5588_s30 + $0x350] sm:$0xff]  ;;  %v1663_v44 = vunpack.c.l.s8.bf16 %v1527_v47  ;;  %v1645_v50 = vunpack.c.l.s8.bf16 %v1517_v52 }
 0x1c7   : > { %2372 = vmatprep.mubr.bf16.mxu1 %v1798_v48  ;;  %2067 = vmatprep.mubr.bf16.mxu0 %v1780_v49  ;;  %v1611_v48 = vld [vmem:[%s5588_s30 + $0x300] sm:$0xff]  ;;  %v1853_v49 = vunpack.c.l.s8.bf16 %v1621_v46 }
 0x1c8   : > { %v1835_v54 = vunpack.c.l.s8.bf16 %v1611_v48 }
 0x1c9   : > { %v5726_v56 = vpop.f32.mrb[100].mxu0 }
 0x1ca   : > { %v5728_v59 = vpop.f32.mrb[101].mxu0 }
 0x1cb   : > { %v5730_v62 = vpop.f32.mrb[102].mxu0 }
 0x1cc   : > { %v1502_v63 = vpack.c.bf16 %v5730_v62, %v5726_v56  ;;  %v5734_v0 = vpop.f32.mrb[103].mxu0 }
 0x1cd   : > { %v1501_v1 = vpack.c.bf16 %v5734_v0, %v5728_v59 }
 0x1ce   : > { %2373 = vmatmul.mubr.bf16.gmra.mrb[36].mxu1 %v1797_v57  ;;  %2068 = vmatmul.mubr.bf16.gmra.mrb[196].mxu0 %v1779_v58  ;;  %v1844_v57 = vunpack.c.h.s8.bf16 %v1612_v40 }
 0x1cf   : > { %2380 = vmatprep.mubr.bf16.mxu1 %v1806_v60  ;;  %2075 = vmatprep.mubr.bf16.mxu0 %v1788_v61  ;;  %v1630_v61 = vld [vmem:[%s5588_s30 + $0x398] sm:$0xff] }
 0x1d0   : > { %v1870_v10 = vunpack.c.l.s8.bf16 %v1630_v61  ;;  %v1878_v16 = vunpack.c.h.s8.bf16 %v1630_v61 }
 0x1d1   : > { %v5744_v21 = vpop.f32.mrb[104].mxu0 }
 0x1d2   : > { %v5746_v22 = vpop.f32.mrb[105].mxu0 }
 0x1d3   : > { %v5750_v3 = vpop.f32.mrb[106].mxu0 }
 0x1d4   : > { %v1504_v25 = vpack.c.bf16 %v5750_v3, %v5744_v21  ;;  %v5754_v26 = vpop.f32.mrb[107].mxu0 }
 0x1d5   : > { %v1503_v29 = vpack.c.bf16 %v5754_v26, %v5746_v22  ;;  %v1535_v22 = vld [vmem:[%s5588_s30 + $0xa0] sm:$0xff]  ;;  %v1525_v26 = vld [vmem:[%s5588_s30 + $0x50] sm:$0xff] }
 0x1d6   : > { %2381 = vmatmul.mubr.bf16.gmra.mrb[40].mxu1 %v1805_v5  ;;  %2076 = vmatmul.mubr.bf16.gmra.mrb[200].mxu0 %v1787_v6 }
 0x1d7   : > { %2388 = vmatprep.mubr.bf16.mxu1 %v1814_v7  ;;  %2083 = vmatprep.mubr.bf16.mxu0 %v1796_v8  ;;  %v1861_v7 = vunpack.c.h.s8.bf16 %v1621_v46  ;;  %v1843_v8 = vunpack.c.h.s8.bf16 %v1611_v48 }
 0x1d9   : > { %v5764_v58 = vpop.f32.mrb[108].mxu0 }
 0x1da   : > { %v5766_v60 = vpop.f32.mrb[109].mxu0 }
 0x1db   : > { %v5770_v4 = vpop.f32.mrb[110].mxu0 }
 0x1dc   : > { %v1506_v5 = vpack.c.bf16 %v5770_v4, %v5764_v58  ;;  %v5774_v6 = vpop.f32.mrb[111].mxu0 }
 0x1dd   : > { %v1505_v9 = vpack.c.bf16 %v5774_v6, %v5766_v60  ;;  %v1544_v6 = vld [vmem:[%s5588_s30 + $0xe8] sm:$0xff] }
 0x1de   : > { %2389 = vmatmul.mubr.bf16.gmra.mrb[44].mxu1 %v1813_v11  ;;  %2084 = vmatmul.mubr.bf16.gmra.mrb[204].mxu0 %v1795_v12  ;;  %v1852_v11 = vunpack.c.l.s8.bf16 %v1620_v2  ;;  %v1629_v12 = vld [vmem:[%s5588_s30 + $0x390] sm:$0xff] }
 0x1df   : > { %2396 = vmatprep.mubr.bf16.mxu1 %v1822_v13  ;;  %2091 = vmatprep.mubr.bf16.mxu0 %v1804_v14  ;;  %v1619_v13 = vld [vmem:[%s5588_s30 + $0x340] sm:$0xff]  ;;  %v1869_v14 = vunpack.c.l.s8.bf16 %v1629_v12 }
 0x1e0   : > { %v1851_v15 = vunpack.c.l.s8.bf16 %v1619_v13  ;;  %v1859_v23 = vunpack.c.h.s8.bf16 %v1619_v13 }
 0x1e6   : > { %2397 = vmatmul.mubr.bf16.gmra.mrb[48].mxu1 %v1821_v17  ;;  %2092 = vmatmul.mubr.bf16.gmra.mrb[208].mxu0 %v1803_v18  ;;  %v1860_v17 = vunpack.c.h.s8.bf16 %v1620_v2  ;;  %v1638_v18 = vld [vmem:[%s5588_s30 + $0x3d8] sm:$0xff] }
 0x1e7   : > { %2404 = vmatprep.mubr.bf16.mxu1 %v1830_v19  ;;  %2099 = vmatprep.mubr.bf16.mxu0 %v1812_v20  ;;  %v1628_v19 = vld [vmem:[%s5588_s30 + $0x388] sm:$0xff]  ;;  %v1877_v20 = vunpack.c.h.s8.bf16 %v1629_v12  ;;  %v1886_v24 = vunpack.c.l.s8.bf16 %v1638_v18  ;;  %v1894_v34 = vunpack.c.h.s8.bf16 %v1638_v18 }
 0x1ee   : > { %2405 = vmatmul.mubr.bf16.gmra.mrb[52].mxu1 %v1829_v27  ;;  %2100 = vmatmul.mubr.bf16.gmra.mrb[212].mxu0 %v1811_v28  ;;  %v1868_v27 = vunpack.c.l.s8.bf16 %v1628_v19  ;;  %v1637_v28 = vld [vmem:[%s5588_s30 + $0x3d0] sm:$0xff] }
 0x1ef   : > { %2412 = vmatprep.mubr.bf16.mxu1 %v1838_v30  ;;  %2107 = vmatprep.mubr.bf16.mxu0 %v1820_v31  ;;  %v1627_v30 = vld [vmem:[%s5588_s30 + $0x380] sm:$0xff]  ;;  %v1885_v31 = vunpack.c.l.s8.bf16 %v1637_v28 }
 0x1f0   : > { %v1867_v32 = vunpack.c.l.s8.bf16 %v1627_v30 }
 0x1f6   : > { %2413 = vmatmul.mubr.bf16.gmra.mrb[56].mxu1 %v1837_v35  ;;  %2108 = vmatmul.mubr.bf16.gmra.mrb[216].mxu0 %v1819_v36  ;;  %v1876_v35 = vunpack.c.h.s8.bf16 %v1628_v19  ;;  %v5784_v36 = vpop.f32.mrb[112].mxu0 }
 0x1f7   : > { %2420 = vmatprep.mubr.bf16.mxu1 %v1846_v37  ;;  %2115 = vmatprep.mubr.bf16.mxu0 %v1828_v38  ;;  %v5786_v37 = vpop.f32.mrb[113].mxu0  ;;  %v1520_v38 = vld [vmem:[%s5588_s30 + $0x28] sm:$0xff] }
 0x1f8   : > { %v5790_v40 = vpop.f32.mrb[114].mxu0  ;;  %v1648_v48 = vunpack.c.l.s8.bf16 %v1520_v38  ;;  %v1656_v2 = vunpack.c.h.s8.bf16 %v1520_v38 }
 0x1fe   : > { %2421 = vmatmul.mubr.bf16.gmra.mrb[60].mxu1 %v1845_v41  ;;  %2116 = vmatmul.mubr.bf16.gmra.mrb[220].mxu0 %v1827_v42  ;;  %v1508_v41 = vpack.c.bf16 %v5790_v40, %v5784_v36  ;;  %v5794_v42 = vpop.f32.mrb[115].mxu0 }
 0x1ff   : > { %2428 = vmatprep.mubr.bf16.mxu1 %v1854_v43  ;;  %2123 = vmatprep.mubr.bf16.mxu0 %v1836_v45  ;;  %v1893_v43 = vunpack.c.h.s8.bf16 %v1637_v28  ;;  %v1875_v45 = vunpack.c.h.s8.bf16 %v1627_v30  ;;  %v1507_v46 = vpack.c.bf16 %v5794_v42, %v5786_v37  ;;  %v5820_v59 = vpop.f32.mrb[116].mxu0  ;;  %v1533_v37 = vld [vmem:[%s5588_s30 + $0x90] sm:$0xff] }
 0x200   : > { %v1404_v0 = vpop.f32.mrb[117].mxu0  ;;  %v1677_v40 = vunpack.c.l.s8.bf16 %v1533_v37 }
 0x206   : > { %2429 = vmatmul.mubr.bf16.gmra.mrb[64].mxu1 %v1853_v49  ;;  %2124 = vmatmul.mubr.bf16.gmra.mrb[224].mxu0 %v1835_v54  ;;  %v1884_v49 = vunpack.c.l.s8.bf16 %v1636_v39  ;;  %v1519_v54 = vld [vmem:[%s5588_s30 + $0x20] sm:$0xff] }
 0x207   : > { %2436 = vmatprep.mubr.bf16.mxu1 %v1862_v55  ;;  %2131 = vmatprep.mubr.bf16.mxu0 %v1844_v57  ;;  %v1635_v55 = vld [vmem:[%s5588_s30 + $0x3c0] sm:$0xff]  ;;  %v1647_v57 = vunpack.c.l.s8.bf16 %v1519_v54 }
 0x208   : > { %v1883_v61 = vunpack.c.l.s8.bf16 %v1635_v55  ;;  %v1891_v12 = vunpack.c.h.s8.bf16 %v1635_v55  ;;  %v1685_v55 = vunpack.c.h.s8.bf16 %v1533_v37  ;;  %v5292_v37 = vld [vmem:[%s6589_s4] sm:$0xff]  }
 0x209   : > { %4777 = vmatprep.subr.bf16.mxu0 %v5292_v37 }
 0x20e   : > { %2437 = vmatmul.mubr.bf16.gmra.mrb[68].mxu1 %v1861_v7  ;;  %2132 = vmatmul.mubr.bf16.gmra.mrb[228].mxu0 %v1843_v8  ;;  %v1892_v7 = vunpack.c.h.s8.bf16 %v1636_v39  ;;  %v1528_v8 = vld [vmem:[%s5588_s30 + $0x68] sm:$0xff] }
 0x20f   : > { %2444 = vmatprep.mubr.bf16.mxu1 %v1870_v10  ;;  %2139 = vmatprep.mubr.bf16.mxu0 %v1852_v11  ;;  %v1518_v10 = vld [vmem:[%s5588_s30 + $0x18] sm:$0xff]  ;;  %v1655_v11 = vunpack.c.h.s8.bf16 %v1519_v54  ;;  %v1664_v13 = vunpack.c.l.s8.bf16 %v1528_v8 }
 0x216   : > { %2445 = vmatmul.mubr.bf16.gmra.mrb[72].mxu1 %v1869_v14  ;;  %2140 = vmatmul.mubr.bf16.gmra.mrb[232].mxu0 %v1851_v15  ;;  %v1646_v14 = vunpack.c.l.s8.bf16 %v1518_v10  ;;  %v1526_v15 = vld [vmem:[%s5588_s30 + $0x58] sm:$0xff] }
 0x217   : > { %2452 = vmatprep.mubr.bf16.mxu1 %v1878_v16  ;;  %2147 = vmatprep.mubr.bf16.mxu0 %v1860_v17  ;;  %v5827_v16 = vpop.f32.mrb[118].mxu0  ;;  %v1653_v17 = vunpack.c.h.s8.bf16 %v1517_v52  ;;  %v1670_v3 = vunpack.c.h.s8.bf16 %v1526_v15 }
 0x218   : > { %v1510_v56 = vpack.c.bf16 %v5827_v16, %v5820_v59  ;;  %v1407_v62 = vpop.f32.mrb[119].mxu0  ;;  %v1550_v59 = vld [vmem:[%s5588_s30 + $0x118] sm:$0xff] }
 0x219   : > { %v1509_v18 = vpack.c.bf16 %v1407_v62, %v1404_v0 }
 0x21e   : > { %2453 = vmatmul.mubr.bf16.gmra.mrb[76].mxu1 %v1877_v20  ;;  %2148 = vmatmul.mubr.bf16.gmra.mrb[236].mxu0 %v1859_v23  ;;  %v1662_v20 = vunpack.c.l.s8.bf16 %v1526_v15  ;;  %v1661_v23 = vunpack.c.l.s8.bf16 %v1525_v26 }
 0x21f   : > { %2460 = vmatprep.mubr.bf16.mxu1 %v1886_v24  ;;  %2155 = vmatprep.mubr.bf16.mxu0 %v1868_v27  ;;  %v1669_v27 = vunpack.c.h.s8.bf16 %v1525_v26 }
 0x226   : > { %2461 = vmatmul.mubr.bf16.gmra.mrb[80].mxu1 %v1885_v31  ;;  %2156 = vmatmul.mubr.bf16.gmra.mrb[240].mxu0 %v1867_v32  ;;  %v1696_v31 = vunpack.c.l.s8.bf16 %v1544_v6 }
 0x227   : > { %2468 = vmatprep.mubr.bf16.mxu1 %v1894_v34  ;;  %2163 = vmatprep.mubr.bf16.mxu0 %v1876_v35  ;;  %v1543_v35 = vld [vmem:[%s5588_s30 + $0xe0] sm:$0xff] }
 0x228   : > { %v1695_v36 = vunpack.c.l.s8.bf16 %v1543_v35  ;;  %v1703_v54 = vunpack.c.h.s8.bf16 %v1543_v35 }
 0x22e   : > { %2469 = vmatmul.mubr.bf16.gmra.mrb[84].mxu1 %v1893_v43  ;;  %2164 = vmatmul.mubr.bf16.gmra.mrb[244].mxu0 %v1875_v45 }
 0x22f   : > { %2509 = vmatprep.mubr.bf16.mxu1 %v1648_v48  ;;  %2171 = vmatprep.mubr.bf16.mxu0 %v1884_v49  ;;  %v1542_v48 = vld [vmem:[%s5588_s30 + $0xd8] sm:$0xff] }
 0x236   : > { %2510 = vmatmul.mubr.bf16.vlgmr.msra.gmra.mrb[88].mxu1 %v1647_v57  ;;  %2172 = vmatmul.mubr.bf16.gmra.mrb[248].mxu0 %v1883_v61 }
 0x237   : > { %2767 = vmatpush1.bf16.msra.mxu1 %v1499_v53  ;;  %2517 = vmatprep.mubr.bf16.mxu1 %v1656_v2  ;;  %v1654_v53 = vunpack.c.h.s8.bf16 %v1518_v10  ;;  %v1694_v2 = vunpack.c.l.s8.bf16 %v1542_v48  ;;  %v1551_v10 = vld [vmem:[%s5588_s30 + $0x120] sm:$0xff] }
 0x238   : > { %2768 = vmatprep.subr.bf16.mxu1 %v5341_v33  ;;  %2179 = vmatprep.mubr.bf16.mxu0 %v1892_v7 }
 0x23b   : > { %2769 = vmatpush1.bf16.msra.mxu1 %v1500_v51  ;;  %v1672_v51 = vunpack.c.h.s8.bf16 %v1528_v8 }
 0x23c   : > { %2770 = vmatprep.subr.bf16.mxu1 %v5341_v33 }
 0x23e   : > { %2518 = vmatmul.mubr.bf16.gmra.mrb[92].mxu1 %v1655_v11  ;;  %2180 = vmatmul.mubr.bf16.gmra.mrb[252].mxu0 %v1891_v12  ;;  %v1541_v11 = vld [vmem:[%s5588_s30 + $0xd0] sm:$0xff] }
 0x23f   : > { %2525 = vmatprep.mubr.bf16.mxu1 %v1664_v13  ;;  %2771 = vmatpush1.bf16.msra.mxu1 %v1501_v1  ;;  %v1536_v1 = vld [vmem:[%s5588_s30 + $0xa8] sm:$0xff]  ;;  %v1711_v13 = vunpack.c.l.s8.bf16 %v1551_v10 }
 0x240   : > { %2772 = vmatprep.subr.bf16.mxu1 %v5341_v33  ;;  %2220 = vmatprep.mubr.bf16.mxu0 %v1646_v14  ;;  %v1680_v19 = vunpack.c.l.s8.bf16 %v1536_v1  ;;  %v1688_v21 = vunpack.c.h.s8.bf16 %v1536_v1  ;;  %v1693_v14 = vunpack.c.l.s8.bf16 %v1541_v11  ;;  %v1701_v1 = vunpack.c.h.s8.bf16 %v1541_v11  ;;  %v5296_v11 = vld [vmem:[%s6589_s4 + $0x20] sm:$0xff]  }
 0x243   : > { %2773 = vmatpush1.bf16.msra.mxu1 %v1502_v63  ;;  %v1671_v63 = vunpack.c.h.s8.bf16 %v1527_v47 }
 0x244   : > { %2774 = vmatprep.subr.bf16.mxu1 %v5341_v33 }
 0x246   : > { %2526 = vmatmul.mubr.bf16.gmra.mrb[96].mxu1 %v1663_v44  ;;  %2221 = vmatmul.mubr.bf16.vlgmr.msra.gmra.mrb[128].mxu0 %v1645_v50  ;;  %v1702_v44 = vunpack.c.h.s8.bf16 %v1542_v48  ;;  %v1575_v48 = vld [vmem:[%s5588_s30 + $0x1e0] sm:$0xff] }
 0x247   : > { %2533 = vmatprep.mubr.bf16.mxu1 %v1672_v51  ;;  %2228 = vmatprep.mubr.bf16.mxu0 %v1654_v53  ;;  %v1560_v53 = vld [vmem:[%s5588_s30 + $0x168] sm:$0xff] }
 0x248   : > { %2775 = vmatpush1.bf16.msra.mxu1 %v1503_v29  ;;  %v1679_v29 = vunpack.c.l.s8.bf16 %v1535_v22  ;;  %v1728_v16 = vunpack.c.l.s8.bf16 %v1560_v53  ;;  %4778 = vmatpush3.bf16.msra.mxu0 %v5292_v37  ;;  %v1600_v37 = vld [vmem:[%s5588_s30 + $0x2a8] sm:$0xff] }
 0x249   : > { %2776 = vmatprep.subr.bf16.mxu1 %v5341_v33 }
 0x24c   : > { %2777 = vmatpush1.bf16.msra.mxu1 %v1504_v25  ;;  %v4771_v25 = vpop.f32.mrb[120].mxu0 }
 0x24d   : > { %2778 = vmatprep.subr.bf16.mxu1 %v5341_v33  ;;  %v1420_v60 = vpop.f32.mrb[121].mxu0 }
 0x24e   : > { %2534 = vmatmul.mubr.bf16.gmra.mrb[100].mxu1 %v1671_v63  ;;  %2229 = vmatmul.mubr.bf16.gmra.mrb[132].mxu0 %v1653_v17  ;;  %v4772_v24 = vpop.f32.mrb[122].mxu0  ;;  %v1559_v17 = vld [vmem:[%s5588_s30 + $0x160] sm:$0xff] }
 0x24f   : > { %2541 = vmatprep.mubr.bf16.mxu1 %v1680_v19  ;;  %2236 = vmatprep.mubr.bf16.mxu0 %v1662_v20  ;;  %v1512_v58 = vpack.c.bf16 %v4772_v24, %v4771_v25  ;;  %v1423_v4 = vpop.f32.mrb[123].mxu0  ;;  %v1727_v20 = vunpack.c.l.s8.bf16 %v1559_v17  ;;  %v1568_v25 = vld [vmem:[%s5588_s30 + $0x1a8] sm:$0xff] }
 0x250   : > { %2779 = vmatpush1.bf16.msra.mxu1 %v1505_v9  ;;  %v1534_v9 = vld [vmem:[%s5588_s30 + $0x98] sm:$0xff]  ;;  %v1511_v28 = vpack.c.bf16 %v1423_v4, %v1420_v60  ;;  %v4775_v30 = vpop.f32.mrb[124].mxu0 }
 0x251   : > { %2780 = vmatprep.subr.bf16.mxu1 %v5341_v33  ;;  %v1678_v32 = vunpack.c.l.s8.bf16 %v1534_v9  ;;  %v1436_v34 = vpop.f32.mrb[125].mxu0  ;;  %v1686_v45 = vunpack.c.h.s8.bf16 %v1534_v9 }
 0x252   : > { %v4776_v38 = vpop.f32.mrb[126].mxu0 }
 0x253   : > { %v1514_v39 = vpack.c.bf16 %v4776_v38, %v4775_v30  ;;  %v1439_v42 = vpop.f32.mrb[127].mxu0  ;;  %v5293_v38 = vld [vmem:[%s6589_s4 + $0x8] sm:$0xff]  }
 0x254   : > { %2781 = vmatpush1.bf16.msra.mxu1 %v1506_v5  ;;  %v1687_v5 = vunpack.c.h.s8.bf16 %v1535_v22  ;;  %v1513_v43 = vpack.c.bf16 %v1439_v42, %v1436_v34  ;;  %4779 = vmatprep.subr.bf16.mxu0 %v5293_v38 }
 0x255   : > { %2782 = vmatprep.subr.bf16.mxu1 %v5341_v33  ;;  %4780 = vmatpush3.bf16.msra.mxu0 %v5293_v38  ;;  %v5302_v38 = vld [vmem:[%s5949_s27 + $0x10] sm:$0xff]  }
 0x256   : > { %2542 = vmatmul.mubr.bf16.gmra.mrb[104].mxu1 %v1679_v29  ;;  %2237 = vmatmul.mubr.bf16.gmra.mrb[136].mxu0 %v1661_v23  ;;  %v1736_v29 = vunpack.c.h.s8.bf16 %v1560_v53  ;;  %v1718_v23 = vunpack.c.h.s8.bf16 %v1550_v59 }
 0x257   : > { %2549 = vmatprep.mubr.bf16.mxu1 %v1688_v21  ;;  %2244 = vmatprep.mubr.bf16.mxu0 %v1670_v3 }
 0x258   : > { %2783 = vmatpush1.bf16.msra.mxu1 %v1507_v46  ;;  %v1552_v46 = vld [vmem:[%s5588_s30 + $0x128] sm:$0xff] }
 0x259   : > { %2784 = vmatprep.subr.bf16.mxu1 %v5341_v33  ;;  %v1712_v61 = vunpack.c.l.s8.bf16 %v1552_v46  ;;  %v1720_v52 = vunpack.c.h.s8.bf16 %v1552_v46  ;;  %v5294_v46 = vld [vmem:[%s6589_s4 + $0x10] sm:$0xff]  }
 0x25a   : > { %4781 = vmatprep.subr.bf16.mxu0 %v5294_v46 }
 0x25b   : > { %4782 = vmatpush3.bf16.msra.mxu0 %v5294_v46 }
 0x25c   : > { %2785 = vmatpush1.bf16.msra.mxu1 %v1508_v41  ;;  %v1704_v41 = vunpack.c.h.s8.bf16 %v1544_v6  ;;  %v1735_v6 = vunpack.c.h.s8.bf16 %v1559_v17 }
 0x25d   : > { %2786 = vmatprep.subr.bf16.mxu1 %v5341_v33 }
 0x25e   : > { %2550 = vmatmul.mubr.bf16.gmra.mrb[108].mxu1 %v1687_v5  ;;  %2245 = vmatmul.mubr.bf16.gmra.mrb[140].mxu0 %v1669_v27  ;;  %v1567_v27 = vld [vmem:[%s5588_s30 + $0x1a0] sm:$0xff] }
 0x25f   : > { %2557 = vmatprep.mubr.bf16.mxu1 %v1696_v31  ;;  %2252 = vmatprep.mubr.bf16.mxu0 %v1678_v32  ;;  %v1743_v30 = vunpack.c.l.s8.bf16 %v1567_v27  ;;  %v1752_v32 = vunpack.c.h.s8.bf16 %v1568_v25 }
 0x260   : > { %2787 = vmatpush1.bf16.msra.mxu1 %v1509_v18  ;;  %v1549_v18 = vld [vmem:[%s5588_s30 + $0x110] sm:$0xff] }
 0x261   : > { %2788 = vmatprep.subr.bf16.mxu1 %v5341_v33  ;;  %v1709_v22 = vunpack.c.l.s8.bf16 %v1549_v18  ;;  %v1717_v9 = vunpack.c.h.s8.bf16 %v1549_v18 }
 0x264   : > { %2789 = vmatpush1.bf16.msra.mxu1 %v1510_v56  ;;  %v1710_v56 = vunpack.c.l.s8.bf16 %v1550_v59 }
 0x265   : > { %2790 = vmatprep.subr.bf16.mxu1 %v5341_v33 }
 0x266   : > { %2558 = vmatmul.mubr.bf16.gmra.mrb[112].mxu1 %v1695_v36  ;;  %2253 = vmatmul.mubr.bf16.gmra.mrb[144].mxu0 %v1677_v40 }
 0x267   : > { %2565 = vmatprep.mubr.bf16.mxu1 %v1704_v41  ;;  %2260 = vmatprep.mubr.bf16.mxu0 %v1686_v45 }
 0x268   : > { %2791 = vmatpush1.bf16.msra.mxu1 %v1511_v28 }
 0x269   : > { %v5862_v49 = vpop.f32.mrb[168].mxu0  ;;  %2792 = vmatprep.subr.bf16.mxu1 %v5341_v33 }
 0x26a   : > { %v2015_v57 = vpop.f32.mrb[169].mxu0 }
 0x26b   : > { %v5865_v7 = vpop.f32.mrb[170].mxu0  ;;  %v1759_v57 = vunpack.c.l.s8.bf16 %v1575_v48 }
 0x26c   : > { %v2018_v8 = vpop.f32.mrb[171].mxu0  ;;  %2793 = vmatpush1.bf16.msra.mxu1 %v1512_v58  ;;  %v1744_v58 = vunpack.c.l.s8.bf16 %v1568_v25 }
 0x26d   : > { %2794 = vmatprep.subr.bf16.mxu1 %v5341_v33 }
 0x26e   : > { %2566 = vmatmul.mubr.bf16.gmra.mrb[116].mxu1 %v1703_v54  ;;  %2261 = vmatmul.mubr.bf16.gmra.mrb[148].mxu0 %v1685_v55  ;;  %v5295_v54 = vld [vmem:[%s6589_s4 + $0x18] sm:$0xff]  }
 0x26f   : > { %2573 = vmatprep.mubr.bf16.mxu1 %v1712_v61  ;;  %2268 = vmatprep.mubr.bf16.mxu0 %v1694_v2 }
 0x270   : > { %2795 = vmatpush1.bf16.msra.mxu1 %v1513_v43  ;;  %v1751_v43 = vunpack.c.h.s8.bf16 %v1567_v27  ;;  %4783 = vmatprep.subr.bf16.mxu0 %v5295_v54 }
 0x271   : > { %v5870_v12 = vpop.f32.mrb[172].mxu0  ;;  %2796 = vmatprep.subr.bf16.mxu1 %v5341_v33  ;;  %v1719_v33 = vunpack.c.h.s8.bf16 %v1551_v10  ;;  %4784 = vmatpush3.bf16.msra.mxu0 %v5295_v54  ;;  %v1599_v54 = vld [vmem:[%s5588_s30 + $0x2a0] sm:$0xff] }
 0x272   : > { %v2023_v47 = vpop.f32.mrb[173].mxu0  ;;  %4785 = vmatprep.subr.bf16.mxu0 %v5296_v11 }
 0x273   : > { %v5873_v50 = vpop.f32.mrb[174].mxu0 }
 0x274   : > { %v2026_v51 = vpop.f32.mrb[175].mxu0  ;;  %2797 = vmatpush1.bf16.msra.mxu1 %v1514_v39  ;;  %v1576_v39 = vld [vmem:[%s5588_s30 + $0x1e8] sm:$0xff] }
 0x275   : > { %v1760_v40 = vunpack.c.l.s8.bf16 %v1576_v39  ;;  %v1768_v2 = vunpack.c.h.s8.bf16 %v1576_v39  ;;  %4786 = vmatpush3.bf16.msra.mxu0 %v5296_v11  ;;  %v5303_v39 = vld [vmem:[%s5949_s27 + $0x18] sm:$0xff]  }
 0x276   : > { %2574 = vmatmul.mubr.bf16.gmra.mrb[120].mxu1 %v1711_v13  ;;  %2269 = vmatmul.mubr.bf16.gmra.mrb[152].mxu0 %v1693_v14  ;;  %v5297_v13 = vld [vmem:[%s6589_s4 + $0x28] sm:$0xff]  }
 0x277   : > { %2581 = vmatprep.mubr.bf16.mxu1 %v1720_v52  ;;  %2276 = vmatprep.mubr.bf16.mxu0 %v1702_v44  ;;  %v1584_v14 = vld [vmem:[%s5588_s30 + $0x228] sm:$0xff]  ;;  %v1767_v52 = vunpack.c.h.s8.bf16 %v1575_v48 }
 0x278   : > { %4787 = vmatprep.subr.bf16.mxu0 %v5297_v13  ;;  %v1776_v51 = vunpack.c.l.s8.bf16 %v1584_v14  ;;  %v1784_v17 = vunpack.c.h.s8.bf16 %v1584_v14  ;;  %v5304_v14 = vld [vmem:[%s5949_s27 + $0x20] sm:$0xff]  }
 0x279   : > { %v5877_v0 = vpop.f32.mrb[176].mxu0  ;;  %4788 = vmatpush3.bf16.msra.mxu0 %v5297_v13 }
 0x27a   : > { %6593 = vst [vmem:[#allocation2_spill] sm:$0xff] %v5877_v0  ;;  %v2031_v15 = vpop.f32.mrb[177].mxu0 }
 0x27b   : > { %v5879_v62 = vpop.f32.mrb[178].mxu0  ;;  %v5299_v15 = vld [vmem:[%s6589_s4 + $0x38] sm:$0xff]  }
 0x27c   : > { %6594 = vst [vmem:[#allocation3_spill] sm:$0xff] %v5879_v62  ;;  %v2034_v63 = vpop.f32.mrb[179].mxu0 }
 0x27e   : > { %2582 = vmatmul.mubr.bf16.gmra.mrb[124].mxu1 %v1719_v33  ;;  %2277 = vmatmul.mubr.bf16.gmra.mrb[156].mxu0 %v1701_v1  ;;  %v5298_v33 = vld [vmem:[%s6589_s4 + $0x30] sm:$0xff]   ;;  %v1583_v1 = vld [vmem:[%s5588_s30 + $0x220] sm:$0xff] }
 0x27f   : > { %2589 = vmatprep.mubr.bf16.mxu1 %v1728_v16  ;;  %2284 = vmatprep.mubr.bf16.mxu0 %v1710_v56  ;;  %v1775_v56 = vunpack.c.l.s8.bf16 %v1583_v1 }
 0x280   : > { %4789 = vmatprep.subr.bf16.mxu0 %v5298_v33 }
 0x281   : > { %v5883_v19 = vpop.f32.mrb[180].mxu0  ;;  %4790 = vmatpush3.bf16.msra.mxu0 %v5298_v33 }
 0x282   : > { %6595 = vst [vmem:[#allocation4_spill] sm:$0xff] %v5883_v19  ;;  %v2039_v26 = vpop.f32.mrb[181].mxu0  ;;  %4791 = vmatprep.subr.bf16.mxu0 %v5299_v15 }
 0x283   : > { %v5885_v21 = vpop.f32.mrb[182].mxu0  ;;  %v5300_v26 = vld [vmem:[%s5949_s27] sm:$0xff]  }
 0x284   : > { %6596 = vst [vmem:[#allocation5_spill] sm:$0xff] %v5885_v21  ;;  %v2042_v3 = vpop.f32.mrb[183].mxu0 }
 0x285   : > { %4792 = vmatpush3.bf16.msra.mxu0 %v5299_v15  ;;  %v1783_v3 = vunpack.c.h.s8.bf16 %v1583_v1 }
 0x286   : > { %2590 = vmatmul.mubr.bf16.gmra.mrb[0].mxu1 %v1727_v20  ;;  %2285 = vmatmul.mubr.bf16.gmra.mrb[160].mxu0 %v1709_v22  ;;  %v1592_v22 = vld [vmem:[%s5588_s30 + $0x268] sm:$0xff] }
 0x287   : > { %2597 = vmatprep.mubr.bf16.mxu1 %v1736_v29  ;;  %2292 = vmatprep.mubr.bf16.mxu0 %v1718_v23  ;;  %v5301_v29 = vld [vmem:[%s5949_s27 + $0x8] sm:$0xff]  }
 0x289   : > { %v5888_v60 = vpop.f32.mrb[184].mxu0 }
 0x28a   : > { %6597 = vst [vmem:[#allocation6_spill] sm:$0xff] %v5888_v60  ;;  %v2047_v24 = vpop.f32.mrb[185].mxu0 }
 0x28b   : > { %v5890_v4 = vpop.f32.mrb[186].mxu0 }
 0x28c   : > { %6598 = vst [vmem:[#allocation7_spill] sm:$0xff] %v5890_v4  ;;  %v2050_v5 = vpop.f32.mrb[187].mxu0 }
 0x28e   : > { %2598 = vmatmul.mubr.bf16.gmra.mrb[4].mxu1 %v1735_v6  ;;  %2293 = vmatmul.mubr.bf16.gmra.mrb[164].mxu0 %v1717_v9  ;;  %v1792_v6 = vunpack.c.l.s8.bf16 %v1592_v22 }
 0x28f   : > { %2605 = vmatprep.mubr.bf16.mxu1 %v1744_v58  ;;  %4793 = vmatprep.mubr.bf16.mxu0 %v5300_v26  ;;  %v1591_v58 = vld [vmem:[%s5588_s30 + $0x260] sm:$0xff] }
 0x290   : > { %v1791_v27 = vunpack.c.l.s8.bf16 %v1591_v58 }
 0x291   : > { %v5893_v28 = vpop.f32.mrb[188].mxu0 }
 0x292   : > { %6599 = vst [vmem:[#allocation8_spill] sm:$0xff] %v5893_v28  ;;  %v2055_v31 = vpop.f32.mrb[189].mxu0 }
 0x293   : > { %v5895_v34 = vpop.f32.mrb[190].mxu0  ;;  %v1800_v31 = vunpack.c.h.s8.bf16 %v1592_v22 }
 0x294   : > { %6600 = vst [vmem:[#allocation9_spill] sm:$0xff] %v5895_v34  ;;  %v2058_v35 = vpop.f32.mrb[191].mxu0 }
 0x296   : > { %2606 = vmatmul.mubr.bf16.gmra.mrb[8].mxu1 %v1743_v30  ;;  %4794 = vmatmul.mubr.bf16.vlgmr.msra.gmra.mrb[0].mxu0 %v5301_v29 }
 0x297   : > { %2613 = vmatprep.mubr.bf16.mxu1 %v1752_v32  ;;  %4797 = vmatprep.mubr.bf16.mxu0 %v5302_v38  ;;  %v1615_v38 = vld [vmem:[%s5588_s30 + $0x320] sm:$0xff] }
 0x299   : > { %v5904_v42 = vpop.f32.mrb[192].mxu0 }
 0x29a   : > { %6601 = vst [vmem:[#allocation10_spill] sm:$0xff] %v5904_v42  ;;  %v2063_v36 = vpop.f32.mrb[193].mxu0 }
 0x29b   : > { %v5906_v41 = vpop.f32.mrb[194].mxu0  ;;  %v1799_v36 = vunpack.c.h.s8.bf16 %v1591_v58 }
 0x29c   : > { %6602 = vst [vmem:[#allocation11_spill] sm:$0xff] %v5906_v41  ;;  %v2066_v45 = vpop.f32.mrb[195].mxu0 }
 0x29d   : > { %v1808_v45 = vunpack.c.l.s8.bf16 %v1600_v37 }
 0x29e   : > { %2614 = vmatmul.mubr.bf16.gmra.mrb[12].mxu1 %v1751_v43  ;;  %4798 = vmatmul.mubr.bf16.gmra.mrb[4].mxu0 %v5303_v39 }
 0x29f   : > { %2621 = vmatprep.mubr.bf16.mxu1 %v1760_v40  ;;  %4801 = vmatprep.mubr.bf16.mxu0 %v5304_v14  ;;  %v1847_v14 = vunpack.c.h.s8.bf16 %v1615_v38 }
 0x2a1   : > { %v5915_v55 = vpop.f32.mrb[196].mxu0 }
 0x2a2   : > { %6603 = vst [vmem:[#allocation12_spill] sm:$0xff] %v5915_v55  ;;  %v2071_v61 = vpop.f32.mrb[197].mxu0 }
 0x2a3   : > { %v5917_v8 = vpop.f32.mrb[198].mxu0  ;;  %v1807_v61 = vunpack.c.l.s8.bf16 %v1599_v54 }
 0x2a4   : > { %6604 = vst [vmem:[#allocation13_spill] sm:$0xff] %v5917_v8  ;;  %v2074_v10 = vpop.f32.mrb[199].mxu0 }
 0x2a5   : > { %v1816_v10 = vunpack.c.h.s8.bf16 %v1600_v37 }
 0x2a6   : > { %2622 = vmatmul.mubr.bf16.gmra.mrb[16].mxu1 %v1759_v57 }
 0x2a7   : > { %2629 = vmatprep.mubr.bf16.mxu1 %v1768_v2 }
 0x2a9   : > { %v5926_v47 = vpop.f32.mrb[200].mxu0 }
 0x2aa   : > { %6605 = vst [vmem:[#allocation14_spill] sm:$0xff] %v5926_v47  ;;  %v2079_v44 = vpop.f32.mrb[201].mxu0 }
 0x2ab   : > { %v5928_v53 = vpop.f32.mrb[202].mxu0  ;;  %v1608_v44 = vld [vmem:[%s5588_s30 + $0x2e8] sm:$0xff] }
 0x2ac   : > { %6606 = vst [vmem:[#allocation15_spill] sm:$0xff] %v5928_v53  ;;  %v2082_v59 = vpop.f32.mrb[203].mxu0  ;;  %v1824_v1 = vunpack.c.l.s8.bf16 %v1608_v44  ;;  %v1832_v26 = vunpack.c.h.s8.bf16 %v1608_v44 }
 0x2ad   : > { %v1815_v59 = vunpack.c.h.s8.bf16 %v1599_v54 }
 0x2ae   : > { %2630 = vmatmul.mubr.bf16.gmra.mrb[20].mxu1 %v1767_v52  ;;  %v5305_v52 = vld [vmem:[%s5949_s27 + $0x28] sm:$0xff]  }
 0x2af   : > { %2637 = vmatprep.mubr.bf16.mxu1 %v1776_v51  ;;  %4802 = vmatmul.mubr.bf16.gmra.mrb[8].mxu0 %v5305_v52 }
 0x2b1   : > { %v5939_v16 = vpop.f32.mrb[204].mxu0 }
 0x2b2   : > { %6607 = vst [vmem:[#allocation16_spill] sm:$0xff] %v5939_v16  ;;  %v2087_v63 = vpop.f32.mrb[205].mxu0 }
 0x2b3   : > { %v5943_v18 = vpop.f32.mrb[206].mxu0  ;;  %v1607_v63 = vld [vmem:[%s5588_s30 + $0x2e0] sm:$0xff] }
 0x2b4   : > { %6608 = vst [vmem:[#allocation17_spill] sm:$0xff] %v5943_v18  ;;  %v2090_v20 = vpop.f32.mrb[207].mxu0 }
 0x2b5   : > { %v1823_v20 = vunpack.c.l.s8.bf16 %v1607_v63 }
 0x2b6   : > { %2638 = vmatmul.mubr.bf16.gmra.mrb[24].mxu1 %v1775_v56 }
 0x2b7   : > { %2645 = vmatprep.mubr.bf16.mxu1 %v1784_v17 }
 0x2b9   : > { %v5954_v23 = vpop.f32.mrb[208].mxu0 }
 0x2ba   : > { %6609 = vst [vmem:[#allocation18_spill] sm:$0xff] %v5954_v23  ;;  %v2095_v25 = vpop.f32.mrb[209].mxu0 }
 0x2bb   : > { %v5956_v9 = vpop.f32.mrb[210].mxu0  ;;  %v5306_v25 = vld [vmem:[%s5949_s27 + $0x30] sm:$0xff]  }
 0x2bc   : > { %6610 = vst [vmem:[#allocation19_spill] sm:$0xff] %v5956_v9  ;;  %v2098_v24 = vpop.f32.mrb[211].mxu0  ;;  %4805 = vmatprep.mubr.bf16.mxu0 %v5306_v25  ;;  %v5310_v25 = vld [vmem:[%s5949_s27 + $0x50] sm:$0xff]  }
 0x2bd   : > { %v1616_v24 = vld [vmem:[%s5588_s30 + $0x328] sm:$0xff] }
 0x2be   : > { %2646 = vmatmul.mubr.bf16.gmra.mrb[28].mxu1 %v1783_v3 }
 0x2bf   : > { %2653 = vmatprep.mubr.bf16.mxu1 %v1792_v6  ;;  %v5307_v6 = vld [vmem:[%s5949_s27 + $0x38] sm:$0xff]  }
 0x2c0   : > { %4806 = vmatmul.mubr.bf16.gmra.mrb[12].mxu0 %v5307_v6  ;;  %v5311_v6 = vld [vmem:[%s5949_s27 + $0x58] sm:$0xff]  }
 0x2c1   : > { %v5959_v5 = vpop.f32.mrb[212].mxu0 }
 0x2c2   : > { %6611 = vst [vmem:[#allocation20_spill] sm:$0xff] %v5959_v5  ;;  %v2103_v30 = vpop.f32.mrb[213].mxu0 }
 0x2c3   : > { %v5961_v32 = vpop.f32.mrb[214].mxu0 }
 0x2c4   : > { %6612 = vst [vmem:[#allocation21_spill] sm:$0xff] %v5961_v32  ;;  %v2106_v35 = vpop.f32.mrb[215].mxu0 }
 0x2c6   : > { %2654 = vmatmul.mubr.bf16.gmra.mrb[32].mxu1 %v1791_v27  ;;  %v1831_v27 = vunpack.c.h.s8.bf16 %v1607_v63 }
 0x2c7   : > { %2661 = vmatprep.mubr.bf16.mxu1 %v1800_v31  ;;  %v1840_v31 = vunpack.c.l.s8.bf16 %v1616_v24 }
 0x2c9   : > { %v5966_v43 = vpop.f32.mrb[216].mxu0 }
 0x2ca   : > { %6613 = vst [vmem:[#allocation22_spill] sm:$0xff] %v5966_v43  ;;  %v2111_v40 = vpop.f32.mrb[217].mxu0 }
 0x2cb   : > { %v5968_v46 = vpop.f32.mrb[218].mxu0 }
 0x2cc   : > { %6614 = vst [vmem:[#allocation23_spill] sm:$0xff] %v5968_v46  ;;  %v2114_v48 = vpop.f32.mrb[219].mxu0 }
 0x2ce   : > { %2662 = vmatmul.mubr.bf16.gmra.mrb[36].mxu1 %v1799_v36  ;;  %v1839_v36 = vunpack.c.l.s8.bf16 %v1615_v38  ;;  %v3665_v38 = vld [vmem:[%s6019_s9 + $0x8] sm:$0xff] }
 0x2cf   : > { %2669 = vmatprep.mubr.bf16.mxu1 %v1808_v45  ;;  %v1848_v45 = vunpack.c.h.s8.bf16 %v1616_v24  ;;  %v1632_v24 = vld [vmem:[%s5588_s30 + $0x3a8] sm:$0xff] }
 0x2d1   : > { %v5971_v57 = vpop.f32.mrb[220].mxu0 }
 0x2d2   : > { %6615 = vst [vmem:[#allocation24_spill] sm:$0xff] %v5971_v57  ;;  %v2119_v2 = vpop.f32.mrb[221].mxu0 }
 0x2d3   : > { %v5973_v11 = vpop.f32.mrb[222].mxu0  ;;  %v5309_v2 = vld [vmem:[%s5949_s27 + $0x48] sm:$0xff]  }
 0x2d4   : > { %6616 = vst [vmem:[#allocation25_spill] sm:$0xff] %v5973_v11  ;;  %v2122_v13 = vpop.f32.mrb[223].mxu0 }
 0x2d6   : > { %2670 = vmatmul.mubr.bf16.gmra.mrb[40].mxu1 %v1807_v61  ;;  %v5308_v61 = vld [vmem:[%s5949_s27 + $0x40] sm:$0xff]  }
 0x2d7   : > { %2677 = vmatprep.mubr.bf16.mxu1 %v1816_v10  ;;  %v1624_v10 = vld [vmem:[%s5588_s30 + $0x368] sm:$0xff]  ;;  %4809 = vmatprep.mubr.bf16.mxu0 %v5308_v61  ;;  %v1631_v61 = vld [vmem:[%s5588_s30 + $0x3a0] sm:$0xff] }
 0x2d8   : > { %4810 = vmatmul.mubr.bf16.gmra.mrb[16].mxu0 %v5309_v2  ;;  %v1856_v44 = vunpack.c.l.s8.bf16 %v1624_v10  ;;  %v3667_v2 = vld [vmem:[%s6019_s9 + $0x18] sm:$0xff] }
 0x2d9   : > { %v5978_v51 = vpop.f32.mrb[224].mxu0  ;;  %4813 = vmatprep.mubr.bf16.mxu0 %v5310_v25  ;;  %v3671_v25 = vld [vmem:[%s6019_s9 + $0x38] sm:$0xff] }
 0x2da   : > { %6617 = vst [vmem:[#allocation26_spill] sm:$0xff] %v5978_v51  ;;  %v2127_v33 = vpop.f32.mrb[225].mxu0 }
 0x2db   : > { %v5980_v15 = vpop.f32.mrb[226].mxu0 }
 0x2dc   : > { %6618 = vst [vmem:[#allocation27_spill] sm:$0xff] %v5980_v15  ;;  %v2130_v56 = vpop.f32.mrb[227].mxu0 }
 0x2de   : > { %2678 = vmatmul.mubr.bf16.gmra.mrb[44].mxu1 %v1815_v59 }
 0x2df   : > { %2685 = vmatprep.mubr.bf16.mxu1 %v1824_v1  ;;  %v1623_v1 = vld [vmem:[%s5588_s30 + $0x360] sm:$0xff] }
 0x2e0   : > { %v1855_v63 = vunpack.c.l.s8.bf16 %v1623_v1  ;;  %4814 = vmatmul.mubr.bf16.gmra.mrb[20].mxu0 %v5311_v6  ;;  %v1640_v6 = vld [vmem:[%s5588_s30 + $0x3e8] sm:$0xff] }
 0x2e1   : > { %v5983_v17 = vpop.f32.mrb[228].mxu0 }
 0x2e2   : > { %6619 = vst [vmem:[#allocation28_spill] sm:$0xff] %v5983_v17  ;;  %v2135_v22 = vpop.f32.mrb[229].mxu0 }
 0x2e3   : > { %v5985_v29 = vpop.f32.mrb[230].mxu0  ;;  %v1864_v22 = vunpack.c.h.s8.bf16 %v1624_v10 }
 0x2e4   : > { %6620 = vst [vmem:[#allocation29_spill] sm:$0xff] %v5985_v29  ;;  %v2138_v3 = vpop.f32.mrb[231].mxu0  ;;  %v3711_v29 = vld [vmem:[%s6019_s9 + $0x178] sm:$0xff] }
 0x2e6   : > { %2686 = vmatmul.mubr.bf16.gmra.mrb[48].mxu1 %v1823_v20 }
 0x2e7   : > { %2693 = vmatprep.mubr.bf16.mxu1 %v1832_v26 }
 0x2e9   : > { %v5990_v58 = vpop.f32.mrb[232].mxu0 }
 0x2ea   : > { %6621 = vst [vmem:[#allocation30_spill] sm:$0xff] %v5990_v58  ;;  %v2143_v30 = vpop.f32.mrb[233].mxu0  ;;  %v5323_v58 = vld [vmem:[%s5949_s27 + $0xb8] sm:$0xff]  }
 0x2eb   : > { %v5992_v35 = vpop.f32.mrb[234].mxu0 }
 0x2ec   : > { %6622 = vst [vmem:[#allocation31_spill] sm:$0xff] %v5992_v35  ;;  %v2146_v37 = vpop.f32.mrb[235].mxu0 }
 0x2ee   : > { %2694 = vmatmul.mubr.bf16.gmra.mrb[52].mxu1 %v1831_v27  ;;  %v3664_v27 = vld [vmem:[%s6019_s9] sm:$0xff] }
 0x2ef   : > { %2701 = vmatprep.mubr.bf16.mxu1 %v1840_v31  ;;  %3730 = vperm.xlu0 %5218, %v3664_v27   ;;  %v1863_v31 = vunpack.c.h.s8.bf16 %v1623_v1  ;;  %v3670_v27 = vld [vmem:[%s6019_s9 + $0x30] sm:$0xff] }
 0x2f1   : > { %v5995_v39 = vpop.f32.mrb[236].mxu0 }
 0x2f2   : > { %6623 = vst [vmem:[#allocation32_spill] sm:$0xff] %v5995_v39  ;;  %v2151_v40 = vpop.f32.mrb[237].mxu0  ;;  %v1546_v39 = vld [vmem:[%s5588_s30 + $0xf8] sm:$0xff] }
 0x2f3   : > { %v5997_v48 = vpop.f32.mrb[238].mxu0  ;;  %3735 = vperm.xlu0 %5218, %v3665_v38   ;;  %v1888_v38 = vunpack.c.l.s8.bf16 %v1640_v6 }
 0x2f4   : > { %6624 = vst [vmem:[#allocation33_spill] sm:$0xff] %v5997_v48  ;;  %v2154_v54 = vpop.f32.mrb[239].mxu0  ;;  %v3703_v48 = vld [vmem:[%s6019_s9 + $0x138] sm:$0xff] }
 0x2f5   : > { %v3666_v54 = vld [vmem:[%s6019_s9 + $0x10] sm:$0xff] }
 0x2f6   : > { %2702 = vmatmul.mubr.bf16.gmra.mrb[56].mxu1 %v1839_v36  ;;  %v1872_v36 = vunpack.c.l.s8.bf16 %v1632_v24  ;;  %3740 = vperm.xlu1 %5219, %v3666_v54   ;;  %v3673_v54 = vld [vmem:[%s6019_s9 + $0x48] sm:$0xff] }
 0x2f7   : > { %2709 = vmatprep.mubr.bf16.mxu1 %v1848_v45 }
 0x2f9   : > { %v6002_v13 = vpop.f32.mrb[240].mxu0 }
 0x2fa   : > { %6625 = vst [vmem:[#allocation34_spill] sm:$0xff] %v6002_v13  ;;  %v2159_v52 = vpop.f32.mrb[241].mxu0  ;;  %3745 = vperm.xlu1 %5219, %v3667_v2   ;;  %v3672_v2 = vld [vmem:[%s6019_s9 + $0x40] sm:$0xff]  ;;  %v5321_v13 = vld [vmem:[%s5949_s27 + $0xa8] sm:$0xff]  }
 0x2fb   : > { %v6004_v59 = vpop.f32.mrb[242].mxu0 }
 0x2fc   : > { %6626 = vst [vmem:[#allocation35_spill] sm:$0xff] %v6004_v59  ;;  %v2162_v33 = vpop.f32.mrb[243].mxu0 }
 0x2fe   : > { %2710 = vmatmul.mubr.bf16.gmra.mrb[60].mxu1 %v1847_v14  ;;  %v1871_v14 = vunpack.c.l.s8.bf16 %v1631_v61 }
 0x2ff   : > { %2717 = vmatprep.mubr.bf16.mxu1 %v1856_v44  ;;  %v1880_v44 = vunpack.c.h.s8.bf16 %v1632_v24  ;;  %v1879_v24 = vunpack.c.h.s8.bf16 %v1631_v61  ;;  %v3674_v61 = vld [vmem:[%s6019_s9 + $0x50] sm:$0xff] }
 0x301   : > { %v6007_v56 = vpop.f32.mrb[244].mxu0 }
 0x302   : > { %6627 = vst [vmem:[#allocation36_spill] sm:$0xff] %v6007_v56  ;;  %v2167_v20 = vpop.f32.mrb[245].mxu0  ;;  %v1538_v56 = vld [vmem:[%s5588_s30 + $0xb8] sm:$0xff] }
 0x303   : > { %v6009_v26 = vpop.f32.mrb[246].mxu0  ;;  %v3668_v20 = vld [vmem:[%s6019_s9 + $0x20] sm:$0xff] }
 0x304   : > { %6628 = vst [vmem:[#allocation37_spill] sm:$0xff] %v6009_v26  ;;  %v2170_v3 = vpop.f32.mrb[247].mxu0  ;;  %3750 = vperm.xlu0 %5218, %v3668_v20   ;;  %v1896_v20 = vunpack.c.h.s8.bf16 %v1640_v6  ;;  %v3695_v26 = vld [vmem:[%s6019_s9 + $0xf8] sm:$0xff] }
 0x305   : > { %v5313_v3 = vld [vmem:[%s5949_s27 + $0x68] sm:$0xff]  }
 0x306   : > { %2718 = vmatmul.mubr.bf16.gmra.mrb[64].mxu1 %v1855_v63  ;;  %v3669_v63 = vld [vmem:[%s6019_s9 + $0x28] sm:$0xff] }
 0x307   : > { %2725 = vmatprep.mubr.bf16.mxu1 %v1864_v22  ;;  %3755 = vperm.xlu1 %5219, %v3669_v63   ;;  %v5312_v22 = vld [vmem:[%s5949_s27 + $0x60] sm:$0xff]  }
 0x308   : > { %4817 = vmatprep.mubr.bf16.mxu0 %v5312_v22  ;;  %3760 = vperm.xlu0 %5218, %v3670_v27   ;;  %v3676_v27 = vld [vmem:[%s6019_s9 + $0x60] sm:$0xff] }
 0x309   : > { %v6023_v30 = vpop.f32.mrb[248].mxu0  ;;  %4818 = vmatmul.mubr.bf16.gmra.mrb[24].mxu0 %v5313_v3 }
 0x30a   : > { %6629 = vst [vmem:[#allocation38_spill] sm:$0xff] %v6023_v30  ;;  %v2175_v37 = vpop.f32.mrb[249].mxu0  ;;  %v5319_v30 = vld [vmem:[%s5949_s27 + $0x98] sm:$0xff]  }
 0x30b   : > { %v6026_v40 = vpop.f32.mrb[250].mxu0  ;;  %3765 = vperm.xlu1 %5219, %v3671_v25   ;;  %v3677_v25 = vld [vmem:[%s6019_s9 + $0x68] sm:$0xff] }
 0x30c   : > { %6630 = vst [vmem:[#allocation39_spill] sm:$0xff] %v6026_v40  ;;  %v2178_v45 = vpop.f32.mrb[251].mxu0  ;;  %3770 = vperm.xlu0 %5218, %v3672_v2  }
 0x30e   : > { %2726 = vmatmul.mubr.bf16.gmra.mrb[68].mxu1 %v1863_v31 }
 0x30f   : > { %2733 = vmatprep.mubr.bf16.mxu1 %v1872_v36  ;;  %3775 = vperm.xlu1 %5219, %v3673_v54   ;;  %v3678_v54 = vld [vmem:[%s6019_s9 + $0x70] sm:$0xff] }
 0x310   : > { %3780 = vperm.xlu0 %5218, %v3674_v61  }
 0x311   : > { %v6031_v10 = vpop.f32.mrb[252].mxu0 }
 0x312   : > { %6631 = vst [vmem:[#allocation40_spill] sm:$0xff] %v6031_v10  ;;  %v2183_v52 = vpop.f32.mrb[253].mxu0  ;;  %v1530_v10 = vld [vmem:[%s5588_s30 + $0x78] sm:$0xff] }
 0x313   : > { %v6033_v33 = vpop.f32.mrb[254].mxu0  ;;  %v3675_v52 = vld [vmem:[%s6019_s9 + $0x58] sm:$0xff] }
 0x314   : > { %6632 = vst [vmem:[#allocation41_spill] sm:$0xff] %v6033_v33  ;;  %v2186_v1 = vpop.f32.mrb[255].mxu0  ;;  %3785 = vperm.xlu1 %5219, %v3675_v52   ;;  %3790 = vperm.xlu0 %5218, %v3676_v27   ;;  %v3683_v27 = vld [vmem:[%s6019_s9 + $0x98] sm:$0xff] }
 0x315   : > { %v3687_v33 = vld [vmem:[%s6019_s9 + $0xb8] sm:$0xff] }
 0x316   : > { %2734 = vmatmul.mubr.bf16.gmra.mrb[72].mxu1 %v1871_v14  ;;  %v1639_v14 = vld [vmem:[%s5588_s30 + $0x3e0] sm:$0xff] }
 0x317   : > { %2741 = vmatprep.mubr.bf16.mxu1 %v1880_v44  ;;  %v1887_v1 = vunpack.c.l.s8.bf16 %v1639_v14  ;;  %v1895_v2 = vunpack.c.h.s8.bf16 %v1639_v14  ;;  %v3682_v14 = vld [vmem:[%s6019_s9 + $0x90] sm:$0xff] }
 0x318   : > { %3795 = vperm.xlu1 %5219, %v3677_v25   ;;  %3800 = vperm.xlu0 %5218, %v3678_v54   ;;  %v1521_v25 = vld [vmem:[%s5588_s30 + $0x30] sm:$0xff] }
 0x319   : > { %v6042_v31 = vpop.f32.mrb[128].mxu0 }
 0x31a   : > { %v2224_v37 = vpop.f32.mrb[129].mxu0 }
 0x31b   : > { %v6044_v36 = vpop.f32.mrb[130].mxu0  ;;  %v5315_v37 = vld [vmem:[%s5949_s27 + $0x78] sm:$0xff]  }
 0x31c   : > { %v2227_v45 = vpop.f32.mrb[131].mxu0 }
 0x31d   : > { %v1522_v45 = vld [vmem:[%s5588_s30 + $0x38] sm:$0xff] }
 0x31e   : > { %2742 = vmatmul.mubr.bf16.gmra.mrb[76].mxu1 %v1879_v24  ;;  %v5314_v24 = vld [vmem:[%s5949_s27 + $0x70] sm:$0xff]   ;;  %v1650_v61 = vunpack.c.l.s8.bf16 %v1522_v45  ;;  %v1658_v54 = vunpack.c.h.s8.bf16 %v1522_v45 }
 0x31f   : > { %2749 = vmatprep.mubr.bf16.mxu1 %v1888_v38  ;;  %v3679_v38 = vld [vmem:[%s6019_s9 + $0x78] sm:$0xff]  ;;  %4821 = vmatprep.mubr.bf16.mxu0 %v5314_v24 }
 0x320   : > { %4822 = vmatmul.mubr.bf16.gmra.mrb[28].mxu0 %v5315_v37  ;;  %3805 = vperm.xlu1 %5219, %v3679_v38   ;;  %v1649_v37 = vunpack.c.l.s8.bf16 %v1521_v25 }
 0x321   : > { %v6051_v44 = vpop.f32.mrb[132].mxu0 }
 0x322   : > { %v2232_v63 = vpop.f32.mrb[133].mxu0 }
 0x323   : > { %v6053_v22 = vpop.f32.mrb[134].mxu0 }
 0x324   : > { %v2235_v3 = vpop.f32.mrb[135].mxu0 }
 0x325   : > { %v3680_v3 = vld [vmem:[%s6019_s9 + $0x80] sm:$0xff] }
 0x326   : > { %2750 = vmatmul.mubr.bf16.gmra.mrb[80].mxu1 %v1887_v1  ;;  %3810 = vperm.xlu0 %5218, %v3680_v3   ;;  %v5317_v3 = vld [vmem:[%s5949_s27 + $0x88] sm:$0xff]  }
 0x327   : > { %2757 = vmatprep.mubr.bf16.mxu1 %v1896_v20  ;;  %v3681_v20 = vld [vmem:[%s6019_s9 + $0x88] sm:$0xff] }
 0x328   : > { %3815 = vperm.xlu1 %5219, %v3681_v20   ;;  %v5316_v20 = vld [vmem:[%s5949_s27 + $0x80] sm:$0xff]  }
 0x329   : > { %v6062_v6 = vpop.f32.mrb[136].mxu0  ;;  %4825 = vmatprep.mubr.bf16.mxu0 %v5316_v20  ;;  %v1529_v20 = vld [vmem:[%s5588_s30 + $0x70] sm:$0xff] }
 0x32a   : > { %v2240_v52 = vpop.f32.mrb[137].mxu0  ;;  %3820 = vperm.xlu0 %5218, %v3682_v14   ;;  %4826 = vmatmul.mubr.bf16.gmra.mrb[32].mxu0 %v5317_v3  ;;  %v1657_v14 = vunpack.c.h.s8.bf16 %v1521_v25  ;;  %v3691_v3 = vld [vmem:[%s6019_s9 + $0xd8] sm:$0xff]  ;;  %v3690_v25 = vld [vmem:[%s6019_s9 + $0xd0] sm:$0xff] }
 0x32b   : > { %v6064_v1 = vpop.f32.mrb[138].mxu0 }
 0x32c   : > { %v2243_v63 = vpop.f32.mrb[139].mxu0  ;;  %3825 = vperm.xlu1 %5219, %v3683_v27   ;;  %v3686_v27 = vld [vmem:[%s6019_s9 + $0xb0] sm:$0xff] }
 0x32d   : > { %v3684_v63 = vld [vmem:[%s6019_s9 + $0xa0] sm:$0xff] }
 0x32e   : > { %2758 = vmatmul.mubr.bf16.gmra.mrb[84].mxu1 %v1895_v2  ;;  %3830 = vperm.xlu0 %5218, %v3684_v63   ;;  %v3688_v63 = vld [vmem:[%s6019_s9 + $0xc0] sm:$0xff] }
 0x32f   : > { %2798 = vmatprep.mubr.bf16.mxu1 %v1650_v61  ;;  %v3685_v61 = vld [vmem:[%s6019_s9 + $0xa8] sm:$0xff] }
 0x330   : > { %3835 = vperm.xlu1 %5219, %v3685_v61   ;;  %v3689_v61 = vld [vmem:[%s6019_s9 + $0xc8] sm:$0xff] }
 0x331   : > { %v6071_v24 = vpop.f32.mrb[140].mxu0 }
 0x332   : > { %v2248_v38 = vpop.f32.mrb[141].mxu0  ;;  %3840 = vperm.xlu0 %5218, %v3686_v27  }
 0x333   : > { %v6073_v52 = vpop.f32.mrb[142].mxu0 }
 0x334   : > { %v2251_v2 = vpop.f32.mrb[143].mxu0  ;;  %3845 = vperm.xlu1 %5219, %v3687_v33   ;;  %v1665_v33 = vunpack.c.l.s8.bf16 %v1529_v20 }
 0x336   : > { %2799 = vmatmul.mubr.bf16.vlgmr.msra.gmra.mrb[88].mxu1 %v1649_v37  ;;  %v1666_v37 = vunpack.c.l.s8.bf16 %v1530_v10  ;;  %3850 = vperm.xlu0 %5218, %v3688_v63   ;;  %v5318_v63 = vld [vmem:[%s5949_s27 + $0x90] sm:$0xff]  }
 0x337   : > { %2806 = vmatprep.mubr.bf16.mxu1 %v1658_v54  ;;  %4829 = vmatprep.mubr.bf16.mxu0 %v5318_v63  ;;  %v1537_v63 = vld [vmem:[%s5588_s30 + $0xb0] sm:$0xff] }
 0x338   : > { %3855 = vperm.xlu1 %5219, %v3689_v61   ;;  %v3692_v61 = vld [vmem:[%s6019_s9 + $0xe0] sm:$0xff]  ;;  %4830 = vmatmul.mubr.bf16.gmra.mrb[36].mxu0 %v5319_v30  ;;  %v3699_v30 = vld [vmem:[%s6019_s9 + $0x118] sm:$0xff] }
 0x339   : > { %v6082_v45 = vpop.f32.mrb[144].mxu0 }
 0x33a   : > { %v2256_v38 = vpop.f32.mrb[145].mxu0  ;;  %3860 = vperm.xlu0 %5218, %v3690_v25   ;;  %v1673_v25 = vunpack.c.h.s8.bf16 %v1529_v20  ;;  %v3698_v20 = vld [vmem:[%s6019_s9 + $0x110] sm:$0xff] }
 0x33b   : > { %v6084_v2 = vpop.f32.mrb[146].mxu0 }
 0x33c   : > { %v2259_v54 = vpop.f32.mrb[147].mxu0  ;;  %3865 = vperm.xlu1 %5219, %v3691_v3   ;;  %v3694_v3 = vld [vmem:[%s6019_s9 + $0xf0] sm:$0xff] }
 0x33d   : > { %v1674_v54 = vunpack.c.h.s8.bf16 %v1530_v10 }
 0x33e   : > { %2807 = vmatmul.mubr.bf16.gmra.mrb[92].mxu1 %v1657_v14  ;;  %3870 = vperm.xlu0 %5218, %v3692_v61   ;;  %v3696_v61 = vld [vmem:[%s6019_s9 + $0x100] sm:$0xff] }
 0x33f   : > { %2814 = vmatprep.mubr.bf16.mxu1 %v1666_v37  ;;  %v3693_v37 = vld [vmem:[%s6019_s9 + $0xe8] sm:$0xff] }
 0x340   : > { %3875 = vperm.xlu1 %5219, %v3693_v37   ;;  %v3697_v37 = vld [vmem:[%s6019_s9 + $0x108] sm:$0xff] }
 0x341   : > { %v6091_v38 = vpop.f32.mrb[148].mxu0 }
 0x342   : > { %v2264_v27 = vpop.f32.mrb[149].mxu0  ;;  %3880 = vperm.xlu0 %5218, %v3694_v3  }
 0x343   : > { %v6093_v40 = vpop.f32.mrb[150].mxu0 }
 0x344   : > { %v2267_v14 = vpop.f32.mrb[151].mxu0  ;;  %3885 = vperm.xlu1 %5219, %v3695_v26   ;;  %v1681_v26 = vunpack.c.l.s8.bf16 %v1537_v63 }
 0x346   : > { %2815 = vmatmul.mubr.bf16.gmra.mrb[96].mxu1 %v1665_v33  ;;  %v1682_v33 = vunpack.c.l.s8.bf16 %v1538_v56  ;;  %3890 = vperm.xlu0 %5218, %v3696_v61   ;;  %v5320_v61 = vld [vmem:[%s5949_s27 + $0xa0] sm:$0xff]  }
 0x347   : > { %2822 = vmatprep.mubr.bf16.mxu1 %v1674_v54  ;;  %4833 = vmatprep.mubr.bf16.mxu0 %v5320_v61  ;;  %v1545_v61 = vld [vmem:[%s5588_s30 + $0xf0] sm:$0xff] }
 0x348   : > { %3895 = vperm.xlu1 %5219, %v3697_v37   ;;  %v3700_v37 = vld [vmem:[%s6019_s9 + $0x120] sm:$0xff]  ;;  %4834 = vmatmul.mubr.bf16.gmra.mrb[40].mxu0 %v5321_v13  ;;  %v3707_v13 = vld [vmem:[%s6019_s9 + $0x158] sm:$0xff] }
 0x349   : > { %v6102_v10 = vpop.f32.mrb[152].mxu0 }
 0x34a   : > { %v2272_v27 = vpop.f32.mrb[153].mxu0  ;;  %3900 = vperm.xlu0 %5218, %v3698_v20   ;;  %v1689_v20 = vunpack.c.h.s8.bf16 %v1537_v63  ;;  %v3706_v63 = vld [vmem:[%s6019_s9 + $0x150] sm:$0xff] }
 0x34b   : > { %v6104_v14 = vpop.f32.mrb[154].mxu0 }
 0x34c   : > { %v2275_v54 = vpop.f32.mrb[155].mxu0  ;;  %3905 = vperm.xlu1 %5219, %v3699_v30   ;;  %v3702_v30 = vld [vmem:[%s6019_s9 + $0x130] sm:$0xff] }
 0x34d   : > { %v1690_v54 = vunpack.c.h.s8.bf16 %v1538_v56 }
 0x34e   : > { %2823 = vmatmul.mubr.bf16.gmra.mrb[100].mxu1 %v1673_v25  ;;  %3910 = vperm.xlu0 %5218, %v3700_v37   ;;  %v3704_v37 = vld [vmem:[%s6019_s9 + $0x140] sm:$0xff] }
 0x34f   : > { %2830 = vmatprep.mubr.bf16.mxu1 %v1682_v33  ;;  %v3701_v33 = vld [vmem:[%s6019_s9 + $0x128] sm:$0xff] }
 0x350   : > { %3915 = vperm.xlu1 %5219, %v3701_v33   ;;  %v3705_v33 = vld [vmem:[%s6019_s9 + $0x148] sm:$0xff] }
 0x351   : > { %v6111_v27 = vpop.f32.mrb[156].mxu0 }
 0x352   : > { %v2280_v3 = vpop.f32.mrb[157].mxu0  ;;  %3920 = vperm.xlu0 %5218, %v3702_v30  }
 0x353   : > { %v6113_v59 = vpop.f32.mrb[158].mxu0 }
 0x354   : > { %v2283_v25 = vpop.f32.mrb[159].mxu0  ;;  %3925 = vperm.xlu1 %5219, %v3703_v48   ;;  %v1697_v48 = vunpack.c.l.s8.bf16 %v1545_v61 }
 0x356   : > { %2831 = vmatmul.mubr.bf16.gmra.mrb[104].mxu1 %v1681_v26  ;;  %v1698_v26 = vunpack.c.l.s8.bf16 %v1546_v39  ;;  %3930 = vperm.xlu0 %5218, %v3704_v37   ;;  %v5322_v37 = vld [vmem:[%s5949_s27 + $0xb0] sm:$0xff]  }
 0x357   : > { %2838 = vmatprep.mubr.bf16.mxu1 %v1690_v54  ;;  %4837 = vmatprep.mubr.bf16.mxu0 %v5322_v37  ;;  %v3716_v37 = vld [vmem:[%s6019_s9 + $0x1a0] sm:$0xff] }
 0x358   : > { %3935 = vperm.xlu1 %5219, %v3705_v33   ;;  %v3708_v33 = vld [vmem:[%s6019_s9 + $0x160] sm:$0xff]  ;;  %4838 = vmatmul.mubr.bf16.gmra.mrb[44].mxu0 %v5323_v58 }
 0x359   : > { %v6122_v56 = vpop.f32.mrb[160].mxu0 }
 0x35a   : > { %v2288_v3 = vpop.f32.mrb[161].mxu0  ;;  %3940 = vperm.xlu0 %5218, %v3706_v63   ;;  %v1705_v63 = vunpack.c.h.s8.bf16 %v1545_v61  ;;  %v3717_v61 = vld [vmem:[%s6019_s9 + $0x1a8] sm:$0xff] }
 0x35b   : > { %v6124_v25 = vpop.f32.mrb[162].mxu0 }
 0x35c   : > { %v2291_v54 = vpop.f32.mrb[163].mxu0  ;;  %3945 = vperm.xlu1 %5219, %v3707_v13   ;;  %v1554_v13 = vld [vmem:[%s5588_s30 + $0x138] sm:$0xff] }
 0x35d   : > { %v1706_v54 = vunpack.c.h.s8.bf16 %v1546_v39  ;;  %v3710_v39 = vld [vmem:[%s6019_s9 + $0x170] sm:$0xff] }
 0x35e   : > { %2839 = vmatmul.mubr.bf16.gmra.mrb[108].mxu1 %v1689_v20  ;;  %3950 = vperm.xlu0 %5218, %v3708_v33   ;;  %v3714_v33 = vld [vmem:[%s6019_s9 + $0x190] sm:$0xff] }
 0x35f   : > { %2846 = vmatprep.mubr.bf16.mxu1 %v1698_v26  ;;  %v3709_v26 = vld [vmem:[%s6019_s9 + $0x168] sm:$0xff] }
 0x360   : > { %3955 = vperm.xlu1 %5219, %v3709_v26   ;;  %v3715_v26 = vld [vmem:[%s6019_s9 + $0x198] sm:$0xff] }
 0x361   : > { %v6131_v3 = vpop.f32.mrb[164].mxu0 }
 0x362   : > { %v2296_v30 = vpop.f32.mrb[165].mxu0  ;;  %3960 = vperm.xlu0 %5218, %v3710_v39   ;;  %v5324_v39 = vld [vmem:[%s5949_s27 + $0xc0] sm:$0xff]  }
 0x363   : > { %v6133_v35 = vpop.f32.mrb[166].mxu0  ;;  %v1714_v30 = vunpack.c.l.s8.bf16 %v1554_v13  ;;  %4841 = vmatprep.mubr.bf16.mxu0 %v5324_v39 }
 0x364   : > { %v2299_v20 = vpop.f32.mrb[167].mxu0  ;;  %3965 = vperm.xlu1 %5219, %v3711_v29   ;;  %v1722_v29 = vunpack.c.h.s8.bf16 %v1554_v13 }
 0x365   : > { %v3712_v20 = vld [vmem:[%s6019_s9 + $0x180] sm:$0xff] }
 0x366   : > { %2847 = vmatmul.mubr.bf16.gmra.mrb[112].mxu1 %v1697_v48  ;;  %v3713_v48 = vld [vmem:[%s6019_s9 + $0x188] sm:$0xff]  ;;  %3970 = vperm.xlu0 %5218, %v3712_v20   ;;  %v3718_v20 = vld [vmem:[%s6019_s9 + $0x1b0] sm:$0xff] }
 0x367   : > { %2854 = vmatprep.mubr.bf16.mxu1 %v1706_v54  ;;  %v1553_v54 = vld [vmem:[%s5588_s30 + $0x130] sm:$0xff] }
 0x368   : > { %3975 = vperm.xlu1 %5219, %v3713_v48   ;;  %v1713_v58 = vunpack.c.l.s8.bf16 %v1553_v54  ;;  %v1562_v48 = vld [vmem:[%s5588_s30 + $0x178] sm:$0xff]  ;;  %v1721_v13 = vunpack.c.h.s8.bf16 %v1553_v54 }
 0x369   : > { %v1738_v54 = vunpack.c.h.s8.bf16 %v1562_v48 }
 0x36a   : > { %3980 = vperm.xlu0 %5218, %v3714_v33   ;;  %v3721_v33 = vld [vmem:[%s6019_s9 + $0x1c8] sm:$0xff] }
 0x36c   : > { %3985 = vperm.xlu1 %5219, %v3715_v26   ;;  %v1730_v26 = vunpack.c.l.s8.bf16 %v1562_v48 }
 0x36e   : > { %2855 = vmatmul.mubr.bf16.gmra.mrb[116].mxu1 %v1705_v63  ;;  %v5325_v63 = vld [vmem:[%s5949_s27 + $0xc8] sm:$0xff]   ;;  %3990 = vperm.xlu0 %5218, %v3716_v37   ;;  %v3722_v37 = vld [vmem:[%s6019_s9 + $0x1d0] sm:$0xff] }
 0x36f   : > { %2862 = vmatprep.mubr.bf16.mxu1 %v1714_v30  ;;  %v3719_v30 = vld [vmem:[%s6019_s9 + $0x1b8] sm:$0xff]  ;;  %4842 = vmatmul.mubr.bf16.gmra.mrb[48].mxu0 %v5325_v63  ;;  %v3725_v63 = vld [vmem:[%s6019_s9 + $0x1e8] sm:$0xff] }
 0x370   : > { %3995 = vperm.xlu1 %5219, %v3717_v61   ;;  %v3723_v61 = vld [vmem:[%s6019_s9 + $0x1d8] sm:$0xff] }
 0x372   : > { %4000 = vperm.xlu0 %5218, %v3718_v20   ;;  %v5326_v20 = vld [vmem:[%s5949_s27 + $0xd0] sm:$0xff]  }
 0x373   : > { %4845 = vmatprep.mubr.bf16.mxu0 %v5326_v20 }
 0x374   : > { %4005 = vperm.xlu1 %5219, %v3719_v30   ;;  %v3724_v30 = vld [vmem:[%s6019_s9 + $0x1e0] sm:$0xff] }
 0x376   : > { %2863 = vmatmul.mubr.bf16.gmra.mrb[120].mxu1 %v1713_v58  ;;  %v3720_v58 = vld [vmem:[%s6019_s9 + $0x1c0] sm:$0xff] }
 0x377   : > { %2870 = vmatprep.mubr.bf16.mxu1 %v1722_v29  ;;  %v1561_v29 = vld [vmem:[%s5588_s30 + $0x170] sm:$0xff]  ;;  %4010 = vperm.xlu0 %5218, %v3720_v58  }
 0x378   : > { %4015 = vperm.xlu1 %5219, %v3721_v33   ;;  %v1729_v39 = vunpack.c.l.s8.bf16 %v1561_v29  ;;  %v3727_v33 = vld [vmem:[%s6019_s9 + $0x1f8] sm:$0xff]  ;;  %v3726_v58 = vld [vmem:[%s6019_s9 + $0x1f0] sm:$0xff]  ;;  %v1737_v17 = vunpack.c.h.s8.bf16 %v1561_v29  ;;  %v5328_v29 = vld [vmem:[%s5949_s27 + $0xe0] sm:$0xff]  }
 0x37b   : > { %4020 = vperm.xlu0 %5218, %v3722_v37  }
 0x37c   : > { %4025 = vperm.xlu1 %5219, %v3723_v61   ;;  %v6166_v61 = vpop.f32.mrb[0].mxu0 }
 0x37d   : > { %v6168_v37 = vpop.f32.mrb[1].mxu0 }
 0x37e   : > { %2871 = vmatmul.mubr.bf16.gmra.mrb[124].mxu1 %v1721_v13  ;;  %v5327_v13 = vld [vmem:[%s5949_s27 + $0xd8] sm:$0xff]  }
 0x37f   : > { %2878 = vmatprep.mubr.bf16.mxu1 %v1730_v26  ;;  %4030 = vperm.xlu0 %5218, %v3724_v30   ;;  %v1570_v26 = vld [vmem:[%s5588_s30 + $0x1b8] sm:$0xff] }
 0x380   : > { %4035 = vperm.xlu1 %5219, %v3725_v63   ;;  %4846 = vmatmul.mubr.bf16.gmra.mrb[52].mxu0 %v5327_v13  ;;  %v1746_v48 = vunpack.c.l.s8.bf16 %v1570_v26  ;;  %v1754_v20 = vunpack.c.h.s8.bf16 %v1570_v26  ;;  %v5329_v13 = vld [vmem:[%s5949_s27 + $0xe8] sm:$0xff]   ;;  %v1577_v26 = vld [vmem:[%s5588_s30 + $0x1f0] sm:$0xff] }
 0x381   : > { %4849 = vmatprep.mubr.bf16.mxu0 %v5328_v29  ;;  %v5330_v29 = vld [vmem:[%s5949_s27 + $0xf0] sm:$0xff]   ;;  %v1769_v57 = vunpack.c.h.s8.bf16 %v1577_v26 }
 0x383   : > { %4040 = vperm.xlu0 %5218, %v3726_v58  }
 0x384   : > { %4045 = vperm.xlu1 %5219, %v3727_v33   ;;  %v1578_v33 = vld [vmem:[%s5588_s30 + $0x1f8] sm:$0xff] }
 0x385   : > { %v1762_v58 = vunpack.c.l.s8.bf16 %v1578_v33  ;;  %v1770_v11 = vunpack.c.h.s8.bf16 %v1578_v33  ;;  %v1585_v33 = vld [vmem:[%s5588_s30 + $0x230] sm:$0xff] }
 0x386   : > { %2879 = vmatmul.mubr.bf16.gmra.mrb[0].mxu1 %v1729_v39  ;;  %v6170_v39 = vpop.f32.mrb[2].mxu0 }
 0x387   : > { %2886 = vmatprep.mubr.bf16.mxu1 %v1738_v54  ;;  %v1569_v54 = vld [vmem:[%s5588_s30 + $0x1b0] sm:$0xff]  ;;  %v6173_v63 = vpop.f32.mrb[3].mxu0 }
 0x388   : > { %v1745_v30 = vunpack.c.l.s8.bf16 %v1569_v54  ;;  %4850 = vmatmul.mubr.bf16.gmra.mrb[56].mxu0 %v5329_v13  ;;  %v6178_v15 = vpop.f32.mrb[4].mxu0  ;;  %v5331_v13 = vld [vmem:[%s5949_s27 + $0xf8] sm:$0xff]  }
 0x389   : > { %4853 = vmatprep.mubr.bf16.mxu0 %v5330_v29  ;;  %v1594_v29 = vld [vmem:[%s5588_s30 + $0x278] sm:$0xff] }
 0x38e   : > { %2887 = vmatmul.mubr.bf16.gmra.mrb[4].mxu1 %v1737_v17  ;;  %v1753_v17 = vunpack.c.h.s8.bf16 %v1569_v54  ;;  %v1586_v54 = vld [vmem:[%s5588_s30 + $0x238] sm:$0xff] }
 0x38f   : > { %2894 = vmatprep.mubr.bf16.mxu1 %v1746_v48  ;;  %v6180_v48 = vpop.f32.mrb[5].mxu0  ;;  %v1778_v46 = vunpack.c.l.s8.bf16 %v1586_v54  ;;  %v1786_v32 = vunpack.c.h.s8.bf16 %v1586_v54  ;;  %v1802_v54 = vunpack.c.h.s8.bf16 %v1594_v29 }
 0x390   : > { %v6182_v51 = vpop.f32.mrb[6].mxu0  ;;  %4854 = vmatmul.mubr.bf16.gmra.mrb[60].mxu0 %v5331_v13  ;;  %v1794_v13 = vunpack.c.l.s8.bf16 %v1594_v29 }
 0x396   : > { %2895 = vmatmul.mubr.bf16.gmra.mrb[8].mxu1 %v1745_v30  ;;  %v6185_v30 = vpop.f32.mrb[7].mxu0 }
 0x397   : > { %2902 = vmatprep.mubr.bf16.mxu1 %v1754_v20  ;;  %v1761_v20 = vunpack.c.l.s8.bf16 %v1577_v26  ;;  %v1785_v26 = vunpack.c.h.s8.bf16 %v1585_v33 }
 0x39e   : > { %2903 = vmatmul.mubr.bf16.gmra.mrb[12].mxu1 %v1753_v17  ;;  %v6190_v17 = vpop.f32.mrb[8].mxu0 }
 0x39f   : > { %2910 = vmatprep.mubr.bf16.mxu1 %v1762_v58  ;;  %v6192_v43 = vpop.f32.mrb[9].mxu0 }
 0x3a0   : > { %v6194_v58 = vpop.f32.mrb[10].mxu0 }
 0x3a6   : > { %2911 = vmatmul.mubr.bf16.gmra.mrb[16].mxu1 %v1761_v20  ;;  %v6197_v20 = vpop.f32.mrb[11].mxu0 }
 0x3a7   : > { %2918 = vmatprep.mubr.bf16.mxu1 %v1770_v11  ;;  %v1777_v11 = vunpack.c.l.s8.bf16 %v1585_v33  ;;  %v6200_v5 = vpop.f32.mrb[12].mxu0 }
 0x3a8   : > { %v6202_v9 = vpop.f32.mrb[13].mxu0 }
 0x3ae   : > { %2919 = vmatmul.mubr.bf16.gmra.mrb[20].mxu1 %v1769_v57  ;;  %v6204_v57 = vpop.f32.mrb[14].mxu0 }
 0x3af   : > { %2926 = vmatprep.mubr.bf16.mxu1 %v1778_v46  ;;  %v1593_v46 = vld [vmem:[%s5588_s30 + $0x270] sm:$0xff]  ;;  %v6207_v23 = vpop.f32.mrb[15].mxu0 }
 0x3b0   : > { %v1793_v18 = vunpack.c.l.s8.bf16 %v1593_v46  ;;  %v1801_v33 = vunpack.c.h.s8.bf16 %v1593_v46  ;;  %v6210_v16 = vpop.f32.mrb[16].mxu0 }
 0x3b1   : > { %v6212_v53 = vpop.f32.mrb[17].mxu0 }
 0x3b6   : > { %2927 = vmatmul.mubr.bf16.gmra.mrb[24].mxu1 %v1777_v11 }
 0x3b7   : > { %2934 = vmatprep.mubr.bf16.mxu1 %v1786_v32  ;;  %v1602_v32 = vld [vmem:[%s5588_s30 + $0x2b8] sm:$0xff] }
 0x3b8   : > { %v1810_v11 = vunpack.c.l.s8.bf16 %v1602_v32  ;;  %v1818_v29 = vunpack.c.h.s8.bf16 %v1602_v32 }
 0x3be   : > { %2935 = vmatmul.mubr.bf16.gmra.mrb[28].mxu1 %v1785_v26  ;;  %v6214_v26 = vpop.f32.mrb[18].mxu0 }
 0x3bf   : > { %2942 = vmatprep.mubr.bf16.mxu1 %v1794_v13  ;;  %v1601_v13 = vld [vmem:[%s5588_s30 + $0x2b0] sm:$0xff]  ;;  %v6217_v47 = vpop.f32.mrb[19].mxu0 }
 0x3c0   : > { %v1809_v8 = vunpack.c.l.s8.bf16 %v1601_v13  ;;  %v1817_v46 = vunpack.c.h.s8.bf16 %v1601_v13  ;;  %v6220_v55 = vpop.f32.mrb[20].mxu0 }
 0x3c1   : > { %v6222_v41 = vpop.f32.mrb[21].mxu0 }
 0x3c6   : > { %2943 = vmatmul.mubr.bf16.gmra.mrb[32].mxu1 %v1793_v18  ;;  %v1610_v18 = vld [vmem:[%s5588_s30 + $0x2f8] sm:$0xff] }
 0x3c7   : > { %2950 = vmatprep.mubr.bf16.mxu1 %v1802_v54  ;;  %v1826_v54 = vunpack.c.l.s8.bf16 %v1610_v18  ;;  %v1834_v32 = vunpack.c.h.s8.bf16 %v1610_v18 }
 0x3ce   : > { %2951 = vmatmul.mubr.bf16.gmra.mrb[36].mxu1 %v1801_v33  ;;  %v6224_v33 = vpop.f32.mrb[22].mxu0 }
 0x3cf   : > { %2958 = vmatprep.mubr.bf16.mxu1 %v1810_v11  ;;  %6633 = vst [vmem:[#allocation42_spill] sm:$0xff] %v6224_v33  ;;  %v1609_v11 = vld [vmem:[%s5588_s30 + $0x2f0] sm:$0xff]  ;;  %v6227_v42 = vpop.f32.mrb[23].mxu0 }
 0x3d0   : > { %v1825_v34 = vunpack.c.l.s8.bf16 %v1609_v11  ;;  %v1833_v13 = vunpack.c.h.s8.bf16 %v1609_v11 }
 0x3d6   : > { %2959 = vmatmul.mubr.bf16.gmra.mrb[40].mxu1 %v1809_v8  ;;  %v1618_v8 = vld [vmem:[%s5588_s30 + $0x338] sm:$0xff] }
 0x3d7   : > { %2966 = vmatprep.mubr.bf16.mxu1 %v1818_v29  ;;  %v1842_v29 = vunpack.c.l.s8.bf16 %v1618_v8  ;;  %v1850_v18 = vunpack.c.h.s8.bf16 %v1618_v8  ;;  %v3731_v8 = vpop.permute.xlu0 %3730 }
 0x3dc   : > { %v6230_v28 = vpop.f32.mrb[24].mxu0 }
 0x3dd   : > { %6634 = vst [vmem:[#allocation43_spill] sm:$0xff] %v6230_v28  ;;  %v6232_v4 = vpop.f32.mrb[25].mxu0 }
 0x3de   : > { %2967 = vmatmul.mubr.bf16.gmra.mrb[44].mxu1 %v1817_v46  ;;  %6635 = vst [vmem:[#allocation44_spill] sm:$0xff] %v6232_v4  ;;  %v6234_v46 = vpop.f32.mrb[26].mxu0 }
 0x3df   : > { %2974 = vmatprep.mubr.bf16.mxu1 %v1826_v54  ;;  %6636 = vst [vmem:[#allocation45_spill] sm:$0xff] %v6234_v46  ;;  %v1617_v54 = vld [vmem:[%s5588_s30 + $0x330] sm:$0xff]  ;;  %v6237_v60 = vpop.f32.mrb[27].mxu0 }
 0x3e0   : > { %6637 = vst [vmem:[#allocation46_spill] sm:$0xff] %v6237_v60  ;;  %v1841_v21 = vunpack.c.l.s8.bf16 %v1617_v54  ;;  %v1849_v11 = vunpack.c.h.s8.bf16 %v1617_v54 }
 0x3e6   : > { %2975 = vmatmul.mubr.bf16.gmra.mrb[48].mxu1 %v1825_v34  ;;  %v1626_v34 = vld [vmem:[%s5588_s30 + $0x378] sm:$0xff] }
 0x3e7   : > { %2982 = vmatprep.mubr.bf16.mxu1 %v1834_v32  ;;  %v1858_v32 = vunpack.c.l.s8.bf16 %v1626_v34  ;;  %v1866_v4 = vunpack.c.h.s8.bf16 %v1626_v34 }
 0x3ee   : > { %2983 = vmatmul.mubr.bf16.gmra.mrb[52].mxu1 %v1833_v13 }
 0x3ef   : > { %2990 = vmatprep.mubr.bf16.mxu1 %v1842_v29  ;;  %v1625_v29 = vld [vmem:[%s5588_s30 + $0x370] sm:$0xff] }
 0x3f0   : > { %v1857_v60 = vunpack.c.l.s8.bf16 %v1625_v29  ;;  %v1865_v62 = vunpack.c.h.s8.bf16 %v1625_v29 }
 0x3f3   : > { %v6240_v19 = vpop.f32.mrb[28].mxu0 }
 0x3f4   : > { %6638 = vst [vmem:[#allocation47_spill] sm:$0xff] %v6240_v19  ;;  %v6242_v28 = vpop.f32.mrb[29].mxu0 }
 0x3f5   : > { %6639 = vst [vmem:[#allocation48_spill] sm:$0xff] %v6242_v28  ;;  %v6244_v13 = vpop.f32.mrb[30].mxu0 }
 0x3f6   : > { %2991 = vmatmul.mubr.bf16.gmra.mrb[56].mxu1 %v1841_v21  ;;  %6640 = vst [vmem:[#allocation49_spill] sm:$0xff] %v6244_v13  ;;  %v6247_v46 = vpop.f32.mrb[31].mxu0  ;;  %v1634_v21 = vld [vmem:[%s5588_s30 + $0x3b8] sm:$0xff] }
 0x3f7   : > { %2998 = vmatprep.mubr.bf16.mxu1 %v1850_v18  ;;  %6641 = vst [vmem:[#allocation50_spill] sm:$0xff] %v6247_v46  ;;  %v1874_v13 = vunpack.c.l.s8.bf16 %v1634_v21 }
 0x3fd   : > { %v6252_v33 = vpop.f32.mrb[32].mxu0 }
 0x3fe   : > { %2999 = vmatmul.mubr.bf16.gmra.mrb[60].mxu1 %v1849_v11  ;;  %v3736_v11 = vpop.permute.xlu0 %3735  ;;  %6642 = vst [vmem:[#allocation51_spill] sm:$0xff] %v6252_v33 }
 0x3ff   : > { %3006 = vmatprep.mubr.bf16.mxu1 %v1858_v32 }
 0x406   : > { %3007 = vmatmul.mubr.bf16.gmra.mrb[64].mxu1 %v1857_v60  ;;  %v6257_v60 = vld [vmem:[%s6590_s5] ss:$0 sm:$0xff] }
 0x407   : > { %3014 = vmatprep.mubr.bf16.mxu1 %v1866_v4  ;;  %v6259_v4 = vpop.f32.mrb[33].mxu0 }
 0x408   : > { %v6262_v34 = vpop.f32.mrb[34].mxu0 }
 0x409   : > { %v2800_v18 = vpop.f32.mrb[88].mxu1  ;;  %6643 = vst [vmem:[#allocation52_spill] sm:$0xff] %v6262_v34 }
 0x40a   : > { %v4889_v54 = vadd.f32 %v2800_v18, %v6042_v31  ;;  %v2802_v19 = vpop.f32.mrb[89].mxu1 }
 0x40b   : > { %v2803_v28 = vpop.f32.mrb[90].mxu1 }
 0x40c   : > { %v4890_v32 = vadd.f32 %v2803_v28, %v6044_v36  ;;  %v2805_v0 = vpop.f32.mrb[91].mxu1  ;;  %v4048_v46 = vmul.f32 %v4889_v54, %v3731_v8  ;;  %v1633_v28 = vld [vmem:[%s5588_s30 + $0x3b0] sm:$0xff]  ;;  %v6272_v36 = vpop.f32.mrb[35].mxu0 }
 0x40d   : > { %v3741_v0 = vpop.permute.xlu1 %3740  ;;  %v1873_v54 = vunpack.c.l.s8.bf16 %v1633_v28 }
 0x40e   : > { %v4049_v31 = vmul.f32 %v4890_v32, %v3736_v11  ;;  %v4112_v19 = vadd.f32 %v4048_v46, %v6168_v37  ;;  %3015 = vmatmul.mubr.bf16.gmra.mrb[68].mxu1 %v1865_v62  ;;  %v1882_v32 = vunpack.c.h.s8.bf16 %v1634_v21 }
 0x40f   : > { %3022 = vmatprep.mubr.bf16.mxu1 %v1874_v13 }
 0x410   : > { %v4183_v29 = vadd.f32 %v6257_v60, %v4112_v19  ;;  %v4113_v37 = vadd.f32 %v4049_v31, %v6173_v63 }
 0x411   : > { %v2808_v62 = vpop.f32.mrb[92].mxu1  ;;  %v3746_v19 = vpop.permute.xlu1 %3745 }
 0x412   : > { %4247 = vst [vmem:[%s6269_s14] sm:$0xff] %v4183_v29  ;;  %v4184_v46 = vadd.f32 %v6257_v60, %v4113_v37  ;;  %v4891_v8 = vadd.f32 %v2808_v62, %v6051_v44  ;;  %v2810_v18 = vpop.f32.mrb[93].mxu1  ;;  %v1642_v37 = vld [vmem:[%s5588_s30 + $0x3f8] sm:$0xff] }
 0x413   : > { %v2811_v11 = vpop.f32.mrb[94].mxu1 }
 0x414   : > { %4248 = vst [vmem:[%s6269_s14 + $0x8] sm:$0xff] %v4184_v46  ;;  %v4050_v13 = vmul.f32 %v4891_v8, %v3741_v0  ;;  %v4892_v34 = vadd.f32 %v2811_v11, %v6053_v22  ;;  %v2813_v33 = vpop.f32.mrb[95].mxu1  ;;  %v3751_v46 = vpop.permute.xlu0 %3750  ;;  %v1890_v8 = vunpack.c.l.s8.bf16 %v1642_v37 }
 0x415   : > { %v1881_v33 = vunpack.c.h.s8.bf16 %v1633_v28  ;;  %v3756_v11 = vpop.permute.xlu1 %3755 }
 0x416   : > { %v4114_v63 = vadd.f32 %v6166_v61, %v4050_v13  ;;  %v4051_v31 = vmul.f32 %v4892_v34, %v3746_v19  ;;  %3023 = vmatmul.mubr.bf16.gmra.mrb[72].mxu1 %v1873_v54  ;;  %v1641_v19 = vld [vmem:[%s5588_s30 + $0x3f0] sm:$0xff] }
 0x417   : > { %3030 = vmatprep.mubr.bf16.mxu1 %v1882_v32 }
 0x418   : > { %v4185_v44 = vadd.f32 %v6257_v60, %v4114_v63  ;;  %v4115_v29 = vadd.f32 %v6170_v39, %v4051_v31  ;;  %v6290_v39 = vpop.f32.mrb[36].mxu0 }
 0x419   : > { %v2816_v62 = vpop.f32.mrb[96].mxu1  ;;  %v6292_v32 = vpop.f32.mrb[37].mxu0 }
 0x41a   : > { %4249 = vst [vmem:[%s6269_s14 + $0x10] sm:$0xff] %v4185_v44  ;;  %v4186_v21 = vadd.f32 %v6257_v60, %v4115_v29  ;;  %v4893_v0 = vadd.f32 %v2816_v62, %v6062_v6  ;;  %v2818_v22 = vpop.f32.mrb[97].mxu1  ;;  %v6295_v28 = vpop.f32.mrb[38].mxu0 }
 0x41b   : > { %v2819_v61 = vpop.f32.mrb[98].mxu1  ;;  %v6298_v63 = vpop.f32.mrb[39].mxu0 }
 0x41c   : > { %4250 = vst [vmem:[%s6269_s14 + $0x18] sm:$0xff] %v4186_v21  ;;  %v4894_v34 = vadd.f32 %v2819_v61, %v6064_v1  ;;  %v2821_v18 = vpop.f32.mrb[99].mxu1  ;;  %v4052_v54 = vmul.f32 %v4893_v0, %v3751_v46  ;;  %v1889_v21 = vunpack.c.l.s8.bf16 %v1641_v19  ;;  %v3761_v0 = vpop.permute.xlu0 %3760 }
 0x41e   : > { %v4116_v13 = vadd.f32 %v4052_v54, %v6180_v48  ;;  %3031 = vmatmul.mubr.bf16.gmra.mrb[76].mxu1 %v1881_v33  ;;  %v4053_v6 = vmul.f32 %v4894_v34, %v3756_v11  ;;  %v1898_v33 = vunpack.c.h.s8.bf16 %v1642_v37  ;;  %v3766_v34 = vpop.permute.xlu1 %3765 }
 0x41f   : > { %3038 = vmatprep.mubr.bf16.mxu1 %v1890_v8 }
 0x420   : > { %v4187_v1 = vadd.f32 %v6257_v60, %v4116_v13  ;;  %v4117_v31 = vadd.f32 %v4053_v6, %v6185_v30 }
 0x421   : > { %v2824_v44 = vpop.f32.mrb[100].mxu1 }
 0x422   : > { %4251 = vst [vmem:[%s6269_s14 + $0x20] sm:$0xff] %v4187_v1  ;;  %v4188_v29 = vadd.f32 %v6257_v60, %v4117_v31  ;;  %v4895_v62 = vadd.f32 %v2824_v44, %v6071_v24  ;;  %v2826_v48 = vpop.f32.mrb[101].mxu1  ;;  %v3771_v1 = vpop.permute.xlu0 %3770 }
 0x423   : > { %v2827_v22 = vpop.f32.mrb[102].mxu1  ;;  %v3776_v48 = vpop.permute.xlu1 %3775 }
 0x424   : > { %4252 = vst [vmem:[%s6269_s14 + $0x28] sm:$0xff] %v4188_v29  ;;  %v4054_v46 = vmul.f32 %v4895_v62, %v3761_v0  ;;  %v4896_v61 = vadd.f32 %v2827_v22, %v6073_v52  ;;  %v2829_v8 = vpop.f32.mrb[103].mxu1  ;;  %v1897_v52 = vunpack.c.h.s8.bf16 %v1641_v19  ;;  %v6315_v62 = vpop.f32.mrb[40].mxu0 }
 0x426   : > { %v4118_v30 = vadd.f32 %v6178_v15, %v4054_v46  ;;  %v4055_v18 = vmul.f32 %v4896_v61, %v3766_v34  ;;  %3039 = vmatmul.mubr.bf16.gmra.mrb[80].mxu1 %v1889_v21  ;;  %v3781_v34 = vpop.permute.xlu0 %3780 }
 0x427   : > { %3046 = vmatprep.mubr.bf16.mxu1 %v1898_v33 }
 0x428   : > { %v4189_v24 = vadd.f32 %v6257_v60, %v4118_v30  ;;  %v4119_v54 = vadd.f32 %v6182_v51, %v4055_v18  ;;  %v6317_v51 = vpop.f32.mrb[41].mxu0 }
 0x429   : > { %v2832_v11 = vpop.f32.mrb[104].mxu1  ;;  %v6320_v0 = vpop.f32.mrb[42].mxu0 }
 0x42a   : > { %4253 = vst [vmem:[%s6269_s14 + $0x30] sm:$0xff] %v4189_v24  ;;  %v4190_v37 = vadd.f32 %v6257_v60, %v4119_v54  ;;  %v4897_v13 = vadd.f32 %v2832_v11, %v6082_v45  ;;  %v2834_v6 = vpop.f32.mrb[105].mxu1  ;;  %v6322_v19 = vpop.f32.mrb[43].mxu0 }
 0x42b   : > { %v2835_v31 = vpop.f32.mrb[106].mxu1  ;;  %v3786_v54 = vpop.permute.xlu1 %3785 }
 0x42c   : > { %4254 = vst [vmem:[%s6269_s14 + $0x38] sm:$0xff] %v4190_v37  ;;  %v4898_v15 = vadd.f32 %v2835_v31, %v6084_v2  ;;  %v2837_v44 = vpop.f32.mrb[107].mxu1  ;;  %v4056_v29 = vmul.f32 %v4897_v13, %v3771_v1  ;;  %v3791_v31 = vpop.permute.xlu0 %3790 }
 0x42e   : > { %v4120_v21 = vadd.f32 %v4056_v29, %v6192_v43  ;;  %3047 = vmatmul.mubr.bf16.gmra.mrb[84].mxu1 %v1897_v52  ;;  %v4057_v45 = vmul.f32 %v4898_v15, %v3776_v48  ;;  %v6339_v29 = vpop.f32.mrb[44].mxu0 }
 0x42f   : > { %v3796_v48 = vpop.permute.xlu1 %3795 }
 0x430   : > { %v4191_v22 = vadd.f32 %v6257_v60, %v4120_v21  ;;  %v4121_v2 = vadd.f32 %v4057_v45, %v6197_v20 }
 0x431   : > { %v2840_v33 = vpop.f32.mrb[108].mxu1 }
 0x432   : > { %4255 = vst [vmem:[%s6269_s14 + $0x40] sm:$0xff] %v4191_v22  ;;  %v4192_v46 = vadd.f32 %v6257_v60, %v4121_v2  ;;  %v4899_v61 = vadd.f32 %v2840_v33, %v6091_v38  ;;  %v2842_v8 = vpop.f32.mrb[109].mxu1 }
 0x433   : > { %v2843_v43 = vpop.f32.mrb[110].mxu1 }
 0x434   : > { %4256 = vst [vmem:[%s6269_s14 + $0x48] sm:$0xff] %v4192_v46  ;;  %v4058_v30 = vmul.f32 %v4899_v61, %v3781_v34  ;;  %v4900_v18 = vadd.f32 %v2843_v43, %v6093_v40  ;;  %v2845_v24 = vpop.f32.mrb[111].mxu1  ;;  %v3801_v34 = vpop.permute.xlu0 %3800 }
 0x435   : > { %v3806_v24 = vpop.permute.xlu1 %3805 }
 0x436   : > { %v4122_v11 = vadd.f32 %v6190_v17, %v4058_v30  ;;  %v4059_v20 = vmul.f32 %v4900_v18, %v3786_v54 }
 0x438   : > { %v4193_v37 = vadd.f32 %v6257_v60, %v4122_v11  ;;  %v4123_v13 = vadd.f32 %v6194_v58, %v4059_v20  ;;  %v6341_v58 = vpop.f32.mrb[45].mxu0 }
 0x439   : > { %v2848_v6 = vpop.f32.mrb[112].mxu1  ;;  %v6344_v22 = vpop.f32.mrb[46].mxu0 }
 0x43a   : > { %4257 = vst [vmem:[%s6269_s14 + $0x50] sm:$0xff] %v4193_v37  ;;  %v4194_v38 = vadd.f32 %v6257_v60, %v4123_v13  ;;  %v4901_v52 = vadd.f32 %v2848_v6, %v6102_v10  ;;  %v2850_v1 = vpop.f32.mrb[113].mxu1  ;;  %v6346_v10 = vpop.f32.mrb[47].mxu0 }
 0x43b   : > { %v2851_v15 = vpop.f32.mrb[114].mxu1 }
 0x43c   : > { %4258 = vst [vmem:[%s6269_s14 + $0x58] sm:$0xff] %v4194_v38  ;;  %v4902_v40 = vadd.f32 %v2851_v15, %v6104_v14  ;;  %v2853_v44 = vpop.f32.mrb[115].mxu1  ;;  %v4060_v17 = vmul.f32 %v4901_v52, %v3791_v31  ;;  %v3811_v38 = vpop.permute.xlu0 %3810 }
 0x43d   : > { %v3816_v15 = vpop.permute.xlu1 %3815 }
 0x43e   : > { %v4124_v21 = vadd.f32 %v4060_v17, %v6202_v9  ;;  %v4061_v45 = vmul.f32 %v4902_v40, %v3796_v48 }
 0x440   : > { %v4195_v2 = vadd.f32 %v6257_v60, %v4124_v21  ;;  %v4125_v33 = vadd.f32 %v4061_v45, %v6207_v23 }
 0x441   : > { %v2856_v14 = vpop.f32.mrb[116].mxu1 }
 0x442   : > { %4259 = vst [vmem:[%s6269_s14 + $0x60] sm:$0xff] %v4195_v2  ;;  %v4196_v46 = vadd.f32 %v6257_v60, %v4125_v33  ;;  %v4903_v61 = vadd.f32 %v2856_v14, %v6111_v27  ;;  %v2858_v8 = vpop.f32.mrb[117].mxu1  ;;  %v6363_v31 = vpop.f32.mrb[48].mxu0 }
 0x443   : > { %v2859_v43 = vpop.f32.mrb[118].mxu1  ;;  %v3821_v14 = vpop.permute.xlu0 %3820 }
 0x444   : > { %4260 = vst [vmem:[%s6269_s14 + $0x68] sm:$0xff] %v4196_v46  ;;  %v4062_v9 = vmul.f32 %v4903_v61, %v3801_v34  ;;  %v4904_v30 = vadd.f32 %v2859_v43, %v6113_v59  ;;  %v2861_v18 = vpop.f32.mrb[119].mxu1  ;;  %v3826_v34 = vpop.permute.xlu1 %3825 }
 0x446   : > { %v4126_v54 = vadd.f32 %v6200_v5, %v4062_v9  ;;  %v4063_v23 = vmul.f32 %v4904_v30, %v3806_v24 }
 0x448   : > { %v4197_v11 = vadd.f32 %v6257_v60, %v4126_v54  ;;  %v4127_v20 = vadd.f32 %v6204_v57, %v4063_v23  ;;  %v6365_v57 = vpop.f32.mrb[49].mxu0  ;;  %v3831_v23 = vpop.permute.xlu0 %3830 }
 0x449   : > { %v2864_v37 = vpop.f32.mrb[120].mxu1  ;;  %v6368_v17 = vpop.f32.mrb[50].mxu0 }
 0x44a   : > { %4261 = vst [vmem:[%s6269_s14 + $0x70] sm:$0xff] %v4197_v11  ;;  %v4198_v27 = vadd.f32 %v6257_v60, %v4127_v20  ;;  %v4905_v13 = vadd.f32 %v2864_v37, %v6122_v56  ;;  %v2866_v6 = vpop.f32.mrb[121].mxu1  ;;  %v6370_v56 = vpop.f32.mrb[51].mxu0 }
 0x44b   : > { %v2867_v52 = vpop.f32.mrb[122].mxu1 }
 0x44c   : > { %4262 = vst [vmem:[%s6269_s14 + $0x78] sm:$0xff] %v4198_v27  ;;  %v4906_v59 = vadd.f32 %v2867_v52, %v6124_v25  ;;  %v2869_v1 = vpop.f32.mrb[123].mxu1  ;;  %v4064_v5 = vmul.f32 %v4905_v13, %v3811_v38  ;;  %v3836_v27 = vpop.permute.xlu1 %3835 }
 0x44e   : > { %v4128_v40 = vadd.f32 %v4064_v5, %v6212_v53  ;;  %v4065_v44 = vmul.f32 %v4906_v59, %v3816_v15 }
 0x450   : > { %v4199_v48 = vadd.f32 %v6257_v60, %v4128_v40  ;;  %v4129_v21 = vadd.f32 %v4065_v44, %v6217_v47  ;;  %v3841_v40 = vpop.permute.xlu0 %3840 }
 0x451   : > { %v2872_v25 = vpop.f32.mrb[124].mxu1 }
 0x452   : > { %4263 = vst [vmem:[%s6269_s14 + $0x80] sm:$0xff] %v4199_v48  ;;  %v4200_v45 = vadd.f32 %v6257_v60, %v4129_v21  ;;  %v4907_v2 = vadd.f32 %v2872_v25, %v6131_v3  ;;  %v2874_v33 = vpop.f32.mrb[125].mxu1  ;;  %v3846_v25 = vpop.permute.xlu1 %3845 }
 0x453   : > { %v2875_v46 = vpop.f32.mrb[126].mxu1  ;;  %v6387_v37 = vpop.f32.mrb[52].mxu0  ;;  %v6644_v33 = vld [vmem:[#allocation42_spill] sm:$0xff] }
 0x454   : > { %4264 = vst [vmem:[%s6269_s14 + $0x88] sm:$0xff] %v4200_v45  ;;  %v4066_v53 = vmul.f32 %v4907_v2, %v3821_v14  ;;  %v4908_v61 = vadd.f32 %v2875_v46, %v6133_v35  ;;  %v2877_v8 = vpop.f32.mrb[127].mxu1 }
 0x456   : > { %v4130_v43 = vadd.f32 %v6210_v16, %v4066_v53  ;;  %v4067_v47 = vmul.f32 %v4908_v61, %v3826_v34  ;;  %v6645_v53 = vld [vmem:[#allocation2_spill] sm:$0xff]  ;;  %v3851_v34 = vpop.permute.xlu0 %3850 }
 0x458   : > { %v4201_v9 = vadd.f32 %v6257_v60, %v4130_v43  ;;  %v4131_v30 = vadd.f32 %v6214_v26, %v4067_v47  ;;  %v6389_v26 = vpop.f32.mrb[53].mxu0 }
 0x459   : > { %v2880_v18 = vpop.f32.mrb[0].mxu1  ;;  %v6392_v38 = vpop.f32.mrb[54].mxu0 }
 0x45a   : > { %4265 = vst [vmem:[%s6269_s14 + $0x90] sm:$0xff] %v4201_v9  ;;  %v4202_v3 = vadd.f32 %v6257_v60, %v4131_v30  ;;  %v4909_v24 = vadd.f32 %v2880_v18, %v5862_v49  ;;  %v2882_v54 = vpop.f32.mrb[1].mxu1  ;;  %v6394_v49 = vpop.f32.mrb[55].mxu0 }
 0x45b   : > { %v2883_v11 = vpop.f32.mrb[2].mxu1  ;;  %v6411_v30 = vpop.f32.mrb[56].mxu0 }
 0x45c   : > { %4266 = vst [vmem:[%s6269_s14 + $0x98] sm:$0xff] %v4202_v3  ;;  %v4910_v35 = vadd.f32 %v2883_v11, %v5865_v7  ;;  %v2885_v20 = vpop.f32.mrb[3].mxu1  ;;  %v4068_v16 = vmul.f32 %v4909_v24, %v3831_v23  ;;  %v3856_v18 = vpop.permute.xlu1 %3855  ;;  %v6647_v24 = vld [vmem:[#allocation44_spill] sm:$0xff] }
 0x45d   : > { %v6413_v3 = vpop.f32.mrb[57].mxu0 }
 0x45e   : > { %v4132_v13 = vadd.f32 %v4068_v16, %v6222_v41  ;;  %v4069_v6 = vmul.f32 %v4910_v35, %v3836_v27  ;;  %v6416_v11 = vpop.f32.mrb[58].mxu0  ;;  %v6648_v16 = vld [vmem:[#allocation46_spill] sm:$0xff] }
 0x45f   : > { %v6418_v35 = vpop.f32.mrb[59].mxu0 }
 0x460   : > { %v4203_v52 = vadd.f32 %v6257_v60, %v4132_v13  ;;  %v4133_v59 = vadd.f32 %v4069_v6, %v6227_v42 }
 0x461   : > { %v2888_v7 = vpop.f32.mrb[4].mxu1 }
 0x462   : > { %4267 = vst [vmem:[%s6269_s14 + $0xa0] sm:$0xff] %v4203_v52  ;;  %v4204_v1 = vadd.f32 %v6257_v60, %v4133_v59  ;;  %v4911_v5 = vadd.f32 %v2888_v7, %v5870_v12  ;;  %v2890_v15 = vpop.f32.mrb[5].mxu1  ;;  %v6649_v52 = vld [vmem:[#allocation4_spill] sm:$0xff] }
 0x463   : > { %v2891_v44 = vpop.f32.mrb[6].mxu1 }
 0x464   : > { %4268 = vst [vmem:[%s6269_s14 + $0xa8] sm:$0xff] %v4204_v1  ;;  %v4070_v41 = vmul.f32 %v4911_v5, %v3841_v40  ;;  %v4912_v48 = vadd.f32 %v2891_v44, %v5873_v50  ;;  %v2893_v21 = vpop.f32.mrb[7].mxu1  ;;  %v6646_v50 = vld [vmem:[#allocation3_spill] sm:$0xff]  ;;  %v3861_v1 = vpop.permute.xlu0 %3860  ;;  %v6650_v40 = vld [vmem:[#allocation5_spill] sm:$0xff] }
 0x465   : > { %v6651_v21 = vld [vmem:[#allocation43_spill] sm:$0xff] }
 0x466   : > { %v4134_v45 = vadd.f32 %v6220_v55, %v4070_v41  ;;  %v4071_v42 = vmul.f32 %v4912_v48, %v3846_v25  ;;  %v3866_v48 = vpop.permute.xlu1 %3865 }
 0x468   : > { %v4205_v2 = vadd.f32 %v6257_v60, %v4134_v45  ;;  %v4135_v14 = vadd.f32 %v6644_v33, %v4071_v42 }
 0x469   : > { %v2896_v46 = vpop.f32.mrb[8].mxu1 }
 0x46a   : > { %4269 = vst [vmem:[%s6269_s14 + $0xb0] sm:$0xff] %v4205_v2  ;;  %v4206_v12 = vadd.f32 %v6257_v60, %v4135_v14  ;;  %v4913_v61 = vadd.f32 %v2896_v46, %v6645_v53  ;;  %v2898_v8 = vpop.f32.mrb[9].mxu1  ;;  %v6652_v2 = vld [vmem:[#allocation45_spill] sm:$0xff] }
 0x46b   : > { %v2899_v43 = vpop.f32.mrb[10].mxu1  ;;  %v3871_v8 = vpop.permute.xlu0 %3870 }
 0x46c   : > { %4270 = vst [vmem:[%s6269_s14 + $0xb8] sm:$0xff] %v4206_v12  ;;  %v4914_v47 = vadd.f32 %v2899_v43, %v6646_v50  ;;  %v2901_v9 = vpop.f32.mrb[11].mxu1  ;;  %v4072_v55 = vmul.f32 %v4913_v61, %v3851_v34  ;;  %v6653_v12 = vld [vmem:[#allocation6_spill] sm:$0xff]  ;;  %v6654_v43 = vld [vmem:[#allocation7_spill] sm:$0xff] }
 0x46e   : > { %v4136_v54 = vadd.f32 %v4072_v55, %v6647_v24  ;;  %v4073_v23 = vmul.f32 %v4914_v47, %v3856_v18  ;;  %v6435_v55 = vpop.f32.mrb[60].mxu0  ;;  %v3876_v18 = vpop.permute.xlu1 %3875 }
 0x46f   : > { %v6437_v24 = vpop.f32.mrb[61].mxu0 }
 0x470   : > { %v4207_v20 = vadd.f32 %v6257_v60, %v4136_v54  ;;  %v4137_v27 = vadd.f32 %v4073_v23, %v6648_v16  ;;  %v6655_v54 = vld [vmem:[#allocation48_spill] sm:$0xff]  ;;  %v6440_v16 = vpop.f32.mrb[62].mxu0 }
 0x471   : > { %v2904_v13 = vpop.f32.mrb[12].mxu1 }
 0x472   : > { %4271 = vst [vmem:[%s6269_s14 + $0xc0] sm:$0xff] %v4207_v20  ;;  %v4208_v6 = vadd.f32 %v6257_v60, %v4137_v27  ;;  %v4915_v59 = vadd.f32 %v2904_v13, %v6649_v52  ;;  %v2906_v7 = vpop.f32.mrb[13].mxu1  ;;  %v6442_v27 = vpop.f32.mrb[63].mxu0 }
 0x473   : > { %v2907_v5 = vpop.f32.mrb[14].mxu1 }
 0x474   : > { %4272 = vst [vmem:[%s6269_s14 + $0xc8] sm:$0xff] %v4208_v6  ;;  %v4074_v15 = vmul.f32 %v4915_v59, %v3861_v1  ;;  %v4916_v44 = vadd.f32 %v2907_v5, %v6650_v40  ;;  %v2909_v41 = vpop.f32.mrb[15].mxu1  ;;  %v6656_v6 = vld [vmem:[#allocation50_spill] sm:$0xff]  ;;  %v6657_v1 = vld [vmem:[#allocation8_spill] sm:$0xff]  ;;  %v3881_v40 = vpop.permute.xlu0 %3880 }
 0x476   : > { %v4138_v25 = vadd.f32 %v6651_v21, %v4074_v15  ;;  %v4075_v45 = vmul.f32 %v4916_v44, %v3866_v48  ;;  %v6658_v48 = vld [vmem:[#allocation9_spill] sm:$0xff] }
 0x478   : > { %v4209_v42 = vadd.f32 %v6257_v60, %v4138_v25  ;;  %v4139_v33 = vadd.f32 %v6652_v2, %v4075_v45  ;;  %v3886_v45 = vpop.permute.xlu1 %3885 }
 0x479   : > { %v2912_v14 = vpop.f32.mrb[16].mxu1 }
 0x47a   : > { %4273 = vst [vmem:[%s6269_s14 + $0xd0] sm:$0xff] %v4209_v42  ;;  %v4210_v46 = vadd.f32 %v6257_v60, %v4139_v33  ;;  %v4917_v53 = vadd.f32 %v2912_v14, %v6653_v12  ;;  %v2914_v61 = vpop.f32.mrb[17].mxu1  ;;  %v6659_v42 = vld [vmem:[#allocation47_spill] sm:$0xff] }
 0x47b   : > { %v2915_v34 = vpop.f32.mrb[18].mxu1 }
 0x47c   : > { %4274 = vst [vmem:[%s6269_s14 + $0xd8] sm:$0xff] %v4210_v46  ;;  %v4918_v50 = vadd.f32 %v2915_v34, %v6654_v43  ;;  %v2917_v47 = vpop.f32.mrb[19].mxu1  ;;  %v4076_v9 = vmul.f32 %v4917_v53, %v3871_v8  ;;  %v6660_v46 = vld [vmem:[#allocation49_spill] sm:$0xff]  ;;  %v6661_v8 = vld [vmem:[#allocation10_spill] sm:$0xff] }
 0x47e   : > { %v4140_v23 = vadd.f32 %v4076_v9, %v6655_v54  ;;  %v4077_v20 = vmul.f32 %v4918_v50, %v3876_v18  ;;  %v3891_v50 = vpop.permute.xlu0 %3890  ;;  %v6662_v9 = vld [vmem:[#allocation11_spill] sm:$0xff] }
 0x480   : > { %v4211_v13 = vadd.f32 %v6257_v60, %v4140_v23  ;;  %v4141_v52 = vadd.f32 %v4077_v20, %v6656_v6  ;;  %v3896_v20 = vpop.permute.xlu1 %3895 }
 0x481   : > { %v2920_v59 = vpop.f32.mrb[20].mxu1 }
 0x482   : > { %4275 = vst [vmem:[%s6269_s14 + $0xe0] sm:$0xff] %v4211_v13  ;;  %v4212_v7 = vadd.f32 %v6257_v60, %v4141_v52  ;;  %v4919_v5 = vadd.f32 %v2920_v59, %v6657_v1  ;;  %v2922_v15 = vpop.f32.mrb[21].mxu1 }
 0x483   : > { %v2923_v44 = vpop.f32.mrb[22].mxu1 }
 0x484   : > { %4276 = vst [vmem:[%s6269_s14 + $0xe8] sm:$0xff] %v4212_v7  ;;  %v4078_v41 = vmul.f32 %v4919_v5, %v3881_v40  ;;  %v4920_v21 = vadd.f32 %v2923_v44, %v6658_v48  ;;  %v2925_v25 = vpop.f32.mrb[23].mxu1  ;;  %v6663_v5 = vld [vmem:[#allocation12_spill] sm:$0xff]  ;;  %v3901_v44 = vpop.permute.xlu0 %3900 }
 0x486   : > { %v4142_v2 = vadd.f32 %v6659_v42, %v4078_v41  ;;  %v4079_v33 = vmul.f32 %v4920_v21, %v3886_v45  ;;  %v6664_v21 = vld [vmem:[#allocation13_spill] sm:$0xff]  ;;  %v3906_v45 = vpop.permute.xlu1 %3905  ;;  %v6665_v42 = vld [vmem:[#allocation51_spill] sm:$0xff] }
 0x488   : > { %v4213_v14 = vadd.f32 %v6257_v60, %v4142_v2  ;;  %v4143_v12 = vadd.f32 %v6660_v46, %v4079_v33 }
 0x489   : > { %v2928_v53 = vpop.f32.mrb[24].mxu1 }
 0x48a   : > { %4277 = vst [vmem:[%s6269_s14 + $0xf0] sm:$0xff] %v4213_v14  ;;  %v4214_v61 = vadd.f32 %v6257_v60, %v4143_v12  ;;  %v4921_v34 = vadd.f32 %v2928_v53, %v6661_v8  ;;  %v2930_v43 = vpop.f32.mrb[25].mxu1  ;;  %v6666_v14 = vld [vmem:[#allocation52_spill] sm:$0xff] }
 0x48b   : > { %v2931_v47 = vpop.f32.mrb[26].mxu1  ;;  %v3911_v43 = vpop.permute.xlu0 %3910 }
 0x48c   : > { %4278 = vst [vmem:[%s6269_s14 + $0xf8] sm:$0xff] %v4214_v61  ;;  %v4922_v18 = vadd.f32 %v2931_v47, %v6662_v9  ;;  %v2933_v54 = vpop.f32.mrb[27].mxu1  ;;  %v4080_v23 = vmul.f32 %v4921_v34, %v3891_v50  ;;  %v6667_v61 = vld [vmem:[#allocation14_spill] sm:$0xff]  ;;  %v6668_v47 = vld [vmem:[#allocation15_spill] sm:$0xff] }
 0x48e   : > { %v4144_v13 = vadd.f32 %v4080_v23, %v6259_v4  ;;  %v4081_v6 = vmul.f32 %v4922_v18, %v3896_v20  ;;  %v3916_v23 = vpop.permute.xlu1 %3915 }
 0x490   : > { %v4215_v52 = vadd.f32 %v6257_v60, %v4144_v13  ;;  %v4145_v59 = vadd.f32 %v4081_v6, %v6272_v36 }
 0x491   : > { %v2936_v7 = vpop.f32.mrb[28].mxu1 }
 0x492   : > { %4279 = vst [vmem:[%s6269_s14 + $0x100] sm:$0xff] %v4215_v52  ;;  %v4216_v1 = vadd.f32 %v6257_v60, %v4145_v59  ;;  %v4923_v15 = vadd.f32 %v2936_v7, %v6663_v5  ;;  %v2938_v40 = vpop.f32.mrb[29].mxu1 }
 0x493   : > { %v2939_v41 = vpop.f32.mrb[30].mxu1  ;;  %v3921_v40 = vpop.permute.xlu0 %3920 }
 0x494   : > { %4280 = vst [vmem:[%s6269_s14 + $0x108] sm:$0xff] %v4216_v1  ;;  %v4082_v48 = vmul.f32 %v4923_v15, %v3901_v44  ;;  %v4924_v4 = vadd.f32 %v2939_v41, %v6664_v21  ;;  %v2941_v25 = vpop.f32.mrb[31].mxu1  ;;  %v6669_v1 = vld [vmem:[#allocation16_spill] sm:$0xff] }
 0x496   : > { %v4146_v2 = vadd.f32 %v6665_v42, %v4082_v48  ;;  %v4083_v36 = vmul.f32 %v4924_v4, %v3906_v45  ;;  %v6670_v48 = vld [vmem:[#allocation17_spill] sm:$0xff]  ;;  %v3926_v4 = vpop.permute.xlu1 %3925 }
 0x498   : > { %v4217_v33 = vadd.f32 %v6257_v60, %v4146_v2  ;;  %v4147_v46 = vadd.f32 %v6666_v14, %v4083_v36 }
 0x499   : > { %v2944_v12 = vpop.f32.mrb[32].mxu1 }
 0x49a   : > { %4281 = vst [vmem:[%s6269_s14 + $0x110] sm:$0xff] %v4217_v33  ;;  %v4218_v53 = vadd.f32 %v6257_v60, %v4147_v46  ;;  %v4925_v8 = vadd.f32 %v2944_v12, %v6667_v61  ;;  %v2946_v34 = vpop.f32.mrb[33].mxu1  ;;  %v6671_v33 = vld [vmem:[#allocation18_spill] sm:$0xff]  ;;  %v3931_v12 = vpop.permute.xlu0 %3930  ;;  %v6672_v61 = vld [vmem:[#allocation19_spill] sm:$0xff] }
 0x49b   : > { %v2947_v50 = vpop.f32.mrb[34].mxu1 }
 0x49c   : > { %4282 = vst [vmem:[%s6269_s14 + $0x118] sm:$0xff] %v4218_v53  ;;  %v4926_v9 = vadd.f32 %v2947_v50, %v6668_v47  ;;  %v2949_v18 = vpop.f32.mrb[35].mxu1  ;;  %v4084_v54 = vmul.f32 %v4925_v8, %v3911_v43  ;;  %v3936_v43 = vpop.permute.xlu1 %3935 }
 0x49e   : > { %v4148_v20 = vadd.f32 %v4084_v54, %v6292_v32  ;;  %v4085_v13 = vmul.f32 %v4926_v9, %v3916_v23  ;;  %v6673_v23 = vld [vmem:[#allocation20_spill] sm:$0xff] }
 0x4a0   : > { %v4219_v6 = vadd.f32 %v6257_v60, %v4148_v20  ;;  %v4149_v52 = vadd.f32 %v4085_v13, %v6298_v63 }
 0x4a1   : > { %v2952_v59 = vpop.f32.mrb[36].mxu1 }
 0x4a2   : > { %4283 = vst [vmem:[%s6269_s14 + $0x120] sm:$0xff] %v4219_v6  ;;  %v4220_v7 = vadd.f32 %v6257_v60, %v4149_v52  ;;  %v4927_v5 = vadd.f32 %v2952_v59, %v6669_v1  ;;  %v2954_v15 = vpop.f32.mrb[37].mxu1  ;;  %v3941_v6 = vpop.permute.xlu0 %3940 }
 0x4a3   : > { %v2955_v44 = vpop.f32.mrb[38].mxu1 }
 0x4a4   : > { %4284 = vst [vmem:[%s6269_s14 + $0x128] sm:$0xff] %v4220_v7  ;;  %v4086_v41 = vmul.f32 %v4927_v5, %v3921_v40  ;;  %v4928_v32 = vadd.f32 %v2955_v44, %v6670_v48  ;;  %v2957_v21 = vpop.f32.mrb[39].mxu1  ;;  %v6674_v7 = vld [vmem:[#allocation21_spill] sm:$0xff]  ;;  %v3946_v5 = vpop.permute.xlu1 %3945 }
 0x4a6   : > { %v4150_v25 = vadd.f32 %v6290_v39, %v4086_v41  ;;  %v4087_v63 = vmul.f32 %v4928_v32, %v3926_v4  ;;  %v6675_v32 = vld [vmem:[#allocation22_spill] sm:$0xff] }
 0x4a8   : > { %v4221_v45 = vadd.f32 %v6257_v60, %v4150_v25  ;;  %v4151_v42 = vadd.f32 %v6295_v28, %v4087_v63  ;;  %v3951_v25 = vpop.permute.xlu0 %3950 }
 0x4a9   : > { %v2960_v2 = vpop.f32.mrb[40].mxu1 }
 0x4aa   : > { %4285 = vst [vmem:[%s6269_s14 + $0x130] sm:$0xff] %v4221_v45  ;;  %v4222_v36 = vadd.f32 %v6257_v60, %v4151_v42  ;;  %v4929_v14 = vadd.f32 %v2960_v2, %v6671_v33  ;;  %v2962_v46 = vpop.f32.mrb[41].mxu1  ;;  %v6676_v45 = vld [vmem:[#allocation23_spill] sm:$0xff] }
 0x4ab   : > { %v2963_v53 = vpop.f32.mrb[42].mxu1 }
 0x4ac   : > { %4286 = vst [vmem:[%s6269_s14 + $0x138] sm:$0xff] %v4222_v36  ;;  %v4930_v8 = vadd.f32 %v2963_v53, %v6672_v61  ;;  %v2965_v39 = vpop.f32.mrb[43].mxu1  ;;  %v4088_v34 = vmul.f32 %v4929_v14, %v3931_v12  ;;  %v3956_v36 = vpop.permute.xlu1 %3955  ;;  %v6677_v61 = vld [vmem:[#allocation24_spill] sm:$0xff] }
 0x4ae   : > { %v4152_v50 = vadd.f32 %v4088_v34, %v6317_v51  ;;  %v4089_v28 = vmul.f32 %v4930_v8, %v3936_v43  ;;  %v3961_v34 = vpop.permute.xlu0 %3960 }
 0x4b0   : > { %v4223_v47 = vadd.f32 %v6257_v60, %v4152_v50  ;;  %v4153_v9 = vadd.f32 %v4089_v28, %v6322_v19  ;;  %v6678_v28 = vld [vmem:[#allocation25_spill] sm:$0xff] }
 0x4b1   : > { %v2968_v18 = vpop.f32.mrb[44].mxu1 }
 0x4b2   : > { %4287 = vst [vmem:[%s6269_s14 + $0x140] sm:$0xff] %v4223_v47  ;;  %v4224_v54 = vadd.f32 %v6257_v60, %v4153_v9  ;;  %v4931_v20 = vadd.f32 %v2968_v18, %v6673_v23  ;;  %v2970_v13 = vpop.f32.mrb[45].mxu1  ;;  %v3966_v9 = vpop.permute.xlu1 %3965 }
 0x4b3   : > { %v2971_v52 = vpop.f32.mrb[46].mxu1 }
 0x4b4   : > { %4288 = vst [vmem:[%s6269_s14 + $0x148] sm:$0xff] %v4224_v54  ;;  %v4090_v59 = vmul.f32 %v4931_v20, %v3941_v6  ;;  %v4932_v51 = vadd.f32 %v2971_v52, %v6674_v7  ;;  %v2973_v1 = vpop.f32.mrb[47].mxu1  ;;  %v6679_v6 = vld [vmem:[#allocation26_spill] sm:$0xff]  ;;  %v3971_v7 = vpop.permute.xlu0 %3970 }
 0x4b5   : > { %v6680_v1 = vld [vmem:[#allocation27_spill] sm:$0xff] }
 0x4b6   : > { %v4154_v15 = vadd.f32 %v6315_v62, %v4090_v59  ;;  %v4091_v19 = vmul.f32 %v4932_v51, %v3946_v5 }
 0x4b8   : > { %v4225_v40 = vadd.f32 %v6257_v60, %v4154_v15  ;;  %v4155_v44 = vadd.f32 %v6320_v0, %v4091_v19  ;;  %v3976_v19 = vpop.permute.xlu1 %3975 }
 0x4b9   : > { %v2976_v41 = vpop.f32.mrb[48].mxu1 }
 0x4ba   : > { %4289 = vst [vmem:[%s6269_s14 + $0x150] sm:$0xff] %v4225_v40  ;;  %v4226_v48 = vadd.f32 %v6257_v60, %v4155_v44  ;;  %v4933_v21 = vadd.f32 %v2976_v41, %v6675_v32  ;;  %v2978_v4 = vpop.f32.mrb[49].mxu1 }
 0x4bb   : > { %v2979_v63 = vpop.f32.mrb[50].mxu1 }
 0x4bc   : > { %4290 = vst [vmem:[%s6269_s14 + $0x158] sm:$0xff] %v4226_v48  ;;  %v4934_v42 = vadd.f32 %v2979_v63, %v6676_v45  ;;  %v2981_v62 = vpop.f32.mrb[51].mxu1  ;;  %v4092_v2 = vmul.f32 %v4933_v21, %v3951_v25  ;;  %v6681_v21 = vld [vmem:[#allocation28_spill] sm:$0xff]  ;;  %v3981_v63 = vpop.permute.xlu0 %3980 }
 0x4bd   : > { %v6682_v62 = vld [vmem:[#allocation29_spill] sm:$0xff] }
 0x4be   : > { %v4156_v33 = vadd.f32 %v4092_v2, %v6341_v58  ;;  %v4093_v0 = vmul.f32 %v4934_v42, %v3956_v36  ;;  %v3986_v36 = vpop.permute.xlu1 %3985 }
 0x4c0   : > { %v4227_v14 = vadd.f32 %v6257_v60, %v4156_v33  ;;  %v4157_v46 = vadd.f32 %v4093_v0, %v6346_v10 }
 0x4c1   : > { %v2984_v12 = vpop.f32.mrb[52].mxu1 }
 0x4c2   : > { %4291 = vst [vmem:[%s6269_s14 + $0x160] sm:$0xff] %v4227_v14  ;;  %v4228_v53 = vadd.f32 %v6257_v60, %v4157_v46  ;;  %v4935_v8 = vadd.f32 %v2984_v12, %v6677_v61  ;;  %v2986_v39 = vpop.f32.mrb[53].mxu1 }
 0x4c3   : > { %v2987_v43 = vpop.f32.mrb[54].mxu1  ;;  %v3991_v39 = vpop.permute.xlu0 %3990 }
 0x4c4   : > { %4292 = vst [vmem:[%s6269_s14 + $0x168] sm:$0xff] %v4228_v53  ;;  %v4094_v50 = vmul.f32 %v4935_v8, %v3961_v34  ;;  %v4936_v58 = vadd.f32 %v2987_v43, %v6678_v28  ;;  %v2989_v47 = vpop.f32.mrb[55].mxu1  ;;  %v6683_v53 = vld [vmem:[#allocation30_spill] sm:$0xff]  ;;  %v6684_v43 = vld [vmem:[#allocation31_spill] sm:$0xff] }
 0x4c6   : > { %v4158_v18 = vadd.f32 %v6339_v29, %v4094_v50  ;;  %v4095_v10 = vmul.f32 %v4936_v58, %v3966_v9  ;;  %v3996_v58 = vpop.permute.xlu1 %3995 }
 0x4c8   : > { %v4229_v54 = vadd.f32 %v6257_v60, %v4158_v18  ;;  %v4159_v23 = vadd.f32 %v6344_v22, %v4095_v10 }
 0x4c9   : > { %v2992_v20 = vpop.f32.mrb[56].mxu1 }
 0x4ca   : > { %4293 = vst [vmem:[%s6269_s14 + $0x170] sm:$0xff] %v4229_v54  ;;  %v4230_v13 = vadd.f32 %v6257_v60, %v4159_v23  ;;  %v4937_v52 = vadd.f32 %v2992_v20, %v6679_v6  ;;  %v2994_v59 = vpop.f32.mrb[57].mxu1  ;;  %v6685_v23 = vld [vmem:[#allocation32_spill] sm:$0xff]  ;;  %v4001_v6 = vpop.permute.xlu0 %4000 }
 0x4cb   : > { %v2995_v51 = vpop.f32.mrb[58].mxu1 }
 0x4cc   : > { %4294 = vst [vmem:[%s6269_s14 + $0x178] sm:$0xff] %v4230_v13  ;;  %v4938_v5 = vadd.f32 %v2995_v51, %v6680_v1  ;;  %v2997_v29 = vpop.f32.mrb[59].mxu1  ;;  %v4096_v15 = vmul.f32 %v4937_v52, %v3971_v7  ;;  %v6686_v7 = vld [vmem:[#allocation33_spill] sm:$0xff]  ;;  %v4006_v1 = vpop.permute.xlu1 %4005 }
 0x4ce   : > { %v4160_v40 = vadd.f32 %v4096_v15, %v6365_v57  ;;  %v4097_v22 = vmul.f32 %v4938_v5, %v3976_v19 }
 0x4d0   : > { %v4231_v44 = vadd.f32 %v6257_v60, %v4160_v40  ;;  %v4161_v41 = vadd.f32 %v4097_v22, %v6370_v56  ;;  %v6687_v22 = vld [vmem:[#allocation34_spill] sm:$0xff] }
 0x4d1   : > { %v3000_v48 = vpop.f32.mrb[60].mxu1 }
 0x4d2   : > { %4295 = vst [vmem:[%s6269_s14 + $0x180] sm:$0xff] %v4231_v44  ;;  %v4232_v32 = vadd.f32 %v6257_v60, %v4161_v41  ;;  %v4939_v4 = vadd.f32 %v3000_v48, %v6681_v21  ;;  %v3002_v25 = vpop.f32.mrb[61].mxu1  ;;  %v4011_v48 = vpop.permute.xlu0 %4010  ;;  %v6688_v21 = vld [vmem:[#allocation35_spill] sm:$0xff] }
 0x4d3   : > { %v3003_v45 = vpop.f32.mrb[62].mxu1 }
 0x4d4   : > { %4296 = vst [vmem:[%s6269_s14 + $0x188] sm:$0xff] %v4232_v32  ;;  %v4098_v42 = vmul.f32 %v4939_v4, %v3981_v63  ;;  %v4940_v57 = vadd.f32 %v3003_v45, %v6682_v62  ;;  %v3005_v2 = vpop.f32.mrb[63].mxu1  ;;  %v4016_v63 = vpop.permute.xlu1 %4015 }
 0x4d6   : > { %v4162_v33 = vadd.f32 %v6363_v31, %v4098_v42  ;;  %v4099_v56 = vmul.f32 %v4940_v57, %v3986_v36  ;;  %v6689_v36 = vld [vmem:[#allocation36_spill] sm:$0xff] }
 0x4d8   : > { %v4233_v0 = vadd.f32 %v6257_v60, %v4162_v33  ;;  %v4163_v14 = vadd.f32 %v6368_v17, %v4099_v56 }
 0x4d9   : > { %v3008_v46 = vpop.f32.mrb[64].mxu1 }
 0x4da   : > { %4297 = vst [vmem:[%s6269_s14 + $0x190] sm:$0xff] %v4233_v0  ;;  %v4234_v12 = vadd.f32 %v6257_v60, %v4163_v14  ;;  %v4941_v61 = vadd.f32 %v3008_v46, %v6683_v53  ;;  %v3010_v8 = vpop.f32.mrb[65].mxu1  ;;  %v4021_v0 = vpop.permute.xlu0 %4020 }
 0x4db   : > { %v3011_v34 = vpop.f32.mrb[66].mxu1 }
 0x4dc   : > { %4298 = vst [vmem:[%s6269_s14 + $0x198] sm:$0xff] %v4234_v12  ;;  %v4942_v50 = vadd.f32 %v3011_v34, %v6684_v43  ;;  %v3013_v31 = vpop.f32.mrb[67].mxu1  ;;  %v4100_v28 = vmul.f32 %v4941_v61, %v3991_v39  ;;  %v6690_v12 = vld [vmem:[#allocation37_spill] sm:$0xff]  ;;  %v4026_v61 = vpop.permute.xlu1 %4025 }
 0x4dd   : > { %v6691_v31 = vld [vmem:[#allocation38_spill] sm:$0xff] }
 0x4de   : > { %v4164_v47 = vadd.f32 %v4100_v28, %v6389_v26  ;;  %v4101_v17 = vmul.f32 %v4942_v50, %v3996_v58 }
 0x4e0   : > { %v4235_v9 = vadd.f32 %v6257_v60, %v4164_v47  ;;  %v4165_v18 = vadd.f32 %v4101_v17, %v6394_v49  ;;  %v4031_v47 = vpop.permute.xlu0 %4030 }
 0x4e1   : > { %v3016_v10 = vpop.f32.mrb[68].mxu1 }
 0x4e2   : > { %4299 = vst [vmem:[%s6269_s14 + $0x1a0] sm:$0xff] %v4235_v9  ;;  %v4236_v54 = vadd.f32 %v6257_v60, %v4165_v18  ;;  %v4943_v20 = vadd.f32 %v3016_v10, %v6685_v23  ;;  %v3018_v13 = vpop.f32.mrb[69].mxu1  ;;  %v6692_v9 = vld [vmem:[#allocation39_spill] sm:$0xff] }
 0x4e3   : > { %v3019_v52 = vpop.f32.mrb[70].mxu1 }
 0x4e4   : > { %4300 = vst [vmem:[%s6269_s14 + $0x1a8] sm:$0xff] %v4236_v54  ;;  %v4102_v59 = vmul.f32 %v4943_v20, %v4001_v6  ;;  %v4944_v26 = vadd.f32 %v3019_v52, %v6686_v7  ;;  %v3021_v51 = vpop.f32.mrb[71].mxu1  ;;  %v4036_v54 = vpop.permute.xlu1 %4035 }
 0x4e5   : > { %v4041_v51 = vpop.permute.xlu0 %4040 }
 0x4e6   : > { %v4166_v5 = vadd.f32 %v6387_v37, %v4102_v59  ;;  %v4103_v49 = vmul.f32 %v4944_v26, %v4006_v1  ;;  %v6693_v59 = vld [vmem:[#allocation40_spill] sm:$0xff] }
 0x4e8   : > { %v4237_v29 = vadd.f32 %v6257_v60, %v4166_v5  ;;  %v4167_v15 = vadd.f32 %v6392_v38, %v4103_v49  ;;  %v6694_v49 = vld [vmem:[#allocation41_spill] sm:$0xff] }
 0x4e9   : > { %v3024_v19 = vpop.f32.mrb[72].mxu1 }
 0x4ea   : > { %4301 = vst [vmem:[%s6269_s14 + $0x1b0] sm:$0xff] %v4237_v29  ;;  %v4238_v40 = vadd.f32 %v6257_v60, %v4167_v15  ;;  %v4945_v44 = vadd.f32 %v3024_v19, %v6687_v22  ;;  %v3026_v41 = vpop.f32.mrb[73].mxu1 }
 0x4eb   : > { %v3027_v32 = vpop.f32.mrb[74].mxu1 }
 0x4ec   : > { %4302 = vst [vmem:[%s6269_s14 + $0x1b8] sm:$0xff] %v4238_v40  ;;  %v4946_v4 = vadd.f32 %v3027_v32, %v6688_v21  ;;  %v3029_v37 = vpop.f32.mrb[75].mxu1  ;;  %v4104_v25 = vmul.f32 %v4945_v44, %v4011_v48 }
 0x4ee   : > { %v4168_v45 = vadd.f32 %v4104_v25, %v6413_v3  ;;  %v4105_v38 = vmul.f32 %v4946_v4, %v4016_v63 }
 0x4f0   : > { %v4239_v42 = vadd.f32 %v6257_v60, %v4168_v45  ;;  %v4169_v62 = vadd.f32 %v4105_v38, %v6418_v35 }
 0x4f1   : > { %v3032_v57 = vpop.f32.mrb[76].mxu1 }
 0x4f2   : > { %4303 = vst [vmem:[%s6269_s14 + $0x1c0] sm:$0xff] %v4239_v42  ;;  %v4240_v2 = vadd.f32 %v6257_v60, %v4169_v62  ;;  %v4947_v33 = vadd.f32 %v3032_v57, %v6689_v36  ;;  %v3034_v56 = vpop.f32.mrb[77].mxu1  ;;  %v5332_v60 = vld [vmem:[%s6590_s5] ss:$0 sm:$0xff] }
 0x4f3   : > { %v3035_v14 = vpop.f32.mrb[78].mxu1 }
 0x4f4   : > { %4304 = vst [vmem:[%s6269_s14 + $0x1c8] sm:$0xff] %v4240_v2  ;;  %v4106_v46 = vmul.f32 %v4947_v33, %v4021_v0  ;;  %v4948_v3 = vadd.f32 %v3035_v14, %v6690_v12  ;;  %v3037_v53 = vpop.f32.mrb[79].mxu1 }
 0x4f6   : > { %v4170_v8 = vadd.f32 %v6411_v30, %v4106_v46  ;;  %v4107_v35 = vmul.f32 %v4948_v3, %v4026_v61 }
 0x4f8   : > { %v4241_v39 = vadd.f32 %v5332_v60, %v4170_v8  ;;  %v4171_v34 = vadd.f32 %v6416_v11, %v4107_v35 }
 0x4f9   : > { %v3040_v43 = vpop.f32.mrb[80].mxu1 }
 0x4fa   : > { %4305 = vst [vmem:[%s6269_s14 + $0x1d0] sm:$0xff] %v4241_v39  ;;  %v4242_v50 = vadd.f32 %v5332_v60, %v4171_v34  ;;  %v4949_v28 = vadd.f32 %v3040_v43, %v6691_v31  ;;  %v3042_v58 = vpop.f32.mrb[81].mxu1 }
 0x4fb   : > { %v3043_v17 = vpop.f32.mrb[82].mxu1 }
 0x4fc   : > { %4306 = vst [vmem:[%s6269_s14 + $0x1d8] sm:$0xff] %v4242_v50  ;;  %v4950_v30 = vadd.f32 %v3043_v17, %v6692_v9  ;;  %v3045_v18 = vpop.f32.mrb[83].mxu1  ;;  %v4108_v10 = vmul.f32 %v4949_v28, %v4031_v47 }
 0x4fe   : > { %v4172_v23 = vadd.f32 %v4108_v10, %v6437_v24  ;;  %v4109_v20 = vmul.f32 %v4950_v30, %v4036_v54  ;;  %v4046_v24 = vpop.permute.xlu1 %4045 }
 0x500   : > { %v4243_v11 = vadd.f32 %v5332_v60, %v4172_v23  ;;  %v4173_v13 = vadd.f32 %v4109_v20, %v6442_v27 }
 0x501   : > { %v3048_v6 = vpop.f32.mrb[84].mxu1 }
 0x502   : > { %4307 = vst [vmem:[%s6269_s14 + $0x1e0] sm:$0xff] %v4243_v11  ;;  %v4244_v52 = vadd.f32 %v5332_v60, %v4173_v13  ;;  %v4951_v7 = vadd.f32 %v3048_v6, %v6693_v59  ;;  %v3050_v26 = vpop.f32.mrb[85].mxu1 }
 0x503   : > { %v3051_v1 = vpop.f32.mrb[86].mxu1 }
 0x504   : > { %4308 = vst [vmem:[%s6269_s14 + $0x1e8] sm:$0xff] %v4244_v52  ;;  %v4110_v5 = vmul.f32 %v4951_v7, %v4041_v51  ;;  %v4952_v29 = vadd.f32 %v3051_v1, %v6694_v49  ;;  %v3053_v15 = vpop.f32.mrb[87].mxu1 }
 0x506   : > { %v4174_v19 = vadd.f32 %v6435_v55, %v4110_v5  ;;  %v4111_v40 = vmul.f32 %v4952_v29, %v4046_v24 }
 0x508   : > { %v4245_v27 = vadd.f32 %v5332_v60, %v4174_v19  ;;  %v4175_v22 = vadd.f32 %v6440_v16, %v4111_v40 }
 0x50a   : > { %4309 = vst [vmem:[%s6269_s14 + $0x1f0] sm:$0xff] %v4245_v27  ;;  %v4246_v44 = vadd.f32 %v5332_v60, %v4175_v22 }
 0x50c   : > { %4310 = vst [vmem:[%s6269_s14 + $0x1f8] sm:$0xff] %v4246_v44 }
 0x50d PF: > { %s17_s24 = sadd.s32 1, %s5339_s24  }
 0x50e   : > { %p14_p5 = scmp.ge.s32.totalorder %s17_s24, 4  }
 0x510   :  { %16 = sbr.rel (!%p14_p5) target bundleno = 1 (0x1), region = 84 }

</bundles_post_ra>
